<compile_context>
chip_gen: v7x
topology: tpu7x:2x2x1
jax: 0.10.0
libtpu: 0.0.40
codegen_flags: <defaults>
</compile_context>

<pallas_src>
import numpy as np

import jax
import jax.numpy as jnp
from jax import lax
from jax.experimental import pallas as pl
from jax.experimental.pallas import tpu as pltpu

# ---------------------------------------------------------------------------
# Static model / layout constants (28x28 input is implied by x.view(-1, 320))
# ---------------------------------------------------------------------------
NB = 4              # batch
HW = 28             # input spatial size
K = 5               # conv kernel size
C0P = 8             # sublane-padded conv1 input rows (5 kh-shifted + 3 zero)
C1, C1P = 10, 16    # conv1 out channels (real / padded to one bf16 vreg row)
C2, C2P = 20, 24    # conv2 out channels (real / sublane-padded)
F1, F2 = 50, 10     # dense sizes
EPS = 1e-5


def _ru(x, m):
    return ((x + m - 1) // m) * m


IMG = HW * HW                       # 784 base-grid lanes per image
L_VAL = NB * IMG                    # 3136 real flattened input lanes
L_M1 = NB * IMG                     # 3136 pool1 slab (one 784-lane block/img)
L_Y1 = L_M1 + HW + 1                # 3165 conv1 slab (pool1 reads +29)
L_X = _ru(L_Y1 + (K - 1), 128)      # 3200 padded input slab lanes
XPAD = L_X + (K - 1) * HW           # 3312 wrapper zero-padded flat length

PG = (HW - (K - 1)) // 2            # 12  pooled grid side after conv1+pool1
CIMG = PG * PG                      # 144 compact lanes per image
S2MAX = (K - 1) * PG + (K - 1)      # 52  max conv2 lane shift (compact grid)
LC1X = _ru(NB * CIMG + S2MAX, 128)  # 640 compact pooled slab
LQ2 = LC1X - S2MAX                  # 588 conv2 + BN2d slab
LM2 = LQ2 - (PG + 1)                # 575 pool2 slab
CONV2G = PG - (K - 1)               # 8   conv2 output grid side
POOL2G = CONV2G // 2                # 4   pool2 output grid side
NSEL = POOL2G * POOL2G * NB         # 64  selected (spatial, image) columns


# ---------------------------------------------------------------------------
# Fused kernel: conv1 -> pool+relu -> compact -> conv2 -> BN2d -> pool+relu ->
#               dense1 -> BN1d -> relu -> dense2 -> relu
# ---------------------------------------------------------------------------
def _compliantnet_kernel(x_ref, w1_ref, b1_ref, selc_ref, w2_ref, g2_ref,
                         be2_ref, mask2_ref, sel_ref, wd1_ref, bd1_ref,
                         g1_ref, be1_ref, wd2_ref, bd2_ref,
                         o_ref, y1_ref, m1_ref, m1c_ref, im2_ref, q2_ref):
    f32, bf16 = jnp.float32, jnp.bfloat16

    # ---- conv1 as ONE matmul: kh shifts live on x's sublanes (wrapper), the
    # ---- kw shifts are stacked into the contraction (K = 5*C0P = 40).
    im1 = jnp.concatenate([x_ref[:, kw:kw + L_Y1] for kw in range(K)], axis=0)
    y1_ref[...] = (jnp.dot(w1_ref[...], im1, preferred_element_type=f32)
                   + b1_ref[...])

    # ---- 2x2 maxpool + relu (4 lane-shifted maxes) on the sparse 28-grid ---
    m1 = jnp.maximum(
        jnp.maximum(y1_ref[:, 0:L_M1], y1_ref[:, 1:1 + L_M1]),
        jnp.maximum(y1_ref[:, HW:HW + L_M1], y1_ref[:, HW + 1:HW + 1 + L_M1]))
    m1_ref[...] = jnp.maximum(m1, 0.0).astype(bf16)

    # ---- compact to a dense 12x12-per-image grid: one exact bf16 selection
    # ---- matmul per image (linear in batch), zeros in the shift tail -------
    m1c_ref[...] = jnp.zeros((C1P, LC1X), bf16)
    for n in range(NB):
        piece = jnp.dot(m1_ref[:, n * IMG:(n + 1) * IMG], selc_ref[...],
                        preferred_element_type=f32)
        m1c_ref[:, n * CIMG:(n + 1) * CIMG] = piece.astype(bf16)

    # ---- conv2 (bias=False) as ONE matmul: all 25 offsets folded into the
    # ---- contraction (K = 25*C1P = 400) via 25 aligned 16-row im2col stores -
    for t in range(K * K):
        d = (t // K) * PG + (t % K)
        im2_ref[t * C1P:(t + 1) * C1P, :] = m1c_ref[:, d:d + LQ2]
    acc2 = jnp.dot(w2_ref[...], im2_ref[...], preferred_element_type=f32)

    # ---- BatchNorm2d: training-mode stats over the NB*8*8 valid positions --
    mask = mask2_ref[...]
    inv_cnt = 1.0 / float(NB * CONV2G * CONV2G)
    mu = jnp.sum(acc2 * mask, axis=1, keepdims=True) * inv_cnt
    xc = acc2 - mu
    var = jnp.sum(xc * xc * mask, axis=1, keepdims=True) * inv_cnt
    q2_ref[...] = xc * lax.rsqrt(var + EPS) * g2_ref[...] + be2_ref[...]

    # ---- 2x2 maxpool + relu on the compact 12-grid -------------------------
    m2 = jnp.maximum(
        jnp.maximum(q2_ref[:, 0:LM2], q2_ref[:, 1:1 + LM2]),
        jnp.maximum(q2_ref[:, PG:PG + LM2], q2_ref[:, PG + 1:PG + 1 + LM2]))
    m2 = jnp.maximum(m2, 0.0)                                # (C2P, LM2) f32

    # ---- gather the NB*4*4 pooled pixels (exact bf16 selection matmul) -----
    g = jnp.dot(m2.astype(bf16), sel_ref[...], preferred_element_type=f32)
    gb = g.astype(bf16)                                      # (C2P, NSEL)

    # ---- dense1 as ONE matmul: stack the 16 spatial blocks onto sublanes ---
    gstack = jnp.concatenate(
        [gb[:, s * NB:(s + 1) * NB] for s in range(POOL2G * POOL2G)], axis=0)
    h = jnp.dot(wd1_ref[...], gstack, preferred_element_type=f32) + bd1_ref[...]

    # ---- BatchNorm1d over the batch (lanes) + relu --------------------------
    mu1 = jnp.sum(h, axis=1, keepdims=True) * (1.0 / NB)
    hc = h - mu1
    v1 = jnp.sum(hc * hc, axis=1, keepdims=True) * (1.0 / NB)
    h = jnp.maximum(hc * lax.rsqrt(v1 + EPS) * g1_ref[...] + be1_ref[...], 0.0)

    # ---- dense2 + relu ------------------------------------------------------
    o = (jnp.dot(wd2_ref[...], h.astype(bf16), preferred_element_type=f32)
         + bd2_ref[...])
    o_ref[...] = jnp.maximum(o, 0.0)                         # (F2, NB)


_NET_CALL = pl.pallas_call(
    _compliantnet_kernel,
    out_shape=jax.ShapeDtypeStruct((F2, NB), jnp.float32),
    scratch_shapes=[
        pltpu.VMEM((C1P, L_Y1), jnp.float32),          # conv1(+bias) slab
        pltpu.VMEM((C1P, L_M1), jnp.bfloat16),         # pool1+relu slab
        pltpu.VMEM((C1P, LC1X), jnp.bfloat16),         # compact pooled slab
        pltpu.VMEM((K * K * C1P, LQ2), jnp.bfloat16),  # conv2 im2col slab
        pltpu.VMEM((C2P, LQ2), jnp.float32),           # BN2d(conv2) slab
    ],
    cost_estimate=pl.CostEstimate(flops=32_000_000, transcendentals=100,
                                  bytes_accessed=600_000),
)


# ---------------------------------------------------------------------------
# Parameter packing (host-side, once): fold layouts / flatten order / padding
# ---------------------------------------------------------------------------
def pack_params(raw):
    p = {}
    w1 = np.asarray(raw["w1"], np.float32)       # (10, 1, 5, 5)
    w2 = np.asarray(raw["w2"], np.float32)       # (20, 10, 5, 5)
    wd1 = np.asarray(raw["wd1"], np.float32)     # (50, 320)

    # conv1 weight (C1P, K*C0P): column kw*C0P + kh  <- w1[c, 0, kh, kw]
    w1p = np.zeros((C1P, K * C0P), np.float32)
    for kh in range(K):
        for kw in range(K):
            w1p[:C1, kw * C0P + kh] = w1[:, 0, kh, kw]
    p["w1"] = jnp.asarray(w1p, jnp.bfloat16)
    b1p = np.zeros((C1P, 1), np.float32)
    b1p[:C1, 0] = np.asarray(raw["b1"], np.float32)
    p["b1"] = jnp.asarray(b1p)

    # per-image pool1 compaction selector: sparse lane 56u+2v -> compact 12u+v
    selc = np.zeros((IMG, CIMG), np.float32)
    for u in range(PG):
        for v in range(PG):
            selc[(2 * u) * HW + 2 * v, u * PG + v] = 1.0
    p["selc"] = jnp.asarray(selc, jnp.bfloat16)

    # conv2 weight (bias=False) (C2P, 25*C1P): column t*C1P + cin
    w2p = np.zeros((C2P, K * K * C1P), np.float32)
    for t in range(K * K):
        w2p[:C2, t * C1P:t * C1P + C1] = w2[:, :, t // K, t % K]
    p["w2"] = jnp.asarray(w2p, jnp.bfloat16)

    g2p = np.ones((C2P, 1), np.float32)
    g2p[:C2, 0] = np.asarray(raw["g2"], np.float32)
    be2p = np.zeros((C2P, 1), np.float32)
    be2p[:C2, 0] = np.asarray(raw["be2"], np.float32)
    p["g2"], p["be2"] = jnp.asarray(g2p), jnp.asarray(be2p)

    # BN2d validity mask on the compact conv2 slab
    mask2 = np.zeros((1, LQ2), np.float32)
    for n in range(NB):
        for u in range(CONV2G):
            for v in range(CONV2G):
                mask2[0, n * CIMG + u * PG + v] = 1.0
    p["mask2"] = jnp.asarray(mask2)

    # pool2 output selector: columns ordered (spatial s = a*4+b, image n)
    sel = np.zeros((LM2, NSEL), np.float32)
    for n in range(NB):
        for a in range(POOL2G):
            for b in range(POOL2G):
                sel[n * CIMG + (2 * a) * PG + 2 * b,
                    (a * POOL2G + b) * NB + n] = 1.0
    p["sel"] = jnp.asarray(sel, jnp.bfloat16)

    # dense1: PyTorch view(-1, 320) = (c, h, w) order folded into the weight,
    # rows of the stacked operand are spatial-major: row s*C2P + c
    wd1p = np.zeros((F1, POOL2G * POOL2G * C2P), np.float32)
    for c in range(C2):
        for s in range(POOL2G * POOL2G):
            wd1p[:, s * C2P + c] = wd1[:, c * (POOL2G * POOL2G) + s]
    p["wd1"] = jnp.asarray(wd1p, jnp.bfloat16)
    p["bd1"] = jnp.asarray(np.asarray(raw["bd1"], np.float32).reshape(F1, 1))
    p["g1"] = jnp.asarray(np.asarray(raw["g1"], np.float32).reshape(F1, 1))
    p["be1"] = jnp.asarray(np.asarray(raw["be1"], np.float32).reshape(F1, 1))

    p["wd2"] = jnp.asarray(np.asarray(raw["wd2"], np.float32), jnp.bfloat16)
    p["bd2"] = jnp.asarray(np.asarray(raw["bd2"], np.float32).reshape(F2, 1))
    return p


def init_raw_params(key):
    ks = jax.random.split(key, 11)
    n = jax.random.normal
    return {
        "w1": 0.10 * n(ks[0], (C1, 1, K, K), jnp.float32),
        "b1": 0.10 * n(ks[1], (C1,), jnp.float32),
        "w2": 0.05 * n(ks[2], (C2, C1, K, K), jnp.float32),   # bias=False
        "g2": 1.0 + 0.10 * n(ks[3], (C2,), jnp.float32),
        "be2": 0.10 * n(ks[4], (C2,), jnp.float32),
        "wd1": 0.05 * n(ks[5], (F1, C2 * POOL2G * POOL2G), jnp.float32),
        "bd1": 0.10 * n(ks[6], (F1,), jnp.float32),
        "g1": 1.0 + 0.10 * n(ks[7], (F1,), jnp.float32),
        "be1": 0.10 * n(ks[8], (F1,), jnp.float32),
        "wd2": 0.10 * n(ks[9], (F2, F1), jnp.float32),
        "bd2": 0.10 * n(ks[10], (F2,), jnp.float32),
    }


# ---------------------------------------------------------------------------
# Forward wrapper: only layout adaptation at the NCHW boundary, 1 pallas_call
# ---------------------------------------------------------------------------
@jax.jit
def forward(x_nchw, params):
    assert x_nchw.shape == (NB, 1, HW, HW)
    xflat = x_nchw.reshape(-1).astype(jnp.float32)           # (NB*784,)
    xpad = jnp.pad(xflat, (0, XPAD - L_VAL))
    # rows 0..4 = the flattened sequence pre-shifted by kh*28 lanes
    rows = jnp.stack([xpad[r * HW:r * HW + L_X] for r in range(K)], axis=0)
    x_slab = jnp.pad(rows, ((0, C0P - K), (0, 0))).astype(jnp.bfloat16)
    out_t = _NET_CALL(
        x_slab, params["w1"], params["b1"], params["selc"], params["w2"],
        params["g2"], params["be2"], params["mask2"], params["sel"],
        params["wd1"], params["bd1"], params["g1"], params["be1"],
        params["wd2"], params["bd2"])
    return out_t.T                                           # (NB, 10)


# ---------------------------------------------------------------------------
# Pure-JAX reference with matched bf16 cast points (training-mode BN)
# ---------------------------------------------------------------------------
def _maxpool2(x):
    n, c, h, w = x.shape
    return x.reshape(n, c, h // 2, 2, w // 2, 2).max(axis=(3, 5))


def reference_forward(x, raw):
    bf16, f32 = jnp.bfloat16, jnp.float32
    dn = ("NCHW", "OIHW", "NCHW")
    y = lax.conv_general_dilated(x.astype(bf16), raw["w1"].astype(bf16),
                                 (1, 1), "VALID", dimension_numbers=dn,
                                 preferred_element_type=f32)
    y = y + raw["b1"].reshape(1, C1, 1, 1)
    m1 = jnp.maximum(_maxpool2(y), 0.0).astype(bf16)
    q = lax.conv_general_dilated(m1, raw["w2"].astype(bf16), (1, 1), "VALID",
                                 dimension_numbers=dn,
                                 preferred_element_type=f32)
    mu = jnp.mean(q, axis=(0, 2, 3), keepdims=True)
    var = jnp.mean((q - mu) ** 2, axis=(0, 2, 3), keepdims=True)
    q = ((q - mu) * lax.rsqrt(var + EPS) * raw["g2"].reshape(1, C2, 1, 1)
         + raw["be2"].reshape(1, C2, 1, 1))
    m2 = jnp.maximum(_maxpool2(q), 0.0)
    flat = m2.reshape(NB, C2 * POOL2G * POOL2G).astype(bf16)
    h = (jnp.dot(flat, raw["wd1"].astype(bf16).T, preferred_element_type=f32)
         + raw["bd1"])
    mu1 = jnp.mean(h, axis=0, keepdims=True)
    v1 = jnp.mean((h - mu1) ** 2, axis=0, keepdims=True)
    h = jnp.maximum((h - mu1) * lax.rsqrt(v1 + EPS) * raw["g1"] + raw["be1"],
                    0.0)
    o = (jnp.dot(h.astype(bf16), raw["wd2"].astype(bf16).T,
                 preferred_element_type=f32) + raw["bd2"])
    return jnp.maximum(o, 0.0)


if __name__ == "__main__":
    root = jax.random.PRNGKey(0)
    k_x, k_p = jax.random.split(root)
    x = jax.random.normal(k_x, (NB, 1, HW, HW), jnp.float32)
    raw = init_raw_params(k_p)
    params = pack_params(raw)

    out = jax.block_until_ready(forward(x, params))
    assert out.shape == (NB, F2) and out.dtype == jnp.float32
    assert bool(jnp.all(jnp.isfinite(out)))

    ref = jax.block_until_ready(jax.jit(reference_forward)(x, raw))
    np.testing.assert_allclose(np.asarray(out), np.asarray(ref),
                               rtol=3e-2, atol=3e-2)
    print("KERNEL_OK")
</pallas_src>

<mosaic_0001>
module attributes {stable_mosaic.version = 11 : i64} {
  func.func @_compliantnet_kernel(%arg0: memref<8x3200xbf16, #tpu.memory_space<vmem>>, %arg1: memref<16x40xbf16, #tpu.memory_space<vmem>>, %arg2: memref<16x1xf32, #tpu.memory_space<vmem>>, %arg3: memref<784x144xbf16, #tpu.memory_space<vmem>>, %arg4: memref<24x400xbf16, #tpu.memory_space<vmem>>, %arg5: memref<24x1xf32, #tpu.memory_space<vmem>>, %arg6: memref<24x1xf32, #tpu.memory_space<vmem>>, %arg7: memref<1x588xf32, #tpu.memory_space<vmem>>, %arg8: memref<575x64xbf16, #tpu.memory_space<vmem>>, %arg9: memref<50x384xbf16, #tpu.memory_space<vmem>>, %arg10: memref<50x1xf32, #tpu.memory_space<vmem>>, %arg11: memref<50x1xf32, #tpu.memory_space<vmem>>, %arg12: memref<50x1xf32, #tpu.memory_space<vmem>>, %arg13: memref<10x50xbf16, #tpu.memory_space<vmem>>, %arg14: memref<10x1xf32, #tpu.memory_space<vmem>>, %arg15: memref<10x4xf32, #tpu.memory_space<vmem>>, %arg16: memref<16x3165xf32, #tpu.memory_space<vmem>>, %arg17: memref<16x3136xbf16, #tpu.memory_space<vmem>>, %arg18: memref<16x640xbf16, #tpu.memory_space<vmem>>, %arg19: memref<400x588xbf16, #tpu.memory_space<vmem>>, %arg20: memref<24x588xf32, #tpu.memory_space<vmem>>) attributes {dimension_semantics = [], scalar_prefetch = 0 : i64, scratch_operands = 5 : i64, tpu.core_type = #tpu.core_type<tc>} {
    %c0 = arith.constant 0 : index
    %c0_0 = arith.constant 0 : index
    %0 = vector.load %arg0[%c0, %c0_0] : memref<8x3200xbf16, #tpu.memory_space<vmem>>, vector<8x3165xbf16>
    %c0_1 = arith.constant 0 : index
    %c1 = arith.constant 1 : index
    %1 = vector.load %arg0[%c0_1, %c1] : memref<8x3200xbf16, #tpu.memory_space<vmem>>, vector<8x3165xbf16>
    %c0_2 = arith.constant 0 : index
    %c2 = arith.constant 2 : index
    %2 = vector.load %arg0[%c0_2, %c2] : memref<8x3200xbf16, #tpu.memory_space<vmem>>, vector<8x3165xbf16>
    %c0_3 = arith.constant 0 : index
    %c3 = arith.constant 3 : index
    %3 = vector.load %arg0[%c0_3, %c3] : memref<8x3200xbf16, #tpu.memory_space<vmem>>, vector<8x3165xbf16>
    %c0_4 = arith.constant 0 : index
    %c4 = arith.constant 4 : index
    %4 = vector.load %arg0[%c0_4, %c4] : memref<8x3200xbf16, #tpu.memory_space<vmem>>, vector<8x3165xbf16>
    %5 = tpu.concatenate %0, %1, %2, %3, %4 in 0 : vector<8x3165xbf16>, vector<8x3165xbf16>, vector<8x3165xbf16>, vector<8x3165xbf16>, vector<8x3165xbf16> -> vector<40x3165xbf16>
    %c0_5 = arith.constant 0 : index
    %c0_6 = arith.constant 0 : index
    %6 = vector.load %arg1[%c0_5, %c0_6] : memref<16x40xbf16, #tpu.memory_space<vmem>>, vector<16x40xbf16>
    %cst = arith.constant dense<0.000000e+00> : vector<16x3165xf32>
    %7 = tpu.matmul %6, %5, %cst {dimension_numbers = #tpu.dot_dimension_numbers<[1], [0], [0], [1], [0, 0, 1, 1], [], []>} : vector<16x40xbf16>, vector<40x3165xbf16>, vector<16x3165xf32> -> vector<16x3165xf32>
    %c0_7 = arith.constant 0 : index
    %c0_8 = arith.constant 0 : index
    %8 = vector.load %arg2[%c0_7, %c0_8] : memref<16x1xf32, #tpu.memory_space<vmem>>, vector<16x1xf32>
    %9 = vector.broadcast %8 : vector<16x1xf32> to vector<16x3165xf32>
    %10 = arith.addf %7, %9 : vector<16x3165xf32>
    %c0_9 = arith.constant 0 : index
    %c0_10 = arith.constant 0 : index
    %11 = vector.load %arg16[%c0_9, %c0_10] : memref<16x3165xf32, #tpu.memory_space<vmem>>, vector<16x3165xf32>
    tpu.vector_store %arg16[%c0_9, %c0_10], %10 {strides = array<i32>} : memref<16x3165xf32, #tpu.memory_space<vmem>>, vector<16x3165xf32>,
    %c0_11 = arith.constant 0 : index
    %c0_12 = arith.constant 0 : index
    %12 = vector.load %arg16[%c0_11, %c0_12] : memref<16x3165xf32, #tpu.memory_space<vmem>>, vector<16x3136xf32>
    %c0_13 = arith.constant 0 : index
    %c1_14 = arith.constant 1 : index
    %13 = vector.load %arg16[%c0_13, %c1_14] : memref<16x3165xf32, #tpu.memory_space<vmem>>, vector<16x3136xf32>
    %14 = arith.maximumf %12, %13 : vector<16x3136xf32>
    %c0_15 = arith.constant 0 : index
    %c28 = arith.constant 28 : index
    %15 = vector.load %arg16[%c0_15, %c28] : memref<16x3165xf32, #tpu.memory_space<vmem>>, vector<16x3136xf32>
    %c0_16 = arith.constant 0 : index
    %c29 = arith.constant 29 : index
    %16 = vector.load %arg16[%c0_16, %c29] : memref<16x3165xf32, #tpu.memory_space<vmem>>, vector<16x3136xf32>
    %17 = arith.maximumf %15, %16 : vector<16x3136xf32>
    %18 = arith.maximumf %14, %17 : vector<16x3136xf32>
    %cst_17 = arith.constant 0.000000e+00 : f32
    %19 = vector.broadcast %cst_17 : f32 to vector<16x3136xf32>
    %20 = arith.maximumf %18, %19 : vector<16x3136xf32>
    %21 = arith.truncf %20 : vector<16x3136xf32> to vector<16x3136xbf16>
    %c0_18 = arith.constant 0 : index
    %c0_19 = arith.constant 0 : index
    %22 = vector.load %arg17[%c0_18, %c0_19] : memref<16x3136xbf16, #tpu.memory_space<vmem>>, vector<16x3136xbf16>
    tpu.vector_store %arg17[%c0_18, %c0_19], %21 {strides = array<i32>} : memref<16x3136xbf16, #tpu.memory_space<vmem>>, vector<16x3136xbf16>,
    %cst_20 = arith.constant 0.000000e+00 : bf16
    %23 = vector.broadcast %cst_20 : bf16 to vector<16x640xbf16>
    %c0_21 = arith.constant 0 : index
    %c0_22 = arith.constant 0 : index
    %24 = vector.load %arg18[%c0_21, %c0_22] : memref<16x640xbf16, #tpu.memory_space<vmem>>, vector<16x640xbf16>
    tpu.vector_store %arg18[%c0_21, %c0_22], %23 {strides = array<i32>} : memref<16x640xbf16, #tpu.memory_space<vmem>>, vector<16x640xbf16>,
    %c0_23 = arith.constant 0 : index
    %c0_24 = arith.constant 0 : index
    %25 = vector.load %arg17[%c0_23, %c0_24] : memref<16x3136xbf16, #tpu.memory_space<vmem>>, vector<16x784xbf16>
    %c0_25 = arith.constant 0 : index
    %c0_26 = arith.constant 0 : index
    %26 = vector.load %arg3[%c0_25, %c0_26] : memref<784x144xbf16, #tpu.memory_space<vmem>>, vector<784x144xbf16>
    %cst_27 = arith.constant dense<0.000000e+00> : vector<16x144xf32>
    %27 = tpu.matmul %25, %26, %cst_27 {dimension_numbers = #tpu.dot_dimension_numbers<[1], [0], [0], [1], [0, 0, 1, 1], [], []>} : vector<16x784xbf16>, vector<784x144xbf16>, vector<16x144xf32> -> vector<16x144xf32>
    %28 = arith.truncf %27 : vector<16x144xf32> to vector<16x144xbf16>
    %c0_28 = arith.constant 0 : index
    %c0_29 = arith.constant 0 : index
    %29 = vector.load %arg18[%c0_28, %c0_29] : memref<16x640xbf16, #tpu.memory_space<vmem>>, vector<16x144xbf16>
    tpu.vector_store %arg18[%c0_28, %c0_29], %28 {strides = array<i32>} : memref<16x640xbf16, #tpu.memory_space<vmem>>, vector<16x144xbf16>,
    %c0_30 = arith.constant 0 : index
    %c784 = arith.constant 784 : index
    %30 = vector.load %arg17[%c0_30, %c784] : memref<16x3136xbf16, #tpu.memory_space<vmem>>, vector<16x784xbf16>
    %c0_31 = arith.constant 0 : index
    %c0_32 = arith.constant 0 : index
    %31 = vector.load %arg3[%c0_31, %c0_32] : memref<784x144xbf16, #tpu.memory_space<vmem>>, vector<784x144xbf16>
    %cst_33 = arith.constant dense<0.000000e+00> : vector<16x144xf32>
    %32 = tpu.matmul %30, %31, %cst_33 {dimension_numbers = #tpu.dot_dimension_numbers<[1], [0], [0], [1], [0, 0, 1, 1], [], []>} : vector<16x784xbf16>, vector<784x144xbf16>, vector<16x144xf32> -> vector<16x144xf32>
    %33 = arith.truncf %32 : vector<16x144xf32> to vector<16x144xbf16>
    %c0_34 = arith.constant 0 : index
    %c144 = arith.constant 144 : index
    %34 = vector.load %arg18[%c0_34, %c144] : memref<16x640xbf16, #tpu.memory_space<vmem>>, vector<16x144xbf16>
    tpu.vector_store %arg18[%c0_34, %c144], %33 {strides = array<i32>} : memref<16x640xbf16, #tpu.memory_space<vmem>>, vector<16x144xbf16>,
    %c0_35 = arith.constant 0 : index
    %c1568 = arith.constant 1568 : index
    %35 = vector.load %arg17[%c0_35, %c1568] : memref<16x3136xbf16, #tpu.memory_space<vmem>>, vector<16x784xbf16>
    %c0_36 = arith.constant 0 : index
    %c0_37 = arith.constant 0 : index
    %36 = vector.load %arg3[%c0_36, %c0_37] : memref<784x144xbf16, #tpu.memory_space<vmem>>, vector<784x144xbf16>
    %cst_38 = arith.constant dense<0.000000e+00> : vector<16x144xf32>
    %37 = tpu.matmul %35, %36, %cst_38 {dimension_numbers = #tpu.dot_dimension_numbers<[1], [0], [0], [1], [0, 0, 1, 1], [], []>} : vector<16x784xbf16>, vector<784x144xbf16>, vector<16x144xf32> -> vector<16x144xf32>
    %38 = arith.truncf %37 : vector<16x144xf32> to vector<16x144xbf16>
    %c0_39 = arith.constant 0 : index
    %c288 = arith.constant 288 : index
    %39 = vector.load %arg18[%c0_39, %c288] : memref<16x640xbf16, #tpu.memory_space<vmem>>, vector<16x144xbf16>
    tpu.vector_store %arg18[%c0_39, %c288], %38 {strides = array<i32>} : memref<16x640xbf16, #tpu.memory_space<vmem>>, vector<16x144xbf16>,
    %c0_40 = arith.constant 0 : index
    %c2352 = arith.constant 2352 : index
    %40 = vector.load %arg17[%c0_40, %c2352] : memref<16x3136xbf16, #tpu.memory_space<vmem>>, vector<16x784xbf16>
    %c0_41 = arith.constant 0 : index
    %c0_42 = arith.constant 0 : index
    %41 = vector.load %arg3[%c0_41, %c0_42] : memref<784x144xbf16, #tpu.memory_space<vmem>>, vector<784x144xbf16>
    %cst_43 = arith.constant dense<0.000000e+00> : vector<16x144xf32>
    %42 = tpu.matmul %40, %41, %cst_43 {dimension_numbers = #tpu.dot_dimension_numbers<[1], [0], [0], [1], [0, 0, 1, 1], [], []>} : vector<16x784xbf16>, vector<784x144xbf16>, vector<16x144xf32> -> vector<16x144xf32>
    %43 = arith.truncf %42 : vector<16x144xf32> to vector<16x144xbf16>
    %c0_44 = arith.constant 0 : index
    %c432 = arith.constant 432 : index
    %44 = vector.load %arg18[%c0_44, %c432] : memref<16x640xbf16, #tpu.memory_space<vmem>>, vector<16x144xbf16>
    tpu.vector_store %arg18[%c0_44, %c432], %43 {strides = array<i32>} : memref<16x640xbf16, #tpu.memory_space<vmem>>, vector<16x144xbf16>,
    %c0_45 = arith.constant 0 : index
    %c0_46 = arith.constant 0 : index
    %45 = vector.load %arg18[%c0_45, %c0_46] : memref<16x640xbf16, #tpu.memory_space<vmem>>, vector<16x588xbf16>
    %c0_47 = arith.constant 0 : index
    %c0_48 = arith.constant 0 : index
    %46 = vector.load %arg19[%c0_47, %c0_48] : memref<400x588xbf16, #tpu.memory_space<vmem>>, vector<16x588xbf16>
    tpu.vector_store %arg19[%c0_47, %c0_48], %45 {strides = array<i32>} : memref<400x588xbf16, #tpu.memory_space<vmem>>, vector<16x588xbf16>,
    %c0_49 = arith.constant 0 : index
    %c1_50 = arith.constant 1 : index
    %47 = vector.load %arg18[%c0_49, %c1_50] : memref<16x640xbf16, #tpu.memory_space<vmem>>, vector<16x588xbf16>
    %c16 = arith.constant 16 : index
    %c0_51 = arith.constant 0 : index
    %48 = vector.load %arg19[%c16, %c0_51] : memref<400x588xbf16, #tpu.memory_space<vmem>>, vector<16x588xbf16>
    tpu.vector_store %arg19[%c16, %c0_51], %47 {strides = array<i32>} : memref<400x588xbf16, #tpu.memory_space<vmem>>, vector<16x588xbf16>,
    %c0_52 = arith.constant 0 : index
    %c2_53 = arith.constant 2 : index
    %49 = vector.load %arg18[%c0_52, %c2_53] : memref<16x640xbf16, #tpu.memory_space<vmem>>, vector<16x588xbf16>
    %c32 = arith.constant 32 : index
    %c0_54 = arith.constant 0 : index
    %50 = vector.load %arg19[%c32, %c0_54] : memref<400x588xbf16, #tpu.memory_space<vmem>>, vector<16x588xbf16>
    tpu.vector_store %arg19[%c32, %c0_54], %49 {strides = array<i32>} : memref<400x588xbf16, #tpu.memory_space<vmem>>, vector<16x588xbf16>,
    %c0_55 = arith.constant 0 : index
    %c3_56 = arith.constant 3 : index
    %51 = vector.load %arg18[%c0_55, %c3_56] : memref<16x640xbf16, #tpu.memory_space<vmem>>, vector<16x588xbf16>
    %c48 = arith.constant 48 : index
    %c0_57 = arith.constant 0 : index
    %52 = vector.load %arg19[%c48, %c0_57] : memref<400x588xbf16, #tpu.memory_space<vmem>>, vector<16x588xbf16>
    tpu.vector_store %arg19[%c48, %c0_57], %51 {strides = array<i32>} : memref<400x588xbf16, #tpu.memory_space<vmem>>, vector<16x588xbf16>,
    %c0_58 = arith.constant 0 : index
    %c4_59 = arith.constant 4 : index
    %53 = vector.load %arg18[%c0_58, %c4_59] : memref<16x640xbf16, #tpu.memory_space<vmem>>, vector<16x588xbf16>
    %c64 = arith.constant 64 : index
    %c0_60 = arith.constant 0 : index
    %54 = vector.load %arg19[%c64, %c0_60] : memref<400x588xbf16, #tpu.memory_space<vmem>>, vector<16x588xbf16>
    tpu.vector_store %arg19[%c64, %c0_60], %53 {strides = array<i32>} : memref<400x588xbf16, #tpu.memory_space<vmem>>, vector<16x588xbf16>,
    %c0_61 = arith.constant 0 : index
    %c12 = arith.constant 12 : index
    %55 = vector.load %arg18[%c0_61, %c12] : memref<16x640xbf16, #tpu.memory_space<vmem>>, vector<16x588xbf16>
    %c80 = arith.constant 80 : index
    %c0_62 = arith.constant 0 : index
    %56 = vector.load %arg19[%c80, %c0_62] : memref<400x588xbf16, #tpu.memory_space<vmem>>, vector<16x588xbf16>
    tpu.vector_store %arg19[%c80, %c0_62], %55 {strides = array<i32>} : memref<400x588xbf16, #tpu.memory_space<vmem>>, vector<16x588xbf16>,
    %c0_63 = arith.constant 0 : index
    %c13 = arith.constant 13 : index
    %57 = vector.load %arg18[%c0_63, %c13] : memref<16x640xbf16, #tpu.memory_space<vmem>>, vector<16x588xbf16>
    %c96 = arith.constant 96 : index
    %c0_64 = arith.constant 0 : index
    %58 = vector.load %arg19[%c96, %c0_64] : memref<400x588xbf16, #tpu.memory_space<vmem>>, vector<16x588xbf16>
    tpu.vector_store %arg19[%c96, %c0_64], %57 {strides = array<i32>} : memref<400x588xbf16, #tpu.memory_space<vmem>>, vector<16x588xbf16>,
    %c0_65 = arith.constant 0 : index
    %c14 = arith.constant 14 : index
    %59 = vector.load %arg18[%c0_65, %c14] : memref<16x640xbf16, #tpu.memory_space<vmem>>, vector<16x588xbf16>
    %c112 = arith.constant 112 : index
    %c0_66 = arith.constant 0 : index
    %60 = vector.load %arg19[%c112, %c0_66] : memref<400x588xbf16, #tpu.memory_space<vmem>>, vector<16x588xbf16>
    tpu.vector_store %arg19[%c112, %c0_66], %59 {strides = array<i32>} : memref<400x588xbf16, #tpu.memory_space<vmem>>, vector<16x588xbf16>,
    %c0_67 = arith.constant 0 : index
    %c15 = arith.constant 15 : index
    %61 = vector.load %arg18[%c0_67, %c15] : memref<16x640xbf16, #tpu.memory_space<vmem>>, vector<16x588xbf16>
    %c128 = arith.constant 128 : index
    %c0_68 = arith.constant 0 : index
    %62 = vector.load %arg19[%c128, %c0_68] : memref<400x588xbf16, #tpu.memory_space<vmem>>, vector<16x588xbf16>
    tpu.vector_store %arg19[%c128, %c0_68], %61 {strides = array<i32>} : memref<400x588xbf16, #tpu.memory_space<vmem>>, vector<16x588xbf16>,
    %c0_69 = arith.constant 0 : index
    %c16_70 = arith.constant 16 : index
    %63 = vector.load %arg18[%c0_69, %c16_70] : memref<16x640xbf16, #tpu.memory_space<vmem>>, vector<16x588xbf16>
    %c144_71 = arith.constant 144 : index
    %c0_72 = arith.constant 0 : index
    %64 = vector.load %arg19[%c144_71, %c0_72] : memref<400x588xbf16, #tpu.memory_space<vmem>>, vector<16x588xbf16>
    tpu.vector_store %arg19[%c144_71, %c0_72], %63 {strides = array<i32>} : memref<400x588xbf16, #tpu.memory_space<vmem>>, vector<16x588xbf16>,
    %c0_73 = arith.constant 0 : index
    %c24 = arith.constant 24 : index
    %65 = vector.load %arg18[%c0_73, %c24] : memref<16x640xbf16, #tpu.memory_space<vmem>>, vector<16x588xbf16>
    %c160 = arith.constant 160 : index
    %c0_74 = arith.constant 0 : index
    %66 = vector.load %arg19[%c160, %c0_74] : memref<400x588xbf16, #tpu.memory_space<vmem>>, vector<16x588xbf16>
    tpu.vector_store %arg19[%c160, %c0_74], %65 {strides = array<i32>} : memref<400x588xbf16, #tpu.memory_space<vmem>>, vector<16x588xbf16>,
    %c0_75 = arith.constant 0 : index
    %c25 = arith.constant 25 : index
    %67 = vector.load %arg18[%c0_75, %c25] : memref<16x640xbf16, #tpu.memory_space<vmem>>, vector<16x588xbf16>
    %c176 = arith.constant 176 : index
    %c0_76 = arith.constant 0 : index
    %68 = vector.load %arg19[%c176, %c0_76] : memref<400x588xbf16, #tpu.memory_space<vmem>>, vector<16x588xbf16>
    tpu.vector_store %arg19[%c176, %c0_76], %67 {strides = array<i32>} : memref<400x588xbf16, #tpu.memory_space<vmem>>, vector<16x588xbf16>,
    %c0_77 = arith.constant 0 : index
    %c26 = arith.constant 26 : index
    %69 = vector.load %arg18[%c0_77, %c26] : memref<16x640xbf16, #tpu.memory_space<vmem>>, vector<16x588xbf16>
    %c192 = arith.constant 192 : index
    %c0_78 = arith.constant 0 : index
    %70 = vector.load %arg19[%c192, %c0_78] : memref<400x588xbf16, #tpu.memory_space<vmem>>, vector<16x588xbf16>
    tpu.vector_store %arg19[%c192, %c0_78], %69 {strides = array<i32>} : memref<400x588xbf16, #tpu.memory_space<vmem>>, vector<16x588xbf16>,
    %c0_79 = arith.constant 0 : index
    %c27 = arith.constant 27 : index
    %71 = vector.load %arg18[%c0_79, %c27] : memref<16x640xbf16, #tpu.memory_space<vmem>>, vector<16x588xbf16>
    %c208 = arith.constant 208 : index
    %c0_80 = arith.constant 0 : index
    %72 = vector.load %arg19[%c208, %c0_80] : memref<400x588xbf16, #tpu.memory_space<vmem>>, vector<16x588xbf16>
    tpu.vector_store %arg19[%c208, %c0_80], %71 {strides = array<i32>} : memref<400x588xbf16, #tpu.memory_space<vmem>>, vector<16x588xbf16>,
    %c0_81 = arith.constant 0 : index
    %c28_82 = arith.constant 28 : index
    %73 = vector.load %arg18[%c0_81, %c28_82] : memref<16x640xbf16, #tpu.memory_space<vmem>>, vector<16x588xbf16>
    %c224 = arith.constant 224 : index
    %c0_83 = arith.constant 0 : index
    %74 = vector.load %arg19[%c224, %c0_83] : memref<400x588xbf16, #tpu.memory_space<vmem>>, vector<16x588xbf16>
    tpu.vector_store %arg19[%c224, %c0_83], %73 {strides = array<i32>} : memref<400x588xbf16, #tpu.memory_space<vmem>>, vector<16x588xbf16>,
    %c0_84 = arith.constant 0 : index
    %c36 = arith.constant 36 : index
    %75 = vector.load %arg18[%c0_84, %c36] : memref<16x640xbf16, #tpu.memory_space<vmem>>, vector<16x588xbf16>
    %c240 = arith.constant 240 : index
    %c0_85 = arith.constant 0 : index
    %76 = vector.load %arg19[%c240, %c0_85] : memref<400x588xbf16, #tpu.memory_space<vmem>>, vector<16x588xbf16>
    tpu.vector_store %arg19[%c240, %c0_85], %75 {strides = array<i32>} : memref<400x588xbf16, #tpu.memory_space<vmem>>, vector<16x588xbf16>,
    %c0_86 = arith.constant 0 : index
    %c37 = arith.constant 37 : index
    %77 = vector.load %arg18[%c0_86, %c37] : memref<16x640xbf16, #tpu.memory_space<vmem>>, vector<16x588xbf16>
    %c256 = arith.constant 256 : index
    %c0_87 = arith.constant 0 : index
    %78 = vector.load %arg19[%c256, %c0_87] : memref<400x588xbf16, #tpu.memory_space<vmem>>, vector<16x588xbf16>
    tpu.vector_store %arg19[%c256, %c0_87], %77 {strides = array<i32>} : memref<400x588xbf16, #tpu.memory_space<vmem>>, vector<16x588xbf16>,
    %c0_88 = arith.constant 0 : index
    %c38 = arith.constant 38 : index
    %79 = vector.load %arg18[%c0_88, %c38] : memref<16x640xbf16, #tpu.memory_space<vmem>>, vector<16x588xbf16>
    %c272 = arith.constant 272 : index
    %c0_89 = arith.constant 0 : index
    %80 = vector.load %arg19[%c272, %c0_89] : memref<400x588xbf16, #tpu.memory_space<vmem>>, vector<16x588xbf16>
    tpu.vector_store %arg19[%c272, %c0_89], %79 {strides = array<i32>} : memref<400x588xbf16, #tpu.memory_space<vmem>>, vector<16x588xbf16>,
    %c0_90 = arith.constant 0 : index
    %c39 = arith.constant 39 : index
    %81 = vector.load %arg18[%c0_90, %c39] : memref<16x640xbf16, #tpu.memory_space<vmem>>, vector<16x588xbf16>
    %c288_91 = arith.constant 288 : index
    %c0_92 = arith.constant 0 : index
    %82 = vector.load %arg19[%c288_91, %c0_92] : memref<400x588xbf16, #tpu.memory_space<vmem>>, vector<16x588xbf16>
    tpu.vector_store %arg19[%c288_91, %c0_92], %81 {strides = array<i32>} : memref<400x588xbf16, #tpu.memory_space<vmem>>, vector<16x588xbf16>,
    %c0_93 = arith.constant 0 : index
    %c40 = arith.constant 40 : index
    %83 = vector.load %arg18[%c0_93, %c40] : memref<16x640xbf16, #tpu.memory_space<vmem>>, vector<16x588xbf16>
    %c304 = arith.constant 304 : index
    %c0_94 = arith.constant 0 : index
    %84 = vector.load %arg19[%c304, %c0_94] : memref<400x588xbf16, #tpu.memory_space<vmem>>, vector<16x588xbf16>
    tpu.vector_store %arg19[%c304, %c0_94], %83 {strides = array<i32>} : memref<400x588xbf16, #tpu.memory_space<vmem>>, vector<16x588xbf16>,
    %c0_95 = arith.constant 0 : index
    %c48_96 = arith.constant 48 : index
    %85 = vector.load %arg18[%c0_95, %c48_96] : memref<16x640xbf16, #tpu.memory_space<vmem>>, vector<16x588xbf16>
    %c320 = arith.constant 320 : index
    %c0_97 = arith.constant 0 : index
    %86 = vector.load %arg19[%c320, %c0_97] : memref<400x588xbf16, #tpu.memory_space<vmem>>, vector<16x588xbf16>
    tpu.vector_store %arg19[%c320, %c0_97], %85 {strides = array<i32>} : memref<400x588xbf16, #tpu.memory_space<vmem>>, vector<16x588xbf16>,
    %c0_98 = arith.constant 0 : index
    %c49 = arith.constant 49 : index
    %87 = vector.load %arg18[%c0_98, %c49] : memref<16x640xbf16, #tpu.memory_space<vmem>>, vector<16x588xbf16>
    %c336 = arith.constant 336 : index
    %c0_99 = arith.constant 0 : index
    %88 = vector.load %arg19[%c336, %c0_99] : memref<400x588xbf16, #tpu.memory_space<vmem>>, vector<16x588xbf16>
    tpu.vector_store %arg19[%c336, %c0_99], %87 {strides = array<i32>} : memref<400x588xbf16, #tpu.memory_space<vmem>>, vector<16x588xbf16>,
    %c0_100 = arith.constant 0 : index
    %c50 = arith.constant 50 : index
    %89 = vector.load %arg18[%c0_100, %c50] : memref<16x640xbf16, #tpu.memory_space<vmem>>, vector<16x588xbf16>
    %c352 = arith.constant 352 : index
    %c0_101 = arith.constant 0 : index
    %90 = vector.load %arg19[%c352, %c0_101] : memref<400x588xbf16, #tpu.memory_space<vmem>>, vector<16x588xbf16>
    tpu.vector_store %arg19[%c352, %c0_101], %89 {strides = array<i32>} : memref<400x588xbf16, #tpu.memory_space<vmem>>, vector<16x588xbf16>,
    %c0_102 = arith.constant 0 : index
    %c51 = arith.constant 51 : index
    %91 = vector.load %arg18[%c0_102, %c51] : memref<16x640xbf16, #tpu.memory_space<vmem>>, vector<16x588xbf16>
    %c368 = arith.constant 368 : index
    %c0_103 = arith.constant 0 : index
    %92 = vector.load %arg19[%c368, %c0_103] : memref<400x588xbf16, #tpu.memory_space<vmem>>, vector<16x588xbf16>
    tpu.vector_store %arg19[%c368, %c0_103], %91 {strides = array<i32>} : memref<400x588xbf16, #tpu.memory_space<vmem>>, vector<16x588xbf16>,
    %c0_104 = arith.constant 0 : index
    %c52 = arith.constant 52 : index
    %93 = vector.load %arg18[%c0_104, %c52] : memref<16x640xbf16, #tpu.memory_space<vmem>>, vector<16x588xbf16>
    %c384 = arith.constant 384 : index
    %c0_105 = arith.constant 0 : index
    %94 = vector.load %arg19[%c384, %c0_105] : memref<400x588xbf16, #tpu.memory_space<vmem>>, vector<16x588xbf16>
    tpu.vector_store %arg19[%c384, %c0_105], %93 {strides = array<i32>} : memref<400x588xbf16, #tpu.memory_space<vmem>>, vector<16x588xbf16>,
    %c0_106 = arith.constant 0 : index
    %c0_107 = arith.constant 0 : index
    %95 = vector.load %arg4[%c0_106, %c0_107] : memref<24x400xbf16, #tpu.memory_space<vmem>>, vector<24x400xbf16>
    %c0_108 = arith.constant 0 : index
    %c0_109 = arith.constant 0 : index
    %96 = vector.load %arg19[%c0_108, %c0_109] : memref<400x588xbf16, #tpu.memory_space<vmem>>, vector<400x588xbf16>
    %cst_110 = arith.constant dense<0.000000e+00> : vector<24x588xf32>
    %97 = tpu.matmul %95, %96, %cst_110 {dimension_numbers = #tpu.dot_dimension_numbers<[1], [0], [0], [1], [0, 0, 1, 1], [], []>} : vector<24x400xbf16>, vector<400x588xbf16>, vector<24x588xf32> -> vector<24x588xf32>
    %c0_111 = arith.constant 0 : index
    %c0_112 = arith.constant 0 : index
    %98 = vector.load %arg7[%c0_111, %c0_112] : memref<1x588xf32, #tpu.memory_space<vmem>>, vector<1x588xf32>
    %99 = vector.broadcast %98 : vector<1x588xf32> to vector<24x588xf32>
    %100 = arith.mulf %97, %99 : vector<24x588xf32>
    %cst_113 = arith.constant dense<0.000000e+00> : vector<24xf32>
    %101 = vector.multi_reduction <add>, %100, %cst_113 [1] : vector<24x588xf32> to vector<24xf32>
    %102 = vector.shape_cast %101 : vector<24xf32> to vector<24x1xf32>
    %cst_114 = arith.constant 3.906250e-03 : f32
    %103 = vector.broadcast %cst_114 : f32 to vector<24x1xf32>
    %104 = arith.mulf %102, %103 : vector<24x1xf32>
    %105 = vector.broadcast %104 : vector<24x1xf32> to vector<24x588xf32>
    %106 = arith.subf %97, %105 : vector<24x588xf32>
    %107 = arith.mulf %106, %106 : vector<24x588xf32>
    %108 = vector.broadcast %98 : vector<1x588xf32> to vector<24x588xf32>
    %109 = arith.mulf %107, %108 : vector<24x588xf32>
    %cst_115 = arith.constant dense<0.000000e+00> : vector<24xf32>
    %110 = vector.multi_reduction <add>, %109, %cst_115 [1] : vector<24x588xf32> to vector<24xf32>
    %111 = vector.shape_cast %110 : vector<24xf32> to vector<24x1xf32>
    %cst_116 = arith.constant 3.906250e-03 : f32
    %112 = vector.broadcast %cst_116 : f32 to vector<24x1xf32>
    %113 = arith.mulf %111, %112 : vector<24x1xf32>
    %cst_117 = arith.constant 9.99999974E-6 : f32
    %114 = vector.broadcast %cst_117 : f32 to vector<24x1xf32>
    %115 = arith.addf %113, %114 : vector<24x1xf32>
    %116 = math.rsqrt %115 : vector<24x1xf32>
    %117 = vector.broadcast %116 : vector<24x1xf32> to vector<24x588xf32>
    %118 = arith.mulf %106, %117 : vector<24x588xf32>
    %c0_118 = arith.constant 0 : index
    %c0_119 = arith.constant 0 : index
    %119 = vector.load %arg5[%c0_118, %c0_119] : memref<24x1xf32, #tpu.memory_space<vmem>>, vector<24x1xf32>
    %120 = vector.broadcast %119 : vector<24x1xf32> to vector<24x588xf32>
    %121 = arith.mulf %118, %120 : vector<24x588xf32>
    %c0_120 = arith.constant 0 : index
    %c0_121 = arith.constant 0 : index
    %122 = vector.load %arg6[%c0_120, %c0_121] : memref<24x1xf32, #tpu.memory_space<vmem>>, vector<24x1xf32>
    %123 = vector.broadcast %122 : vector<24x1xf32> to vector<24x588xf32>
    %124 = arith.addf %121, %123 : vector<24x588xf32>
    %c0_122 = arith.constant 0 : index
    %c0_123 = arith.constant 0 : index
    %125 = vector.load %arg20[%c0_122, %c0_123] : memref<24x588xf32, #tpu.memory_space<vmem>>, vector<24x588xf32>
    tpu.vector_store %arg20[%c0_122, %c0_123], %124 {strides = array<i32>} : memref<24x588xf32, #tpu.memory_space<vmem>>, vector<24x588xf32>,
    %c0_124 = arith.constant 0 : index
    %c0_125 = arith.constant 0 : index
    %126 = vector.load %arg20[%c0_124, %c0_125] : memref<24x588xf32, #tpu.memory_space<vmem>>, vector<24x575xf32>
    %c0_126 = arith.constant 0 : index
    %c1_127 = arith.constant 1 : index
    %127 = vector.load %arg20[%c0_126, %c1_127] : memref<24x588xf32, #tpu.memory_space<vmem>>, vector<24x575xf32>
    %128 = arith.maximumf %126, %127 : vector<24x575xf32>
    %c0_128 = arith.constant 0 : index
    %c12_129 = arith.constant 12 : index
    %129 = vector.load %arg20[%c0_128, %c12_129] : memref<24x588xf32, #tpu.memory_space<vmem>>, vector<24x575xf32>
    %c0_130 = arith.constant 0 : index
    %c13_131 = arith.constant 13 : index
    %130 = vector.load %arg20[%c0_130, %c13_131] : memref<24x588xf32, #tpu.memory_space<vmem>>, vector<24x575xf32>
    %131 = arith.maximumf %129, %130 : vector<24x575xf32>
    %132 = arith.maximumf %128, %131 : vector<24x575xf32>
    %cst_132 = arith.constant 0.000000e+00 : f32
    %133 = vector.broadcast %cst_132 : f32 to vector<24x575xf32>
    %134 = arith.maximumf %132, %133 : vector<24x575xf32>
    %135 = arith.truncf %134 : vector<24x575xf32> to vector<24x575xbf16>
    %c0_133 = arith.constant 0 : index
    %c0_134 = arith.constant 0 : index
    %136 = vector.load %arg8[%c0_133, %c0_134] : memref<575x64xbf16, #tpu.memory_space<vmem>>, vector<575x64xbf16>
    %cst_135 = arith.constant dense<0.000000e+00> : vector<24x64xf32>
    %137 = tpu.matmul %135, %136, %cst_135 {dimension_numbers = #tpu.dot_dimension_numbers<[1], [0], [0], [1], [0, 0, 1, 1], [], []>} : vector<24x575xbf16>, vector<575x64xbf16>, vector<24x64xf32> -> vector<24x64xf32>
    %138 = arith.truncf %137 : vector<24x64xf32> to vector<24x64xbf16>
    %139 = vector.extract_strided_slice %138 {offsets = [0, 0], sizes = [24, 4], strides = [1, 1]} : vector<24x64xbf16> to vector<24x4xbf16>
    %140 = vector.extract_strided_slice %138 {offsets = [0, 4], sizes = [24, 4], strides = [1, 1]} : vector<24x64xbf16> to vector<24x4xbf16>
    %141 = vector.extract_strided_slice %138 {offsets = [0, 8], sizes = [24, 4], strides = [1, 1]} : vector<24x64xbf16> to vector<24x4xbf16>
    %142 = vector.extract_strided_slice %138 {offsets = [0, 12], sizes = [24, 4], strides = [1, 1]} : vector<24x64xbf16> to vector<24x4xbf16>
    %143 = vector.extract_strided_slice %138 {offsets = [0, 16], sizes = [24, 4], strides = [1, 1]} : vector<24x64xbf16> to vector<24x4xbf16>
    %144 = vector.extract_strided_slice %138 {offsets = [0, 20], sizes = [24, 4], strides = [1, 1]} : vector<24x64xbf16> to vector<24x4xbf16>
    %145 = vector.extract_strided_slice %138 {offsets = [0, 24], sizes = [24, 4], strides = [1, 1]} : vector<24x64xbf16> to vector<24x4xbf16>
    %146 = vector.extract_strided_slice %138 {offsets = [0, 28], sizes = [24, 4], strides = [1, 1]} : vector<24x64xbf16> to vector<24x4xbf16>
    %147 = vector.extract_strided_slice %138 {offsets = [0, 32], sizes = [24, 4], strides = [1, 1]} : vector<24x64xbf16> to vector<24x4xbf16>
    %148 = vector.extract_strided_slice %138 {offsets = [0, 36], sizes = [24, 4], strides = [1, 1]} : vector<24x64xbf16> to vector<24x4xbf16>
    %149 = vector.extract_strided_slice %138 {offsets = [0, 40], sizes = [24, 4], strides = [1, 1]} : vector<24x64xbf16> to vector<24x4xbf16>
    %150 = vector.extract_strided_slice %138 {offsets = [0, 44], sizes = [24, 4], strides = [1, 1]} : vector<24x64xbf16> to vector<24x4xbf16>
    %151 = vector.extract_strided_slice %138 {offsets = [0, 48], sizes = [24, 4], strides = [1, 1]} : vector<24x64xbf16> to vector<24x4xbf16>
    %152 = vector.extract_strided_slice %138 {offsets = [0, 52], sizes = [24, 4], strides = [1, 1]} : vector<24x64xbf16> to vector<24x4xbf16>
    %153 = vector.extract_strided_slice %138 {offsets = [0, 56], sizes = [24, 4], strides = [1, 1]} : vector<24x64xbf16> to vector<24x4xbf16>
    %154 = vector.extract_strided_slice %138 {offsets = [0, 60], sizes = [24, 4], strides = [1, 1]} : vector<24x64xbf16> to vector<24x4xbf16>
    %155 = tpu.concatenate %139, %140, %141, %142, %143, %144, %145, %146, %147, %148, %149, %150, %151, %152, %153, %154 in 0 : vector<24x4xbf16>, vector<24x4xbf16>, vector<24x4xbf16>, vector<24x4xbf16>, vector<24x4xbf16>, vector<24x4xbf16>, vector<24x4xbf16>, vector<24x4xbf16>, vector<24x4xbf16>, vector<24x4xbf16>, vector<24x4xbf16>, vector<24x4xbf16>, vector<24x4xbf16>, vector<24x4xbf16>, vector<24x4xbf16>, vector<24x4xbf16> -> vector<384x4xbf16>
    %c0_136 = arith.constant 0 : index
    %c0_137 = arith.constant 0 : index
    %156 = vector.load %arg9[%c0_136, %c0_137] : memref<50x384xbf16, #tpu.memory_space<vmem>>, vector<50x384xbf16>
    %cst_138 = arith.constant dense<0.000000e+00> : vector<50x4xf32>
    %157 = tpu.matmul %156, %155, %cst_138 {dimension_numbers = #tpu.dot_dimension_numbers<[1], [0], [0], [1], [0, 0, 1, 1], [], []>} : vector<50x384xbf16>, vector<384x4xbf16>, vector<50x4xf32> -> vector<50x4xf32>
    %c0_139 = arith.constant 0 : index
    %c0_140 = arith.constant 0 : index
    %158 = vector.load %arg10[%c0_139, %c0_140] : memref<50x1xf32, #tpu.memory_space<vmem>>, vector<50x1xf32>
    %159 = vector.broadcast %158 : vector<50x1xf32> to vector<50x4xf32>
    %160 = arith.addf %157, %159 : vector<50x4xf32>
    %cst_141 = arith.constant dense<0.000000e+00> : vector<50xf32>
    %161 = vector.multi_reduction <add>, %160, %cst_141 [1] : vector<50x4xf32> to vector<50xf32>
    %162 = vector.shape_cast %161 : vector<50xf32> to vector<50x1xf32>
    %cst_142 = arith.constant 2.500000e-01 : f32
    %163 = vector.broadcast %cst_142 : f32 to vector<50x1xf32>
    %164 = arith.mulf %162, %163 : vector<50x1xf32>
    %165 = vector.broadcast %164 : vector<50x1xf32> to vector<50x4xf32>
    %166 = arith.subf %160, %165 : vector<50x4xf32>
    %167 = arith.mulf %166, %166 : vector<50x4xf32>
    %cst_143 = arith.constant dense<0.000000e+00> : vector<50xf32>
    %168 = vector.multi_reduction <add>, %167, %cst_143 [1] : vector<50x4xf32> to vector<50xf32>
    %169 = vector.shape_cast %168 : vector<50xf32> to vector<50x1xf32>
    %cst_144 = arith.constant 2.500000e-01 : f32
    %170 = vector.broadcast %cst_144 : f32 to vector<50x1xf32>
    %171 = arith.mulf %169, %170 : vector<50x1xf32>
    %cst_145 = arith.constant 9.99999974E-6 : f32
    %172 = vector.broadcast %cst_145 : f32 to vector<50x1xf32>
    %173 = arith.addf %171, %172 : vector<50x1xf32>
    %174 = math.rsqrt %173 : vector<50x1xf32>
    %175 = vector.broadcast %174 : vector<50x1xf32> to vector<50x4xf32>
    %176 = arith.mulf %166, %175 : vector<50x4xf32>
    %c0_146 = arith.constant 0 : index
    %c0_147 = arith.constant 0 : index
    %177 = vector.load %arg11[%c0_146, %c0_147] : memref<50x1xf32, #tpu.memory_space<vmem>>, vector<50x1xf32>
    %178 = vector.broadcast %177 : vector<50x1xf32> to vector<50x4xf32>
    %179 = arith.mulf %176, %178 : vector<50x4xf32>
    %c0_148 = arith.constant 0 : index
    %c0_149 = arith.constant 0 : index
    %180 = vector.load %arg12[%c0_148, %c0_149] : memref<50x1xf32, #tpu.memory_space<vmem>>, vector<50x1xf32>
    %181 = vector.broadcast %180 : vector<50x1xf32> to vector<50x4xf32>
    %182 = arith.addf %179, %181 : vector<50x4xf32>
    %cst_150 = arith.constant 0.000000e+00 : f32
    %183 = vector.broadcast %cst_150 : f32 to vector<50x4xf32>
    %184 = arith.maximumf %182, %183 : vector<50x4xf32>
    %c0_151 = arith.constant 0 : index
    %c0_152 = arith.constant 0 : index
    %185 = vector.load %arg13[%c0_151, %c0_152] : memref<10x50xbf16, #tpu.memory_space<vmem>>, vector<10x50xbf16>
    %186 = arith.truncf %184 : vector<50x4xf32> to vector<50x4xbf16>
    %cst_153 = arith.constant dense<0.000000e+00> : vector<10x4xf32>
    %187 = tpu.matmul %185, %186, %cst_153 {dimension_numbers = #tpu.dot_dimension_numbers<[1], [0], [0], [1], [0, 0, 1, 1], [], []>} : vector<10x50xbf16>, vector<50x4xbf16>, vector<10x4xf32> -> vector<10x4xf32>
    %c0_154 = arith.constant 0 : index
    %c0_155 = arith.constant 0 : index
    %188 = vector.load %arg14[%c0_154, %c0_155] : memref<10x1xf32, #tpu.memory_space<vmem>>, vector<10x1xf32>
    %189 = vector.broadcast %188 : vector<10x1xf32> to vector<10x4xf32>
    %190 = arith.addf %187, %189 : vector<10x4xf32>
    %cst_156 = arith.constant 0.000000e+00 : f32
    %191 = vector.broadcast %cst_156 : f32 to vector<10x4xf32>
    %192 = arith.maximumf %190, %191 : vector<10x4xf32>
    %c0_157 = arith.constant 0 : index
    %c0_158 = arith.constant 0 : index
    %193 = vector.load %arg15[%c0_157, %c0_158] : memref<10x4xf32, #tpu.memory_space<vmem>>, vector<10x4xf32>
    tpu.vector_store %arg15[%c0_157, %c0_158], %192 {strides = array<i32>} : memref<10x4xf32, #tpu.memory_space<vmem>>, vector<10x4xf32>,
    return
  }
}

</mosaic_0001>

<bundles_post_ra>
// kernel: forward.1
= control target key start
LH: loop header
LB: loop body
LE: loop exit
PB: predicated region body
PF: predicated region fallthrough
CT: control target
= control target key end

     0   :  { %s9733_s22 = smov 127   ;;  %s9734_s25 = smov 126   ;;  %v9737_v8 = vmov 0   ;;  %vm177_vm0 = vcmask 1039360   ;;  %vm14050_vm1 = vcmask 1043456   ;;  %vm14060_vm2 = vcmask 1031168   ;;  %s13955_s0 = inlined_call_operand.vmem [shape: bf16[8,3200], index: 0, kind: input, shape index: {}]   ;;  %s13956_s1 = inlined_call_operand.vmem [shape: bf16[16,40], index: 1, kind: input, shape index: {}]   ;;  %s13957_s2 = inlined_call_operand.vmem [shape: f32[16,1], index: 2, kind: input, shape index: {}]   ;;  %s13958_s3 = inlined_call_operand.vmem [shape: bf16[784,144], index: 3, kind: input, shape index: {}]   ;;  %s13959_s4 = inlined_call_operand.vmem [shape: bf16[24,400], index: 4, kind: input, shape index: {}]   ;;  %s13960_s7 = inlined_call_operand.vmem [shape: f32[1,588], index: 7, kind: input, shape index: {}]   ;;  %s13961_s5 = inlined_call_operand.vmem [shape: f32[24,1], index: 5, kind: input, shape index: {}]   ;;  %s13962_s6 = inlined_call_operand.vmem [shape: f32[24,1], index: 6, kind: input, shape index: {}]   ;;  %s13963_s8 = inlined_call_operand.vmem [shape: bf16[575,64], index: 8, kind: input, shape index: {}]   ;;  %s13964_s9 = inlined_call_operand.vmem [shape: bf16[50,384], index: 9, kind: input, shape index: {}]   ;;  %s13965_s10 = inlined_call_operand.vmem [shape: f32[50,1], index: 10, kind: input, shape index: {}]   ;;  %s13966_s11 = inlined_call_operand.vmem [shape: f32[50,1], index: 11, kind: input, shape index: {}]   ;;  %s13967_s12 = inlined_call_operand.vmem [shape: f32[50,1], index: 12, kind: input, shape index: {}]   ;;  %s13968_s14 = inlined_call_operand.vmem [shape: f32[10,1], index: 14, kind: input, shape index: {}]   ;;  %s13969_s13 = inlined_call_operand.vmem [shape: bf16[10,50], index: 13, kind: input, shape index: {}]   ;;  %s13970_s15 = inlined_call_operand.vmem [shape: f32[10,4], index: 15, kind: output, shape index: {}]  }
   0x1   :  { %v51_v0 = vld [vmem:[%s13955_s0] sm:$0xff]  ;;  %v52_v1 = vld [vmem:[%s13955_s0 + $0x8] sm:$0xff]  ;;  %v53_v6 = vld [vmem:[%s13955_s0 + $0x10] sm:$0xff]  ;;  %s9735_s26 = smov 125   ;;  %s9736_s27 = smov 124   ;;  %758 = vmatprep.mubr.bf16.mxu0 %v9737_v8  ;;  %2084 = vst [vmem:[#allocation4 + $0x8] sm:$0xff] %v9737_v8  ;;  %801 = vmatprep.mubr.bf16.mxu1 %v9737_v8 }
   0x2   :  { %v9856_v2 = vcombine.high %v51_v0, %v51_v0  ;;  %v9858_v3 = vcombine.low %v51_v0, %v51_v0  ;;  %v9864_v4 = vcombine.low %v52_v1, %v52_v1  ;;  %v9866_v5 = vcombine.high %v52_v1, %v52_v1  ;;  %2085 = vst [vmem:[#allocation4 + $0x10] sm:$0xff] %v9737_v8  ;;  %v54_v9 = vld [vmem:[%s13955_s0 + $0x18] sm:$0xff]  ;;  %v55_v12 = vld [vmem:[%s13955_s0 + $0x20] sm:$0xff]  ;;  %v56_v15 = vld [vmem:[%s13955_s0 + $0x28] sm:$0xff]  ;;  %s14058_s28 = smov 112   ;;  %s14037_s30 = smov 96  }
   0x3   :  { %v9875_v7 = vcombine.low %v53_v6, %v53_v6  ;;  %2086 = vst [vmem:[#allocation4 + $0x18] sm:$0xff] %v9737_v8  ;;  %2087 = vst [vmem:[#allocation4 + $0x20] sm:$0xff] %v9737_v8  ;;  %8993 = vset.pattern.permute.xlu1 %v9737_v8  ;;  %8992 = vset.pattern.permute.xlu0 %v9737_v8  ;;  %v9920_v10 = vcombine.high %v53_v6, %v53_v6  ;;  %v57_v18 = vld [vmem:[%s13955_s0 + $0x30] sm:$0xff]  ;;  %v58_v21 = vld [vmem:[%s13955_s0 + $0x38] sm:$0xff]  ;;  %vm327_vm3 = vcmask 1022976   ;;  %vm402_vm4 = vcmask 1014784  }
   0x4   :  { %129 = vrot.lane.b32.xlu0 %v9856_v2, %s9733_s22  ;;  %127 = vrot.lane.b32.xlu1 %v9858_v3, %s9733_s22  ;;  %v9922_v11 = vcombine.low %v54_v9, %v54_v9  ;;  %v9931_v13 = vcombine.high %v54_v9, %v54_v9  ;;  %v9933_v14 = vcombine.low %v55_v12, %v55_v12  ;;  %v59_v24 = vld [vmem:[%s13955_s0 + $0x40] sm:$0xff]  ;;  %v60_v43 = vld [vmem:[%s13955_s0 + $0x48] sm:$0xff]  ;;  %vm647_vm5 = vcmask 326656   ;;  %s14039_s16 = smov 80   ;;  %s9744_s20 = smov 116  }
   0x5   :  { %v9966_v16 = vcombine.high %v55_v12, %v55_v12  ;;  %v9968_v17 = vcombine.low %v56_v15, %v56_v15  ;;  %v9977_v19 = vcombine.high %v56_v15, %v56_v15  ;;  %v9979_v20 = vcombine.low %v57_v18, %v57_v18  ;;  %v10083_v51 = vld [vmem:[%s13955_s0 + $0x50] sm:$0xff]  ;;  %s9746_s21 = smov 115   ;;  %s9747_s18 = smov 113  }
   0x6   :  { %v10012_v22 = vcombine.high %v57_v18, %v57_v18  ;;  %v10014_v23 = vcombine.low %v58_v21, %v58_v21  ;;  %v10035_v27 = vcombine.high %v58_v21, %v58_v21  ;;  %v10037_v28 = vcombine.low %v59_v24, %v59_v24  ;;  %v10129_v18 = vld [vmem:[%s13956_s1] sm:$0xff]   ;;  %s14045_s19 = smov 103   ;;  %s9749_s29 = smov 104  }
   0x7   :  { %v10076_v49 = vcombine.high %v59_v24, %v59_v24  ;;  %v10078_v50 = vcombine.low %v60_v43, %v60_v43  ;;  %v10091_v54 = vcombine.high %v60_v43, %v60_v43  ;;  %v10095_v55 = vcombine.low %v10083_v51, %v10083_v51  ;;  %s14043_s17 = smov 101   ;;  %s14047_s23 = smov 102  }
   0x8   :  { %131 = vrot.lane.b32.xlu0 %v9864_v4, %s9733_s22  ;;  %133 = vrot.lane.b32.xlu1 %v9866_v5, %s9733_s22  ;;  %vm14049_vm6 = vmmov 0   ;;  %vm1307_vm7 = vcmask 760832   ;;  %vm14062_vm8 = vcmask 818176   ;;  %vm14055_vm9 = vcmask 916480   ;;  %s14170_s1 = smov 103   ;;  %s14172_s24 = smov 101  }
   0x9   :  { %vm14052_vm10 = vcmask 130048   ;;  %vm3809_vm11 = vcmask 785408   ;;  %vm14051_vm12 = vcmask 654336   ;;  %vm2081_vm13 = vcmask 523264  }
   0xa   :  { %vm3679_vm14 = vcmask 1047680   ;;  %vm3681_vm15 = vcmask 261120  }
   0xc   :  { %135 = vrot.lane.b32.xlu0 %v9875_v7, %s9733_s22  ;;  %204 = vrot.lane.b32.xlu1 %v9856_v2, %s9734_s25 }
  0x10   :  { %206 = vrot.lane.b32.xlu0 %v9864_v4, %s9734_s25  ;;  %279 = vrot.lane.b32.xlu1 %v9856_v2, %s9735_s26 }
  0x14   :  { %281 = vrot.lane.b32.xlu0 %v9864_v4, %s9735_s26  ;;  %202 = vrot.lane.b32.xlu1 %v9858_v3, %s9734_s25 }
  0x18   :  { %208 = vrot.lane.b32.xlu0 %v9866_v5, %s9734_s25  ;;  %210 = vrot.lane.b32.xlu1 %v9875_v7, %s9734_s25 }
  0x1c   :  { %277 = vrot.lane.b32.xlu0 %v9858_v3, %s9735_s26  ;;  %283 = vrot.lane.b32.xlu1 %v9866_v5, %s9735_s26 }
  0x20   :  { %285 = vrot.lane.b32.xlu0 %v9875_v7, %s9735_s26  ;;  %352 = vrot.lane.b32.xlu1 %v9858_v3, %s9736_s27 }
  0x24   :  { %354 = vrot.lane.b32.xlu0 %v9856_v2, %s9736_s27  ;;  %356 = vrot.lane.b32.xlu1 %v9864_v4, %s9736_s27 }
  0x28   :  { %358 = vrot.lane.b32.xlu0 %v9866_v5, %s9736_s27  ;;  %360 = vrot.lane.b32.xlu1 %v9875_v7, %s9736_s27 }
  0x2c   :  { %137 = vrot.lane.b32.xlu0 %v9920_v10, %s9733_s22  ;;  %139 = vrot.lane.b32.xlu1 %v9922_v11, %s9733_s22 }
  0x30   :  { %141 = vrot.lane.b32.xlu0 %v9931_v13, %s9733_s22  ;;  %143 = vrot.lane.b32.xlu1 %v9933_v14, %s9733_s22 }
  0x34   :  { %212 = vrot.lane.b32.xlu0 %v9920_v10, %s9734_s25  ;;  %214 = vrot.lane.b32.xlu1 %v9922_v11, %s9734_s25 }
  0x38   :  { %287 = vrot.lane.b32.xlu0 %v9920_v10, %s9735_s26  ;;  %289 = vrot.lane.b32.xlu1 %v9922_v11, %s9735_s26 }
  0x3c   :  { %216 = vrot.lane.b32.xlu0 %v9931_v13, %s9734_s25  ;;  %218 = vrot.lane.b32.xlu1 %v9933_v14, %s9734_s25 }
  0x40   :  { %291 = vrot.lane.b32.xlu0 %v9931_v13, %s9735_s26  ;;  %293 = vrot.lane.b32.xlu1 %v9933_v14, %s9735_s26 }
  0x44   :  { %362 = vrot.lane.b32.xlu0 %v9920_v10, %s9736_s27  ;;  %364 = vrot.lane.b32.xlu1 %v9922_v11, %s9736_s27 }
  0x48   :  { %366 = vrot.lane.b32.xlu0 %v9931_v13, %s9736_s27  ;;  %368 = vrot.lane.b32.xlu1 %v9933_v14, %s9736_s27 }
  0x4c   :  { %145 = vrot.lane.b32.xlu0 %v9966_v16, %s9733_s22  ;;  %147 = vrot.lane.b32.xlu1 %v9968_v17, %s9733_s22 }
  0x50   :  { %149 = vrot.lane.b32.xlu0 %v9977_v19, %s9733_s22  ;;  %151 = vrot.lane.b32.xlu1 %v9979_v20, %s9733_s22 }
  0x54   :  { %220 = vrot.lane.b32.xlu0 %v9966_v16, %s9734_s25  ;;  %222 = vrot.lane.b32.xlu1 %v9968_v17, %s9734_s25 }
  0x58   :  { %295 = vrot.lane.b32.xlu0 %v9966_v16, %s9735_s26  ;;  %297 = vrot.lane.b32.xlu1 %v9968_v17, %s9735_s26 }
  0x5c   :  { %224 = vrot.lane.b32.xlu0 %v9977_v19, %s9734_s25  ;;  %226 = vrot.lane.b32.xlu1 %v9979_v20, %s9734_s25 }
  0x60   :  { %299 = vrot.lane.b32.xlu0 %v9977_v19, %s9735_s26  ;;  %301 = vrot.lane.b32.xlu1 %v9979_v20, %s9735_s26 }
  0x64   :  { %370 = vrot.lane.b32.xlu0 %v9966_v16, %s9736_s27  ;;  %372 = vrot.lane.b32.xlu1 %v9968_v17, %s9736_s27 }
  0x68   :  { %374 = vrot.lane.b32.xlu0 %v9977_v19, %s9736_s27  ;;  %376 = vrot.lane.b32.xlu1 %v9979_v20, %s9736_s27 }
  0x6c   :  { %153 = vrot.lane.b32.xlu0 %v10012_v22, %s9733_s22  ;;  %155 = vrot.lane.b32.xlu1 %v10014_v23, %s9733_s22 }
  0x70   :  { %228 = vrot.lane.b32.xlu0 %v10012_v22, %s9734_s25  ;;  %230 = vrot.lane.b32.xlu1 %v10014_v23, %s9734_s25 }
  0x74   :  { %303 = vrot.lane.b32.xlu0 %v10012_v22, %s9735_s26  ;;  %305 = vrot.lane.b32.xlu1 %v10014_v23, %s9735_s26 }
  0x76   :  { %v130_v25 = vpop.permute.xlu0 %129  ;;  %v128_v26 = vpop.permute.xlu1 %127 }
  0x77   :  { %v178_v29 = vsel %vm177_vm0, %v128_v26, %v130_v25 }
  0x78   :  { %378 = vrot.lane.b32.xlu0 %v10012_v22, %s9736_s27  ;;  %380 = vrot.lane.b32.xlu1 %v10014_v23, %s9736_s27  ;;  %v430_v34 = vsel %vm14050_vm1, %v9858_v3, %v178_v29 }
  0x7a   :  { %v132_v30 = vpop.permute.xlu0 %131  ;;  %v134_v31 = vpop.permute.xlu1 %133 }
  0x7b   :  { %v179_v32 = vsel %vm177_vm0, %v130_v25, %v132_v30  ;;  %v180_v37 = vsel %vm177_vm0, %v132_v30, %v134_v31 }
  0x7c   :  { %157 = vrot.lane.b32.xlu0 %v10035_v27, %s9733_s22  ;;  %159 = vrot.lane.b32.xlu1 %v10037_v28, %s9733_s22  ;;  %v434_v33 = vsel %vm14050_vm1, %v9856_v2, %v179_v32  ;;  %v438_v40 = vsel %vm14050_vm1, %v9864_v4, %v180_v37 }
  0x7d   :  { %726 = vmatprep.subr.bf16.mxu0 %v434_v33 }
  0x7e   :  { %v10049_v35 = vpop.permute.xlu0 %135  ;;  %727 = vmatpush1.bf16.msra.mxu0 %v430_v34  ;;  %v205_v36 = vpop.permute.xlu1 %204 }
  0x7f   :  { %v181_v38 = vsel %vm177_vm0, %v134_v31, %v10049_v35 }
  0x80   :  { %232 = vrot.lane.b32.xlu0 %v10035_v27, %s9734_s25  ;;  %234 = vrot.lane.b32.xlu1 %v10037_v28, %s9734_s25  ;;  %v442_v39 = vsel %vm14050_vm1, %v9866_v5, %v181_v38 }
  0x81   :  { %769 = vmatprep.subr.bf16.mxu1 %v442_v39 }
  0x82   :  { %v207_v41 = vpop.permute.xlu0 %206  ;;  %770 = vmatpush1.bf16.msra.mxu1 %v438_v40  ;;  %v280_v42 = vpop.permute.xlu1 %279  ;;  %v62_v40 = vld [vmem:[%s13955_s0 + $0x58] sm:$0xff] }
  0x83   :  { %v254_v46 = vsel %vm14060_vm2, %v205_v36, %v207_v41  ;;  %v10183_v43 = vcombine.low %v62_v40, %v62_v40 }
  0x84   :  { %307 = vrot.lane.b32.xlu0 %v10035_v27, %s9735_s26  ;;  %309 = vrot.lane.b32.xlu1 %v10037_v28, %s9735_s26 }
  0x86   :  { %v282_v44 = vpop.permute.xlu0 %281  ;;  %v203_v45 = vpop.permute.xlu1 %202 }
  0x87   :  { %v329_v47 = vsel %vm327_vm3, %v280_v42, %v282_v44  ;;  %v253_v58 = vsel %vm14060_vm2, %v203_v45, %v205_v36 }
  0x88   :  { %382 = vrot.lane.b32.xlu0 %v10035_v27, %s9736_s27  ;;  %384 = vrot.lane.b32.xlu1 %v10037_v28, %s9736_s27  ;;  %v534_v48 = vsel %vm14050_vm1, %v254_v46, %v329_v47 }
  0x89   :  { %728 = vmatprep.subr.bf16.mxu0 %v534_v48 }
  0x8a   :  { %v209_v52 = vpop.permute.xlu0 %208  ;;  %v10085_v53 = vpop.permute.xlu1 %210 }
  0x8b   :  { %v256_v0 = vsel %vm14060_vm2, %v209_v52, %v10085_v53  ;;  %v255_v2 = vsel %vm14060_vm2, %v207_v41, %v209_v52 }
  0x8c   :  { %161 = vrot.lane.b32.xlu0 %v10076_v49, %s9733_s22  ;;  %163 = vrot.lane.b32.xlu1 %v10078_v50, %s9733_s22 }
  0x8e   :  { %v278_v56 = vpop.permute.xlu0 %277  ;;  %v284_v57 = vpop.permute.xlu1 %283 }
  0x8f   :  { %v328_v59 = vsel %vm327_vm3, %v278_v56, %v280_v42  ;;  %v330_v61 = vsel %vm327_vm3, %v282_v44, %v284_v57  ;;  %v10197_v56 = vcombine.high %v62_v40, %v62_v40 }
  0x90   :  { %165 = vrot.lane.b32.xlu0 %v10091_v54, %s9733_s22  ;;  %167 = vrot.lane.b32.xlu1 %v10095_v55, %s9733_s22  ;;  %v530_v60 = vsel %vm14050_vm1, %v253_v58, %v328_v59  ;;  %v538_v4 = vsel %vm14050_vm1, %v255_v2, %v330_v61 }
  0x91   :  { %729 = vmatpush1.bf16.msra.mxu0 %v530_v60 }
  0x92   :  { %v10105_v62 = vpop.permute.xlu0 %285  ;;  %v353_v63 = vpop.permute.xlu1 %352 }
  0x93   :  { %v331_v1 = vsel %vm327_vm3, %v284_v57, %v10105_v62 }
  0x94   :  { %236 = vrot.lane.b32.xlu0 %v10076_v49, %s9734_s25  ;;  %238 = vrot.lane.b32.xlu1 %v10078_v50, %s9734_s25  ;;  %v542_v3 = vsel %vm14050_vm1, %v256_v0, %v331_v1 }
  0x95   :  { %771 = vmatprep.subr.bf16.mxu1 %v542_v3 }
  0x96   :  { %v355_v5 = vpop.permute.xlu0 %354  ;;  %772 = vmatpush1.bf16.msra.mxu1 %v538_v4  ;;  %v357_v6 = vpop.permute.xlu1 %356 }
  0x97   :  { %v404_v9 = vsel %vm402_vm4, %v355_v5, %v357_v6  ;;  %v403_v12 = vsel %vm402_vm4, %v353_v63, %v355_v5 }
  0x98   :  { %311 = vrot.lane.b32.xlu0 %v10076_v49, %s9735_s26  ;;  %313 = vrot.lane.b32.xlu1 %v10078_v50, %s9735_s26  ;;  %v652_v15 = vsel %vm14050_vm1, %v403_v12, 0 }
  0x99   :  { %8195 = vmatprep.subr.msk.bf16.mxu0 %vm14050_vm1, %v404_v9 }
  0x9a   :  { %731 = vmatpush1.bf16.msra.mxu0 %v652_v15  ;;  %v359_v21 = vpop.permute.xlu0 %358  ;;  %v10131_v24 = vpop.permute.xlu1 %360 }
  0x9b   :  { %v406_v25 = vsel %vm402_vm4, %v359_v21, %v10131_v24  ;;  %v405_v26 = vsel %vm402_vm4, %v357_v6, %v359_v21 }
  0x9c   :  { %240 = vrot.lane.b32.xlu0 %v10091_v54, %s9734_s25  ;;  %242 = vrot.lane.b32.xlu1 %v10095_v55, %s9734_s25  ;;  %v658_v29 = vsel %vm14050_vm1, %v405_v26, 0 }
  0x9d   :  { %8197 = vmatprep.subr.msk.bf16.mxu1 %vm14050_vm1, %v406_v25  ;;  %8196 = vmatmul.mubr.msk.bf16.vlgmr.msra.gmra.mrb[0].mxu0 %vm647_vm5, %v10129_v18 }
  0x9e   :  { %774 = vmatpush1.bf16.msra.mxu1 %v658_v29  ;;  %v138_v30 = vpop.permute.xlu0 %137  ;;  %v140_v31 = vpop.permute.xlu1 %139  ;;  %844 = vmatprep.mubr.bf16.mxu0 %v9737_v8 }
  0x9f   :  { %v182_v32 = vsel %vm177_vm0, %v10049_v35, %v138_v30  ;;  %v183_v33 = vsel %vm177_vm0, %v138_v30, %v140_v31 }
  0xa0   :  { %315 = vrot.lane.b32.xlu0 %v10091_v54, %s9735_s26  ;;  %317 = vrot.lane.b32.xlu1 %v10095_v55, %s9735_s26  ;;  %v450_v34 = vsel %vm14050_vm1, %v9920_v10, %v183_v33  ;;  %v446_v36 = vsel %vm14050_vm1, %v9875_v7, %v182_v32 }
  0xa1   :  { %812 = vmatprep.subr.bf16.mxu0 %v450_v34  ;;  %8198 = vmatmul.mubr.msk.bf16.vlgmr.msra.gmra.mrb[0].mxu1 %vm647_vm5, %v10129_v18 }
  0xa2   :  { %v142_v37 = vpop.permute.xlu0 %141  ;;  %813 = vmatpush1.bf16.msra.mxu0 %v446_v36  ;;  %v10158_v35 = vpop.permute.xlu1 %143  ;;  %887 = vmatprep.mubr.bf16.mxu1 %v9737_v8 }
  0xa3   :  { %v184_v38 = vsel %vm177_vm0, %v140_v31, %v142_v37  ;;  %v185_v39 = vsel %vm177_vm0, %v142_v37, %v10158_v35 }
  0xa4   :  { %386 = vrot.lane.b32.xlu0 %v10076_v49, %s9736_s27  ;;  %388 = vrot.lane.b32.xlu1 %v10078_v50, %s9736_s27  ;;  %v458_v7 = vsel %vm14050_vm1, %v9931_v13, %v185_v39  ;;  %v454_v10 = vsel %vm14050_vm1, %v9922_v11, %v184_v38  ;;  %v10181_v13 = vcombine.high %v10083_v51, %v10083_v51 }
  0xa5   :  { %855 = vmatprep.subr.bf16.mxu1 %v458_v7  ;;  %v630_v7 = vld [vmem:[%s13957_s2] sm:$0xff] }
  0xa6   :  { %v213_v41 = vpop.permute.xlu0 %212  ;;  %856 = vmatpush1.bf16.msra.mxu1 %v454_v10  ;;  %v215_v42 = vpop.permute.xlu1 %214 }
  0xa7   :  { %v257_v45 = vsel %vm14060_vm2, %v10085_v53, %v213_v41  ;;  %v258_v46 = vsel %vm14060_vm2, %v213_v41, %v215_v42  ;;  %v10202_v53 = vld [vmem:[%s13955_s0 + $0x60] ss:$0 sps:$4 sm:$0xff]   ;;  %s14041_s0 = smov 100  }
  0xa8   :  { %390 = vrot.lane.b32.xlu0 %v10091_v54, %s9736_s27  ;;  %392 = vrot.lane.b32.xlu1 %v10095_v55, %s9736_s27 }
  0xaa   :  { %v288_v11 = vpop.permute.xlu0 %287  ;;  %v290_v44 = vpop.permute.xlu1 %289 }
  0xab   :  { %v332_v47 = vsel %vm327_vm3, %v10105_v62, %v288_v11  ;;  %v333_v48 = vsel %vm327_vm3, %v288_v11, %v290_v44 }
  0xac   :  { %169 = vrot.lane.b32.xlu0 %v10181_v13, %s9733_s22  ;;  %171 = vrot.lane.b32.xlu1 %v10183_v43, %s9733_s22  ;;  %v550_v51 = vsel %vm14050_vm1, %v258_v46, %v333_v48  ;;  %v546_v52 = vsel %vm14050_vm1, %v257_v45, %v332_v47 }
  0xad   :  { %814 = vmatprep.subr.bf16.mxu0 %v550_v51 }
  0xae   :  { %v217_v57 = vpop.permute.xlu0 %216  ;;  %815 = vmatpush1.bf16.msra.mxu0 %v546_v52  ;;  %v10204_v58 = vpop.permute.xlu1 %218 }
  0xaf   :  { %v259_v61 = vsel %vm14060_vm2, %v215_v42, %v217_v57  ;;  %v260_v62 = vsel %vm14060_vm2, %v217_v57, %v10204_v58 }
  0xb0   :  { %173 = vrot.lane.b32.xlu0 %v10197_v56, %s9733_s22  ;;  %175 = vrot.lane.b32.xlu1 %v10202_v53, %s9733_s22 }
  0xb2   :  { %v292_v59 = vpop.permute.xlu0 %291  ;;  %v10210_v60 = vpop.permute.xlu1 %293 }
  0xb3   :  { %v334_v63 = vsel %vm327_vm3, %v290_v44, %v292_v59  ;;  %v335_v0 = vsel %vm327_vm3, %v292_v59, %v10210_v60 }
  0xb4   :  { %244 = vrot.lane.b32.xlu0 %v10181_v13, %s9734_s25  ;;  %246 = vrot.lane.b32.xlu1 %v10183_v43, %s9734_s25  ;;  %v558_v1 = vsel %vm14050_vm1, %v260_v62, %v335_v0  ;;  %v554_v2 = vsel %vm14050_vm1, %v259_v61, %v334_v63 }
  0xb5   :  { %857 = vmatprep.subr.bf16.mxu1 %v558_v1 }
  0xb6   :  { %v363_v3 = vpop.permute.xlu0 %362  ;;  %858 = vmatpush1.bf16.msra.mxu1 %v554_v2  ;;  %v365_v4 = vpop.permute.xlu1 %364 }
  0xb7   :  { %v407_v5 = vsel %vm402_vm4, %v10131_v24, %v363_v3  ;;  %v408_v6 = vsel %vm402_vm4, %v363_v3, %v365_v4 }
  0xb8   :  { %319 = vrot.lane.b32.xlu0 %v10181_v13, %s9735_s26  ;;  %321 = vrot.lane.b32.xlu1 %v10183_v43, %s9735_s26  ;;  %v664_v9 = vsel %vm14050_vm1, %v407_v5, 0 }
  0xb9   :  { %8199 = vmatprep.subr.msk.bf16.mxu0 %vm14050_vm1, %v408_v6 }
  0xba   :  { %817 = vmatpush1.bf16.msra.mxu0 %v664_v9  ;;  %v367_v12 = vpop.permute.xlu0 %366  ;;  %v10233_v15 = vpop.permute.xlu1 %368 }
  0xbb   :  { %v409_v21 = vsel %vm402_vm4, %v365_v4, %v367_v12  ;;  %v410_v24 = vsel %vm402_vm4, %v367_v12, %v10233_v15 }
  0xbc   :  { %248 = vrot.lane.b32.xlu0 %v10197_v56, %s9734_s25  ;;  %250 = vrot.lane.b32.xlu1 %v10202_v53, %s9734_s25  ;;  %v670_v25 = vsel %vm14050_vm1, %v409_v21, 0 }
  0xbd   :  { %8201 = vmatprep.subr.msk.bf16.mxu1 %vm14050_vm1, %v410_v24  ;;  %8200 = vmatmul.mubr.msk.bf16.vlgmr.msra.gmra.mrb[4].mxu0 %vm647_vm5, %v10129_v18 }
  0xbe   :  { %860 = vmatpush1.bf16.msra.mxu1 %v670_v25  ;;  %v146_v26 = vpop.permute.xlu0 %145  ;;  %v148_v29 = vpop.permute.xlu1 %147  ;;  %930 = vmatprep.mubr.bf16.mxu0 %v9737_v8 }
  0xbf   :  { %v186_v30 = vsel %vm177_vm0, %v10158_v35, %v146_v26  ;;  %v187_v31 = vsel %vm177_vm0, %v146_v26, %v148_v29 }
  0xc0   :  { %323 = vrot.lane.b32.xlu0 %v10197_v56, %s9735_s26  ;;  %325 = vrot.lane.b32.xlu1 %v10202_v53, %s9735_s26  ;;  %v466_v32 = vsel %vm14050_vm1, %v9966_v16, %v187_v31  ;;  %v462_v33 = vsel %vm14050_vm1, %v9933_v14, %v186_v30 }
  0xc1   :  { %898 = vmatprep.subr.bf16.mxu0 %v466_v32  ;;  %8202 = vmatmul.mubr.msk.bf16.vlgmr.msra.gmra.mrb[4].mxu1 %vm647_vm5, %v10129_v18 }
  0xc2   :  { %v150_v34 = vpop.permute.xlu0 %149  ;;  %899 = vmatpush1.bf16.msra.mxu0 %v462_v33  ;;  %v152_v36 = vpop.permute.xlu1 %151  ;;  %973 = vmatprep.mubr.bf16.mxu1 %v9737_v8 }
  0xc3   :  { %v188_v37 = vsel %vm177_vm0, %v148_v29, %v150_v34  ;;  %v189_v35 = vsel %vm177_vm0, %v150_v34, %v152_v36 }
  0xc4   :  { %394 = vrot.lane.b32.xlu0 %v10181_v13, %s9736_s27  ;;  %396 = vrot.lane.b32.xlu1 %v10183_v43, %s9736_s27  ;;  %v474_v14 = vsel %vm14050_vm1, %v9977_v19, %v189_v35  ;;  %v470_v16 = vsel %vm14050_vm1, %v9968_v17, %v188_v37  ;;  %v631_v19 = vld [vmem:[%s13957_s2 + $0x8] sm:$0xff]  ;;  %s9745_s2 = smov 114  }
  0xc5   :  { %941 = vmatprep.subr.bf16.mxu1 %v474_v14 }
  0xc6   :  { %v221_v38 = vpop.permute.xlu0 %220  ;;  %942 = vmatpush1.bf16.msra.mxu1 %v470_v16  ;;  %v223_v39 = vpop.permute.xlu1 %222 }
  0xc7   :  { %v261_v40 = vsel %vm14060_vm2, %v10204_v58, %v221_v38  ;;  %v262_v41 = vsel %vm14060_vm2, %v221_v38, %v223_v39 }
  0xc8   :  { %398 = vrot.lane.b32.xlu0 %v10197_v56, %s9736_s27  ;;  %400 = vrot.lane.b32.xlu1 %v10202_v53, %s9736_s27 }
  0xca   :  { %v296_v10 = vpop.permute.xlu0 %295  ;;  %v298_v17 = vpop.permute.xlu1 %297 }
  0xcb   :  { %v336_v42 = vsel %vm327_vm3, %v10210_v60, %v296_v10  ;;  %v337_v11 = vsel %vm327_vm3, %v296_v10, %v298_v17 }
  0xcc   :  { %v566_v44 = vsel %vm14050_vm1, %v262_v41, %v337_v11  ;;  %v562_v45 = vsel %vm14050_vm1, %v261_v40, %v336_v42  ;;  %634 = vperm.xlu0 %8992, %v630_v7   ;;  %639 = vperm.xlu1 %8993, %v631_v19  }
  0xcd   :  { %900 = vmatprep.subr.bf16.mxu0 %v566_v44 }
  0xce   :  { %v225_v46 = vpop.permute.xlu0 %224  ;;  %901 = vmatpush1.bf16.msra.mxu0 %v562_v45  ;;  %v227_v47 = vpop.permute.xlu1 %226 }
  0xcf   :  { %v263_v52 = vsel %vm14060_vm2, %v223_v39, %v225_v46  ;;  %v264_v57 = vsel %vm14060_vm2, %v225_v46, %v227_v47 }
  0xd2   :  { %v300_v48 = vpop.permute.xlu0 %299  ;;  %v302_v51 = vpop.permute.xlu1 %301 }
  0xd3   :  { %v338_v58 = vsel %vm327_vm3, %v298_v17, %v300_v48  ;;  %v339_v59 = vsel %vm327_vm3, %v300_v48, %v302_v51 }
  0xd4   :  { %v574_v60 = vsel %vm14050_vm1, %v264_v57, %v339_v59  ;;  %v570_v61 = vsel %vm14050_vm1, %v263_v52, %v338_v58 }
  0xd5   :  { %943 = vmatprep.subr.bf16.mxu1 %v574_v60 }
  0xd6   :  { %v371_v62 = vpop.permute.xlu0 %370  ;;  %944 = vmatpush1.bf16.msra.mxu1 %v570_v61  ;;  %v373_v63 = vpop.permute.xlu1 %372 }
  0xd7   :  { %v411_v0 = vsel %vm402_vm4, %v10233_v15, %v371_v62  ;;  %v412_v1 = vsel %vm402_vm4, %v371_v62, %v373_v63 }
  0xd8   :  { %8203 = vmatprep.subr.msk.bf16.mxu0 %vm14050_vm1, %v412_v1  ;;  %v676_v2 = vsel %vm14050_vm1, %v411_v0, 0 }
  0xd9   :  { %903 = vmatpush1.bf16.msra.mxu0 %v676_v2 }
  0xda   :  { %v375_v3 = vpop.permute.xlu0 %374  ;;  %v377_v4 = vpop.permute.xlu1 %376 }
  0xdb   :  { %v413_v5 = vsel %vm402_vm4, %v373_v63, %v375_v3  ;;  %v414_v6 = vsel %vm402_vm4, %v375_v3, %v377_v4 }
  0xdc   :  { %8204 = vmatmul.mubr.msk.bf16.vlgmr.msra.gmra.mrb[8].mxu0 %vm647_vm5, %v10129_v18  ;;  %8205 = vmatprep.subr.msk.bf16.mxu1 %vm14050_vm1, %v414_v6  ;;  %v682_v9 = vsel %vm14050_vm1, %v413_v5, 0 }
  0xdd   :  { %946 = vmatpush1.bf16.msra.mxu1 %v682_v9  ;;  %1016 = vmatprep.mubr.bf16.mxu0 %v9737_v8 }
  0xde   :  { %v154_v12 = vpop.permute.xlu0 %153  ;;  %v156_v15 = vpop.permute.xlu1 %155 }
  0xdf   :  { %v190_v21 = vsel %vm177_vm0, %v152_v36, %v154_v12  ;;  %v191_v24 = vsel %vm177_vm0, %v154_v12, %v156_v15 }
  0xe0   :  { %8206 = vmatmul.mubr.msk.bf16.vlgmr.msra.gmra.mrb[8].mxu1 %vm647_vm5, %v10129_v18  ;;  %v482_v25 = vsel %vm14050_vm1, %v10012_v22, %v191_v24  ;;  %v478_v26 = vsel %vm14050_vm1, %v9979_v20, %v190_v21 }
  0xe1   :  { %984 = vmatprep.subr.bf16.mxu0 %v482_v25  ;;  %1059 = vmatprep.mubr.bf16.mxu1 %v9737_v8 }
  0xe2   :  { %v229_v29 = vpop.permute.xlu0 %228  ;;  %985 = vmatpush1.bf16.msra.mxu0 %v478_v26  ;;  %v231_v30 = vpop.permute.xlu1 %230 }
  0xe3   :  { %v266_v31 = vsel %vm14060_vm2, %v229_v29, %v231_v30  ;;  %v265_v34 = vsel %vm14060_vm2, %v227_v47, %v229_v29 }
  0xe6   :  { %v304_v32 = vpop.permute.xlu0 %303  ;;  %v306_v33 = vpop.permute.xlu1 %305 }
  0xe7   :  { %v340_v36 = vsel %vm327_vm3, %v302_v51, %v304_v32  ;;  %v341_v37 = vsel %vm327_vm3, %v304_v32, %v306_v33 }
  0xe8   :  { %v582_v22 = vsel %vm14050_vm1, %v266_v31, %v341_v37  ;;  %v578_v20 = vsel %vm14050_vm1, %v265_v34, %v340_v36 }
  0xe9   :  { %986 = vmatprep.subr.bf16.mxu0 %v582_v22 }
  0xea   :  { %v379_v35 = vpop.permute.xlu0 %378  ;;  %987 = vmatpush1.bf16.msra.mxu0 %v578_v20  ;;  %v381_v14 = vpop.permute.xlu1 %380 }
  0xeb   :  { %v415_v16 = vsel %vm402_vm4, %v377_v4, %v379_v35  ;;  %v416_v38 = vsel %vm402_vm4, %v379_v35, %v381_v14 }
  0xec   :  { %8207 = vmatprep.subr.msk.bf16.mxu0 %vm14050_vm1, %v416_v38  ;;  %v688_v39 = vsel %vm14050_vm1, %v415_v16, 0 }
  0xee   :  { %v158_v7 = vpop.permute.xlu0 %157  ;;  %989 = vmatpush1.bf16.msra.mxu0 %v688_v39  ;;  %v160_v19 = vpop.permute.xlu1 %159 }
  0xef   :  { %v192_v10 = vsel %vm177_vm0, %v156_v15, %v158_v7  ;;  %v193_v17 = vsel %vm177_vm0, %v158_v7, %v160_v19 }
  0xf0   :  { %v490_v40 = vsel %vm14050_vm1, %v10035_v27, %v193_v17  ;;  %v486_v41 = vsel %vm14050_vm1, %v10014_v23, %v192_v10 }
  0xf1   :  { %8208 = vmatmul.mubr.msk.bf16.vlgmr.msra.gmra.mrb[12].mxu0 %vm647_vm5, %v10129_v18  ;;  %1027 = vmatprep.subr.bf16.mxu1 %v490_v40 }
  0xf2   :  { %v233_v42 = vpop.permute.xlu0 %232  ;;  %v235_v11 = vpop.permute.xlu1 %234  ;;  %1028 = vmatpush1.bf16.msra.mxu1 %v486_v41  ;;  %1102 = vmatprep.mubr.bf16.mxu0 %v9737_v8 }
  0xf3   :  { %v267_v44 = vsel %vm14060_vm2, %v231_v30, %v233_v42  ;;  %v268_v45 = vsel %vm14060_vm2, %v233_v42, %v235_v11 }
  0xf6   :  { %v308_v46 = vpop.permute.xlu0 %307  ;;  %v310_v47 = vpop.permute.xlu1 %309 }
  0xf7   :  { %v342_v27 = vsel %vm327_vm3, %v306_v33, %v308_v46  ;;  %v343_v48 = vsel %vm327_vm3, %v308_v46, %v310_v47 }
  0xf8   :  { %v590_v23 = vsel %vm14050_vm1, %v268_v45, %v343_v48  ;;  %v586_v51 = vsel %vm14050_vm1, %v267_v44, %v342_v27 }
  0xf9   :  { %1029 = vmatprep.subr.bf16.mxu1 %v590_v23 }
  0xfa   :  { %v383_v52 = vpop.permute.xlu0 %382  ;;  %1030 = vmatpush1.bf16.msra.mxu1 %v586_v51  ;;  %v385_v57 = vpop.permute.xlu1 %384 }
  0xfb   :  { %v417_v58 = vsel %vm402_vm4, %v381_v14, %v383_v52  ;;  %v418_v59 = vsel %vm402_vm4, %v383_v52, %v385_v57 }
  0xfc   :  { %8209 = vmatprep.subr.msk.bf16.mxu1 %vm14050_vm1, %v418_v59  ;;  %v694_v60 = vsel %vm14050_vm1, %v417_v58, 0 }
  0xfe   :  { %v162_v61 = vpop.permute.xlu0 %161  ;;  %1032 = vmatpush1.bf16.msra.mxu1 %v694_v60  ;;  %v164_v62 = vpop.permute.xlu1 %163 }
  0xff   :  { %v194_v63 = vsel %vm177_vm0, %v160_v19, %v162_v61  ;;  %v195_v0 = vsel %vm177_vm0, %v162_v61, %v164_v62 }
 0x100   :  { %v498_v1 = vsel %vm14050_vm1, %v10076_v49, %v195_v0  ;;  %v494_v2 = vsel %vm14050_vm1, %v10037_v28, %v194_v63 }
 0x101   :  { %8210 = vmatmul.mubr.msk.bf16.vlgmr.msra.gmra.mrb[12].mxu1 %vm647_vm5, %v10129_v18  ;;  %1070 = vmatprep.subr.bf16.mxu0 %v498_v1 }
 0x102   :  { %v166_v3 = vpop.permute.xlu0 %165  ;;  %v168_v4 = vpop.permute.xlu1 %167  ;;  %1071 = vmatpush1.bf16.msra.mxu0 %v494_v2  ;;  %1145 = vmatprep.mubr.bf16.mxu1 %v9737_v8 }
 0x103   :  { %v196_v5 = vsel %vm177_vm0, %v164_v62, %v166_v3  ;;  %v197_v6 = vsel %vm177_vm0, %v166_v3, %v168_v4 }
 0x104   :  { %v506_v9 = vsel %vm14050_vm1, %v10091_v54, %v197_v6  ;;  %v502_v49 = vsel %vm14050_vm1, %v10078_v50, %v196_v5 }
 0x105   :  { %1113 = vmatprep.subr.bf16.mxu1 %v506_v9 }
 0x106   :  { %v237_v28 = vpop.permute.xlu0 %236  ;;  %v239_v12 = vpop.permute.xlu1 %238  ;;  %1114 = vmatpush1.bf16.msra.mxu1 %v502_v49 }
 0x107   :  { %v269_v15 = vsel %vm14060_vm2, %v235_v11, %v237_v28  ;;  %v270_v21 = vsel %vm14060_vm2, %v237_v28, %v239_v12 }
 0x10a   :  { %v312_v24 = vpop.permute.xlu0 %311  ;;  %v314_v25 = vpop.permute.xlu1 %313 }
 0x10b   :  { %v344_v26 = vsel %vm327_vm3, %v310_v47, %v312_v24  ;;  %v345_v29 = vsel %vm327_vm3, %v312_v24, %v314_v25 }
 0x10c   :  { %v598_v30 = vsel %vm14050_vm1, %v270_v21, %v345_v29  ;;  %v594_v54 = vsel %vm14050_vm1, %v269_v15, %v344_v26  ;;  %v13971_v29 = vmov 0.0  }
 0x10d   :  { %1072 = vmatprep.subr.bf16.mxu0 %v598_v30 }
 0x10e   :  { %v241_v50 = vpop.permute.xlu0 %240  ;;  %v243_v31 = vpop.permute.xlu1 %242  ;;  %1073 = vmatpush1.bf16.msra.mxu0 %v594_v54 }
 0x10f   :  { %v271_v32 = vsel %vm14060_vm2, %v239_v12, %v241_v50  ;;  %v272_v33 = vsel %vm14060_vm2, %v241_v50, %v243_v31 }
 0x112   :  { %v316_v34 = vpop.permute.xlu0 %315  ;;  %v318_v36 = vpop.permute.xlu1 %317 }
 0x113   :  { %v346_v37 = vsel %vm327_vm3, %v314_v25, %v316_v34  ;;  %v347_v22 = vsel %vm327_vm3, %v316_v34, %v318_v36 }
 0x114   :  { %v606_v20 = vsel %vm14050_vm1, %v272_v33, %v347_v22  ;;  %v602_v35 = vsel %vm14050_vm1, %v271_v32, %v346_v37 }
 0x115   :  { %1115 = vmatprep.subr.bf16.mxu1 %v606_v20 }
 0x116   :  { %v387_v14 = vpop.permute.xlu0 %386  ;;  %v389_v16 = vpop.permute.xlu1 %388  ;;  %1116 = vmatpush1.bf16.msra.mxu1 %v602_v35 }
 0x117   :  { %v419_v38 = vsel %vm402_vm4, %v385_v57, %v387_v14  ;;  %v420_v39 = vsel %vm402_vm4, %v387_v14, %v389_v16 }
 0x118   :  { %8211 = vmatprep.subr.msk.bf16.mxu0 %vm14050_vm1, %v420_v39  ;;  %v700_v7 = vsel %vm14050_vm1, %v419_v38, 0 }
 0x119   :  { %1075 = vmatpush1.bf16.msra.mxu0 %v700_v7 }
 0x11a   :  { %v391_v19 = vpop.permute.xlu0 %390  ;;  %v393_v10 = vpop.permute.xlu1 %392 }
 0x11b   :  { %v421_v17 = vsel %vm402_vm4, %v389_v16, %v391_v19  ;;  %v422_v40 = vsel %vm402_vm4, %v391_v19, %v393_v10 }
 0x11c   :  { %8212 = vmatmul.mubr.msk.bf16.vlgmr.msra.gmra.mrb[16].mxu0 %vm647_vm5, %v10129_v18  ;;  %8213 = vmatprep.subr.msk.bf16.mxu1 %vm14050_vm1, %v422_v40  ;;  %v706_v41 = vsel %vm14050_vm1, %v421_v17, 0 }
 0x11d   :  { %1118 = vmatpush1.bf16.msra.mxu1 %v706_v41  ;;  %1188 = vmatprep.mubr.bf16.mxu0 %v9737_v8 }
 0x11e   :  { %v170_v42 = vpop.permute.xlu0 %169  ;;  %v172_v11 = vpop.permute.xlu1 %171 }
 0x11f   :  { %v198_v44 = vsel %vm177_vm0, %v168_v4, %v170_v42  ;;  %v199_v45 = vsel %vm177_vm0, %v170_v42, %v172_v11 }
 0x120   :  { %8214 = vmatmul.mubr.msk.bf16.vlgmr.msra.gmra.mrb[16].mxu1 %vm647_vm5, %v10129_v18  ;;  %v514_v46 = vsel %vm14050_vm1, %v10181_v13, %v199_v45  ;;  %v510_v47 = vsel %vm14050_vm1, %v10095_v55, %v198_v44 }
 0x121   :  { %1156 = vmatprep.subr.bf16.mxu0 %v514_v46  ;;  %1231 = vmatprep.mubr.bf16.mxu1 %v9737_v8 }
 0x122   :  { %v174_v27 = vpop.permute.xlu0 %173  ;;  %v176_v48 = vpop.permute.xlu1 %175  ;;  %1157 = vmatpush1.bf16.msra.mxu0 %v510_v47 }
 0x123   :  { %v200_v23 = vsel %vm177_vm0, %v172_v11, %v174_v27  ;;  %v201_v51 = vsel %vm177_vm0, %v174_v27, %v176_v48  ;;  %v526_v30 = vsel %vm14050_vm1, %v10202_v53, %v176_v48 }
 0x124   :  { %v522_v52 = vsel %vm14050_vm1, %v10197_v56, %v201_v51  ;;  %v518_v57 = vsel %vm14050_vm1, %v10183_v43, %v200_v23 }
 0x125   :  { %1199 = vmatprep.subr.bf16.mxu1 %v522_v52 }
 0x126   :  { %v245_v13 = vpop.permute.xlu0 %244  ;;  %v247_v58 = vpop.permute.xlu1 %246  ;;  %1200 = vmatpush1.bf16.msra.mxu1 %v518_v57 }
 0x127   :  { %v273_v55 = vsel %vm14060_vm2, %v243_v31, %v245_v13  ;;  %v274_v8 = vsel %vm14060_vm2, %v245_v13, %v247_v58 }
 0x12a   :  { %v320_v59 = vpop.permute.xlu0 %319  ;;  %v322_v60 = vpop.permute.xlu1 %321 }
 0x12b   :  { %v348_v61 = vsel %vm327_vm3, %v318_v36, %v320_v59  ;;  %v349_v62 = vsel %vm327_vm3, %v320_v59, %v322_v60 }
 0x12c   :  { %v614_v63 = vsel %vm14050_vm1, %v274_v8, %v349_v62  ;;  %v610_v56 = vsel %vm14050_vm1, %v273_v55, %v348_v61 }
 0x12d   :  { %1158 = vmatprep.subr.bf16.mxu0 %v614_v63 }
 0x12e   :  { %v249_v43 = vpop.permute.xlu0 %248  ;;  %v251_v0 = vpop.permute.xlu1 %250  ;;  %1159 = vmatpush1.bf16.msra.mxu0 %v610_v56 }
 0x12f   :  { %v275_v1 = vsel %vm14060_vm2, %v247_v58, %v249_v43  ;;  %v276_v2 = vsel %vm14060_vm2, %v249_v43, %v251_v0 }
 0x132   :  { %v324_v3 = vpop.permute.xlu0 %323  ;;  %v326_v4 = vpop.permute.xlu1 %325 }
 0x133   :  { %v350_v5 = vsel %vm327_vm3, %v322_v60, %v324_v3  ;;  %v351_v6 = vsel %vm327_vm3, %v324_v3, %v326_v4  ;;  %v626_v32 = vsel %vm14050_vm1, %v251_v0, %v326_v4 }
 0x134   :  { %v622_v9 = vsel %vm14050_vm1, %v276_v2, %v351_v6  ;;  %v618_v49 = vsel %vm14050_vm1, %v275_v1, %v350_v5 }
 0x135   :  { %1201 = vmatprep.subr.bf16.mxu1 %v622_v9 }
 0x136   :  { %v395_v28 = vpop.permute.xlu0 %394  ;;  %v397_v12 = vpop.permute.xlu1 %396  ;;  %1202 = vmatpush1.bf16.msra.mxu1 %v618_v49 }
 0x137   :  { %v423_v15 = vsel %vm402_vm4, %v393_v10, %v395_v28  ;;  %v424_v21 = vsel %vm402_vm4, %v395_v28, %v397_v12 }
 0x138   :  { %8215 = vmatprep.subr.msk.bf16.mxu0 %vm14050_vm1, %v424_v21  ;;  %v712_v24 = vsel %vm14050_vm1, %v423_v15, 0 }
 0x139   :  { %1161 = vmatpush1.bf16.msra.mxu0 %v712_v24 }
 0x13a   :  { %v399_v25 = vpop.permute.xlu0 %398  ;;  %v401_v26 = vpop.permute.xlu1 %400  ;;  %8833 = vmatprep.subr.bf16.mxu0 %v13971_v29 }
 0x13b   :  { %v425_v54 = vsel %vm402_vm4, %v397_v12, %v399_v25  ;;  %v426_v50 = vsel %vm402_vm4, %v399_v25, %v401_v26  ;;  %v724_v53 = vsel %vm14050_vm1, %v401_v26, 0 }
 0x13c   :  { %8216 = vmatmul.mubr.msk.bf16.vlgmr.msra.gmra.mrb[20].mxu0 %vm647_vm5, %v10129_v18  ;;  %8217 = vmatprep.subr.msk.bf16.mxu1 %vm14050_vm1, %v426_v50  ;;  %v718_v31 = vsel %vm14050_vm1, %v425_v54, 0  ;;  %vm5698_vm1 = vcmask 842752  }
 0x13d   :  { %1204 = vmatpush1.bf16.msra.mxu1 %v718_v31  ;;  %8834 = vmatpush3.bf16.msra.mxu0 %v526_v30 }
 0x13e   :  { %8835 = vmatprep.subr.bf16.mxu0 %v13971_v29  ;;  %8839 = vmatprep.mubr.msk.bf16.mxu0 %vm14049_vm6, %v13971_v29  ;;  %vm5663_vm6 = vcmask 850944  }
 0x140   :  { %8218 = vmatmul.mubr.msk.bf16.vlgmr.msra.gmra.mrb[20].mxu1 %vm647_vm5, %v10129_v18 }
 0x141   :  { %8836 = vmatpush3.bf16.msra.mxu0 %v626_v32 }
 0x142   :  { %8837 = vmatprep.subr.bf16.mxu0 %v13971_v29  ;;  %v11105_v29 = vld [vmem:[%s13958_s3 + $0x1e0] ss:$8 sps:$4 sm:$0xff]  }
 0x145   :  { %8838 = vmatpush3.bf16.msra.mxu0 %v724_v53 }
 0x148   :  { %8840 = vmatmul.mubr.msk.bf16.vlgmr.msra.gmra.mrb[24].mxu0 %vm647_vm5, %v10129_v18  ;;  %vm4499_vm5 = vcmask 1047808  }
 0x14b   :  { %v10433_v33 = vpop.permute.xlu0 %634  ;;  %v10435_v36 = vpop.permute.xlu1 %639 }
 0x170   :  { %v760_v34 = vpop.f32.mrb[0].mxu0 }
 0x171   :  { %v762_v37 = vpop.f32.mrb[1].mxu0  ;;  %v10438_v22 = vadd.f32 %v760_v34, %v10433_v33 }
 0x172   :  { %v764_v20 = vpop.f32.mrb[2].mxu0  ;;  %v10441_v35 = vadd.f32 %v762_v37, %v10433_v33 }
 0x173   :  { %v766_v14 = vpop.f32.mrb[3].mxu0  ;;  %v10444_v16 = vadd.f32 %v764_v20, %v10435_v36 }
 0x174   :  { %v803_v38 = vpop.f32.mrb[0].mxu1  ;;  %v10447_v18 = vadd.f32 %v766_v14, %v10435_v36 }
 0x175   :  { %v805_v39 = vpop.f32.mrb[1].mxu1  ;;  %v10450_v7 = vadd.f32 %v803_v38, %v10433_v33  ;;  %v9034_v54 = vpack.i.bf16 %v10444_v16, %v10438_v22  ;;  %v9340_v38 = vld [vmem:[%s13958_s3] ss:$8 sps:$4 sm:$0xff]  }
 0x176   :  { %v806_v19 = vadd.f32 %v805_v39, %v10433_v33  ;;  %v807_v10 = vpop.f32.mrb[2].mxu1  ;;  %v9342_v39 = vld [vmem:[%s13958_s3 + $0x4] ss:$8 sps:$4 sm:$0xff]  }
 0x177   :  { %v10454_v17 = vadd.f32 %v807_v10, %v10435_v36  ;;  %v809_v40 = vpop.f32.mrb[3].mxu1  ;;  %v9019_v25 = vpack.i.bf16 %v10450_v7, %v10441_v35  ;;  %2687 = vmatprep.subr.bf16.mxu1 %v9342_v39  ;;  %3495 = vmatprep.subr.bf16.mxu0 %v9342_v39  ;;  %v9343_v10 = vld [vmem:[%s13958_s3 + $0x10] ss:$8 sps:$4 sm:$0xff]  }
 0x178   :  { %1286 = vst [vmem:[#allocation2 + $0x18] sm:$0xff] %v806_v19  ;;  %v810_v41 = vadd.f32 %v809_v40, %v10435_v36  ;;  %v9024_v26 = vpack.i.bf16 %v10447_v18, %v806_v19  ;;  %v9345_v19 = vld [vmem:[%s13958_s3 + $0x14] ss:$8 sps:$4 sm:$0xff]   ;;  %2688 = vmatpush1.bf16.msra.mxu1 %v9340_v38  ;;  %3496 = vmatpush1.bf16.msra.mxu0 %v9340_v38  ;;  %v9348_v40 = vld [vmem:[%s13958_s3 + $0x24] ss:$8 sps:$4 sm:$0xff]  }
 0x179   :  { %2689 = vmatprep.subr.bf16.mxu1 %v9345_v19  ;;  %3497 = vmatprep.subr.bf16.mxu0 %v9345_v19 }
 0x17a   :  { %1312 = vst [vmem:[#allocation2 + $0xe0] sm:$0xff] %v810_v41  ;;  %v9029_v30 = vpack.i.bf16 %v810_v41, %v10454_v17  ;;  %v9346_v41 = vld [vmem:[%s13958_s3 + $0x20] ss:$8 sps:$4 sm:$0xff]  }
 0x17c   :  { %2690 = vmatpush1.bf16.msra.mxu1 %v9343_v10  ;;  %3498 = vmatpush1.bf16.msra.mxu0 %v9343_v10 }
 0x17d   :  { %2691 = vmatprep.subr.bf16.mxu1 %v9348_v40  ;;  %3499 = vmatprep.subr.bf16.mxu0 %v9348_v40 }
 0x180   :  { %2692 = vmatpush1.bf16.msra.mxu1 %v9346_v41  ;;  %3500 = vmatpush1.bf16.msra.mxu0 %v9346_v41 }
 0x190   :  { %v846_v42 = vpop.f32.mrb[4].mxu0 }
 0x191   :  { %v10458_v11 = vadd.f32 %v846_v42, %v10433_v33  ;;  %v848_v44 = vpop.f32.mrb[5].mxu0  ;;  %v9351_v42 = vld [vmem:[%s13958_s3 + $0x34] ss:$8 sps:$4 sm:$0xff]  }
 0x192   :  { %v10461_v45 = vadd.f32 %v848_v44, %v10433_v33  ;;  %v850_v46 = vpop.f32.mrb[6].mxu0  ;;  %v9349_v44 = vld [vmem:[%s13958_s3 + $0x30] ss:$8 sps:$4 sm:$0xff]   ;;  %2693 = vmatprep.subr.bf16.mxu1 %v9351_v42  ;;  %3501 = vmatprep.subr.bf16.mxu0 %v9351_v42 }
 0x193   :  { %1287 = vst [vmem:[#allocation2 + $0x20] sm:$0xff] %v10458_v11  ;;  %v10465_v47 = vadd.f32 %v850_v46, %v10435_v36  ;;  %v852_v27 = vpop.f32.mrb[7].mxu0  ;;  %v9354_v46 = vld [vmem:[%s13958_s3 + $0x44] ss:$8 sps:$4 sm:$0xff]   ;;  %2694 = vmatpush1.bf16.msra.mxu1 %v9349_v44  ;;  %3502 = vmatpush1.bf16.msra.mxu0 %v9349_v44 }
 0x194   :  { %1288 = vst [vmem:[#allocation2 + $0x28] sm:$0xff] %v10461_v45  ;;  %v10469_v48 = vadd.f32 %v852_v27, %v10435_v36  ;;  %v889_v23 = vpop.f32.mrb[4].mxu1  ;;  %2695 = vmatprep.subr.bf16.mxu1 %v9354_v46  ;;  %3503 = vmatprep.subr.bf16.mxu0 %v9354_v46 }
 0x195   :  { %1313 = vst [vmem:[#allocation2 + $0xe8] sm:$0xff] %v10465_v47  ;;  %v10473_v51 = vadd.f32 %v889_v23, %v10433_v33  ;;  %v891_v52 = vpop.f32.mrb[5].mxu1 }
 0x196   :  { %1314 = vst [vmem:[#allocation2 + $0xf0] sm:$0xff] %v10469_v48  ;;  %v10477_v57 = vadd.f32 %v891_v52, %v10433_v33  ;;  %v893_v13 = vpop.f32.mrb[6].mxu1 }
 0x197   :  { %v10480_v58 = vadd.f32 %v893_v13, %v10435_v36  ;;  %v895_v55 = vpop.f32.mrb[7].mxu1 }
 0x198   :  { %v10483_v8 = vadd.f32 %v895_v55, %v10435_v36 }
 0x199   :  { %v9014_v24 = vpack.i.bf16 %v10480_v58, %v10473_v51 }
 0x1af   :  { %v932_v59 = vpop.f32.mrb[8].mxu0 }
 0x1b0   :  { %v10486_v60 = vadd.f32 %v932_v59, %v10433_v33  ;;  %v934_v61 = vpop.f32.mrb[9].mxu0  ;;  %v9352_v59 = vld [vmem:[%s13958_s3 + $0x40] ss:$8 sps:$4 sm:$0xff]  }
 0x1b1   :  { %v10489_v62 = vadd.f32 %v934_v61, %v10433_v33  ;;  %v936_v63 = vpop.f32.mrb[10].mxu0  ;;  %2696 = vmatpush1.bf16.msra.mxu1 %v9352_v59  ;;  %3504 = vmatpush1.bf16.msra.mxu0 %v9352_v59 }
 0x1b2   :  { %v10492_v56 = vadd.f32 %v936_v63, %v10435_v36  ;;  %v938_v43 = vpop.f32.mrb[11].mxu0  ;;  %v8994_v0 = vpack.i.bf16 %v10486_v60, %v10477_v57 }
 0x1b3   :  { %v10497_v1 = vadd.f32 %v938_v43, %v10435_v36  ;;  %v975_v2 = vpop.f32.mrb[8].mxu1  ;;  %v9357_v43 = vld [vmem:[%s13958_s3 + $0x54] ss:$8 sps:$4 sm:$0xff]  }
 0x1b4   :  { %v10500_v3 = vadd.f32 %v975_v2, %v10433_v33  ;;  %v977_v4 = vpop.f32.mrb[9].mxu1  ;;  %8995 = vrot.lane.b32.xlu1 %v8994_v0, %s9733_s22  ;;  %v9004_v12 = vpack.i.bf16 %v10492_v56, %v10483_v8  ;;  %v9355_v2 = vld [vmem:[%s13958_s3 + $0x50] ss:$8 sps:$4 sm:$0xff]   ;;  %2697 = vmatprep.subr.bf16.mxu1 %v9357_v43 }
 0x1b5   :  { %v10504_v5 = vadd.f32 %v977_v4, %v10433_v33  ;;  %v979_v6 = vpop.f32.mrb[10].mxu1  ;;  %v9360_v4 = vld [vmem:[%s13958_s3 + $0x64] ss:$8 sps:$4 sm:$0xff]   ;;  %3505 = vmatprep.subr.bf16.mxu0 %v9357_v43  ;;  %2698 = vmatpush1.bf16.msra.mxu1 %v9355_v2 }
 0x1b6   :  { %v980_v9 = vadd.f32 %v979_v6, %v10435_v36  ;;  %v981_v49 = vpop.f32.mrb[11].mxu1  ;;  %v8999_v28 = vpack.i.bf16 %v10500_v3, %v10489_v62  ;;  %v9358_v6 = vld [vmem:[%s13958_s3 + $0x60] ss:$8 sps:$4 sm:$0xff]   ;;  %3506 = vmatpush1.bf16.msra.mxu0 %v9355_v2  ;;  %2699 = vmatprep.subr.bf16.mxu1 %v9360_v4 }
 0x1b7   :  { %v10512_v15 = vadd.f32 %v981_v49, %v10435_v36  ;;  %3507 = vmatprep.subr.bf16.mxu0 %v9360_v4  ;;  %v9361_v49 = vld [vmem:[%s13958_s3 + $0x70] ss:$8 sps:$4 sm:$0xff]  }
 0x1b8   :  { %1319 = vst [vmem:[#allocation2 + $0x118] sm:$0xff] %v980_v9  ;;  %9000 = vrot.lane.b32.xlu0 %v8999_v28, %s9733_s22  ;;  %9005 = vrot.lane.b32.xlu1 %v9004_v12, %s9733_s22  ;;  %v9009_v21 = vpack.i.bf16 %v980_v9, %v10497_v1  ;;  %v9363_v9 = vld [vmem:[%s13958_s3 + $0x74] ss:$8 sps:$4 sm:$0xff]  }
 0x1b9   :  { %1320 = vst [vmem:[#allocation2 + $0x120] sm:$0xff] %v10512_v15  ;;  %2700 = vmatpush1.bf16.msra.mxu1 %v9358_v6 }
 0x1ba   :  { %3508 = vmatpush1.bf16.msra.mxu0 %v9358_v6  ;;  %2701 = vmatprep.subr.bf16.mxu1 %v9363_v9 }
 0x1bb   :  { %3509 = vmatprep.subr.bf16.mxu0 %v9363_v9 }
 0x1bc   :  { %9010 = vrot.lane.b32.xlu0 %v9009_v21, %s9733_s22  ;;  %9015 = vrot.lane.b32.xlu1 %v9014_v24, %s9733_s22 }
 0x1bd   :  { %2702 = vmatpush1.bf16.msra.mxu1 %v9361_v49 }
 0x1be   :  { %3510 = vmatpush1.bf16.msra.mxu0 %v9361_v49 }
 0x1c0   :  { %9020 = vrot.lane.b32.xlu0 %v9019_v25, %s9733_s22  ;;  %9025 = vrot.lane.b32.xlu1 %v9024_v26, %s9733_s22 }
 0x1c4   :  { %v1018_v50 = vpop.f32.mrb[12].mxu0  ;;  %9030 = vrot.lane.b32.xlu0 %v9029_v30, %s9733_s22  ;;  %9035 = vrot.lane.b32.xlu1 %v9034_v54, %s9733_s22 }
 0x1c5   :  { %v10533_v31 = vadd.f32 %v1018_v50, %v10433_v33  ;;  %v1020_v32 = vpop.f32.mrb[13].mxu0 }
 0x1c6   :  { %v10536_v53 = vadd.f32 %v1020_v32, %v10433_v33  ;;  %v1022_v34 = vpop.f32.mrb[14].mxu0 }
 0x1c7   :  { %1295 = vst [vmem:[#allocation2 + $0x60] sm:$0xff] %v10533_v31  ;;  %v10540_v37 = vadd.f32 %v1022_v34, %v10435_v36  ;;  %v1024_v20 = vpop.f32.mrb[15].mxu0 }
 0x1c8   :  { %1296 = vst [vmem:[#allocation2 + $0x68] sm:$0xff] %v10536_v53  ;;  %v1025_v14 = vadd.f32 %v1024_v20, %v10435_v36 }
 0x1c9   :  { %1321 = vst [vmem:[#allocation2 + $0x128] sm:$0xff] %v10540_v37 }
 0x1ca   :  { %1322 = vst [vmem:[#allocation2 + $0x130] sm:$0xff] %v1025_v14 }
 0x1d4   :  { %v1061_v27 = vpop.f32.mrb[12].mxu1 }
 0x1d5   :  { %v10573_v23 = vadd.f32 %v1061_v27, %v10433_v33  ;;  %v1063_v52 = vpop.f32.mrb[13].mxu1 }
 0x1d6   :  { %v1064_v13 = vadd.f32 %v1063_v52, %v10433_v33  ;;  %v1065_v55 = vpop.f32.mrb[14].mxu1 }
 0x1d7   :  { %1297 = vst [vmem:[#allocation2 + $0x70] sm:$0xff] %v10573_v23  ;;  %v10581_v61 = vadd.f32 %v1065_v55, %v10435_v36  ;;  %v1067_v63 = vpop.f32.mrb[15].mxu1 }
 0x1d8   :  { %1298 = vst [vmem:[#allocation2 + $0x78] sm:$0xff] %v1064_v13  ;;  %v1068_v0 = vadd.f32 %v1067_v63, %v10435_v36 }
 0x1d9   :  { %1323 = vst [vmem:[#allocation2 + $0x138] sm:$0xff] %v10581_v61 }
 0x1da   :  { %1324 = vst [vmem:[#allocation2 + $0x140] sm:$0xff] %v1068_v0 }
 0x1ef   :  { %v1104_v28 = vpop.f32.mrb[16].mxu0 }
 0x1f0   :  { %v1105_v12 = vadd.f32 %v1104_v28, %v10433_v33  ;;  %v1106_v21 = vpop.f32.mrb[17].mxu0 }
 0x1f1   :  { %v1107_v24 = vadd.f32 %v1106_v21, %v10433_v33  ;;  %v1108_v25 = vpop.f32.mrb[18].mxu0  ;;  %v9366_v21 = vld [vmem:[%s13958_s3 + $0x84] ss:$8 sps:$4 sm:$0xff]  }
 0x1f2   :  { %1299 = vst [vmem:[#allocation2 + $0x80] sm:$0xff] %v1105_v12  ;;  %v1109_v26 = vadd.f32 %v1108_v25, %v10435_v36  ;;  %v1110_v30 = vpop.f32.mrb[19].mxu0  ;;  %v9364_v25 = vld [vmem:[%s13958_s3 + $0x80] ss:$8 sps:$4 sm:$0xff]   ;;  %2703 = vmatprep.subr.bf16.mxu1 %v9366_v21  ;;  %3511 = vmatprep.subr.bf16.mxu0 %v9366_v21 }
 0x1f3   :  { %1300 = vst [vmem:[#allocation2 + $0x88] sm:$0xff] %v1107_v24  ;;  %v1111_v54 = vadd.f32 %v1110_v30, %v10435_v36  ;;  %v1147_v50 = vpop.f32.mrb[16].mxu1  ;;  %2704 = vmatpush1.bf16.msra.mxu1 %v9364_v25  ;;  %3512 = vmatpush1.bf16.msra.mxu0 %v9364_v25 }
 0x1f4   :  { %1325 = vst [vmem:[#allocation2 + $0x148] sm:$0xff] %v1109_v26  ;;  %v1148_v32 = vadd.f32 %v1147_v50, %v10433_v33  ;;  %v1149_v34 = vpop.f32.mrb[17].mxu1  ;;  %v9372_v50 = vld [vmem:[%s13958_s3 + $0xa4] ss:$8 sps:$4 sm:$0xff]  }
 0x1f5   :  { %1326 = vst [vmem:[#allocation2 + $0x150] sm:$0xff] %v1111_v54  ;;  %v1150_v20 = vadd.f32 %v1149_v34, %v10433_v33  ;;  %v1151_v14 = vpop.f32.mrb[18].mxu1 }
 0x1f6   :  { %1301 = vst [vmem:[#allocation2 + $0x90] sm:$0xff] %v1148_v32  ;;  %v1152_v38 = vadd.f32 %v1151_v14, %v10435_v36  ;;  %v1153_v39 = vpop.f32.mrb[19].mxu1  ;;  %v9370_v32 = vld [vmem:[%s13958_s3 + $0xa0] ss:$8 sps:$4 sm:$0xff]  }
 0x1f7   :  { %1302 = vst [vmem:[#allocation2 + $0x98] sm:$0xff] %v1150_v20  ;;  %v1154_v19 = vadd.f32 %v1153_v39, %v10435_v36  ;;  %v9375_v39 = vld [vmem:[%s13958_s3 + $0xb4] ss:$8 sps:$4 sm:$0xff]  }
 0x1f8   :  { %1327 = vst [vmem:[#allocation2 + $0x158] sm:$0xff] %v1152_v38 }
 0x1f9   :  { %1328 = vst [vmem:[#allocation2 + $0x160] sm:$0xff] %v1154_v19 }
 0x20f   :  { %v1190_v10 = vpop.f32.mrb[20].mxu0 }
 0x210   :  { %v1191_v40 = vadd.f32 %v1190_v10, %v10433_v33  ;;  %v1192_v41 = vpop.f32.mrb[21].mxu0 }
 0x211   :  { %v1193_v42 = vadd.f32 %v1192_v41, %v10433_v33  ;;  %v1194_v44 = vpop.f32.mrb[22].mxu0  ;;  %v9373_v41 = vld [vmem:[%s13958_s3 + $0xb0] ss:$8 sps:$4 sm:$0xff]  }
 0x212   :  { %1303 = vst [vmem:[#allocation2 + $0xa0] sm:$0xff] %v1191_v40  ;;  %v1195_v46 = vadd.f32 %v1194_v44, %v10435_v36  ;;  %v1196_v27 = vpop.f32.mrb[23].mxu0 }
 0x213   :  { %1304 = vst [vmem:[#allocation2 + $0xa8] sm:$0xff] %v1193_v42  ;;  %v1197_v52 = vadd.f32 %v1196_v27, %v10435_v36  ;;  %v1233_v13 = vpop.f32.mrb[20].mxu1 }
 0x214   :  { %1329 = vst [vmem:[#allocation2 + $0x168] sm:$0xff] %v1195_v46  ;;  %v1234_v55 = vadd.f32 %v1233_v13, %v10433_v33  ;;  %v1235_v59 = vpop.f32.mrb[21].mxu1 }
 0x215   :  { %1330 = vst [vmem:[#allocation2 + $0x170] sm:$0xff] %v1197_v52  ;;  %v1236_v63 = vadd.f32 %v1235_v59, %v10433_v33  ;;  %v1237_v43 = vpop.f32.mrb[22].mxu1 }
 0x216   :  { %1305 = vst [vmem:[#allocation2 + $0xb0] sm:$0xff] %v1234_v55  ;;  %v1238_v0 = vadd.f32 %v1237_v43, %v10435_v36  ;;  %v1239_v2 = vpop.f32.mrb[23].mxu1 }
 0x217   :  { %1306 = vst [vmem:[#allocation2 + $0xb8] sm:$0xff] %v1236_v63  ;;  %v1240_v4 = vadd.f32 %v1239_v2, %v10435_v36  ;;  %v9376_v2 = vld [vmem:[%s13958_s3 + $0xc0] ss:$8 sps:$4 sm:$0xff]  }
 0x218   :  { %1331 = vst [vmem:[#allocation2 + $0x178] sm:$0xff] %v1238_v0 }
 0x219   :  { %1332 = vst [vmem:[#allocation2 + $0x180] sm:$0xff] %v1240_v4 }
 0x21b   :  { %v1276_v6 = vpop.f32.mrb[24].mxu0 }
 0x21c   :  { %v1277_v9 = vadd.f32 %v1276_v6, %v10433_v33  ;;  %v8841_v49 = vpop.f32.mrb[25].mxu0  ;;  %v9369_v33 = vld [vmem:[%s13958_s3 + $0x94] ss:$8 sps:$4 sm:$0xff]  }
 0x21d   :  { %v1279_v28 = vpop.f32.mrb[26].mxu0  ;;  %2705 = vmatprep.subr.bf16.mxu1 %v9369_v33  ;;  %3513 = vmatprep.subr.bf16.mxu0 %v9369_v33 }
 0x21e   :  { %1308 = vst.msk [vmem:[#allocation2 + $0xc0] sm:$0xff] %vm1307_vm7, %v1277_v9  ;;  %v1280_v12 = vadd.f32 %v1279_v28, %v10435_v36  ;;  %v8842_v24 = vpop.f32.mrb[27].mxu0  ;;  %v9367_v36 = vld [vmem:[%s13958_s3 + $0x90] ss:$8 sps:$4 sm:$0xff]  }
 0x21f   :  { %2706 = vmatpush1.bf16.msra.mxu1 %v9367_v36  ;;  %3514 = vmatpush1.bf16.msra.mxu0 %v9367_v36 }
 0x220   :  { %1333 = vst.msk [vmem:[#allocation2 + $0x188] sm:$0xff] %vm1307_vm7, %v1280_v12  ;;  %2707 = vmatprep.subr.bf16.mxu1 %v9372_v50  ;;  %3515 = vmatprep.subr.bf16.mxu0 %v9372_v50  ;;  %vm4501_vm7 = vcmask 392192  }
 0x223   :  { %2708 = vmatpush1.bf16.msra.mxu1 %v9370_v32  ;;  %3516 = vmatpush1.bf16.msra.mxu0 %v9370_v32  ;;  %v9381_v32 = vld [vmem:[%s13958_s3 + $0xd4] ss:$8 sps:$4 sm:$0xff]  }
 0x224   :  { %2709 = vmatprep.subr.bf16.mxu1 %v9375_v39  ;;  %3517 = vmatprep.subr.bf16.mxu0 %v9375_v39 }
 0x226   :  { %v8996_v26 = vpop.permute.xlu1 %8995 }
 0x227   :  { %v8998_v30 = vunpack.i.h.bf16 %v8996_v26  ;;  %v8997_v54 = vunpack.i.l.bf16 %v8996_v26  ;;  %2710 = vmatpush1.bf16.msra.mxu1 %v9373_v41  ;;  %3518 = vmatpush1.bf16.msra.mxu0 %v9373_v41 }
 0x229   :  { %v1542_v14 = vsel %vm177_vm0, %v8997_v54, %v8998_v30 }
 0x22a   :  { %v10639_v34 = vpop.permute.xlu0 %9000  ;;  %v9006_v20 = vpop.permute.xlu1 %9005  ;;  %v10652_v44 = vmax.f32 %v10477_v57, %v1542_v14  ;;  %v9378_v57 = vld [vmem:[%s13958_s3 + $0xc4] ss:$8 sps:$4 sm:$0xff]  }
 0x22b   :  { %v9002_v38 = vunpack.i.l.bf16 %v10639_v34  ;;  %v9003_v19 = vunpack.i.h.bf16 %v10639_v34  ;;  %v9008_v10 = vunpack.i.h.bf16 %v9006_v20  ;;  %v9007_v40 = vunpack.i.l.bf16 %v9006_v20  ;;  %2711 = vmatprep.subr.bf16.mxu1 %v9378_v57  ;;  %3519 = vmatprep.subr.bf16.mxu0 %v9378_v57 }
 0x22c   :  { %2712 = vmatpush1.bf16.msra.mxu1 %v9376_v2  ;;  %3520 = vmatpush1.bf16.msra.mxu0 %v9376_v2 }
 0x22d   :  { %v1543_v42 = vsel %vm177_vm0, %v8998_v30, %v9002_v38  ;;  %v1566_v43 = vsel %vm177_vm0, %v9007_v40, %v9008_v10  ;;  %2713 = vmatprep.subr.bf16.mxu1 %v9381_v32  ;;  %3521 = vmatprep.subr.bf16.mxu0 %v9381_v32 }
 0x22e   :  { %v10655_v46 = vmax.f32 %v10486_v60, %v1543_v42  ;;  %v10657_v27 = vpop.permute.xlu0 %9010  ;;  %v10659_v52 = vpop.permute.xlu1 %9015  ;;  %v1544_v60 = vsel %vm177_vm0, %v9002_v38, %v9003_v19  ;;  %v10711_v30 = vmax.f32 %v10483_v8, %v1566_v43  ;;  %v9379_v8 = vld [vmem:[%s13958_s3 + $0xd0] ss:$8 sps:$4 sm:$0xff]  }
 0x22f   :  { %v9013_v13 = vunpack.i.h.bf16 %v10657_v27  ;;  %v9012_v55 = vunpack.i.l.bf16 %v10657_v27  ;;  %v13978_v59 = vunpack.i.h.bf16 %v10659_v52  ;;  %v13976_v63 = vunpack.i.l.bf16 %v10659_v52 }
 0x230   :  { %v9044_v0 = vpack.i.bf16 %v10655_v46, %v10652_v44  ;;  %2714 = vmatpush1.bf16.msra.mxu1 %v9379_v8  ;;  %3522 = vmatpush1.bf16.msra.mxu0 %v9379_v8 }
 0x231   :  { %v1567_v4 = vsel %vm177_vm0, %v9008_v10, %v9012_v55  ;;  %v1568_v6 = vsel %vm177_vm0, %v9012_v55, %v9013_v13  ;;  %v1541_v9 = vsel %vm177_vm0, %v13976_v63, %v8997_v54  ;;  %v1565_v49 = vsel %vm177_vm0, %v13978_v59, %v9007_v40 }
 0x232   :  { %v10688_v28 = vmax.f32 %v10492_v56, %v1567_v4  ;;  %v10691_v12 = vmax.f32 %v10497_v1, %v1568_v6  ;;  %v10694_v21 = vmax.f32 %v10473_v51, %v1541_v9  ;;  %v10697_v24 = vmax.f32 %v10480_v58, %v1565_v49  ;;  %v9021_v25 = vpop.permute.xlu0 %9020  ;;  %v10699_v33 = vpop.permute.xlu1 %9025  ;;  %9045 = vrot.lane.b32.xlu0 %v9044_v0, %s14041_s0 }
 0x233   :  { %v9023_v36 = vunpack.i.h.bf16 %v9021_v25  ;;  %v9022_v26 = vunpack.i.l.bf16 %v9021_v25  ;;  %v9027_v56 = vunpack.i.l.bf16 %v10699_v33  ;;  %v10708_v58 = vmax.f32 %v10489_v62, %v1544_v60 }
 0x234   :  { %v9054_v1 = vpack.i.bf16 %v10691_v12, %v10688_v28  ;;  %v9039_v51 = vpack.i.bf16 %v10697_v24, %v10694_v21  ;;  %v9028_v20 = vunpack.i.h.bf16 %v10699_v33  ;;  %v9059_v55 = vpack.i.bf16 %v10533_v31, %v10504_v5  ;;  %v9382_v31 = vld [vmem:[%s13958_s3 + $0xe0] ss:$8 sps:$4 sm:$0xff]  }
 0x235   :  { %v1536_v54 = vsel %vm177_vm0, %v9022_v26, %v9023_v36  ;;  %v1537_v50 = vsel %vm177_vm0, %v9023_v36, %v9027_v56  ;;  %v9049_v43 = vpack.i.bf16 %v10711_v30, %v10708_v58  ;;  %v9064_v25 = vpack.i.bf16 %v10540_v37, %v10512_v15  ;;  %v9390_v36 = vld [vmem:[%s13958_s3 + $0x104] ss:$8 sps:$4 sm:$0xff]  }
 0x236   :  { %v10721_v14 = vpop.permute.xlu0 %9030  ;;  %v9036_v38 = vpop.permute.xlu1 %9035  ;;  %9055 = vrot.lane.b32.xlu0 %v9054_v1, %s14041_s0  ;;  %9040 = vrot.lane.b32.xlu1 %v9039_v51, %s14041_s0  ;;  %v10731_v41 = vmax.f32 %v10441_v35, %v1536_v54  ;;  %v10734_v42 = vmax.f32 %v10450_v7, %v1537_v50  ;;  %v9384_v35 = vld [vmem:[%s13958_s3 + $0xe4] ss:$8 sps:$4 sm:$0xff]   ;;  %v9089_v15 = vpack.i.bf16 %v10469_v48, %v10465_v47 }
 0x237   :  { %v9033_v62 = vunpack.i.h.bf16 %v10721_v14  ;;  %v9032_v39 = vunpack.i.l.bf16 %v10721_v14  ;;  %v9038_v10 = vunpack.i.h.bf16 %v9036_v38  ;;  %v9037_v40 = vunpack.i.l.bf16 %v9036_v38  ;;  %2715 = vmatprep.subr.bf16.mxu1 %v9384_v35  ;;  %3523 = vmatprep.subr.bf16.mxu0 %v9384_v35  ;;  %v10919_v14 = vld [vmem:[%s13958_s3 + $0x100] ss:$8 sps:$4 sm:$0xff]  }
 0x238   :  { %v9069_v6 = vpack.i.bf16 %v10734_v42, %v10731_v41  ;;  %2716 = vmatpush1.bf16.msra.mxu1 %v9382_v31  ;;  %3524 = vmatpush1.bf16.msra.mxu0 %v9382_v31  ;;  %v9084_v37 = vpack.i.bf16 %v10461_v45, %v10458_v11 }
 0x239   :  { %v1535_v57 = vsel %vm177_vm0, %v9037_v40, %v9022_v26  ;;  %v1559_v60 = vsel %vm177_vm0, %v9038_v10, %v9028_v20  ;;  %v1560_v0 = vsel %vm177_vm0, %v9028_v20, %v9032_v39  ;;  %v1561_v7 = vsel %vm177_vm0, %v9032_v39, %v9033_v62 }
 0x23a   :  { %9060 = vrot.lane.b32.xlu0 %v9059_v55, %s9733_s22  ;;  %9050 = vrot.lane.b32.xlu1 %v9049_v43, %s14041_s0  ;;  %v10755_v2 = vmax.f32 %v10438_v22, %v1535_v57  ;;  %v10758_v4 = vmax.f32 %v10444_v16, %v1559_v60  ;;  %v10763_v9 = vmax.f32 %v10447_v18, %v1560_v0  ;;  %v9387_v22 = vld [vmem:[%s13958_s3 + $0xf4] ss:$8 sps:$4 sm:$0xff]   ;;  %v9385_v16 = vld [vmem:[%s13958_s3 + $0xf0] ss:$8 sps:$4 sm:$0xff]  }
 0x23b   :  { %v10766_v49 = vmax.f32 %v10454_v17, %v1561_v7  ;;  %2717 = vmatprep.subr.bf16.mxu1 %v9387_v22  ;;  %3525 = vmatprep.subr.bf16.mxu0 %v9387_v22 }
 0x23c   :  { %v9079_v18 = vpack.i.bf16 %v10758_v4, %v10755_v2  ;;  %2718 = vmatpush1.bf16.msra.mxu1 %v9385_v16  ;;  %3526 = vmatpush1.bf16.msra.mxu0 %v9385_v16 }
 0x23d   :  { %v9074_v17 = vpack.i.bf16 %v10766_v49, %v10763_v9  ;;  %2730 = vmatprep.subr.bf16.mxu1 %v9390_v36  ;;  %3538 = vmatprep.subr.bf16.mxu0 %v9390_v36 }
 0x23e   :  { %9070 = vrot.lane.b32.xlu0 %v9069_v6, %s14041_s0  ;;  %9065 = vrot.lane.b32.xlu1 %v9064_v25, %s9733_s22 }
 0x242   :  { %9080 = vrot.lane.b32.xlu0 %v9079_v18, %s14041_s0  ;;  %9075 = vrot.lane.b32.xlu1 %v9074_v17, %s14041_s0 }
 0x246   :  { %9090 = vrot.lane.b32.xlu0 %v9089_v15, %s9733_s22  ;;  %9085 = vrot.lane.b32.xlu1 %v9084_v37, %s9733_s22 }
 0x2a4   :  { %v9046_v26 = vpop.permute.xlu0 %9045 }
 0x2a5   :  { %v9048_v1 = vunpack.i.h.bf16 %v9046_v26  ;;  %v9047_v51 = vunpack.i.l.bf16 %v9046_v26 }
 0x2a7   :  { %v1841_v54 = vsel %vm14062_vm8, %v9047_v51, %v9048_v1 }
 0x2a8   :  { %v10794_v47 = vpop.permute.xlu0 %9055  ;;  %v10796_v48 = vpop.permute.xlu1 %9040  ;;  %v1939_v32 = vmax.f32 %v10652_v44, %v1841_v54 }
 0x2a9   :  { %14063 = vst [vmem:[#allocation7_spill] sm:$0xff] %v10796_v48  ;;  %v13982_v11 = vunpack.i.h.bf16 %v10794_v47  ;;  %v9057_v45 = vunpack.i.l.bf16 %v10794_v47  ;;  %v13973_v50 = vunpack.i.l.bf16 %v10796_v48  ;;  %v13974_v44 = vunpack.i.h.bf16 %v10796_v48 }
 0x2aa   :  { %v10814_v55 = vmax.f32 %v1939_v32, 0.0 }
 0x2ab   :  { %v1866_v20 = vsel %vm14062_vm8, %v9057_v45, %v13982_v11  ;;  %v1840_v38 = vsel %vm14062_vm8, %v13973_v50, %v9047_v51  ;;  %v11111_v50 = vld [vmem:[%s13958_s3 + $0x1f4] ss:$8 sps:$4 sm:$0xff]  }
 0x2ac   :  { %v10808_v8 = vpop.permute.xlu0 %9060  ;;  %v10812_v40 = vpop.permute.xlu1 %9050  ;;  %v1965_v43 = vmax.f32 %v10688_v28, %v1866_v20  ;;  %v1938_v35 = vmax.f32 %v10694_v21, %v1840_v38  ;;  %v9716_v38 = vld [vmem:[#allocation2 + $0x118] sm:$0xff] }
 0x2ad   :  { %v13983_v39 = vunpack.i.h.bf16 %v10808_v8  ;;  %v9062_v10 = vunpack.i.l.bf16 %v10808_v8  ;;  %v9053_v57 = vunpack.i.h.bf16 %v10812_v40  ;;  %v9052_v60 = vunpack.i.l.bf16 %v10812_v40 }
 0x2ae   :  { %v10851_v37 = vmax.f32 %v1965_v43, 0.0  ;;  %v1988_v26 = vmax.f32 %v1938_v35, 0.0 }
 0x2af   :  { %v1545_v0 = vsel %vm177_vm0, %v9003_v19, %v9062_v10  ;;  %v1546_v7 = vsel %vm177_vm0, %v9062_v10, %v13983_v39  ;;  %v1865_v25 = vsel %vm14062_vm8, %v9053_v57, %v9057_v45  ;;  %v1842_v28 = vsel %vm14062_vm8, %v9048_v1, %v9052_v60 }
 0x2b0   :  { %v10828_v31 = vmax.f32 %v10500_v3, %v1545_v0  ;;  %v10831_v6 = vmax.f32 %v10504_v5, %v1546_v7  ;;  %v10837_v21 = vpop.permute.xlu0 %9070  ;;  %v1964_v34 = vmax.f32 %v10711_v30, %v1865_v25  ;;  %v1864_v19 = vsel %vm14062_vm8, %v13974_v44, %v9053_v57  ;;  %v10845_v5 = vpop.permute.xlu1 %9065  ;;  %v9717_v57 = vld [vmem:[#allocation2 + $0x120] sm:$0xff]  ;;  %v11117_v44 = vld [vmem:[%s13958_s3 + $0x1f0] ss:$8 sps:$4 sm:$0xff]  }
 0x2b1   :  { %v1940_v3 = vmax.f32 %v10655_v46, %v1842_v28  ;;  %v13979_v22 = vunpack.i.h.bf16 %v10837_v21  ;;  %v1963_v16 = vmax.f32 %v10697_v24, %v1864_v19  ;;  %v9072_v18 = vunpack.i.l.bf16 %v10837_v21  ;;  %14068 = vst [vmem:[#allocation12_spill] sm:$0xff] %v11117_v44 }
 0x2b2   :  { %14064 = vst [vmem:[#allocation8_spill] sm:$0xff] %v10831_v6  ;;  %v13981_v17 = vunpack.i.h.bf16 %v10845_v5  ;;  %v9067_v15 = vunpack.i.l.bf16 %v10845_v5  ;;  %v2014_v30 = vmax.f32 %v1964_v34, 0.0  ;;  %v9094_v46 = vpack.i.bf16 %v10831_v6, %v10828_v31  ;;  %v9723_v6 = vld [vmem:[#allocation2 + $0x60] sm:$0xff] }
 0x2b3   :  { %v10853_v36 = vmax.f32 %v1940_v3, 0.0  ;;  %v2013_v1 = vmax.f32 %v1963_v16, 0.0  ;;  %v1835_v20 = vsel %vm14062_vm8, %v9072_v18, %v13979_v22  ;;  %v9099_v25 = vpack.i.bf16 %v10573_v23, %v10536_v53 }
 0x2b4   :  { %v1569_v24 = vsel %vm177_vm0, %v9013_v13, %v9067_v15  ;;  %v1570_v51 = vsel %vm177_vm0, %v9067_v15, %v13981_v17  ;;  %v9081_v54 = vpop.permute.xlu0 %9080  ;;  %v2039_v45 = vpack.c.bf16 %v2014_v30, %v10814_v55  ;;  %9095 = vrot.lane.b32.xlu1 %v9094_v46, %s14041_s0  ;;  %v10872_v27 = vpop.permute.xlu1 %9075  ;;  %v1933_v28 = vmax.f32 %v10731_v41, %v1835_v20 }
 0x2b5   :  { %v2040_v32 = vpack.c.bf16 %v10851_v37, %v10853_v36  ;;  %v10869_v10 = vmax.f32 %v9716_v38, %v1569_v24  ;;  %v2038_v13 = vpack.c.bf16 %v2013_v1, %v1988_v26  ;;  %v10874_v43 = vmax.f32 %v9717_v57, %v1570_v51  ;;  %v10901_v26 = vld [vmem:[#allocation2 + $0x130] sm:$0xff] }
 0x2b6   :  { %v9083_v35 = vunpack.i.h.bf16 %v9081_v54  ;;  %v9082_v55 = vunpack.i.l.bf16 %v9081_v54  ;;  %v13980_v0 = vunpack.i.h.bf16 %v10872_v27  ;;  %v9077_v7 = vunpack.i.l.bf16 %v10872_v27 }
 0x2b7   :  { %14065 = vst [vmem:[#allocation9_spill] sm:$0xff] %v10874_v43  ;;  %2063 = vst [vmem:[#allocation3 + $0x30] sm:$0xff] %v2038_v13  ;;  %v9104_v3 = vpack.i.bf16 %v10874_v43, %v10869_v10  ;;  %v9109_v1 = vpack.i.bf16 %v10581_v61, %v10901_v26  ;;  %v1983_v24 = vmax.f32 %v1933_v28, 0.0  ;;  %v14072_v43 = vunpack.i.h.bf16 %v10808_v8 }
 0x2b8   :  { %v1834_v34 = vsel %vm14062_vm8, %v9082_v55, %v9072_v18  ;;  %v10882_v19 = vpop.permute.xlu0 %9090  ;;  %v1858_v15 = vsel %vm14062_vm8, %v9083_v35, %v9077_v7  ;;  %v1859_v37 = vsel %vm14062_vm8, %v9077_v7, %v13980_v0  ;;  %9100 = vrot.lane.b32.xlu1 %v9099_v25, %s9733_s22  ;;  %v10893_v23 = vpop.permute.xlu1 %9085  ;;  %v9720_v35 = vld [vmem:[#allocation2 + $0xe8] sm:$0xff]  ;;  %v9722_v25 = vld [vmem:[#allocation2 + $0x20] sm:$0xff] }
 0x2b9   :  { %v1932_v16 = vmax.f32 %v10755_v2, %v1834_v34  ;;  %v13977_v53 = vunpack.i.h.bf16 %v10882_v19  ;;  %v1957_v41 = vmax.f32 %v10758_v4, %v1858_v15  ;;  %v1958_v18 = vmax.f32 %v10763_v9, %v1859_v37  ;;  %9105 = vrot.lane.b32.xlu0 %v9104_v3, %s14041_s0  ;;  %v10943_v34 = vld [vmem:[%s13958_s3 + $0x110] ss:$8 sps:$4 sm:$0xff]   ;;  %v10967_v15 = vld [vmem:[%s13958_s3 + $0x134] ss:$8 sps:$4 sm:$0xff]  }
 0x2ba   :  { %v9092_v30 = vunpack.i.l.bf16 %v10882_v19  ;;  %v13975_v36 = vunpack.i.h.bf16 %v10893_v23  ;;  %v9087_v46 = vunpack.i.l.bf16 %v10893_v23  ;;  %v10973_v37 = vld [vmem:[%s13958_s3 + $0x130] ss:$8 sps:$4 sm:$0xff]  }
 0x2bb   :  { %v1982_v2 = vmax.f32 %v1932_v16, 0.0  ;;  %v2007_v51 = vmax.f32 %v1957_v41, 0.0  ;;  %v2008_v54 = vmax.f32 %v1958_v18, 0.0  ;;  %v10951_v16 = vld [vmem:[%s13958_s3 + $0x124] ss:$8 sps:$4 sm:$0xff]  }
 0x2bc   :  { %v1562_v4 = vsel %vm177_vm0, %v9033_v62, %v9092_v30  ;;  %v1563_v9 = vsel %vm177_vm0, %v9092_v30, %v13977_v53  ;;  %v1538_v20 = vsel %vm177_vm0, %v9027_v56, %v9087_v46  ;;  %2977 = vrot.lane.b32.xlu1 %v2039_v45, %s14058_s28  ;;  %v9719_v62 = vld [vmem:[#allocation2 + $0xe0] sm:$0xff]  ;;  %v1539_v33 = vsel %vm177_vm0, %v9087_v46, %v13975_v36  ;;  %v10931_v56 = vld [vmem:[%s13958_s3 + $0x114] ss:$8 sps:$4 sm:$0xff]  }
 0x2bd   :  { %v2032_v38 = vpack.c.bf16 %v2007_v51, %v1982_v2  ;;  %v2033_v61 = vpack.c.bf16 %v2008_v54, %v1983_v24  ;;  %9110 = vrot.lane.b32.xlu0 %v9109_v1, %s9733_s22  ;;  %v10921_v57 = vmax.f32 %v9719_v62, %v1562_v4  ;;  %v10923_v55 = vmax.f32 %v9720_v35, %v1563_v9  ;;  %v9721_v45 = vld [vmem:[#allocation2 + $0x18] sm:$0xff]  ;;  %v10979_v41 = vld [vmem:[%s13958_s3 + $0x144] ss:$8 sps:$4 sm:$0xff]   ;;  %v10985_v18 = vld [vmem:[%s13958_s3 + $0x140] ss:$8 sps:$4 sm:$0xff]  }
 0x2be   :  { %v10933_v7 = vmax.f32 %v9721_v45, %v1538_v20  ;;  %v10935_v28 = vmax.f32 %v9722_v25, %v1539_v33  ;;  %v10991_v30 = vld [vmem:[%s13958_s3 + $0x154] ss:$8 sps:$4 sm:$0xff]   ;;  %v10997_v2 = vld [vmem:[%s13958_s3 + $0x150] ss:$8 sps:$4 sm:$0xff]   ;;  %v11003_v46 = vld [vmem:[%s13958_s3 + $0x164] ss:$8 sps:$4 sm:$0xff]  }
 0x2bf   :  { %14066 = vst [vmem:[#allocation10_spill] sm:$0xff] %v10923_v55  ;;  %2719 = vmatprep.mubr.bf16.mxu1 %v2033_v61  ;;  %v9119_v3 = vpack.i.bf16 %v10923_v55, %v10921_v57  ;;  %v11009_v1 = vld [vmem:[%s13958_s3 + $0x160] ss:$8 sps:$4 sm:$0xff]   ;;  %v11015_v24 = vld [vmem:[%s13958_s3 + $0x174] ss:$8 sps:$4 sm:$0xff]  }
 0x2c0   :  { %14067 = vst [vmem:[#allocation11_spill] sm:$0xff] %v10935_v28  ;;  %2975 = vrot.lane.b32.xlu1 %v2038_v13, %s14058_s28  ;;  %2720 = vmatmul.mubr.bf16.vlgmr.msra.gmra.mrb[24].mxu1 %v2032_v38  ;;  %v10961_v13 = vld [vmem:[%s13958_s3 + $0x120] ss:$8 sps:$4 sm:$0xff]   ;;  %v11021_v51 = vld [vmem:[%s13958_s3 + $0x170] ss:$8 sps:$4 sm:$0xff]  }
 0x2c1   :  { %2979 = vrot.lane.b32.xlu0 %v2040_v32, %s14058_s28  ;;  %2731 = vmatpush1.bf16.msra.mxu1 %v10919_v14  ;;  %v9114_v32 = vpack.i.bf16 %v10935_v28, %v10933_v7  ;;  %v11027_v54 = vld [vmem:[%s13958_s3 + $0x184] ss:$8 sps:$4 sm:$0xff]   ;;  %v11033_v4 = vld [vmem:[%s13958_s3 + $0x180] ss:$8 sps:$4 sm:$0xff]   ;;  %v11039_v9 = vld [vmem:[%s13958_s3 + $0x194] ss:$8 sps:$4 sm:$0xff]   ;;  %v14074_v28 = vunpack.i.h.bf16 %v10794_v47 }
 0x2c2   :  { %2732 = vmatprep.subr.bf16.mxu1 %v10931_v56  ;;  %v11045_v20 = vld [vmem:[%s13958_s3 + $0x190] ss:$8 sps:$4 sm:$0xff]   ;;  %v11051_v38 = vld [vmem:[%s13958_s3 + $0x1a4] ss:$8 sps:$4 sm:$0xff]   ;;  %v11057_v61 = vld [vmem:[%s13958_s3 + $0x1a0] ss:$8 sps:$4 sm:$0xff]  }
 0x2c3   :  { %v11063_v62 = vld [vmem:[%s13958_s3 + $0x1b4] ss:$8 sps:$4 sm:$0xff]   ;;  %v11069_v35 = vld [vmem:[%s13958_s3 + $0x1b0] ss:$8 sps:$4 sm:$0xff]   ;;  %v11075_v33 = vld [vmem:[%s13958_s3 + $0x1c4] ss:$8 sps:$4 sm:$0xff]  }
 0x2c4   :  { %9120 = vrot.lane.b32.xlu1 %v9119_v3, %s14041_s0  ;;  %v11081_v45 = vld [vmem:[%s13958_s3 + $0x1c0] ss:$8 sps:$4 sm:$0xff]   ;;  %v11087_v25 = vld [vmem:[%s13958_s3 + $0x1d4] ss:$8 sps:$4 sm:$0xff]   ;;  %v11093_v3 = vld [vmem:[%s13958_s3 + $0x1d0] ss:$8 sps:$4 sm:$0xff]  }
 0x2c5   :  { %9115 = vrot.lane.b32.xlu0 %v9114_v32, %s14041_s0  ;;  %2733 = vmatpush1.bf16.msra.mxu1 %v10943_v34  ;;  %v11099_v32 = vld [vmem:[%s13958_s3 + $0x1e4] ss:$8 sps:$4 sm:$0xff]  }
 0x2c6   :  { %2734 = vmatprep.subr.bf16.mxu1 %v10951_v16  ;;  %v11123_v36 = vld [vmem:[%s13958_s3 + $0x204] ss:$8 sps:$4 sm:$0xff]  }
 0x2c7   :  { %14069 = vst [vmem:[#allocation13_spill] sm:$0xff] %v11123_v36 }
 0x2c9   :  { %2735 = vmatpush1.bf16.msra.mxu1 %v10961_v13 }
 0x2ca   :  { %2736 = vmatprep.subr.bf16.mxu1 %v10967_v15 }
 0x2cd   :  { %2737 = vmatpush1.bf16.msra.mxu1 %v10973_v37 }
 0x2ce   :  { %2738 = vmatprep.subr.bf16.mxu1 %v10979_v41 }
 0x2d1   :  { %2739 = vmatpush1.bf16.msra.mxu1 %v10985_v18 }
 0x2d2   :  { %2740 = vmatprep.subr.bf16.mxu1 %v10991_v30 }
 0x2d5   :  { %2741 = vmatpush1.bf16.msra.mxu1 %v10997_v2 }
 0x2d6   :  { %2742 = vmatprep.subr.bf16.mxu1 %v11003_v46 }
 0x2d9   :  { %2743 = vmatpush1.bf16.msra.mxu1 %v11009_v1 }
 0x2da   :  { %2744 = vmatprep.subr.bf16.mxu1 %v11015_v24 }
 0x2dd   :  { %2745 = vmatpush1.bf16.msra.mxu1 %v11021_v51 }
 0x2de   :  { %2746 = vmatprep.subr.bf16.mxu1 %v11027_v54 }
 0x2e1   :  { %2747 = vmatpush1.bf16.msra.mxu1 %v11033_v4 }
 0x2e2   :  { %2748 = vmatprep.subr.bf16.mxu1 %v11039_v9 }
 0x2e5   :  { %2749 = vmatpush1.bf16.msra.mxu1 %v11045_v20 }
 0x2e6   :  { %2750 = vmatprep.subr.bf16.mxu1 %v11051_v38 }
 0x2e9   :  { %2751 = vmatpush1.bf16.msra.mxu1 %v11057_v61 }
 0x2ea   :  { %2752 = vmatprep.subr.bf16.mxu1 %v11063_v62 }
 0x2ed   :  { %2753 = vmatpush1.bf16.msra.mxu1 %v11069_v35 }
 0x2ee   :  { %2754 = vmatprep.subr.bf16.mxu1 %v11075_v33 }
 0x2f1   :  { %2755 = vmatpush1.bf16.msra.mxu1 %v11081_v45 }
 0x2f2   :  { %2756 = vmatprep.subr.bf16.mxu1 %v11087_v25 }
 0x2f5   :  { %2757 = vmatpush1.bf16.msra.mxu1 %v11093_v3 }
 0x2f6   :  { %2758 = vmatprep.subr.bf16.mxu1 %v11099_v32 }
 0x2f9   :  { %2759 = vmatpush1.bf16.msra.mxu1 %v11105_v29 }
 0x2fa   :  { %2760 = vmatprep.subr.bf16.mxu1 %v11111_v50 }
 0x2fd   :  { %2761 = vmatpush1.bf16.msra.mxu1 %v11117_v44 }
 0x2fe   :  { %2773 = vmatprep.subr.bf16.mxu1 %v11123_v36  ;;  %v9724_v36 = vld [vmem:[#allocation2 + $0x68] sm:$0xff] }
 0x326   :  { %v11127_v63 = vpop.permute.xlu1 %9095 }
 0x327   :  { %14070 = vst [vmem:[#allocation14_spill] sm:$0xff] %v11127_v63  ;;  %v13989_v53 = vunpack.i.h.bf16 %v11127_v63  ;;  %v9097_v59 = vunpack.i.l.bf16 %v11127_v63 }
 0x329   :  { %v1843_v22 = vsel %vm14062_vm8, %v9052_v60, %v9097_v59  ;;  %v1844_v0 = vsel %vm14062_vm8, %v9097_v59, %v13989_v53 }
 0x32a   :  { %v11137_v17 = vpop.permute.xlu1 %9100  ;;  %v1941_v40 = vmax.f32 %v10708_v58, %v1843_v22  ;;  %v1942_v60 = vmax.f32 %v10828_v31, %v1844_v0 }
 0x32b   :  { %v13994_v11 = vunpack.i.h.bf16 %v11137_v17  ;;  %v9102_v39 = vunpack.i.l.bf16 %v11137_v17  ;;  %v11141_v55 = vpop.permute.xlu0 %9105 }
 0x32c   :  { %14071 = vst [vmem:[#allocation15_spill] sm:$0xff] %v11141_v55  ;;  %v9107_v48 = vunpack.i.l.bf16 %v11141_v55  ;;  %v14075_v31 = vunpack.i.h.bf16 %v11141_v55  ;;  %v9725_v55 = vld [vmem:[#allocation2 + $0x128] sm:$0xff] }
 0x32d   :  { %v1547_v59 = vsel %vm177_vm0, %v14072_v43, %v9102_v39  ;;  %v1548_v53 = vsel %vm177_vm0, %v9102_v39, %v13994_v11 }
 0x32e   :  { %v11153_v63 = vmax.f32 %v9723_v6, %v1547_v59  ;;  %v11155_v44 = vmax.f32 %v9724_v36, %v1548_v53  ;;  %v1867_v58 = vsel %vm14062_vm8, %v14074_v28, %v9107_v48  ;;  %v1868_v8 = vsel %vm14062_vm8, %v9107_v48, %v14075_v31  ;;  %v2978_v22 = vpop.permute.xlu1 %2977  ;;  %v11171_v48 = vld [vmem:[#allocation2 + $0x80] sm:$0xff] }
 0x32f   :  { %v1966_v43 = vmax.f32 %v10691_v12, %v1867_v58  ;;  %v1967_v0 = vmax.f32 %v10869_v10, %v1868_v8  ;;  %v11165_v39 = vpop.permute.xlu0 %9110  ;;  %v1991_v36 = vmax.f32 %v1941_v40, 0.0  ;;  %v1992_v28 = vmax.f32 %v1942_v60, 0.0  ;;  %14076 = vst [vmem:[#allocation17_spill] sm:$0xff] %v11171_v48 }
 0x330   :  { %14073 = vst [vmem:[#allocation16_spill] sm:$0xff] %v11155_v44  ;;  %v13997_v6 = vunpack.i.h.bf16 %v11165_v39  ;;  %v9112_v53 = vunpack.i.l.bf16 %v11165_v39  ;;  %v9124_v47 = vpack.i.bf16 %v11155_v44, %v11153_v63  ;;  %v14077_v12 = vunpack.i.h.bf16 %v10845_v5  ;;  %v11187_v5 = vld [vmem:[#allocation2 + $0x78] sm:$0xff] }
 0x331   :  { %v2016_v59 = vmax.f32 %v1966_v43, 0.0  ;;  %v2017_v11 = vmax.f32 %v1967_v0, 0.0 }
 0x332   :  { %v1571_v10 = vsel %vm177_vm0, %v14077_v12, %v9112_v53  ;;  %v1572_v58 = vsel %vm177_vm0, %v9112_v53, %v13997_v6  ;;  %9125 = vrot.lane.b32.xlu0 %v9124_v47, %s14041_s0  ;;  %v2976_v31 = vpop.permute.xlu1 %2975  ;;  %v9134_v47 = vpack.i.bf16 %v11171_v48, %v11187_v5  ;;  %v11208_v12 = vld [vmem:[#allocation2 + $0x98] sm:$0xff]  ;;  %v14081_v6 = vunpack.i.h.bf16 %v10837_v21 }
 0x333   :  { %v2041_v8 = vpack.c.bf16 %v2016_v59, %v1991_v36  ;;  %v2042_v44 = vpack.c.bf16 %v2017_v11, %v1992_v28  ;;  %v11180_v40 = vmax.f32 %v9725_v55, %v1571_v10  ;;  %v11183_v60 = vmax.f32 %v10901_v26, %v1572_v58  ;;  %v11185_v43 = vpop.permute.xlu0 %2979  ;;  %v11196_v55 = vld [vmem:[#allocation2 + $0xa0] sm:$0xff]  ;;  %v11201_v36 = vld [vmem:[#allocation2 + $0x148] sm:$0xff] }
 0x334   :  { %v2991_v0 = vsel %vm14055_vm9, %v2978_v22, %v11185_v43  ;;  %v2990_v53 = vsel %vm14055_vm9, %v2976_v31, %v2978_v22  ;;  %14079 = vst [vmem:[#allocation19_spill] sm:$0xff] %v11201_v36  ;;  %v9144_v31 = vpack.i.bf16 %v11196_v55, %v11208_v12 }
 0x335   :  { %14078 = vst [vmem:[#allocation18_spill] sm:$0xff] %v11183_v60  ;;  %3527 = vmatprep.mubr.bf16.mxu0 %v2991_v0  ;;  %v9129_v11 = vpack.i.bf16 %v11183_v60, %v11180_v40  ;;  %v11215_v0 = vld [vmem:[#allocation2 + $0x140] sm:$0xff] }
 0x336   :  { %9135 = vrot.lane.b32.xlu0 %v9134_v47, %s9733_s22  ;;  %3528 = vmatmul.mubr.bf16.vlgmr.msra.gmra.mrb[28].mxu0 %v2990_v53  ;;  %v11199_v26 = vpop.permute.xlu1 %9120  ;;  %v14080_v53 = vunpack.i.h.bf16 %v10872_v27 }
 0x337   :  { %v11203_v28 = vpop.permute.xlu0 %9115  ;;  %9130 = vrot.lane.b32.xlu1 %v9129_v11, %s14041_s0  ;;  %v14000_v22 = vunpack.i.h.bf16 %v11199_v26  ;;  %v9122_v59 = vunpack.i.l.bf16 %v11199_v26  ;;  %3539 = vmatpush1.bf16.msra.mxu0 %v10919_v14  ;;  %v9139_v14 = vpack.i.bf16 %v11201_v36, %v11215_v0 }
 0x338   :  { %v9117_v58 = vunpack.i.l.bf16 %v11203_v28  ;;  %3540 = vmatprep.subr.bf16.mxu0 %v10931_v56  ;;  %v14082_v48 = vunpack.i.h.bf16 %v11203_v28 }
 0x339   :  { %v1860_v47 = vsel %vm14062_vm8, %v14080_v53, %v9122_v59  ;;  %v1861_v11 = vsel %vm14062_vm8, %v9122_v59, %v14000_v22 }
 0x33a   :  { %v1836_v10 = vsel %vm14062_vm8, %v14081_v6, %v9117_v58  ;;  %v1837_v60 = vsel %vm14062_vm8, %v9117_v58, %v14082_v48  ;;  %v1959_v56 = vmax.f32 %v10766_v49, %v1860_v47  ;;  %v1960_v27 = vmax.f32 %v10921_v57, %v1861_v11  ;;  %9145 = vrot.lane.b32.xlu0 %v9144_v31, %s9733_s22  ;;  %v11240_v58 = vld [vmem:[#allocation2 + $0x168] sm:$0xff]  ;;  %v11243_v49 = vld [vmem:[#allocation2 + $0xb0] sm:$0xff] }
 0x33b   :  { %v1934_v53 = vmax.f32 %v10734_v42, %v1836_v10  ;;  %v1935_v59 = vmax.f32 %v10933_v7, %v1837_v60  ;;  %9140 = vrot.lane.b32.xlu1 %v9139_v14, %s9733_s22  ;;  %3541 = vmatpush1.bf16.msra.mxu0 %v10943_v34  ;;  %14083 = vst [vmem:[#allocation20_spill] sm:$0xff] %v11243_v49  ;;  %v11246_v7 = vld [vmem:[#allocation2 + $0x160] sm:$0xff]  ;;  %v14086_v31 = vunpack.i.l.bf16 %v10659_v52  ;;  %v14087_v47 = vunpack.i.h.bf16 %v10893_v23  ;;  %v11279_v14 = vld [vmem:[#allocation2 + $0x178] sm:$0xff]  ;;  %v9726_v23 = vld [vmem:[#allocation2 + $0xf0] sm:$0xff] }
 0x33c   :  { %v2009_v21 = vmax.f32 %v1959_v56, 0.0  ;;  %v2010_v6 = vmax.f32 %v1960_v27, 0.0  ;;  %3542 = vmatprep.subr.bf16.mxu0 %v10951_v16  ;;  %v9154_v34 = vpack.i.bf16 %v11240_v58, %v11246_v7  ;;  %v11251_v16 = vld [vmem:[#allocation2 + $0xa8] sm:$0xff]  ;;  %14088 = vst [vmem:[#allocation21_spill] sm:$0xff] %v11279_v14  ;;  %v11282_v56 = vld [vmem:[#allocation2 + $0x90] sm:$0xff] }
 0x33d   :  { %v1984_v22 = vmax.f32 %v1934_v53, 0.0  ;;  %v1985_v48 = vmax.f32 %v1935_v59, 0.0  ;;  %v9149_v60 = vpack.i.bf16 %v11243_v49, %v11251_v16  ;;  %v1540_v11 = vsel %vm177_vm0, %v14087_v47, %v14086_v31  ;;  %v11287_v27 = vld [vmem:[#allocation2 + $0x170] sm:$0xff]  ;;  %v9727_v59 = vld [vmem:[#allocation2 + $0x28] sm:$0xff]  ;;  %v14103_v49 = vld [vmem:[#allocation15_spill] sm:$0xff] }
 0x33e   :  { %2981 = vrot.lane.b32.xlu0 %v2041_v8, %s14058_s28  ;;  %v11257_v8 = vld [vmem:[%s13958_s3 + $0x200] ss:$8 sps:$4 sm:$0xff]  }
 0x33f   :  { %v2034_v57 = vpack.c.bf16 %v2009_v21, %v1984_v22  ;;  %v2035_v42 = vpack.c.bf16 %v2010_v6, %v1985_v48  ;;  %2983 = vrot.lane.b32.xlu1 %v2042_v44, %s14058_s28  ;;  %3543 = vmatpush1.bf16.msra.mxu0 %v10961_v13  ;;  %v11261_v44 = vld [vmem:[#allocation2 + $0x158] sm:$0xff]  ;;  %v14084_v22 = vunpack.i.h.bf16 %v10659_v52  ;;  %v11298_v21 = vmax.f32 %v9727_v59, %v1540_v11  ;;  %v11316_v6 = vld [vmem:[%s13958_s3 + $0x220] ss:$8 sps:$4 sm:$0xff]  }
 0x340   :  { %3544 = vmatprep.subr.bf16.mxu0 %v10967_v15  ;;  %v11266_v13 = vld [vmem:[%s13958_s3 + $0x214] ss:$8 sps:$4 sm:$0xff]   ;;  %v14085_v15 = vunpack.i.h.bf16 %v10882_v19  ;;  %v9164_v19 = vpack.i.bf16 %v11261_v44, %v11282_v56  ;;  %v11294_v52 = vld [vmem:[%s13958_s3 + $0x210] ss:$8 sps:$4 sm:$0xff]  }
 0x341   :  { %2762 = vmatprep.mubr.bf16.mxu1 %v2035_v42  ;;  %v14089_v42 = vld [vmem:[#allocation12_spill] sm:$0xff] }
 0x342   :  { %v1564_v10 = vsel %vm177_vm0, %v14085_v15, %v14084_v22  ;;  %9155 = vrot.lane.b32.xlu0 %v9154_v34, %s9733_s22  ;;  %2763 = vmatmul.mubr.bf16.vlgmr.msra.gmra.mrb[24].mxu1 %v2034_v57  ;;  %v11324_v57 = vld [vmem:[%s13958_s3 + $0x234] ss:$8 sps:$4 sm:$0xff]   ;;  %v11479_v34 = vld [vmem:[%s13958_s3 + $0x2e4] ss:$8 sps:$4 sm:$0xff]   ;;  %v11497_v15 = vld [vmem:[%s13958_s3 + $0x2f0] ss:$8 sps:$4 sm:$0xff]  }
 0x343   :  { %9150 = vrot.lane.b32.xlu1 %v9149_v60, %s9733_s22  ;;  %3545 = vmatpush1.bf16.msra.mxu0 %v10973_v37  ;;  %v11296_v53 = vmax.f32 %v9726_v23, %v1564_v10  ;;  %v9159_v37 = vpack.i.bf16 %v11279_v14, %v11287_v27  ;;  %14091 = vst [vmem:[#allocation12_spill] sm:$0xff] %v11479_v34  ;;  %v11485_v60 = vld [vmem:[%s13958_s3 + $0x2e0] ss:$8 sps:$4 sm:$0xff]   ;;  %v11491_v22 = vld [vmem:[%s13958_s3 + $0x2f4] ss:$8 sps:$4 sm:$0xff]   ;;  %14094 = vst [vmem:[#allocation23_spill] sm:$0xff] %v11497_v15 }
 0x344   :  { %3546 = vmatprep.subr.bf16.mxu0 %v10979_v41  ;;  %2774 = vmatpush1.bf16.msra.mxu1 %v11257_v8  ;;  %v11306_v41 = vld [vmem:[%s13958_s3 + $0x224] ss:$8 sps:$4 sm:$0xff]   ;;  %14093 = vst [vmem:[#allocation22_spill] sm:$0xff] %v11491_v22 }
 0x345   :  { %2775 = vmatprep.subr.bf16.mxu1 %v11266_v13  ;;  %v9169_v48 = vpack.i.bf16 %v11296_v53, %v11298_v21  ;;  %v11503_v10 = vld [vmem:[%s13958_s3 + $0x304] ss:$8 sps:$4 sm:$0xff]  }
 0x346   :  { %9165 = vrot.lane.b32.xlu0 %v9164_v19, %s9733_s22  ;;  %14095 = vst [vmem:[#allocation24_spill] sm:$0xff] %v11503_v10  ;;  %v14097_v19 = vld [vmem:[#allocation14_spill] sm:$0xff] }
 0x347   :  { %9160 = vrot.lane.b32.xlu1 %v9159_v37, %s9733_s22  ;;  %3547 = vmatpush1.bf16.msra.mxu0 %v10985_v18  ;;  %v11333_v18 = vld [vmem:[%s13958_s3 + $0x230] ss:$8 sps:$4 sm:$0xff]   ;;  %v14098_v23 = vunpack.i.h.bf16 %v14097_v19 }
 0x348   :  { %3548 = vmatprep.subr.bf16.mxu0 %v10991_v30  ;;  %2776 = vmatpush1.bf16.msra.mxu1 %v11294_v52  ;;  %v11339_v30 = vld [vmem:[%s13958_s3 + $0x244] ss:$8 sps:$4 sm:$0xff]  }
 0x349   :  { %2777 = vmatprep.subr.bf16.mxu1 %v11306_v41 }
 0x34b   :  { %9170 = vrot.lane.b32.xlu1 %v9169_v48, %s14041_s0  ;;  %3549 = vmatpush1.bf16.msra.mxu0 %v10997_v2  ;;  %v11347_v2 = vld [vmem:[%s13958_s3 + $0x240] ss:$8 sps:$4 sm:$0xff]  }
 0x34c   :  { %3550 = vmatprep.subr.bf16.mxu0 %v11003_v46  ;;  %2778 = vmatpush1.bf16.msra.mxu1 %v11316_v6  ;;  %v11353_v46 = vld [vmem:[%s13958_s3 + $0x254] ss:$8 sps:$4 sm:$0xff]  }
 0x34d   :  { %2779 = vmatprep.subr.bf16.mxu1 %v11324_v57 }
 0x34f   :  { %3551 = vmatpush1.bf16.msra.mxu0 %v11009_v1  ;;  %v11361_v1 = vld [vmem:[%s13958_s3 + $0x250] ss:$8 sps:$4 sm:$0xff]  }
 0x350   :  { %3552 = vmatprep.subr.bf16.mxu0 %v11015_v24  ;;  %2780 = vmatpush1.bf16.msra.mxu1 %v11333_v18  ;;  %v11367_v24 = vld [vmem:[%s13958_s3 + $0x264] ss:$8 sps:$4 sm:$0xff]  }
 0x351   :  { %2781 = vmatprep.subr.bf16.mxu1 %v11339_v30 }
 0x353   :  { %3553 = vmatpush1.bf16.msra.mxu0 %v11021_v51  ;;  %v11375_v51 = vld [vmem:[%s13958_s3 + $0x260] ss:$8 sps:$4 sm:$0xff]  }
 0x354   :  { %3554 = vmatprep.subr.bf16.mxu0 %v11027_v54  ;;  %2782 = vmatpush1.bf16.msra.mxu1 %v11347_v2  ;;  %v11381_v54 = vld [vmem:[%s13958_s3 + $0x274] ss:$8 sps:$4 sm:$0xff]  }
 0x355   :  { %2783 = vmatprep.subr.bf16.mxu1 %v11353_v46 }
 0x357   :  { %3555 = vmatpush1.bf16.msra.mxu0 %v11033_v4  ;;  %v11389_v4 = vld [vmem:[%s13958_s3 + $0x270] ss:$8 sps:$4 sm:$0xff]  }
 0x358   :  { %3556 = vmatprep.subr.bf16.mxu0 %v11039_v9  ;;  %2784 = vmatpush1.bf16.msra.mxu1 %v11361_v1  ;;  %v11395_v9 = vld [vmem:[%s13958_s3 + $0x284] ss:$8 sps:$4 sm:$0xff]  }
 0x359   :  { %2785 = vmatprep.subr.bf16.mxu1 %v11367_v24 }
 0x35b   :  { %3557 = vmatpush1.bf16.msra.mxu0 %v11045_v20  ;;  %v11403_v20 = vld [vmem:[%s13958_s3 + $0x280] ss:$8 sps:$4 sm:$0xff]  }
 0x35c   :  { %3558 = vmatprep.subr.bf16.mxu0 %v11051_v38  ;;  %2786 = vmatpush1.bf16.msra.mxu1 %v11375_v51  ;;  %v11409_v38 = vld [vmem:[%s13958_s3 + $0x294] ss:$8 sps:$4 sm:$0xff]  }
 0x35d   :  { %2787 = vmatprep.subr.bf16.mxu1 %v11381_v54 }
 0x35f   :  { %3559 = vmatpush1.bf16.msra.mxu0 %v11057_v61  ;;  %v11417_v61 = vld [vmem:[%s13958_s3 + $0x290] ss:$8 sps:$4 sm:$0xff]  }
 0x360   :  { %3560 = vmatprep.subr.bf16.mxu0 %v11063_v62  ;;  %2788 = vmatpush1.bf16.msra.mxu1 %v11389_v4  ;;  %v11423_v62 = vld [vmem:[%s13958_s3 + $0x2a4] ss:$8 sps:$4 sm:$0xff]  }
 0x361   :  { %2789 = vmatprep.subr.bf16.mxu1 %v11395_v9 }
 0x363   :  { %3561 = vmatpush1.bf16.msra.mxu0 %v11069_v35  ;;  %v11431_v35 = vld [vmem:[%s13958_s3 + $0x2a0] ss:$8 sps:$4 sm:$0xff]  }
 0x364   :  { %3562 = vmatprep.subr.bf16.mxu0 %v11075_v33  ;;  %2790 = vmatpush1.bf16.msra.mxu1 %v11403_v20  ;;  %v11437_v33 = vld [vmem:[%s13958_s3 + $0x2b4] ss:$8 sps:$4 sm:$0xff]  }
 0x365   :  { %2791 = vmatprep.subr.bf16.mxu1 %v11409_v38 }
 0x367   :  { %3563 = vmatpush1.bf16.msra.mxu0 %v11081_v45  ;;  %v11445_v45 = vld [vmem:[%s13958_s3 + $0x2b0] ss:$8 sps:$4 sm:$0xff]  }
 0x368   :  { %3564 = vmatprep.subr.bf16.mxu0 %v11087_v25  ;;  %2792 = vmatpush1.bf16.msra.mxu1 %v11417_v61  ;;  %v11451_v25 = vld [vmem:[%s13958_s3 + $0x2c4] ss:$8 sps:$4 sm:$0xff]  }
 0x369   :  { %2793 = vmatprep.subr.bf16.mxu1 %v11423_v62 }
 0x36b   :  { %3565 = vmatpush1.bf16.msra.mxu0 %v11093_v3  ;;  %v11459_v3 = vld [vmem:[%s13958_s3 + $0x2c0] ss:$8 sps:$4 sm:$0xff]  }
 0x36c   :  { %3566 = vmatprep.subr.bf16.mxu0 %v11099_v32  ;;  %2794 = vmatpush1.bf16.msra.mxu1 %v11431_v35  ;;  %v11465_v32 = vld [vmem:[%s13958_s3 + $0x2d4] ss:$8 sps:$4 sm:$0xff]  }
 0x36d   :  { %2795 = vmatprep.subr.bf16.mxu1 %v11437_v33 }
 0x36f   :  { %3567 = vmatpush1.bf16.msra.mxu0 %v11105_v29  ;;  %v11472_v29 = vld [vmem:[%s13958_s3 + $0x2d0] ss:$8 sps:$4 sm:$0xff]  }
 0x370   :  { %3568 = vmatprep.subr.bf16.mxu0 %v11111_v50  ;;  %2796 = vmatpush1.bf16.msra.mxu1 %v11445_v45  ;;  %v14090_v50 = vld [vmem:[#allocation13_spill] sm:$0xff] }
 0x371   :  { %2797 = vmatprep.subr.bf16.mxu1 %v11451_v25  ;;  %14092 = vst [vmem:[#allocation13_spill] sm:$0xff] %v11485_v60 }
 0x373   :  { %3569 = vmatpush1.bf16.msra.mxu0 %v14089_v42 }
 0x374   :  { %2798 = vmatpush1.bf16.msra.mxu1 %v11459_v3  ;;  %3581 = vmatprep.subr.bf16.mxu0 %v14090_v50 }
 0x375   :  { %2799 = vmatprep.subr.bf16.mxu1 %v11465_v32 }
 0x378   :  { %2800 = vmatpush1.bf16.msra.mxu1 %v11472_v29 }
 0x379   :  { %2801 = vmatprep.subr.bf16.mxu1 %v11479_v34  ;;  %v14104_v34 = vunpack.i.h.bf16 %v14103_v49 }
 0x37c   :  { %2802 = vmatpush1.bf16.msra.mxu1 %v11485_v60 }
 0x37d   :  { %2803 = vmatprep.subr.bf16.mxu1 %v11491_v22 }
 0x380   :  { %2804 = vmatpush1.bf16.msra.mxu1 %v11497_v15  ;;  %v9728_v15 = vld [vmem:[#allocation2 + $0x70] sm:$0xff] }
 0x381   :  { %2816 = vmatprep.subr.bf16.mxu1 %v11503_v10  ;;  %v14100_v10 = vld [vmem:[#allocation8_spill] sm:$0xff] }
 0x3a4   :  { %v11507_v31 = vpop.permute.xlu0 %9125 }
 0x3a5   :  { %14096 = vst [vmem:[#allocation25_spill] sm:$0xff] %v11507_v31  ;;  %v14006_v47 = vunpack.i.h.bf16 %v11507_v31  ;;  %v9127_v11 = vunpack.i.l.bf16 %v11507_v31  ;;  %v14101_v31 = vunpack.i.h.bf16 %v11137_v17 }
 0x3a7   :  { %v1845_v59 = vsel %vm14062_vm8, %v14098_v23, %v9127_v11  ;;  %v1846_v37 = vsel %vm14062_vm8, %v9127_v11, %v14006_v47 }
 0x3a8   :  { %v11517_v48 = vpop.permute.xlu0 %9135  ;;  %v1943_v19 = vmax.f32 %v14100_v10, %v1845_v59  ;;  %v1944_v23 = vmax.f32 %v11153_v63, %v1846_v37 }
 0x3a9   :  { %14099 = vst [vmem:[#allocation14_spill] sm:$0xff] %v11517_v48  ;;  %v14012_v42 = vunpack.i.h.bf16 %v11517_v48  ;;  %v9137_v50 = vunpack.i.l.bf16 %v11517_v48  ;;  %v11521_v14 = vpop.permute.xlu1 %9130 }
 0x3aa   :  { %v9132_v36 = vunpack.i.l.bf16 %v11521_v14  ;;  %v14105_v63 = vunpack.i.h.bf16 %v11521_v14 }
 0x3ab   :  { %v1549_v11 = vsel %vm177_vm0, %v14101_v31, %v9137_v50  ;;  %v1550_v47 = vsel %vm177_vm0, %v9137_v50, %v14012_v42  ;;  %v14106_v31 = vld [vmem:[#allocation9_spill] sm:$0xff] }
 0x3ac   :  { %v11533_v22 = vmax.f32 %v9728_v15, %v1549_v11  ;;  %v11536_v60 = vmax.f32 %v11187_v5, %v1550_v47  ;;  %v1869_v10 = vsel %vm14062_vm8, %v14104_v34, %v9132_v36  ;;  %v1870_v17 = vsel %vm14062_vm8, %v9132_v36, %v14105_v63  ;;  %v9146_v59 = vpop.permute.xlu0 %9145 }
 0x3ad   :  { %v1968_v37 = vmax.f32 %v14106_v31, %v1869_v10  ;;  %v1969_v48 = vmax.f32 %v11180_v40, %v1870_v17  ;;  %v11546_v50 = vpop.permute.xlu1 %9140  ;;  %v11552_v47 = vmax.f32 %v1943_v19, 0.0  ;;  %v1994_v34 = vmax.f32 %v1944_v23, 0.0 }
 0x3ae   :  { %14102 = vst [vmem:[#allocation8_spill] sm:$0xff] %v11536_v60  ;;  %v14013_v15 = vunpack.i.h.bf16 %v11546_v50  ;;  %v9142_v5 = vunpack.i.l.bf16 %v11546_v50  ;;  %v9174_v49 = vpack.i.bf16 %v11536_v60, %v11533_v22  ;;  %v9148_v63 = vunpack.i.h.bf16 %v9146_v59 }
 0x3af   :  { %v11554_v11 = vmax.f32 %v1968_v37, 0.0  ;;  %v2019_v36 = vmax.f32 %v1969_v48, 0.0  ;;  %v9147_v42 = vunpack.i.l.bf16 %v9146_v59  ;;  %v14107_v10 = vunpack.i.h.bf16 %v11165_v39  ;;  %v9729_v37 = vld [vmem:[#allocation2 + $0x138] sm:$0xff] }
 0x3b0   :  { %v1574_v17 = vsel %vm177_vm0, %v9142_v5, %v14013_v15  ;;  %v2982_v31 = vpop.permute.xlu0 %2981  ;;  %9175 = vrot.lane.b32.xlu0 %v9174_v49, %s14041_s0 }
 0x3b1   :  { %v1573_v40 = vsel %vm177_vm0, %v14107_v10, %v9142_v5  ;;  %v11565_v23 = vpack.c.bf16 %v2019_v36, %v1994_v34  ;;  %v11570_v59 = vmax.f32 %v11215_v0, %v1574_v17  ;;  %v11572_v39 = vpop.permute.xlu1 %2983  ;;  %v2992_v5 = vsel %vm14055_vm9, %v11185_v43, %v2982_v31 }
 0x3b2   :  { %v11567_v48 = vmax.f32 %v9729_v37, %v1573_v40  ;;  %v2993_v10 = vsel %vm14055_vm9, %v2982_v31, %v11572_v39  ;;  %v1554_v36 = vsel %vm177_vm0, %v9147_v42, %v9148_v63 }
 0x3b3   :  { %14108 = vst [vmem:[#allocation15_spill] sm:$0xff] %v11570_v59  ;;  %3570 = vmatprep.mubr.bf16.mxu0 %v2993_v10  ;;  %v11590_v10 = vmax.f32 %v11208_v12, %v1554_v36 }
 0x3b4   :  { %v9179_v49 = vpack.i.bf16 %v11570_v59, %v11567_v48  ;;  %3571 = vmatmul.mubr.bf16.vlgmr.msra.gmra.mrb[28].mxu0 %v2992_v5  ;;  %v9156_v34 = vpop.permute.xlu0 %9155 }
 0x3b5   :  { %v9158_v40 = vunpack.i.h.bf16 %v9156_v34  ;;  %v9157_v37 = vunpack.i.l.bf16 %v9156_v34  ;;  %v11581_v0 = vpop.permute.xlu1 %9150  ;;  %3582 = vmatpush1.bf16.msra.mxu0 %v11257_v8 }
 0x3b6   :  { %9180 = vrot.lane.b32.xlu1 %v9179_v49, %s14041_s0  ;;  %v14014_v17 = vunpack.i.h.bf16 %v11581_v0  ;;  %v9152_v43 = vunpack.i.l.bf16 %v11581_v0  ;;  %3583 = vmatprep.subr.bf16.mxu0 %v11266_v13 }
 0x3b7   :  { %v1578_v31 = vsel %vm177_vm0, %v9157_v37, %v9158_v40 }
 0x3b8   :  { %v11593_v5 = vmax.f32 %v11246_v7, %v1578_v31  ;;  %v1555_v34 = vsel %vm177_vm0, %v9148_v63, %v9152_v43  ;;  %v1556_v8 = vsel %vm177_vm0, %v9152_v43, %v14014_v17  ;;  %v11599_v49 = vpop.permute.xlu0 %9165 }
 0x3b9   :  { %v11602_v15 = vmax.f32 %v11196_v55, %v1555_v34  ;;  %v11605_v13 = vmax.f32 %v11251_v16, %v1556_v8  ;;  %v14018_v12 = vunpack.i.h.bf16 %v11599_v49  ;;  %v14015_v36 = vunpack.i.l.bf16 %v11599_v49  ;;  %v11609_v7 = vpop.permute.xlu1 %9160  ;;  %3584 = vmatpush1.bf16.msra.mxu0 %v11294_v52 }
 0x3ba   :  { %v14016_v63 = vunpack.i.h.bf16 %v11609_v7  ;;  %v9162_v43 = vunpack.i.l.bf16 %v11609_v7  ;;  %3585 = vmatprep.subr.bf16.mxu0 %v11306_v41 }
 0x3bb   :  { %14109 = vst [vmem:[#allocation9_spill] sm:$0xff] %v11605_v13  ;;  %v9184_v55 = vpack.i.bf16 %v11602_v15, %v11590_v10  ;;  %v9189_v16 = vpack.i.bf16 %v11593_v5, %v11605_v13  ;;  %v1553_v31 = vsel %vm177_vm0, %v14015_v36, %v9147_v42  ;;  %v1577_v52 = vsel %vm177_vm0, %v14018_v12, %v9157_v37  ;;  %v14130_v12 = vld [vmem:[#allocation18_spill] sm:$0xff] }
 0x3bc   :  { %v1579_v34 = vsel %vm177_vm0, %v9158_v40, %v9162_v43  ;;  %v1580_v41 = vsel %vm177_vm0, %v9162_v43, %v14016_v63  ;;  %v11639_v40 = vmax.f32 %v11282_v56, %v1553_v31  ;;  %v11642_v37 = vmax.f32 %v11261_v44, %v1577_v52  ;;  %v14117_v63 = vld [vmem:[#allocation10_spill] sm:$0xff] }
 0x3bd   :  { %v11630_v8 = vmax.f32 %v11240_v58, %v1579_v34  ;;  %v11633_v17 = vmax.f32 %v11287_v27, %v1580_v41  ;;  %v9171_v19 = vpop.permute.xlu1 %9170  ;;  %9185 = vrot.lane.b32.xlu0 %v9184_v55, %s14041_s0  ;;  %9190 = vrot.lane.b32.xlu1 %v9189_v16, %s14041_s0  ;;  %v14111_v27 = vld [vmem:[#allocation7_spill] sm:$0xff]  ;;  %v14113_v16 = vunpack.i.h.bf16 %v11203_v28  ;;  %v14115_v44 = vunpack.i.h.bf16 %v11199_v26 }
 0x3be   :  { %v9173_v42 = vunpack.i.h.bf16 %v9171_v19  ;;  %v9172_v36 = vunpack.i.l.bf16 %v9171_v19  ;;  %3586 = vmatpush1.bf16.msra.mxu0 %v11316_v6  ;;  %v14112_v43 = vunpack.i.h.bf16 %v14111_v27  ;;  %v14114_v6 = vunpack.i.l.bf16 %v14111_v27  ;;  %v14116_v34 = vld [vmem:[#allocation11_spill] sm:$0xff] }
 0x3bf   :  { %14110 = vst [vmem:[#allocation26_spill] sm:$0xff] %v11633_v17  ;;  %v9194_v58 = vpack.i.bf16 %v11633_v17, %v11630_v8  ;;  %3587 = vmatprep.subr.bf16.mxu0 %v11324_v57 }
 0x3c0   :  { %v1863_v55 = vsel %vm14062_vm8, %v9173_v42, %v14112_v43  ;;  %v1838_v19 = vsel %vm14062_vm8, %v14113_v16, %v9172_v36  ;;  %v1839_v56 = vsel %vm14062_vm8, %v9172_v36, %v14114_v6  ;;  %v1862_v31 = vsel %vm14062_vm8, %v14115_v44, %v9173_v42  ;;  %v11670_v42 = vld [vmem:[#allocation2 + $0x150] sm:$0xff]  ;;  %v11687_v16 = vld [vmem:[#allocation2 + $0xb8] sm:$0xff]  ;;  %v11701_v6 = vld [vmem:[#allocation4 + $0x8] sm:$0xff] }
 0x3c1   :  { %v1962_v52 = vmax.f32 %v11296_v53, %v1863_v55  ;;  %v1936_v57 = vmax.f32 %v14116_v34, %v1838_v19  ;;  %v1937_v41 = vmax.f32 %v11298_v21, %v1839_v56  ;;  %v1961_v43 = vmax.f32 %v14117_v63, %v1862_v31  ;;  %9195 = vrot.lane.b32.xlu0 %v9194_v58, %s14041_s0  ;;  %v11676_v55 = vld [vmem:[#allocation2 + $0xc0] sm:$0xff]  ;;  %v11814_v44 = vld [vmem:[%s13958_s3 + $0x74] ss:$8 sps:$4 sm:$0xff]   ;;  %v11822_v34 = vld [vmem:[%s13958_s3 + $0x70] ss:$8 sps:$4 sm:$0xff]  }
 0x3c2   :  { %2987 = vrot.lane.b32.xlu1 %v11565_v23, %s14058_s28  ;;  %3588 = vmatpush1.bf16.msra.mxu0 %v11333_v18  ;;  %v9199_v53 = vpack.i.bf16 %v11642_v37, %v11639_v40  ;;  %v14118_v58 = vpack.c.bf16 %v11554_v11, %v11552_v47  ;;  %v11681_v18 = vld [vmem:[%s13958_s3 + $0x300] ss:$8 sps:$4 sm:$0xff]   ;;  %v9209_v47 = vpack.i.bf16 %v11676_v55, %v11687_v16 }
 0x3c3   :  { %v2012_v28 = vmax.f32 %v1962_v52, 0.0  ;;  %v1986_v36 = vmax.f32 %v1936_v57, 0.0  ;;  %v1987_v26 = vmax.f32 %v1937_v41, 0.0  ;;  %v2011_v27 = vmax.f32 %v1961_v43, 0.0  ;;  %3589 = vmatprep.subr.bf16.mxu0 %v11339_v30  ;;  %v11684_v30 = vld [vmem:[#allocation2 + $0x88] sm:$0xff]  ;;  %v2094_v56 = vld [vmem:[#allocation3 + $0x30] sm:$0xff] }
 0x3c4   :  { %v9204_v19 = vpack.i.bf16 %v11670_v42, %v11684_v30  ;;  %v11694_v11 = vld [vmem:[#allocation2 + $0x188] sm:$0xff]  ;;  %v14122_v31 = vld [vmem:[#allocation23_spill] sm:$0xff]  ;;  %v11840_v43 = vld [vmem:[%s13958_s3 + $0x94] ss:$8 sps:$4 sm:$0xff]  }
 0x3c5   :  { %v2036_v21 = vpack.c.bf16 %v2011_v27, %v1986_v36  ;;  %v2037_v63 = vpack.c.bf16 %v2012_v28, %v1987_v26  ;;  %2985 = vrot.lane.b32.xlu0 %v14118_v58, %s14058_s28  ;;  %v14123_v52 = vld [vmem:[#allocation24_spill] sm:$0xff]  ;;  %v11846_v28 = vld [vmem:[%s13958_s3 + $0x90] ss:$8 sps:$4 sm:$0xff]  }
 0x3c6   :  { %9200 = vrot.lane.b32.xlu1 %v9199_v53, %s14041_s0  ;;  %3590 = vmatpush1.bf16.msra.mxu0 %v11347_v2  ;;  %v11699_v2 = vld [vmem:[#allocation2 + $0x180] sm:$0xff] }
 0x3c7   :  { %2805 = vmatprep.mubr.bf16.mxu1 %v2037_v63  ;;  %3591 = vmatprep.subr.bf16.mxu0 %v11353_v46  ;;  %v9214_v46 = vpack.i.bf16 %v11694_v11, %v11699_v2  ;;  %v11828_v57 = vld [vmem:[%s13958_s3 + $0x84] ss:$8 sps:$4 sm:$0xff]   ;;  %v11834_v41 = vld [vmem:[%s13958_s3 + $0x80] ss:$8 sps:$4 sm:$0xff]   ;;  %v14125_v63 = vld [vmem:[#allocation25_spill] sm:$0xff] }
 0x3c8   :  { %2806 = vmatmul.mubr.bf16.vlgmr.msra.gmra.mrb[24].mxu1 %v2036_v21  ;;  %v11852_v36 = vld [vmem:[%s13958_s3 + $0xa4] ss:$8 sps:$4 sm:$0xff]   ;;  %v11858_v26 = vld [vmem:[%s13958_s3 + $0xa0] ss:$8 sps:$4 sm:$0xff]   ;;  %v14126_v58 = vunpack.i.h.bf16 %v14125_v63  ;;  %v14129_v63 = vunpack.i.h.bf16 %v11521_v14 }
 0x3c9   :  { %9205 = vrot.lane.b32.xlu0 %v9204_v19, %s9733_s22  ;;  %2817 = vmatpush1.bf16.msra.mxu1 %v11681_v18  ;;  %v11909_v14 = vld [vmem:[%s13958_s3 + $0xc0] ss:$8 sps:$4 sm:$0xff]  }
 0x3ca   :  { %9210 = vrot.lane.b32.xlu1 %v9209_v47, %s9733_s22  ;;  %2848 = vmatprep.mubr.bf16.mxu1 %v11701_v6  ;;  %14131 = vst [vmem:[#allocation10_spill] sm:$0xff] %v11909_v14 }
 0x3cb   :  { %3592 = vmatpush1.bf16.msra.mxu0 %v11361_v1  ;;  %v11719_v1 = vld [vmem:[%s13958_s3] ss:$8 sps:$4 sm:$0xff]  }
 0x3cc   :  { %3593 = vmatprep.subr.bf16.mxu0 %v11367_v24  ;;  %v11724_v24 = vld [vmem:[%s13958_s3 + $0x4] ss:$8 sps:$4 sm:$0xff]  }
 0x3cd   :  { %9215 = vrot.lane.b32.xlu0 %v9214_v46, %s9733_s22  ;;  %4315 = vmatprep.subr.bf16.mxu1 %v11724_v24 }
 0x3cf   :  { %3594 = vmatpush1.bf16.msra.mxu0 %v11375_v51  ;;  %v11730_v51 = vld [vmem:[%s13958_s3 + $0x14] ss:$8 sps:$4 sm:$0xff]  }
 0x3d0   :  { %3595 = vmatprep.subr.bf16.mxu0 %v11381_v54  ;;  %v11738_v54 = vld [vmem:[%s13958_s3 + $0x10] ss:$8 sps:$4 sm:$0xff]  }
 0x3d3   :  { %3596 = vmatpush1.bf16.msra.mxu0 %v11389_v4  ;;  %v11744_v4 = vld [vmem:[%s13958_s3 + $0x24] ss:$8 sps:$4 sm:$0xff]  }
 0x3d4   :  { %8318 = vmatmul.mubr.msk.bf16.vlgmr.msra.gmra.mrb[24].mxu1 %vm14052_vm10, %v2094_v56  ;;  %3597 = vmatprep.subr.bf16.mxu0 %v11395_v9  ;;  %v11752_v9 = vld [vmem:[%s13958_s3 + $0x20] ss:$8 sps:$4 sm:$0xff]   ;;  %v11877_v56 = vld [vmem:[%s13958_s3 + $0xb0] ss:$8 sps:$4 sm:$0xff]  }
 0x3d5   :  { %4316 = vmatpush1.bf16.msra.mxu1 %v11719_v1 }
 0x3d6   :  { %4317 = vmatprep.subr.bf16.mxu1 %v11730_v51 }
 0x3d7   :  { %3598 = vmatpush1.bf16.msra.mxu0 %v11403_v20  ;;  %v11758_v20 = vld [vmem:[%s13958_s3 + $0x34] ss:$8 sps:$4 sm:$0xff]  }
 0x3d8   :  { %3599 = vmatprep.subr.bf16.mxu0 %v11409_v38  ;;  %v11766_v38 = vld [vmem:[%s13958_s3 + $0x30] ss:$8 sps:$4 sm:$0xff]  }
 0x3d9   :  { %4318 = vmatpush1.bf16.msra.mxu1 %v11738_v54 }
 0x3da   :  { %4319 = vmatprep.subr.bf16.mxu1 %v11744_v4 }
 0x3db   :  { %3600 = vmatpush1.bf16.msra.mxu0 %v11417_v61  ;;  %v11772_v61 = vld [vmem:[%s13958_s3 + $0x44] ss:$8 sps:$4 sm:$0xff]  }
 0x3dc   :  { %3601 = vmatprep.subr.bf16.mxu0 %v11423_v62  ;;  %v11780_v62 = vld [vmem:[%s13958_s3 + $0x40] ss:$8 sps:$4 sm:$0xff]  }
 0x3dd   :  { %4320 = vmatpush1.bf16.msra.mxu1 %v11752_v9 }
 0x3de   :  { %4321 = vmatprep.subr.bf16.mxu1 %v11758_v20 }
 0x3df   :  { %3602 = vmatpush1.bf16.msra.mxu0 %v11431_v35  ;;  %v11786_v35 = vld [vmem:[%s13958_s3 + $0x54] ss:$8 sps:$4 sm:$0xff]  }
 0x3e0   :  { %3603 = vmatprep.subr.bf16.mxu0 %v11437_v33  ;;  %v14119_v33 = vld [vmem:[#allocation12_spill] sm:$0xff] }
 0x3e1   :  { %4322 = vmatpush1.bf16.msra.mxu1 %v11766_v38 }
 0x3e2   :  { %4323 = vmatprep.subr.bf16.mxu1 %v11772_v61 }
 0x3e3   :  { %3604 = vmatpush1.bf16.msra.mxu0 %v11445_v45  ;;  %v11794_v45 = vld [vmem:[%s13958_s3 + $0x50] ss:$8 sps:$4 sm:$0xff]  }
 0x3e4   :  { %3605 = vmatprep.subr.bf16.mxu0 %v11451_v25  ;;  %v11800_v25 = vld [vmem:[%s13958_s3 + $0x64] ss:$8 sps:$4 sm:$0xff]  }
 0x3e5   :  { %4324 = vmatpush1.bf16.msra.mxu1 %v11780_v62 }
 0x3e6   :  { %4325 = vmatprep.subr.bf16.mxu1 %v11786_v35 }
 0x3e7   :  { %3606 = vmatpush1.bf16.msra.mxu0 %v11459_v3  ;;  %v14120_v3 = vld [vmem:[#allocation13_spill] sm:$0xff] }
 0x3e8   :  { %3607 = vmatprep.subr.bf16.mxu0 %v11465_v32  ;;  %v14121_v32 = vld [vmem:[#allocation22_spill] sm:$0xff] }
 0x3e9   :  { %4326 = vmatpush1.bf16.msra.mxu1 %v11794_v45 }
 0x3ea   :  { %4327 = vmatprep.subr.bf16.mxu1 %v11800_v25 }
 0x3eb   :  { %3608 = vmatpush1.bf16.msra.mxu0 %v11472_v29  ;;  %v11808_v29 = vld [vmem:[%s13958_s3 + $0x60] ss:$8 sps:$4 sm:$0xff]  }
 0x3ec   :  { %3609 = vmatprep.subr.bf16.mxu0 %v14119_v33  ;;  %v11882_v33 = vld [vmem:[%s13958_s3 + $0xb4] ss:$8 sps:$4 sm:$0xff]  }
 0x3ed   :  { %4328 = vmatpush1.bf16.msra.mxu1 %v11808_v29 }
 0x3ee   :  { %4329 = vmatprep.subr.bf16.mxu1 %v11814_v44 }
 0x3ef   :  { %3610 = vmatpush1.bf16.msra.mxu0 %v14120_v3  ;;  %v14128_v3 = vld [vmem:[#allocation16_spill] sm:$0xff] }
 0x3f0   :  { %3611 = vmatprep.subr.bf16.mxu0 %v14121_v32 }
 0x3f1   :  { %4330 = vmatpush1.bf16.msra.mxu1 %v11822_v34 }
 0x3f2   :  { %4331 = vmatprep.subr.bf16.mxu1 %v11828_v57 }
 0x3f3   :  { %3612 = vmatpush1.bf16.msra.mxu0 %v14122_v31 }
 0x3f4   :  { %3624 = vmatprep.subr.bf16.mxu0 %v14123_v52 }
 0x3f5   :  { %4332 = vmatpush1.bf16.msra.mxu1 %v11834_v41 }
 0x3f6   :  { %4333 = vmatprep.subr.bf16.mxu1 %v11840_v43 }
 0x3f9   :  { %4334 = vmatpush1.bf16.msra.mxu1 %v11846_v28 }
 0x3fa   :  { %4335 = vmatprep.subr.bf16.mxu1 %v11852_v36 }
 0x3fd   :  { %4336 = vmatpush1.bf16.msra.mxu1 %v11858_v26 }
 0x3fe   :  { %4337 = vmatprep.subr.bf16.mxu1 %v11882_v33 }
 0x401   :  { %4338 = vmatpush1.bf16.msra.mxu1 %v11877_v56 }
 0x422   :  { %v11862_v27 = vpop.permute.xlu0 %9175 }
 0x423   :  { %14124 = vst [vmem:[#allocation7_spill] sm:$0xff] %v11862_v27  ;;  %v14017_v53 = vunpack.i.h.bf16 %v11862_v27  ;;  %v9177_v21 = vunpack.i.l.bf16 %v11862_v27 }
 0x425   :  { %v1847_v19 = vsel %vm14062_vm8, %v14126_v58, %v9177_v21  ;;  %v1848_v47 = vsel %vm14062_vm8, %v9177_v21, %v14017_v53 }
 0x426   :  { %v1945_v32 = vmax.f32 %v14128_v3, %v1847_v19  ;;  %v1946_v31 = vmax.f32 %v11533_v22, %v1848_v47 }
 0x428   :  { %v11872_v46 = vpop.permute.xlu1 %9180  ;;  %v11898_v47 = vmax.f32 %v1945_v32, 0.0  ;;  %v11900_v3 = vmax.f32 %v1946_v31, 0.0 }
 0x429   :  { %14127 = vst [vmem:[#allocation11_spill] sm:$0xff] %v11872_v46  ;;  %v14021_v52 = vunpack.i.h.bf16 %v11872_v46  ;;  %v9182_v21 = vunpack.i.l.bf16 %v11872_v46 }
 0x42b   :  { %v1871_v58 = vsel %vm14062_vm8, %v14129_v63, %v9182_v21  ;;  %v1872_v53 = vsel %vm14062_vm8, %v9182_v21, %v14021_v52  ;;  %v11914_v21 = vld [vmem:[%s13958_s3 + $0xc4] ss:$8 sps:$4 sm:$0xff]  }
 0x42c   :  { %v1970_v19 = vmax.f32 %v14130_v12, %v1871_v58  ;;  %v1971_v22 = vmax.f32 %v11567_v48, %v1872_v53  ;;  %14132 = vst [vmem:[#allocation12_spill] sm:$0xff] %v11914_v21  ;;  %4339 = vmatprep.subr.bf16.mxu1 %v11914_v21 }
 0x42d   :  { %4340 = vmatpush1.bf16.msra.mxu1 %v11909_v14 }
 0x42e   :  { %v11902_v13 = vmax.f32 %v1970_v19, 0.0  ;;  %v11904_v17 = vmax.f32 %v1971_v22, 0.0 }
 0x42f   :  { %v9186_v53 = vpop.permute.xlu0 %9185  ;;  %v11920_v32 = vpop.permute.xlu1 %9190 }
 0x430   :  { %14133 = vst [vmem:[#allocation13_spill] sm:$0xff] %v11920_v32  ;;  %v9188_v31 = vunpack.i.h.bf16 %v9186_v53  ;;  %v9187_v63 = vunpack.i.l.bf16 %v9186_v53  ;;  %v14026_v58 = vunpack.i.l.bf16 %v11920_v32  ;;  %v9193_v52 = vunpack.i.h.bf16 %v11920_v32 }
 0x432   :  { %v1853_v19 = vsel %vm14062_vm8, %v9187_v63, %v9188_v31  ;;  %v1854_v22 = vsel %vm14062_vm8, %v9188_v31, %v14026_v58 }
 0x433   :  { %v11930_v48 = vpop.permute.xlu0 %9195  ;;  %v1951_v12 = vmax.f32 %v11590_v10, %v1853_v19  ;;  %v1952_v60 = vmax.f32 %v11602_v15, %v1854_v22 }
 0x434   :  { %14134 = vst [vmem:[#allocation22_spill] sm:$0xff] %v11930_v48  ;;  %v14031_v53 = vunpack.i.h.bf16 %v11930_v48  ;;  %v9197_v27 = vunpack.i.l.bf16 %v11930_v48  ;;  %v11936_v59 = vpop.permute.xlu1 %2987 }
 0x435   :  { %v11944_v10 = vmax.f32 %v1951_v12, 0.0  ;;  %v11946_v15 = vmax.f32 %v1952_v60, 0.0  ;;  %v11963_v60 = vld [vmem:[%s13958_s3 + $0xd4] ss:$8 sps:$4 sm:$0xff]  }
 0x436   :  { %v1877_v46 = vsel %vm14062_vm8, %v9193_v52, %v9197_v27  ;;  %v1878_v31 = vsel %vm14062_vm8, %v9197_v27, %v14031_v53  ;;  %4341 = vmatprep.subr.bf16.mxu1 %v11963_v60 }
 0x437   :  { %v1976_v58 = vmax.f32 %v11593_v5, %v1877_v46  ;;  %v1977_v32 = vmax.f32 %v11630_v8, %v1878_v31  ;;  %v2986_v14 = vpop.permute.xlu0 %2985  ;;  %v14143_v46 = vunpack.i.l.bf16 %v11599_v49 }
 0x438   :  { %v11948_v19 = vpop.permute.xlu1 %9200  ;;  %v2995_v22 = vsel %vm14055_vm9, %v2986_v14, %v11936_v59  ;;  %v2994_v21 = vsel %vm14055_vm9, %v11572_v39, %v2986_v14 }
 0x439   :  { %14135 = vst [vmem:[#allocation23_spill] sm:$0xff] %v11948_v19  ;;  %v11954_v48 = vmax.f32 %v1976_v58, 0.0  ;;  %v11956_v27 = vmax.f32 %v1977_v32, 0.0  ;;  %v14033_v5 = vunpack.i.h.bf16 %v11948_v19  ;;  %v14032_v8 = vunpack.i.l.bf16 %v11948_v19  ;;  %3613 = vmatprep.mubr.bf16.mxu0 %v2995_v22  ;;  %v11979_v32 = vld [vmem:[%s13958_s3 + $0xd0] ss:$8 sps:$4 sm:$0xff]  }
 0x43a   :  { %3614 = vmatmul.mubr.bf16.vlgmr.msra.gmra.mrb[28].mxu0 %v2994_v21  ;;  %14136 = vst [vmem:[#allocation24_spill] sm:$0xff] %v11979_v32  ;;  %4342 = vmatpush1.bf16.msra.mxu1 %v11979_v32 }
 0x43b   :  { %v1876_v14 = vsel %vm14062_vm8, %v14033_v5, %v9193_v52  ;;  %v1852_v12 = vsel %vm14062_vm8, %v14032_v8, %v9187_v63  ;;  %v9206_v21 = vpop.permute.xlu0 %9205  ;;  %3625 = vmatpush1.bf16.msra.mxu0 %v11681_v18  ;;  %3656 = vmatprep.mubr.bf16.mxu0 %v11701_v6  ;;  %v12000_v6 = vld [vmem:[%s13958_s3 + $0xe4] ss:$8 sps:$4 sm:$0xff]  }
 0x43c   :  { %v1975_v58 = vmax.f32 %v11642_v37, %v1876_v14  ;;  %v1950_v31 = vmax.f32 %v11639_v40, %v1852_v12  ;;  %v11983_v22 = vpop.permute.xlu1 %9210  ;;  %v9208_v53 = vunpack.i.h.bf16 %v9206_v21  ;;  %5135 = vmatprep.subr.bf16.mxu0 %v11724_v24  ;;  %v9207_v63 = vunpack.i.l.bf16 %v9206_v21  ;;  %v14139_v24 = vld [vmem:[#allocation19_spill] sm:$0xff]  ;;  %4343 = vmatprep.subr.bf16.mxu1 %v12000_v6 }
 0x43d   :  { %v9213_v52 = vunpack.i.h.bf16 %v11983_v22  ;;  %v9212_v18 = vunpack.i.l.bf16 %v11983_v22  ;;  %v14137_v37 = vunpack.i.h.bf16 %v11546_v50  ;;  %v14138_v14 = vunpack.i.h.bf16 %v11599_v49  ;;  %v12008_v50 = vld [vmem:[%s13958_s3 + $0xe0] ss:$8 sps:$4 sm:$0xff]  }
 0x43e   :  { %v2025_v8 = vmax.f32 %v1975_v58, 0.0  ;;  %v2000_v5 = vmax.f32 %v1950_v31, 0.0  ;;  %4344 = vmatpush1.bf16.msra.mxu1 %v12008_v50  ;;  %v14145_v49 = vld [vmem:[#allocation20_spill] sm:$0xff] }
 0x43f   :  { %v1575_v40 = vsel %vm177_vm0, %v14137_v37, %v9208_v53  ;;  %v1576_v12 = vsel %vm177_vm0, %v9208_v53, %v14138_v14  ;;  %v9216_v58 = vpop.permute.xlu0 %9215  ;;  %v14140_v53 = vunpack.i.h.bf16 %v11581_v0  ;;  %v1558_v37 = vsel %vm177_vm0, %v9212_v18, %v9213_v52  ;;  %v14144_v0 = vld [vmem:[#allocation17_spill] sm:$0xff] }
 0x440   :  { %v12003_v21 = vmax.f32 %v14139_v24, %v1575_v40  ;;  %v12010_v31 = vpack.c.bf16 %v2025_v8, %v2000_v5  ;;  %v12017_v14 = vmax.f32 %v11670_v42, %v1576_v12  ;;  %v14141_v40 = vld [vmem:[#allocation14_spill] sm:$0xff]  ;;  %v1552_v5 = vsel %vm177_vm0, %v9207_v63, %v14143_v46 }
 0x441   :  { %v1557_v22 = vsel %vm177_vm0, %v14140_v53, %v9212_v18  ;;  %v14142_v24 = vunpack.i.h.bf16 %v14141_v40  ;;  %v9218_v8 = vunpack.i.h.bf16 %v9216_v58  ;;  %v9217_v19 = vunpack.i.l.bf16 %v9216_v58  ;;  %v9534_v12 = vld [vmem:[%s13958_s3 + $0xf4] ss:$8 sps:$4 sm:$0xff]   ;;  %v9532_v58 = vld [vmem:[%s13958_s3 + $0xf0] ss:$8 sps:$4 sm:$0xff]  }
 0x442   :  { %v12030_v18 = vmax.f32 %v11684_v30, %v1552_v5  ;;  %v9224_v42 = vpack.i.bf16 %v12017_v14, %v12003_v21  ;;  %v12039_v53 = vmax.f32 %v14145_v49, %v1557_v22  ;;  %v12042_v46 = vmax.f32 %v11687_v16, %v1558_v37  ;;  %v14147_v40 = vld [vmem:[#allocation21_spill] sm:$0xff]  ;;  %4345 = vmatprep.subr.bf16.mxu1 %v9534_v12  ;;  %v14163_v49 = vld [vmem:[#allocation22_spill] sm:$0xff] }
 0x443   :  { %v1551_v39 = vsel %vm177_vm0, %v14142_v24, %v9207_v63  ;;  %v1582_v63 = vsel %vm177_vm0, %v9217_v19, %v9218_v8  ;;  %4346 = vmatpush1.bf16.msra.mxu1 %v9532_v58 }
 0x444   :  { %v12027_v32 = vmax.f32 %v14144_v0, %v1551_v39  ;;  %v14146_v39 = vunpack.i.h.bf16 %v11609_v7  ;;  %v12055_v5 = vmax.f32 %v11699_v2, %v1582_v63  ;;  %9225 = vrot.lane.b32.xlu0 %v9224_v42, %s14041_s0  ;;  %v9229_v2 = vpack.i.bf16 %v12042_v46, %v12039_v53 }
 0x446   :  { %v1581_v30 = vsel %vm177_vm0, %v14146_v39, %v9217_v19  ;;  %v9219_v16 = vpack.i.bf16 %v12030_v18, %v12027_v32  ;;  %8417 = vmatmul.mubr.msk.bf16.vlgmr.msra.gmra.mrb[28].mxu0 %vm14052_vm10, %v11936_v59  ;;  %v14148_v59 = vpack.c.bf16 %v11904_v17, %v11900_v3  ;;  %v12091_v17 = vmax.f32 %v11694_v11, %v9218_v8  ;;  %v9537_v11 = vld [vmem:[%s13958_s3 + $0x104] ss:$8 sps:$4 sm:$0xff]  }
 0x447   :  { %v12052_v24 = vmax.f32 %v14147_v40, %v1581_v30  ;;  %5136 = vmatpush1.bf16.msra.mxu0 %v11719_v1  ;;  %v14149_v1 = vpack.c.bf16 %v11902_v13, %v11898_v47  ;;  %v12097_v13 = vmax.f32 %v11676_v55, %v9213_v52  ;;  %v14152_v55 = vld [vmem:[#allocation12_spill] sm:$0xff]  ;;  %4358 = vmatprep.subr.bf16.mxu1 %v9537_v11  ;;  %v14159_v3 = vld [vmem:[#allocation15_spill] sm:$0xff]  ;;  %v14164_v39 = vunpack.i.h.bf16 %v14163_v49 }
 0x448   :  { %9220 = vrot.lane.b32.xlu1 %v9219_v16, %s14041_s0  ;;  %5137 = vmatprep.subr.bf16.mxu0 %v11730_v51  ;;  %v14150_v51 = vpack.c.bf16 %v11954_v48, %v11944_v10  ;;  %v14165_v40 = vld [vmem:[#allocation8_spill] sm:$0xff] }
 0x449   :  { %v9234_v7 = vpack.i.bf16 %v12055_v5, %v12052_v24 }
 0x44b   :  { %9235 = vrot.lane.b32.xlu0 %v9234_v7, %s14041_s0  ;;  %5138 = vmatpush1.bf16.msra.mxu0 %v11738_v54  ;;  %v14151_v54 = vpack.c.bf16 %v11956_v27, %v11946_v15  ;;  %v14166_v7 = vld [vmem:[#allocation26_spill] sm:$0xff] }
 0x44c   :  { %9230 = vrot.lane.b32.xlu1 %v9229_v2, %s14041_s0  ;;  %5139 = vmatprep.subr.bf16.mxu0 %v11744_v4  ;;  %v14153_v4 = vld [vmem:[#allocation10_spill] sm:$0xff] }
 0x44f   :  { %3799 = vrot.lane.b32.xlu0 %v14148_v59, %s14037_s30  ;;  %5140 = vmatpush1.bf16.msra.mxu0 %v11752_v9  ;;  %v14154_v9 = vld [vmem:[#allocation24_spill] sm:$0xff] }
 0x450   :  { %3797 = vrot.lane.b32.xlu1 %v14149_v1, %s14037_s30  ;;  %5141 = vmatprep.subr.bf16.mxu0 %v11758_v20 }
 0x453   :  { %4617 = vrot.lane.b32.xlu0 %v14150_v51, %s14039_s16  ;;  %5142 = vmatpush1.bf16.msra.mxu0 %v11766_v38 }
 0x454   :  { %3795 = vrot.lane.b32.xlu1 %v11565_v23, %s14037_s30  ;;  %5143 = vmatprep.subr.bf16.mxu0 %v11772_v61  ;;  %v9239_v23 = vpack.i.bf16 %v12091_v17, %v12097_v13 }
 0x457   :  { %4615 = vrot.lane.b32.xlu0 %v12010_v31, %s14039_s16  ;;  %5144 = vmatpush1.bf16.msra.mxu0 %v11780_v62 }
 0x458   :  { %4619 = vrot.lane.b32.xlu1 %v14151_v54, %s14039_s16  ;;  %5145 = vmatprep.subr.bf16.mxu0 %v11786_v35 }
 0x45b   :  { %5146 = vmatpush1.bf16.msra.mxu0 %v11794_v45 }
 0x45c   :  { %9240 = vrot.lane.b32.xlu1 %v9239_v23, %s14041_s0  ;;  %5147 = vmatprep.subr.bf16.mxu0 %v11800_v25  ;;  %s14173_s0 = smov 100  }
 0x45f   :  { %5148 = vmatpush1.bf16.msra.mxu0 %v11808_v29 }
 0x460   :  { %5149 = vmatprep.subr.bf16.mxu0 %v11814_v44 }
 0x463   :  { %5150 = vmatpush1.bf16.msra.mxu0 %v11822_v34 }
 0x464   :  { %5151 = vmatprep.subr.bf16.mxu0 %v11828_v57  ;;  %v14155_v57 = vld [vmem:[#allocation23_spill] sm:$0xff] }
 0x465   :  { %v14160_v27 = vunpack.i.l.bf16 %v14155_v57 }
 0x467   :  { %5152 = vmatpush1.bf16.msra.mxu0 %v11834_v41  ;;  %v14156_v41 = vunpack.i.h.bf16 %v14155_v57 }
 0x468   :  { %5153 = vmatprep.subr.bf16.mxu0 %v11840_v43 }
 0x46b   :  { %5154 = vmatpush1.bf16.msra.mxu0 %v11846_v28  ;;  %v14157_v28 = vld [vmem:[#allocation11_spill] sm:$0xff] }
 0x46c   :  { %5155 = vmatprep.subr.bf16.mxu0 %v11852_v36  ;;  %v14158_v36 = vunpack.i.h.bf16 %v14157_v28 }
 0x46f   :  { %5156 = vmatpush1.bf16.msra.mxu0 %v11858_v26 }
 0x470   :  { %5157 = vmatprep.subr.bf16.mxu0 %v11882_v33 }
 0x473   :  { %5158 = vmatpush1.bf16.msra.mxu0 %v11877_v56 }
 0x474   :  { %5159 = vmatprep.subr.bf16.mxu0 %v14152_v55 }
 0x477   :  { %5160 = vmatpush1.bf16.msra.mxu0 %v14153_v4 }
 0x478   :  { %5161 = vmatprep.subr.bf16.mxu0 %v11963_v60 }
 0x47b   :  { %5162 = vmatpush1.bf16.msra.mxu0 %v14154_v9 }
 0x47c   :  { %5163 = vmatprep.subr.bf16.mxu0 %v12000_v6 }
 0x47f   :  { %5164 = vmatpush1.bf16.msra.mxu0 %v12008_v50 }
 0x480   :  { %5165 = vmatprep.subr.bf16.mxu0 %v9534_v12 }
 0x483   :  { %5166 = vmatpush1.bf16.msra.mxu0 %v9532_v58 }
 0x484   :  { %5178 = vmatprep.subr.bf16.mxu0 %v9537_v11 }
 0x4a7   :  { %v2850_v20 = vpop.f32.mrb[24].mxu1 }
 0x4a8   :  { %v2852_v38 = vpop.f32.mrb[25].mxu1 }
 0x4a9   :  { %v2854_v61 = vpop.f32.mrb[26].mxu1 }
 0x4aa   :  { %v12130_v62 = vpack.c.bf16 %v2854_v61, %v2850_v20  ;;  %v2856_v35 = vpop.f32.mrb[27].mxu1 }
 0x4ab   :  { %v2860_v45 = vpack.c.bf16 %v2856_v35, %v2852_v38  ;;  %v14167_v38 = vld [vmem:[#allocation13_spill] sm:$0xff] }
 0x4ac   :  { %2861 = vst [vmem:[#allocation4] sm:$0xff] %v12130_v62  ;;  %5327 = vst [vmem:[#allocation5] sm:$0xff] %v12130_v62  ;;  %v14168_v61 = vunpack.i.l.bf16 %v14167_v38  ;;  %v9576_v38 = vld [vmem:[%s13958_s3 + $0x1d4] ss:$8 sps:$4 sm:$0xff]  }
 0x4ad   :  { %2862 = vst.msk [vmem:[#allocation4 + $0x8] sm:$0xff] %vm14052_vm10, %v2860_v45 }
 0x4b6   :  { %v9226_v25 = vpop.permute.xlu0 %9225 }
 0x4b7   :  { %v9228_v29 = vunpack.i.h.bf16 %v9226_v25  ;;  %v9227_v44 = vunpack.i.l.bf16 %v9226_v25 }
 0x4b9   :  { %v1875_v43 = vsel %vm14062_vm8, %v9228_v29, %v14156_v41  ;;  %v1873_v26 = vsel %vm14062_vm8, %v14158_v36, %v9227_v44  ;;  %v1874_v56 = vsel %vm14062_vm8, %v9227_v44, %v9228_v29  ;;  %v14169_v29 = vld [vmem:[#allocation9_spill] sm:$0xff]  ;;  %v9535_v41 = vld [vmem:[%s13958_s3 + $0x100] ss:$8 sps:$4 sm:$0xff]  }
 0x4ba   :  { %v9221_v34 = vpop.permute.xlu1 %9220  ;;  %v1974_v47 = vmax.f32 %v12017_v14, %v1875_v43  ;;  %v1972_v48 = vmax.f32 %v14159_v3, %v1873_v26  ;;  %v1973_v10 = vmax.f32 %v12003_v21, %v1874_v56  ;;  %v14161_v21 = vld [vmem:[#allocation7_spill] sm:$0xff]  ;;  %v9538_v3 = vld [vmem:[%s13958_s3 + $0x110] ss:$8 sps:$4 sm:$0xff]  }
 0x4bb   :  { %v9223_v33 = vunpack.i.h.bf16 %v9221_v34  ;;  %v9222_v15 = vunpack.i.l.bf16 %v9221_v34  ;;  %v14162_v0 = vunpack.i.h.bf16 %v14161_v21 }
 0x4bc   :  { %v2024_v50 = vmax.f32 %v1974_v47, 0.0  ;;  %v2022_v22 = vmax.f32 %v1972_v48, 0.0  ;;  %v2023_v37 = vmax.f32 %v1973_v10, 0.0 }
 0x4bd   :  { %v12145_v19 = vpop.permute.xlu0 %9235  ;;  %v1851_v60 = vsel %vm14062_vm8, %v9223_v33, %v14160_v27  ;;  %v1849_v42 = vsel %vm14062_vm8, %v14162_v0, %v9222_v15  ;;  %v1850_v12 = vsel %vm14062_vm8, %v9222_v15, %v9223_v33  ;;  %v9543_v27 = vld [vmem:[%s13958_s3 + $0x124] ss:$8 sps:$4 sm:$0xff]   ;;  %v9544_v0 = vld [vmem:[%s13958_s3 + $0x130] ss:$8 sps:$4 sm:$0xff]  }
 0x4be   :  { %v9238_v52 = vunpack.i.h.bf16 %v12145_v19  ;;  %v9237_v6 = vunpack.i.l.bf16 %v12145_v19  ;;  %v1949_v14 = vmax.f32 %v12030_v18, %v1851_v60  ;;  %v12153_v8 = vpop.permute.xlu1 %9230  ;;  %v1947_v16 = vmax.f32 %v14165_v40, %v1849_v42  ;;  %v9541_v60 = vld [vmem:[%s13958_s3 + $0x120] ss:$8 sps:$4 sm:$0xff]   ;;  %v9549_v19 = vld [vmem:[%s13958_s3 + $0x144] ss:$8 sps:$4 sm:$0xff]  }
 0x4bf   :  { %v1948_v18 = vmax.f32 %v12027_v32, %v1850_v12  ;;  %v9233_v51 = vunpack.i.h.bf16 %v12153_v8  ;;  %v9232_v54 = vunpack.i.l.bf16 %v12153_v8  ;;  %v9553_v40 = vld [vmem:[%s13958_s3 + $0x160] ss:$8 sps:$4 sm:$0xff]  }
 0x4c0   :  { %v1879_v30 = vsel %vm14062_vm8, %v14164_v39, %v9237_v6  ;;  %v1880_v63 = vsel %vm14062_vm8, %v9237_v6, %v9238_v52  ;;  %v1999_v58 = vmax.f32 %v1949_v14, 0.0  ;;  %v1997_v55 = vmax.f32 %v1947_v16, 0.0 }
 0x4c1   :  { %v1978_v2 = vmax.f32 %v14166_v7, %v1879_v30  ;;  %v12168_v59 = vpop.permute.xlu0 %3799  ;;  %v1979_v1 = vmax.f32 %v12052_v24, %v1880_v63  ;;  %v1998_v11 = vmax.f32 %v1948_v18, 0.0  ;;  %v1855_v32 = vsel %vm14062_vm8, %v14168_v61, %v9232_v54  ;;  %v9550_v63 = vld [vmem:[%s13958_s3 + $0x150] ss:$8 sps:$4 sm:$0xff]   ;;  %v9558_v18 = vld [vmem:[%s13958_s3 + $0x174] ss:$8 sps:$4 sm:$0xff]  }
 0x4c2   :  { %v2049_v23 = vpack.c.bf16 %v2024_v50, %v1999_v58  ;;  %v3798_v9 = vpop.permute.xlu1 %3797  ;;  %v1856_v35 = vsel %vm14062_vm8, %v9232_v54, %v9233_v51  ;;  %v2047_v24 = vpack.c.bf16 %v2022_v22, %v1997_v55  ;;  %v1953_v44 = vmax.f32 %v14169_v29, %v1855_v32  ;;  %v9546_v50 = vld [vmem:[%s13958_s3 + $0x134] ss:$8 sps:$4 sm:$0xff]   ;;  %v9555_v58 = vld [vmem:[%s13958_s3 + $0x164] ss:$8 sps:$4 sm:$0xff]   ;;  %v9556_v7 = vld [vmem:[%s13958_s3 + $0x170] ss:$8 sps:$4 sm:$0xff]  }
 0x4c3   :  { %v2028_v4 = vmax.f32 %v1978_v2, 0.0  ;;  %v2029_v20 = vmax.f32 %v1979_v1, 0.0  ;;  %v3811_v45 = vsel %vm3809_vm11, %v3798_v9, %v12168_v59  ;;  %v2048_v25 = vpack.c.bf16 %v2023_v37, %v1998_v11  ;;  %v9561_v2 = vld [vmem:[%s13958_s3 + $0x184] ss:$8 sps:$4 sm:$0xff]   ;;  %v9559_v1 = vld [vmem:[%s13958_s3 + $0x180] ss:$8 sps:$4 sm:$0xff]  }
 0x4c4   :  { %v1954_v34 = vmax.f32 %v12039_v53, %v1856_v35  ;;  %4347 = vmatprep.mubr.bf16.mxu1 %v3811_v45  ;;  %v2003_v43 = vmax.f32 %v1953_v44, 0.0  ;;  %3801 = vrot.lane.b32.xlu0 %v2047_v24, %s14037_s30  ;;  %v9540_v53 = vld [vmem:[%s13958_s3 + $0x114] ss:$8 sps:$4 sm:$0xff]   ;;  %v9562_v54 = vld [vmem:[%s13958_s3 + $0x190] ss:$8 sps:$4 sm:$0xff]  }
 0x4c5   :  { %v4618_v57 = vpop.permute.xlu0 %4617  ;;  %3803 = vrot.lane.b32.xlu1 %v2048_v25, %s14037_s30  ;;  %v9565_v55 = vld [vmem:[%s13958_s3 + $0x1a0] ss:$8 sps:$4 sm:$0xff]   ;;  %v9570_v11 = vld [vmem:[%s13958_s3 + $0x1b4] ss:$8 sps:$4 sm:$0xff]   ;;  %v9574_v61 = vld [vmem:[%s13958_s3 + $0x1d0] ss:$8 sps:$4 sm:$0xff]  }
 0x4c6   :  { %v2004_v28 = vmax.f32 %v1954_v34, 0.0  ;;  %v3796_v36 = vpop.permute.xlu1 %3795  ;;  %v2053_v56 = vpack.c.bf16 %v2028_v4, %v2003_v43  ;;  %v9568_v4 = vld [vmem:[%s13958_s3 + $0x1b0] ss:$8 sps:$4 sm:$0xff]   ;;  %v9579_v32 = vld [vmem:[%s13958_s3 + $0x1e4] ss:$8 sps:$4 sm:$0xff]  }
 0x4c7   :  { %v3810_v26 = vsel %vm3809_vm11, %v3796_v36, %v3798_v9  ;;  %v9573_v9 = vld [vmem:[%s13958_s3 + $0x1c4] ss:$8 sps:$4 sm:$0xff]   ;;  %v9577_v35 = vld [vmem:[%s13958_s3 + $0x1e0] ss:$8 sps:$4 sm:$0xff]   ;;  %v9580_v45 = vld [vmem:[%s13958_s3 + $0x1f0] ss:$8 sps:$4 sm:$0xff]  }
 0x4c8   :  { %v2054_v33 = vpack.c.bf16 %v2029_v20, %v2004_v28  ;;  %4348 = vmatmul.mubr.bf16.vlgmr.msra.gmra.mrb[28].mxu1 %v3810_v26  ;;  %4621 = vrot.lane.b32.xlu0 %v2053_v56, %s14039_s16  ;;  %v9571_v20 = vld [vmem:[%s13958_s3 + $0x1c0] ss:$8 sps:$4 sm:$0xff]   ;;  %v9585_v24 = vld [vmem:[%s13958_s3 + $0x204] ss:$8 sps:$4 sm:$0xff]   ;;  %v9588_v56 = vld [vmem:[%s13958_s3 + $0x214] ss:$8 sps:$4 sm:$0xff]  }
 0x4c9   :  { %v4616_v47 = vpop.permute.xlu0 %4615  ;;  %4359 = vmatpush1.bf16.msra.mxu1 %v9535_v41  ;;  %v9583_v36 = vld [vmem:[%s13958_s3 + $0x200] ss:$8 sps:$4 sm:$0xff]  }
 0x4ca   :  { %v4630_v48 = vsel %vm14051_vm12, %v4616_v47, %v4618_v57  ;;  %v12194_v10 = vpop.permute.xlu1 %4619  ;;  %4623 = vrot.lane.b32.xlu1 %v2054_v33, %s14039_s16  ;;  %4360 = vmatprep.subr.bf16.mxu1 %v9540_v53 }
 0x4cb   :  { %v4631_v15 = vsel %vm14051_vm12, %v4618_v57, %v12194_v10 }
 0x4cc   :  { %5167 = vmatprep.mubr.bf16.mxu0 %v4631_v15  ;;  %3805 = vrot.lane.b32.xlu0 %v2049_v23, %s14037_s30  ;;  %v9567_v23 = vld [vmem:[%s13958_s3 + $0x1a4] ss:$8 sps:$4 sm:$0xff]  }
 0x4cd   :  { %5168 = vmatmul.mubr.bf16.vlgmr.msra.gmra.mrb[32].mxu0 %v4630_v48  ;;  %4361 = vmatpush1.bf16.msra.mxu1 %v9538_v3  ;;  %v9591_v15 = vld [vmem:[%s13958_s3 + $0x224] ss:$8 sps:$4 sm:$0xff]  }
 0x4ce   :  { %v9241_v6 = vpop.permute.xlu1 %9240  ;;  %3807 = vrot.lane.b32.xlu1 %v12010_v31, %s14037_s30  ;;  %5179 = vmatpush1.bf16.msra.mxu0 %v9535_v41  ;;  %s9757_s30 = smov 90  }
 0x4cf   :  { %v9243_v22 = vunpack.i.h.bf16 %v9241_v6  ;;  %v9242_v37 = vunpack.i.l.bf16 %v9241_v6  ;;  %4362 = vmatprep.subr.bf16.mxu1 %v9543_v27  ;;  %5180 = vmatprep.subr.bf16.mxu0 %v9540_v53  ;;  %v9589_v6 = vld [vmem:[%s13958_s3 + $0x220] ss:$8 sps:$4 sm:$0xff]  }
 0x4d1   :  { %v1881_v14 = vsel %vm14062_vm8, %v9238_v52, %v9243_v22  ;;  %v1981_v8 = vmax.f32 %v12091_v17, %v9243_v22  ;;  %v1857_v21 = vsel %vm14062_vm8, %v9233_v51, %v9242_v37  ;;  %v1956_v31 = vmax.f32 %v12097_v13, %v9242_v37  ;;  %4363 = vmatpush1.bf16.msra.mxu1 %v9541_v60  ;;  %v9564_v51 = vld [vmem:[%s13958_s3 + $0x194] ss:$8 sps:$4 sm:$0xff]   ;;  %v9592_v22 = vld [vmem:[%s13958_s3 + $0x230] ss:$8 sps:$4 sm:$0xff]   ;;  %v9597_v37 = vld [vmem:[%s13958_s3 + $0x244] ss:$8 sps:$4 sm:$0xff]  }
 0x4d2   :  { %v1980_v42 = vmax.f32 %v12055_v5, %v1881_v14  ;;  %v1955_v12 = vmax.f32 %v12042_v46, %v1857_v21  ;;  %4364 = vmatprep.subr.bf16.mxu1 %v9546_v50  ;;  %5181 = vmatpush1.bf16.msra.mxu0 %v9538_v3  ;;  %v9547_v5 = vld [vmem:[%s13958_s3 + $0x140] ss:$8 sps:$4 sm:$0xff]   ;;  %v9552_v46 = vld [vmem:[%s13958_s3 + $0x154] ss:$8 sps:$4 sm:$0xff]   ;;  %v9586_v3 = vld [vmem:[%s13958_s3 + $0x210] ss:$8 sps:$4 sm:$0xff]  }
 0x4d3   :  { %v2031_v52 = vmax.f32 %v1981_v8, 0.0  ;;  %v2006_v17 = vmax.f32 %v1956_v31, 0.0  ;;  %5182 = vmatprep.subr.bf16.mxu0 %v9543_v27  ;;  %v9595_v14 = vld [vmem:[%s13958_s3 + $0x240] ss:$8 sps:$4 sm:$0xff]   ;;  %v9600_v8 = vld [vmem:[%s13958_s3 + $0x254] ss:$8 sps:$4 sm:$0xff]  }
 0x4d4   :  { %v2030_v49 = vmax.f32 %v1980_v42, 0.0  ;;  %v2005_v13 = vmax.f32 %v1955_v12, 0.0  ;;  %v9598_v21 = vld [vmem:[%s13958_s3 + $0x250] ss:$8 sps:$4 sm:$0xff]   ;;  %v9603_v31 = vld [vmem:[%s13958_s3 + $0x264] ss:$8 sps:$4 sm:$0xff]  }
 0x4d5   :  { %v2056_v39 = vpack.c.bf16 %v2031_v52, %v2006_v17  ;;  %4365 = vmatpush1.bf16.msra.mxu1 %v9544_v0  ;;  %v9604_v17 = vld [vmem:[%s13958_s3 + $0x270] ss:$8 sps:$4 sm:$0xff]  }
 0x4d6   :  { %v2055_v30 = vpack.c.bf16 %v2030_v49, %v2005_v13  ;;  %4366 = vmatprep.subr.bf16.mxu1 %v9549_v19  ;;  %5183 = vmatpush1.bf16.msra.mxu0 %v9541_v60  ;;  %v9609_v49 = vld [vmem:[%s13958_s3 + $0x284] ss:$8 sps:$4 sm:$0xff]   ;;  %v9607_v13 = vld [vmem:[%s13958_s3 + $0x280] ss:$8 sps:$4 sm:$0xff]  }
 0x4d7   :  { %2082 = vst.msk [vmem:[#allocation3 + $0xc0] sm:$0xff] %vm2081_vm13, %v2056_v39  ;;  %5184 = vmatprep.subr.bf16.mxu0 %v9546_v50  ;;  %v9594_v50 = vld [vmem:[%s13958_s3 + $0x234] ss:$8 sps:$4 sm:$0xff]  }
 0x4d8   :  { %4625 = vrot.lane.b32.xlu0 %v2055_v30, %s14039_s16  ;;  %v9612_v39 = vld [vmem:[%s13958_s3 + $0x294] ss:$8 sps:$4 sm:$0xff]   ;;  %v9615_v30 = vld [vmem:[%s13958_s3 + $0x2a4] ss:$8 sps:$4 sm:$0xff]  }
 0x4d9   :  { %4367 = vmatpush1.bf16.msra.mxu1 %v9547_v5 }
 0x4da   :  { %4368 = vmatprep.subr.bf16.mxu1 %v9552_v46  ;;  %5185 = vmatpush1.bf16.msra.mxu0 %v9544_v0  ;;  %v9601_v0 = vld [vmem:[%s13958_s3 + $0x260] ss:$8 sps:$4 sm:$0xff]  }
 0x4db   :  { %5186 = vmatprep.subr.bf16.mxu0 %v9549_v19  ;;  %v9606_v19 = vld [vmem:[%s13958_s3 + $0x274] ss:$8 sps:$4 sm:$0xff]  }
 0x4dc   :  { %5343 = vrot.lane.b32.xlu0 %v12130_v62, %s9733_s22 }
 0x4dd   :  { %4369 = vmatpush1.bf16.msra.mxu1 %v9550_v63 }
 0x4de   :  { %v4509_v16 = vld [vmem:[#allocation3 + $0xc0] sm:$0xff]  ;;  %4370 = vmatprep.subr.bf16.mxu1 %v9555_v58  ;;  %5187 = vmatpush1.bf16.msra.mxu0 %v9547_v5 }
 0x4df   :  { %4627 = vrot.lane.b32.xlu1 %v4509_v16, %s14039_s16  ;;  %5188 = vmatprep.subr.bf16.mxu0 %v9552_v46  ;;  %v9610_v5 = vld [vmem:[%s13958_s3 + $0x290] ss:$8 sps:$4 sm:$0xff]   ;;  %v9613_v46 = vld [vmem:[%s13958_s3 + $0x2a0] ss:$8 sps:$4 sm:$0xff]   ;;  %s9756_s16 = smov 91  }
 0x4e0   :  { %5411 = vrot.lane.b32.xlu0 %v12130_v62, %s9735_s26  ;;  %v9619_v16 = vld [vmem:[%s13958_s3 + $0x2c0] ss:$8 sps:$4 sm:$0xff]  }
 0x4e1   :  { %4371 = vmatpush1.bf16.msra.mxu1 %v9553_v40 }
 0x4e2   :  { %4372 = vmatprep.subr.bf16.mxu1 %v9558_v18  ;;  %5189 = vmatpush1.bf16.msra.mxu0 %v9550_v63  ;;  %v9618_v63 = vld [vmem:[%s13958_s3 + $0x2b4] ss:$8 sps:$4 sm:$0xff]  }
 0x4e3   :  { %5377 = vrot.lane.b32.xlu1 %v12130_v62, %s9734_s25  ;;  %5190 = vmatprep.subr.bf16.mxu0 %v9555_v58  ;;  %v9616_v58 = vld [vmem:[%s13958_s3 + $0x2b0] ss:$8 sps:$4 sm:$0xff]  }
 0x4e4   :  { %5479 = vrot.lane.b32.xlu0 %v12130_v62, %s9744_s20 }
 0x4e5   :  { %4373 = vmatpush1.bf16.msra.mxu1 %v9556_v7 }
 0x4e6   :  { %4374 = vmatprep.subr.bf16.mxu1 %v9561_v2  ;;  %5191 = vmatpush1.bf16.msra.mxu0 %v9553_v40  ;;  %v9621_v40 = vld [vmem:[%s13958_s3 + $0x2c4] ss:$8 sps:$4 sm:$0xff]  }
 0x4e7   :  { %5445 = vrot.lane.b32.xlu1 %v12130_v62, %s9736_s27  ;;  %5192 = vmatprep.subr.bf16.mxu0 %v9558_v18  ;;  %v9624_v18 = vld [vmem:[%s13958_s3 + $0x2d4] ss:$8 sps:$4 sm:$0xff]  }
 0x4e8   :  { %5549 = vrot.lane.b32.xlu0 %v12130_v62, %s9745_s2 }
 0x4e9   :  { %4375 = vmatpush1.bf16.msra.mxu1 %v9559_v1 }
 0x4ea   :  { %4376 = vmatprep.subr.bf16.mxu1 %v9564_v51  ;;  %5193 = vmatpush1.bf16.msra.mxu0 %v9556_v7 }
 0x4eb   :  { %5514 = vrot.lane.b32.xlu1 %v12130_v62, %s9746_s21  ;;  %5194 = vmatprep.subr.bf16.mxu0 %v9561_v2  ;;  %v9622_v2 = vld [vmem:[%s13958_s3 + $0x2d0] ss:$8 sps:$4 sm:$0xff]  }
 0x4ec   :  { %5619 = vrot.lane.b32.xlu0 %v12130_v62, %s14058_s28 }
 0x4ed   :  { %4377 = vmatpush1.bf16.msra.mxu1 %v9562_v54 }
 0x4ee   :  { %4378 = vmatprep.subr.bf16.mxu1 %v9567_v23  ;;  %5195 = vmatpush1.bf16.msra.mxu0 %v9559_v1  ;;  %v9627_v1 = vld [vmem:[%s13958_s3 + $0x2e4] ss:$8 sps:$4 sm:$0xff]  }
 0x4ef   :  { %5584 = vrot.lane.b32.xlu1 %v12130_v62, %s9747_s18  ;;  %5196 = vmatprep.subr.bf16.mxu0 %v9564_v51 }
 0x4f0   :  { %5688 = vrot.lane.b32.xlu0 %v12130_v62, %s14045_s19  ;;  %s9754_s19 = smov 48  }
 0x4f1   :  { %4379 = vmatpush1.bf16.msra.mxu1 %v9565_v55 }
 0x4f2   :  { %4380 = vmatprep.subr.bf16.mxu1 %v9570_v11  ;;  %5197 = vmatpush1.bf16.msra.mxu0 %v9562_v54  ;;  %v9625_v54 = vld [vmem:[%s13958_s3 + $0x2e0] ss:$8 sps:$4 sm:$0xff]  }
 0x4f3   :  { %5653 = vrot.lane.b32.xlu1 %v12130_v62, %s9749_s29  ;;  %5198 = vmatprep.subr.bf16.mxu0 %v9567_v23 }
 0x4f4   :  { %5758 = vrot.lane.b32.xlu0 %v12130_v62, %s14043_s17  ;;  %s14171_s17 = smov 102  }
 0x4f5   :  { %4381 = vmatpush1.bf16.msra.mxu1 %v9568_v4 }
 0x4f6   :  { %4382 = vmatprep.subr.bf16.mxu1 %v9573_v9  ;;  %5199 = vmatpush1.bf16.msra.mxu0 %v9565_v55  ;;  %v9630_v55 = vld [vmem:[%s13958_s3 + $0x2f4] ss:$8 sps:$4 sm:$0xff]  }
 0x4f7   :  { %5723 = vrot.lane.b32.xlu1 %v12130_v62, %s14047_s23  ;;  %5200 = vmatprep.subr.bf16.mxu0 %v9570_v11  ;;  %v9582_v62 = vld [vmem:[%s13958_s3 + $0x1f4] ss:$8 sps:$4 sm:$0xff]   ;;  %s9752_s23 = smov 16   ;;  %v9628_v11 = vld [vmem:[%s13958_s3 + $0x2f0] ss:$8 sps:$4 sm:$0xff]  }
 0x4f9   :  { %4383 = vmatpush1.bf16.msra.mxu1 %v9571_v20 }
 0x4fa   :  { %4384 = vmatprep.subr.bf16.mxu1 %v9576_v38  ;;  %5201 = vmatpush1.bf16.msra.mxu0 %v9568_v4  ;;  %v9633_v4 = vld [vmem:[%s13958_s3 + $0x304] ss:$8 sps:$4 sm:$0xff]  }
 0x4fb   :  { %5202 = vmatprep.subr.bf16.mxu0 %v9573_v9 }
 0x4fd   :  { %4385 = vmatpush1.bf16.msra.mxu1 %v9574_v61 }
 0x4fe   :  { %4386 = vmatprep.subr.bf16.mxu1 %v9579_v32  ;;  %5203 = vmatpush1.bf16.msra.mxu0 %v9571_v20 }
 0x4ff   :  { %5204 = vmatprep.subr.bf16.mxu0 %v9576_v38  ;;  %v9631_v38 = vld [vmem:[%s13958_s3 + $0x300] ss:$8 sps:$4 sm:$0xff]   ;;  %s9753_s3 = smov 32  }
 0x501   :  { %4387 = vmatpush1.bf16.msra.mxu1 %v9577_v35 }
 0x502   :  { %4388 = vmatprep.subr.bf16.mxu1 %v9582_v62  ;;  %5205 = vmatpush1.bf16.msra.mxu0 %v9574_v61 }
 0x503   :  { %5206 = vmatprep.subr.bf16.mxu0 %v9579_v32 }
 0x505   :  { %4389 = vmatpush1.bf16.msra.mxu1 %v9580_v45 }
 0x506   :  { %4401 = vmatprep.subr.bf16.mxu1 %v9585_v24  ;;  %5207 = vmatpush1.bf16.msra.mxu0 %v9577_v35 }
 0x507   :  { %5208 = vmatprep.subr.bf16.mxu0 %v9582_v62  ;;  %v12469_v62 = vld [vmem:[#allocation4 + $0x10] sm:$0xff] }
 0x50a   :  { %5209 = vmatpush1.bf16.msra.mxu0 %v9580_v45 }
 0x50b   :  { %5221 = vmatprep.subr.bf16.mxu0 %v9585_v24 }
 0x519   :  { %v3658_v25 = vpop.f32.mrb[28].mxu0 }
 0x51a   :  { %v3660_v29 = vpop.f32.mrb[29].mxu0 }
 0x51b   :  { %v3662_v44 = vpop.f32.mrb[30].mxu0 }
 0x51c   :  { %v3667_v34 = vpack.c.bf16 %v3662_v44, %v3658_v25  ;;  %v3664_v57 = vpop.f32.mrb[31].mxu0 }
 0x51d   :  { %v3668_v41 = vpack.c.bf16 %v3664_v57, %v3660_v29 }
 0x51e   :  { %3671 = vrot.lane.b32.xlu0 %v3667_v34, %s9752_s23 }
 0x51f   :  { %3673 = vrot.lane.b32.xlu1 %v3668_v41, %s9752_s23  ;;  %s14053_s23 = smov 92  }
 0x536   :  { %v3802_v28 = vpop.permute.xlu0 %3801 }
 0x537   :  { %v12327_v43 = vpop.permute.xlu1 %3803  ;;  %v3812_v53 = vsel %vm3809_vm11, %v12168_v59, %v3802_v28 }
 0x538   :  { %v3813_v26 = vsel %vm3809_vm11, %v3802_v28, %v12327_v43 }
 0x539   :  { %4390 = vmatprep.mubr.bf16.mxu1 %v3813_v26  ;;  %v6173_v26 = vld [vmem:[#allocation5] sm:$0xff] }
 0x53a   :  { %4391 = vmatmul.mubr.bf16.vlgmr.msra.gmra.mrb[28].mxu1 %v3812_v53  ;;  %v4622_v47 = vpop.permute.xlu0 %4621 }
 0x53b   :  { %4402 = vmatpush1.bf16.msra.mxu1 %v9583_v36  ;;  %v4632_v59 = vsel %vm14051_vm12, %v12194_v10, %v4622_v47 }
 0x53c   :  { %v12339_v33 = vpop.permute.xlu1 %4623  ;;  %4403 = vmatprep.subr.bf16.mxu1 %v9588_v56 }
 0x53d   :  { %v4633_v48 = vsel %vm14051_vm12, %v4622_v47, %v12339_v33 }
 0x53e   :  { %5210 = vmatprep.mubr.bf16.mxu0 %v4633_v48  ;;  %v12353_v60 = vpop.permute.xlu0 %3805 }
 0x53f   :  { %5211 = vmatmul.mubr.bf16.vlgmr.msra.gmra.mrb[32].mxu0 %v4632_v59  ;;  %4404 = vmatpush1.bf16.msra.mxu1 %v9586_v3  ;;  %v3814_v61 = vsel %vm3809_vm11, %v12327_v43, %v12353_v60 }
 0x540   :  { %5222 = vmatpush1.bf16.msra.mxu0 %v9583_v36  ;;  %v12351_v27 = vpop.permute.xlu1 %3807  ;;  %4405 = vmatprep.subr.bf16.mxu1 %v9591_v15 }
 0x541   :  { %v3815_v10 = vsel %vm3809_vm11, %v12353_v60, %v12351_v27  ;;  %5223 = vmatprep.subr.bf16.mxu0 %v9588_v56  ;;  %vm5489_vm11 = vcmask 949248  }
 0x542   :  { %4433 = vmatprep.mubr.bf16.mxu1 %v3815_v10 }
 0x543   :  { %4406 = vmatpush1.bf16.msra.mxu1 %v9589_v6 }
 0x544   :  { %5224 = vmatpush1.bf16.msra.mxu0 %v9586_v3  ;;  %4407 = vmatprep.subr.bf16.mxu1 %v9594_v50 }
 0x545   :  { %5225 = vmatprep.subr.bf16.mxu0 %v9591_v15 }
 0x547   :  { %4408 = vmatpush1.bf16.msra.mxu1 %v9592_v22 }
 0x548   :  { %5226 = vmatpush1.bf16.msra.mxu0 %v9589_v6  ;;  %4409 = vmatprep.subr.bf16.mxu1 %v9597_v37 }
 0x549   :  { %5227 = vmatprep.subr.bf16.mxu0 %v9594_v50 }
 0x54a   :  { %v12387_v12 = vpop.permute.xlu0 %4625 }
 0x54b   :  { %4410 = vmatpush1.bf16.msra.mxu1 %v9595_v14  ;;  %v4634_v45 = vsel %vm14051_vm12, %v12339_v33, %v12387_v12 }
 0x54c   :  { %5228 = vmatpush1.bf16.msra.mxu0 %v9592_v22  ;;  %4411 = vmatprep.subr.bf16.mxu1 %v9600_v8 }
 0x54d   :  { %5229 = vmatprep.subr.bf16.mxu0 %v9597_v37 }
 0x54e   :  { %v12431_v7 = vpop.permute.xlu0 %5343 }
 0x54f   :  { %4412 = vmatpush1.bf16.msra.mxu1 %v9598_v21 }
 0x550   :  { %5230 = vmatpush1.bf16.msra.mxu0 %v9595_v14  ;;  %4413 = vmatprep.subr.bf16.mxu1 %v9603_v31 }
 0x551   :  { %v12385_v42 = vpop.permute.xlu1 %4627  ;;  %5231 = vmatprep.subr.bf16.mxu0 %v9600_v8 }
 0x552   :  { %v4635_v52 = vsel %vm14051_vm12, %v12387_v12, %v12385_v42  ;;  %v12439_v51 = vpop.permute.xlu0 %5411  ;;  %vm5733_vm12 = vcmask 834560  }
 0x553   :  { %5253 = vmatprep.mubr.bf16.mxu0 %v4635_v52  ;;  %4414 = vmatpush1.bf16.msra.mxu1 %v9601_v0 }
 0x554   :  { %5232 = vmatpush1.bf16.msra.mxu0 %v9598_v21  ;;  %4415 = vmatprep.subr.bf16.mxu1 %v9606_v19 }
 0x555   :  { %5233 = vmatprep.subr.bf16.mxu0 %v9603_v31  ;;  %v12444_v23 = vpop.permute.xlu1 %5377 }
 0x556   :  { %v12455_v9 = vpop.permute.xlu0 %5479 }
 0x557   :  { %4416 = vmatpush1.bf16.msra.mxu1 %v9604_v17 }
 0x558   :  { %5234 = vmatpush1.bf16.msra.mxu0 %v9601_v0  ;;  %4417 = vmatprep.subr.bf16.mxu1 %v9609_v49 }
 0x559   :  { %5235 = vmatprep.subr.bf16.mxu0 %v9606_v19  ;;  %v12457_v20 = vpop.permute.xlu1 %5445 }
 0x55a   :  { %v12465_v32 = vpop.permute.xlu0 %5549 }
 0x55b   :  { %4418 = vmatpush1.bf16.msra.mxu1 %v9607_v13 }
 0x55c   :  { %5236 = vmatpush1.bf16.msra.mxu0 %v9604_v17  ;;  %4419 = vmatprep.subr.bf16.mxu1 %v9612_v39 }
 0x55d   :  { %5237 = vmatprep.subr.bf16.mxu0 %v9609_v49  ;;  %v12467_v35 = vpop.permute.xlu1 %5514 }
 0x55e   :  { %v12476_v24 = vpop.permute.xlu0 %5619 }
 0x55f   :  { %4420 = vmatpush1.bf16.msra.mxu1 %v9610_v5 }
 0x560   :  { %5238 = vmatpush1.bf16.msra.mxu0 %v9607_v13  ;;  %4421 = vmatprep.subr.bf16.mxu1 %v9615_v30 }
 0x561   :  { %5239 = vmatprep.subr.bf16.mxu0 %v9612_v39  ;;  %v12478_v25 = vpop.permute.xlu1 %5584 }
 0x562   :  { %v12482_v29 = vpop.permute.xlu0 %5688 }
 0x563   :  { %4422 = vmatpush1.bf16.msra.mxu1 %v9613_v46 }
 0x564   :  { %5240 = vmatpush1.bf16.msra.mxu0 %v9610_v5  ;;  %4423 = vmatprep.subr.bf16.mxu1 %v9618_v63 }
 0x565   :  { %5241 = vmatprep.subr.bf16.mxu0 %v9615_v30  ;;  %v12484_v44 = vpop.permute.xlu1 %5653 }
 0x566   :  { %v12488_v34 = vpop.permute.xlu0 %5758 }
 0x567   :  { %4424 = vmatpush1.bf16.msra.mxu1 %v9616_v58 }
 0x568   :  { %5242 = vmatpush1.bf16.msra.mxu0 %v9613_v46  ;;  %4425 = vmatprep.subr.bf16.mxu1 %v9621_v40 }
 0x569   :  { %5243 = vmatprep.subr.bf16.mxu0 %v9618_v63  ;;  %v12490_v57 = vpop.permute.xlu1 %5723 }
 0x56b   :  { %4426 = vmatpush1.bf16.msra.mxu1 %v9619_v16 }
 0x56c   :  { %5244 = vmatpush1.bf16.msra.mxu0 %v9616_v58  ;;  %4427 = vmatprep.subr.bf16.mxu1 %v9624_v18 }
 0x56d   :  { %5245 = vmatprep.subr.bf16.mxu0 %v9621_v40 }
 0x56f   :  { %4428 = vmatpush1.bf16.msra.mxu1 %v9622_v2 }
 0x570   :  { %5246 = vmatpush1.bf16.msra.mxu0 %v9619_v16  ;;  %4429 = vmatprep.subr.bf16.mxu1 %v9627_v1 }
 0x571   :  { %5247 = vmatprep.subr.bf16.mxu0 %v9624_v18 }
 0x573   :  { %4430 = vmatpush1.bf16.msra.mxu1 %v9625_v54 }
 0x574   :  { %5248 = vmatpush1.bf16.msra.mxu0 %v9622_v2  ;;  %4431 = vmatprep.subr.bf16.mxu1 %v9630_v55 }
 0x575   :  { %5249 = vmatprep.subr.bf16.mxu0 %v9627_v1 }
 0x577   :  { %4432 = vmatpush1.bf16.msra.mxu1 %v9628_v11 }
 0x578   :  { %5250 = vmatpush1.bf16.msra.mxu0 %v9625_v54  ;;  %4444 = vmatprep.subr.bf16.mxu1 %v9633_v4 }
 0x579   :  { %5251 = vmatprep.subr.bf16.mxu0 %v9630_v55  ;;  %v12668_v55 = vld [vmem:[#allocation4] sm:$0xff] }
 0x57a   :  { %4434 = vmatmul.mubr.bf16.vlgmr.msra.gmra.mrb[28].mxu1 %v3814_v61 }
 0x57b   :  { %4445 = vmatpush1.bf16.msra.mxu1 %v9631_v38  ;;  %4476 = vmatprep.mubr.bf16.mxu1 %v12469_v62 }
 0x57c   :  { %5252 = vmatpush1.bf16.msra.mxu0 %v9628_v11  ;;  %v9636_v11 = vld [vmem:[%s13959_s4 + $0x4] ss:$16 sps:$4 sm:$0xff]  }
 0x57d   :  { %5264 = vmatprep.subr.bf16.mxu0 %v9633_v4 }
 0x57f   :  { %5254 = vmatmul.mubr.bf16.vlgmr.msra.gmra.mrb[32].mxu0 %v4634_v45 }
 0x580   :  { %5265 = vmatpush1.bf16.msra.mxu0 %v9631_v38  ;;  %5296 = vmatprep.mubr.bf16.mxu0 %v12469_v62 }
 0x586   :  { %8516 = vmatmul.mubr.msk.bf16.vlgmr.msra.gmra.mrb[28].mxu1 %vm14052_vm10, %v12351_v27 }
 0x587   :  { %6368 = vmatprep.mubr.bf16.mxu1 %v9636_v11 }
 0x58b   :  { %8615 = vmatmul.mubr.msk.bf16.vlgmr.msra.gmra.mrb[32].mxu0 %vm14052_vm10, %v12385_v42 }
 0x58c   :  { %6470 = vmatprep.mubr.bf16.mxu0 %v9636_v11 }
 0x590   :  { %v3672_v41 = vpop.permute.xlu0 %3671 }
 0x591   :  { %3680 = vst.msk [vmem:[#allocation4 + $0x8] sm:$0xff] %vm3679_vm14, %v3672_v41  ;;  %v3674_v43 = vpop.permute.xlu1 %3673  ;;  %vm5524_vm14 = vcmask 941056  }
 0x592   :  { %v3676_v28 = vsel %vm14052_vm10, %v3672_v41, %v3674_v43  ;;  %vm5768_vm10 = vcmask 826368  }
 0x593   :  { %3682 = vst.msk [vmem:[#allocation4 + $0x10] sm:$0xff] %vm3681_vm15, %v3676_v28 }
 0x598   :  { %v12494_v36 = vld [vmem:[#allocation4 + $0x8] sm:$0xff] }
 0x599   :  { %6336 = vmatprep.subr.bf16.mxu1 %v12494_v36 }
 0x59a   :  { %6337 = vmatpush1.bf16.msra.mxu1 %v6173_v26 }
 0x659   :  { %v4478_v53 = vpop.f32.mrb[28].mxu1 }
 0x65a   :  { %v4480_v56 = vpop.f32.mrb[29].mxu1 }
 0x65b   :  { %v4482_v33 = vpop.f32.mrb[30].mxu1 }
 0x65c   :  { %v4487_v47 = vpack.c.bf16 %v4482_v33, %v4478_v53  ;;  %v4484_v3 = vpop.f32.mrb[31].mxu1 }
 0x65d   :  { %v4488_v48 = vpack.c.bf16 %v4484_v3, %v4480_v56 }
 0x65e   :  { %v12497_v59 = vpop.f32.mrb[32].mxu0  ;;  %4491 = vrot.lane.b32.xlu0 %v4487_v47, %s9753_s3 }
 0x65f   :  { %v12499_v15 = vpop.f32.mrb[33].mxu0  ;;  %4493 = vrot.lane.b32.xlu1 %v4488_v48, %s9753_s3  ;;  %s9759_s3 = smov 88  }
 0x660   :  { %v12501_v27 = vpop.f32.mrb[34].mxu0 }
 0x661   :  { %v5307_v60 = vpack.c.bf16 %v12501_v27, %v12497_v59  ;;  %v12505_v6 = vpop.f32.mrb[35].mxu0 }
 0x662   :  { %v5308_v10 = vpack.c.bf16 %v12505_v6, %v12499_v15  ;;  %5345 = vrot.lane.b32.xlu0 %v12494_v36, %s9733_s22 }
 0x663   :  { %5379 = vrot.lane.b32.xlu1 %v12494_v36, %s9734_s25 }
 0x666   :  { %5413 = vrot.lane.b32.xlu0 %v12494_v36, %s9735_s26 }
 0x667   :  { %5447 = vrot.lane.b32.xlu1 %v12494_v36, %s9736_s27 }
 0x66a   :  { %5481 = vrot.lane.b32.xlu0 %v12494_v36, %s9744_s20 }
 0x66b   :  { %5516 = vrot.lane.b32.xlu1 %v12494_v36, %s9746_s21 }
 0x66e   :  { %5551 = vrot.lane.b32.xlu0 %v12494_v36, %s9745_s2 }
 0x66f   :  { %5586 = vrot.lane.b32.xlu1 %v12494_v36, %s9747_s18 }
 0x672   :  { %5621 = vrot.lane.b32.xlu0 %v12494_v36, %s14058_s28 }
 0x673   :  { %5655 = vrot.lane.b32.xlu1 %v12494_v36, %s9749_s29 }
 0x676   :  { %5690 = vrot.lane.b32.xlu0 %v12494_v36, %s14170_s1 }
 0x677   :  { %5725 = vrot.lane.b32.xlu1 %v12494_v36, %s14171_s17 }
 0x67a   :  { %5760 = vrot.lane.b32.xlu0 %v12494_v36, %s14172_s24 }
 0x6d0   :  { %v4492_v50 = vpop.permute.xlu0 %4491 }
 0x6d1   :  { %4500 = vst.msk [vmem:[#allocation4 + $0x10] sm:$0xff] %vm4499_vm5, %v4492_v50  ;;  %v4494_v22 = vpop.permute.xlu1 %4493  ;;  %vm5594_vm5 = vcmask 924672  }
 0x6d2   :  { %v4496_v37 = vsel %vm3681_vm15, %v4492_v50, %v4494_v22  ;;  %vm5559_vm15 = vcmask 932864  }
 0x6d3   :  { %4502 = vst.msk [vmem:[#allocation4 + $0x18] sm:$0xff] %vm4501_vm7, %v4496_v37 }
 0x6d4   :  { %v12537_v14 = vpop.permute.xlu0 %5345 }
 0x6d5   :  { %v12542_v8 = vsel %vm177_vm0, %v12431_v7, %v12537_v14  ;;  %v12544_v21 = vpop.permute.xlu1 %5379 }
 0x6d6   :  { %v12549_v31 = vsel %vm14060_vm2, %v12444_v23, %v12544_v21 }
 0x6d8   :  { %v12551_v0 = vld [vmem:[#allocation4 + $0x10] sm:$0xff]  ;;  %v12553_v42 = vpop.permute.xlu0 %5413 }
 0x6d9   :  { %v12558_v12 = vsel %vm327_vm3, %v12439_v51, %v12553_v42  ;;  %5347 = vrot.lane.b32.xlu1 %v12551_v0, %s9733_s22  ;;  %v12562_v19 = vpop.permute.xlu1 %5447  ;;  %5381 = vrot.lane.b32.xlu0 %v12551_v0, %s9734_s25 }
 0x6da   :  { %v12569_v52 = vsel %vm402_vm4, %v12457_v20, %v12562_v19 }
 0x6dc   :  { %v12571_v17 = vpop.permute.xlu0 %5481 }
 0x6dd   :  { %v12576_v49 = vsel %vm5489_vm11, %v12455_v9, %v12571_v17  ;;  %5415 = vrot.lane.b32.xlu1 %v12551_v0, %s9735_s26  ;;  %v12580_v13 = vpop.permute.xlu1 %5516  ;;  %5449 = vrot.lane.b32.xlu0 %v12551_v0, %s9736_s27 }
 0x6de   :  { %v12587_v39 = vsel %vm5524_vm14, %v12467_v35, %v12580_v13 }
 0x6e0   :  { %v12589_v5 = vpop.permute.xlu0 %5551 }
 0x6e1   :  { %v12594_v30 = vsel %vm5559_vm15, %v12465_v32, %v12589_v5  ;;  %5483 = vrot.lane.b32.xlu1 %v12551_v0, %s9744_s20  ;;  %v12598_v46 = vpop.permute.xlu1 %5586  ;;  %5518 = vrot.lane.b32.xlu0 %v12551_v0, %s9746_s21 }
 0x6e2   :  { %v12605_v63 = vsel %vm5594_vm5, %v12478_v25, %v12598_v46 }
 0x6e4   :  { %v12607_v58 = vpop.permute.xlu0 %5621 }
 0x6e5   :  { %v12612_v40 = vsel %vm14055_vm9, %v12476_v24, %v12607_v58  ;;  %5553 = vrot.lane.b32.xlu1 %v12551_v0, %s9745_s2  ;;  %v12616_v16 = vpop.permute.xlu1 %5655  ;;  %5588 = vrot.lane.b32.xlu0 %v12551_v0, %s9747_s18 }
 0x6e6   :  { %v12623_v18 = vsel %vm5663_vm6, %v12484_v44, %v12616_v16 }
 0x6e8   :  { %v12625_v7 = vpop.permute.xlu0 %5690 }
 0x6e9   :  { %v12630_v2 = vsel %vm5698_vm1, %v12482_v29, %v12625_v7  ;;  %5623 = vrot.lane.b32.xlu1 %v12551_v0, %s14058_s28  ;;  %v12634_v1 = vpop.permute.xlu1 %5725  ;;  %5657 = vrot.lane.b32.xlu0 %v12551_v0, %s9749_s29 }
 0x6ea   :  { %v12641_v51 = vsel %vm5733_vm12, %v12490_v57, %v12634_v1 }
 0x6ec   :  { %v12643_v54 = vpop.permute.xlu0 %5760 }
 0x6ed   :  { %v12648_v23 = vsel %vm5768_vm10, %v12488_v34, %v12643_v54  ;;  %5692 = vrot.lane.b32.xlu1 %v12551_v0, %s14170_s1  ;;  %5727 = vrot.lane.b32.xlu0 %v12551_v0, %s14171_s17 }
 0x6f1   :  { %5762 = vrot.lane.b32.xlu1 %v12551_v0, %s14172_s24  ;;  %5311 = vrot.lane.b32.xlu0 %v5307_v60, %s9754_s19 }
 0x6f5   :  { %5313 = vrot.lane.b32.xlu1 %v5308_v10, %s9754_s19  ;;  %5797 = vrot.lane.b32.xlu0 %v12551_v0, %s14173_s0 }
 0x6f9   :  { %5795 = vrot.lane.b32.xlu1 %v12494_v36, %s14173_s0  ;;  %5830 = vrot.lane.b32.xlu0 %v12494_v36, %s14053_s23 }
 0x6fd   :  { %5793 = vrot.lane.b32.xlu1 %v12668_v55, %s14173_s0  ;;  %5828 = vrot.lane.b32.xlu0 %v12668_v55, %s14053_s23 }
 0x701   :  { %5832 = vrot.lane.b32.xlu1 %v12551_v0, %s14053_s23  ;;  %5867 = vrot.lane.b32.xlu0 %v12551_v0, %s9756_s16  ;;  %s9758_s23 = smov 89  }
 0x705   :  { %5865 = vrot.lane.b32.xlu1 %v12494_v36, %s9756_s16  ;;  %5900 = vrot.lane.b32.xlu0 %v12494_v36, %s9757_s30 }
 0x709   :  { %5863 = vrot.lane.b32.xlu1 %v12668_v55, %s9756_s16  ;;  %5898 = vrot.lane.b32.xlu0 %v12668_v55, %s9757_s30 }
 0x70d   :  { %5902 = vrot.lane.b32.xlu1 %v12551_v0, %s9757_s30  ;;  %5937 = vrot.lane.b32.xlu0 %v12551_v0, %s9758_s23 }
 0x711   :  { %5935 = vrot.lane.b32.xlu1 %v12494_v36, %s9758_s23 }
 0x74b   :  { %v12695_v4 = vpop.permute.xlu1 %5347  ;;  %v12697_v9 = vpop.permute.xlu0 %5381 }
 0x74c   :  { %v5354_v20 = vsel %vm177_vm0, %v12537_v14, %v12695_v4  ;;  %v5388_v38 = vsel %vm14060_vm2, %v12544_v21, %v12697_v9 }
 0x74d   :  { %6338 = vmatprep.subr.bf16.mxu1 %v5354_v20 }
 0x74e   :  { %6339 = vmatpush1.bf16.msra.mxu1 %v12542_v8 }
 0x74f   :  { %v12706_v61 = vpop.permute.xlu1 %5415  ;;  %v12708_v32 = vpop.permute.xlu0 %5449  ;;  %6340 = vmatprep.subr.bf16.mxu1 %v5388_v38 }
 0x750   :  { %v5422_v35 = vsel %vm327_vm3, %v12553_v42, %v12706_v61  ;;  %v5456_v45 = vsel %vm402_vm4, %v12562_v19, %v12708_v32 }
 0x752   :  { %6341 = vmatpush1.bf16.msra.mxu1 %v12549_v31 }
 0x753   :  { %v12717_v24 = vpop.permute.xlu1 %5483  ;;  %v12719_v25 = vpop.permute.xlu0 %5518  ;;  %6342 = vmatprep.subr.bf16.mxu1 %v5422_v35 }
 0x754   :  { %v5491_v29 = vsel %vm5489_vm11, %v12571_v17, %v12717_v24  ;;  %v5526_v44 = vsel %vm5524_vm14, %v12580_v13, %v12719_v25 }
 0x756   :  { %6343 = vmatpush1.bf16.msra.mxu1 %v12558_v12 }
 0x757   :  { %v12728_v34 = vpop.permute.xlu1 %5553  ;;  %v12730_v57 = vpop.permute.xlu0 %5588  ;;  %6344 = vmatprep.subr.bf16.mxu1 %v5456_v45 }
 0x758   :  { %v5561_v41 = vsel %vm5559_vm15, %v12589_v5, %v12728_v34  ;;  %v5596_v43 = vsel %vm5594_vm5, %v12598_v46, %v12730_v57 }
 0x75a   :  { %6345 = vmatpush1.bf16.msra.mxu1 %v12569_v52 }
 0x75b   :  { %v12739_v28 = vpop.permute.xlu1 %5623  ;;  %v12741_v26 = vpop.permute.xlu0 %5657  ;;  %6346 = vmatprep.subr.bf16.mxu1 %v5491_v29 }
 0x75c   :  { %v5630_v53 = vsel %vm14055_vm9, %v12607_v58, %v12739_v28  ;;  %v5665_v56 = vsel %vm5663_vm6, %v12616_v16, %v12741_v26  ;;  %vm5319_vm9 = vcmask 1047936  }
 0x75e   :  { %6347 = vmatpush1.bf16.msra.mxu1 %v12576_v49 }
 0x75f   :  { %v12750_v33 = vpop.permute.xlu1 %5692  ;;  %v12752_v47 = vpop.permute.xlu0 %5727  ;;  %6348 = vmatprep.subr.bf16.mxu1 %v5526_v44 }
 0x760   :  { %v5700_v3 = vsel %vm5698_vm1, %v12625_v7, %v12750_v33  ;;  %v5735_v48 = vsel %vm5733_vm12, %v12634_v1, %v12752_v47  ;;  %v6171_v1 = vld [vmem:[%s13959_s4 + $0x20] sm:$0xff] }
 0x762   :  { %6349 = vmatpush1.bf16.msra.mxu1 %v12587_v39 }
 0x763   :  { %v12761_v59 = vpop.permute.xlu1 %5762  ;;  %v5312_v15 = vpop.permute.xlu0 %5311  ;;  %6350 = vmatprep.subr.bf16.mxu1 %v5561_v41 }
 0x764   :  { %v5770_v27 = vsel %vm5768_vm10, %v12643_v54, %v12761_v59  ;;  %5320 = vst.msk [vmem:[#allocation4 + $0x18] sm:$0xff] %vm5319_vm9, %v5312_v15  ;;  %vm14057_vm9 = vcmask 752640   ;;  %v12933_v54 = vcombine.low %v6171_v1, %v6171_v1 }
 0x766   :  { %6351 = vmatpush1.bf16.msra.mxu1 %v12594_v30 }
 0x767   :  { %v5314_v60 = vpop.permute.xlu1 %5313  ;;  %v12767_v6 = vpop.permute.xlu0 %5797  ;;  %6352 = vmatprep.subr.bf16.mxu1 %v5596_v43 }
 0x768   :  { %v5316_v10 = vsel %vm4501_vm7, %v5312_v15, %v5314_v60  ;;  %vm14061_vm7 = vcmask 744448  }
 0x769   :  { %5321 = vst.msk [vmem:[#allocation4 + $0x20] sm:$0xff] %vm2081_vm13, %v5316_v10  ;;  %vm14056_vm13 = vcmask 621568  }
 0x76a   :  { %6353 = vmatpush1.bf16.msra.mxu1 %v12605_v63 }
 0x76b   :  { %v5796_v50 = vpop.permute.xlu1 %5795  ;;  %v5831_v22 = vpop.permute.xlu0 %5830  ;;  %v12772_v37 = vld [vmem:[#allocation4 + $0x18] sm:$0xff]  ;;  %6354 = vmatprep.subr.bf16.mxu1 %v5630_v53 }
 0x76c   :  { %v5805_v14 = vsel %vm14062_vm8, %v5796_v50, %v12767_v6  ;;  %5383 = vrot.lane.b32.xlu1 %v12772_v37, %s9734_s25  ;;  %5349 = vrot.lane.b32.xlu0 %v12772_v37, %s9733_s22 }
 0x76d   :  { %6438 = vmatprep.subr.bf16.mxu0 %v12772_v37 }
 0x76e   :  { %6439 = vmatpush1.bf16.msra.mxu0 %v12551_v0  ;;  %6355 = vmatpush1.bf16.msra.mxu1 %v12612_v40 }
 0x76f   :  { %v5794_v8 = vpop.permute.xlu1 %5793  ;;  %v5829_v21 = vpop.permute.xlu0 %5828  ;;  %6356 = vmatprep.subr.bf16.mxu1 %v5665_v56 }
 0x770   :  { %v12783_v31 = vld [vmem:[#allocation4 + $0x20] sm:$0xff]  ;;  %v5804_v42 = vsel %vm14062_vm8, %v5794_v8, %v5796_v50  ;;  %v5839_v12 = vsel %vm14057_vm9, %v5829_v21, %v5831_v22  ;;  %5451 = vrot.lane.b32.xlu1 %v12772_v37, %s9736_s27  ;;  %5417 = vrot.lane.b32.xlu0 %v12772_v37, %s9735_s26 }
 0x771   :  { %5332 = vst.msk [vmem:[#allocation5 + $0x20] sm:$0xff] %vm14056_vm13, %v12783_v31  ;;  %vm5908_vm13 = vcmask 736256  }
 0x772   :  { %6357 = vmatpush1.bf16.msra.mxu1 %v12623_v18 }
 0x773   :  { %v12794_v19 = vpop.permute.xlu1 %5832  ;;  %v12796_v52 = vpop.permute.xlu0 %5867  ;;  %6358 = vmatprep.subr.bf16.mxu1 %v5700_v3 }
 0x774   :  { %v5840_v17 = vsel %vm14057_vm9, %v5831_v22, %v12794_v19  ;;  %5520 = vrot.lane.b32.xlu1 %v12772_v37, %s9746_s21  ;;  %5485 = vrot.lane.b32.xlu0 %v12772_v37, %s9744_s20  ;;  %vm5943_vm9 = vcmask 728064  }
 0x776   :  { %6359 = vmatpush1.bf16.msra.mxu1 %v12630_v2  ;;  %v12841_v2 = vld [vmem:[%s13959_s4] ss:$16 sps:$4 sm:$0xff]  }
 0x777   :  { %v5866_v49 = vpop.permute.xlu1 %5865  ;;  %v5901_v13 = vpop.permute.xlu0 %5900  ;;  %6360 = vmatprep.subr.bf16.mxu1 %v5735_v48 }
 0x778   :  { %v5875_v39 = vsel %vm14061_vm7, %v5866_v49, %v12796_v52  ;;  %5590 = vrot.lane.b32.xlu1 %v12772_v37, %s9747_s18  ;;  %5555 = vrot.lane.b32.xlu0 %v12772_v37, %s9745_s2 }
 0x77a   :  { %6361 = vmatpush1.bf16.msra.mxu1 %v12641_v51  ;;  %v12927_v51 = vcombine.high %v6171_v1, %v6171_v1 }
 0x77b   :  { %v5864_v5 = vpop.permute.xlu1 %5863  ;;  %v5899_v30 = vpop.permute.xlu0 %5898  ;;  %6362 = vmatprep.subr.bf16.mxu1 %v5770_v27 }
 0x77c   :  { %v5874_v46 = vsel %vm14061_vm7, %v5864_v5, %v5866_v49  ;;  %v5909_v63 = vsel %vm5908_vm13, %v5899_v30, %v5901_v13  ;;  %5659 = vrot.lane.b32.xlu1 %v12772_v37, %s9749_s29  ;;  %5625 = vrot.lane.b32.xlu0 %v12772_v37, %s14058_s28  ;;  %s14174_s28 = smov 92  }
 0x77e   :  { %6363 = vmatpush1.bf16.msra.mxu1 %v12648_v23 }
 0x77f   :  { %v12819_v58 = vpop.permute.xlu1 %5902  ;;  %6364 = vmatprep.subr.bf16.mxu1 %v5805_v14  ;;  %v12827_v16 = vpop.permute.xlu0 %5937 }
 0x780   :  { %v5910_v40 = vsel %vm5908_vm13, %v5901_v13, %v12819_v58  ;;  %5729 = vrot.lane.b32.xlu1 %v12772_v37, %s14171_s17  ;;  %5694 = vrot.lane.b32.xlu0 %v12772_v37, %s14170_s1 }
 0x782   :  { %6365 = vmatpush1.bf16.msra.mxu1 %v5804_v42 }
 0x783   :  { %v12829_v18 = vpop.permute.xlu1 %5935  ;;  %6366 = vmatprep.subr.bf16.mxu1 %v5840_v17 }
 0x784   :  { %v5945_v7 = vsel %vm5943_vm9, %v12829_v18, %v12827_v16  ;;  %5799 = vrot.lane.b32.xlu1 %v12772_v37, %s14173_s0  ;;  %5764 = vrot.lane.b32.xlu0 %v12772_v37, %s14172_s24 }
 0x786   :  { %6367 = vmatpush1.bf16.msra.mxu1 %v5839_v12 }
 0x787   :  { %6387 = vmatprep.subr.bf16.mxu1 %v5875_v39 }
 0x788   :  { %5869 = vrot.lane.b32.xlu1 %v12772_v37, %s9756_s16  ;;  %5834 = vrot.lane.b32.xlu0 %v12772_v37, %s14174_s28 }
 0x789   :  { %6369 = vmatmul.mubr.bf16.vlgmr.msra.gmra.mrb[32].mxu1 %v12841_v2 }
 0x78a   :  { %6388 = vmatpush1.bf16.msra.mxu1 %v5874_v46  ;;  %6378 = vmatprep.mubr.bf16.mxu1 %v12927_v51 }
 0x78b   :  { %6389 = vmatprep.subr.bf16.mxu1 %v5910_v40 }
 0x78c   :  { %5939 = vrot.lane.b32.xlu1 %v12772_v37, %s9758_s23  ;;  %5904 = vrot.lane.b32.xlu0 %v12772_v37, %s9757_s30 }
 0x78e   :  { %6390 = vmatpush1.bf16.msra.mxu1 %v5909_v63 }
 0x78f   :  { %6391 = vmatprep.subr.bf16.mxu1 %v5945_v7 }
 0x790   :  { %5385 = vrot.lane.b32.xlu0 %v12783_v31, %s9734_s25  ;;  %5351 = vrot.lane.b32.xlu1 %v12783_v31, %s9733_s22  ;;  %s14175_s25 = smov 80  }
 0x791   :  { %6379 = vmatmul.mubr.bf16.gmra.mrb[36].mxu1 %v12933_v54 }
 0x794   :  { %5974 = vrot.lane.b32.xlu0 %v12772_v37, %s9759_s3  ;;  %5933 = vrot.lane.b32.xlu1 %v12668_v55, %s9758_s23 }
 0x798   :  { %5453 = vrot.lane.b32.xlu0 %v12783_v31, %s9736_s27  ;;  %5419 = vrot.lane.b32.xlu1 %v12783_v31, %s9735_s26  ;;  %s14176_s26 = smov 112  }
 0x79c   :  { %5970 = vrot.lane.b32.xlu0 %v12494_v36, %s9759_s3  ;;  %5972 = vrot.lane.b32.xlu1 %v12551_v0, %s9759_s3 }
 0x7a0   :  { %5522 = vrot.lane.b32.xlu0 %v12783_v31, %s9746_s21  ;;  %5487 = vrot.lane.b32.xlu1 %v12783_v31, %s9744_s20  ;;  %s9760_s21 = smov 79  }
 0x7a4   :  { %5968 = vrot.lane.b32.xlu0 %v12668_v55, %s9759_s3  ;;  %6009 = vrot.lane.b32.xlu1 %v12772_v37, %s14175_s25 }
 0x7a8   :  { %5592 = vrot.lane.b32.xlu0 %v12783_v31, %s9747_s18  ;;  %5557 = vrot.lane.b32.xlu1 %v12783_v31, %s9745_s2  ;;  %s9761_s2 = smov 78   ;;  %s9762_s18 = smov 77  }
 0x7ac   :  { %6007 = vrot.lane.b32.xlu0 %v12551_v0, %s14175_s25  ;;  %6005 = vrot.lane.b32.xlu1 %v12494_v36, %s14175_s25 }
 0x7b0   :  { %5661 = vrot.lane.b32.xlu0 %v12783_v31, %s9749_s29  ;;  %5627 = vrot.lane.b32.xlu1 %v12783_v31, %s14176_s26 }
 0x7b4   :  { %6043 = vrot.lane.b32.xlu0 %v12772_v37, %s9760_s21  ;;  %6003 = vrot.lane.b32.xlu1 %v12668_v55, %s14175_s25 }
 0x7b8   :  { %5731 = vrot.lane.b32.xlu0 %v12783_v31, %s14171_s17  ;;  %5696 = vrot.lane.b32.xlu1 %v12783_v31, %s14170_s1 }
 0x7bc   :  { %6039 = vrot.lane.b32.xlu0 %v12494_v36, %s9760_s21  ;;  %6041 = vrot.lane.b32.xlu1 %v12551_v0, %s9760_s21 }
 0x7c0   :  { %5801 = vrot.lane.b32.xlu0 %v12783_v31, %s14173_s0  ;;  %5766 = vrot.lane.b32.xlu1 %v12783_v31, %s14172_s24  ;;  %s14228_s24 = smov 96  }
 0x7c4   :  { %6037 = vrot.lane.b32.xlu0 %v12668_v55, %s9760_s21  ;;  %6078 = vrot.lane.b32.xlu1 %v12772_v37, %s9761_s2 }
 0x7c8   :  { %5871 = vrot.lane.b32.xlu0 %v12783_v31, %s9756_s16  ;;  %5836 = vrot.lane.b32.xlu1 %v12783_v31, %s14174_s28  ;;  %s9763_s16 = smov 76  }
 0x7cc   :  { %6076 = vrot.lane.b32.xlu0 %v12551_v0, %s9761_s2  ;;  %6074 = vrot.lane.b32.xlu1 %v12494_v36, %s9761_s2 }
 0x7d0   :  { %5941 = vrot.lane.b32.xlu0 %v12783_v31, %s9758_s23  ;;  %5906 = vrot.lane.b32.xlu1 %v12783_v31, %s9757_s30  ;;  %s9766_s23 = smov 84   ;;  %s9767_s30 = smov 108  }
 0x7d4   :  { %6113 = vrot.lane.b32.xlu0 %v12772_v37, %s9762_s18  ;;  %6072 = vrot.lane.b32.xlu1 %v12668_v55, %s9761_s2 }
 0x7d8   :  { %6011 = vrot.lane.b32.xlu0 %v12783_v31, %s14175_s25  ;;  %5976 = vrot.lane.b32.xlu1 %v12783_v31, %s9759_s3 }
 0x7dc   :  { %6109 = vrot.lane.b32.xlu0 %v12494_v36, %s9762_s18  ;;  %6111 = vrot.lane.b32.xlu1 %v12551_v0, %s9762_s18 }
 0x7de   :  { %v5384_v23 = vpop.permute.xlu1 %5383  ;;  %v5350_v11 = vpop.permute.xlu0 %5349 }
 0x7df   :  { %v5389_v20 = vsel %vm14060_vm2, %v12697_v9, %v5384_v23  ;;  %v5355_v38 = vsel %vm177_vm0, %v12695_v4, %v5350_v11  ;;  %v12953_v9 = vld [vmem:[%s13959_s4 + $0xc] ss:$16 sps:$4 sm:$0xff]   ;;  %vm14177_vm2 = vcmask 130048  }
 0x7e0   :  { %6080 = vrot.lane.b32.xlu0 %v12783_v31, %s9761_s2  ;;  %6045 = vrot.lane.b32.xlu1 %v12783_v31, %s9760_s21 }
 0x7e1   :  { %8624 = vmatprep.mubr.msk.bf16.mxu1 %vm14177_vm2, %v12953_v9  ;;  %vm14178_vm2 = vcmask 916480  }
 0x7e2   :  { %v5452_v35 = vpop.permute.xlu1 %5451  ;;  %v5418_v45 = vpop.permute.xlu0 %5417 }
 0x7e3   :  { %v12946_v29 = vsel %vm402_vm4, %v12708_v32, %v5452_v35  ;;  %v5423_v44 = vsel %vm327_vm3, %v12706_v61, %v5418_v45 }
 0x7e4   :  { %6107 = vrot.lane.b32.xlu0 %v12668_v55, %s9762_s18  ;;  %6148 = vrot.lane.b32.xlu1 %v12772_v37, %s9763_s16 }
 0x7e6   :  { %v12961_v4 = vpop.permute.xlu1 %5520  ;;  %v12963_v32 = vpop.permute.xlu0 %5485 }
 0x7e7   :  { %v12968_v61 = vsel %vm5524_vm14, %v12719_v25, %v12961_v4  ;;  %v12973_v41 = vsel %vm5489_vm11, %v12717_v24, %v12963_v32 }
 0x7e8   :  { %6150 = vrot.lane.b32.xlu0 %v12783_v31, %s9763_s16  ;;  %6115 = vrot.lane.b32.xlu1 %v12783_v31, %s9762_s18 }
 0x7ea   :  { %v12979_v43 = vpop.permute.xlu1 %5590  ;;  %v12981_v53 = vpop.permute.xlu0 %5555 }
 0x7eb   :  { %v12986_v25 = vsel %vm5594_vm5, %v12730_v57, %v12979_v43  ;;  %v12991_v24 = vsel %vm5559_vm15, %v12728_v34, %v12981_v53 }
 0x7ec   :  { %6146 = vrot.lane.b32.xlu0 %v12551_v0, %s9763_s16  ;;  %6144 = vrot.lane.b32.xlu1 %v12494_v36, %s9763_s16 }
 0x7ee   :  { %v12997_v56 = vpop.permute.xlu1 %5659  ;;  %v12999_v3 = vpop.permute.xlu0 %5625 }
 0x7ef   :  { %v13004_v57 = vsel %vm5663_vm6, %v12741_v26, %v12997_v56  ;;  %v13009_v34 = vsel %vm14178_vm2, %v12739_v28, %v12999_v3  ;;  %vm14179_vm2 = vcmask 752640  }
 0x7f0   :  { %6142 = vrot.lane.b32.xlu1 %v12668_v55, %s9763_s16 }
 0x7f2   :  { %v13013_v0 = vpop.permute.xlu1 %5729  ;;  %v13015_v36 = vpop.permute.xlu0 %5694 }
 0x7f3   :  { %v13020_v48 = vsel %vm5733_vm12, %v12752_v47, %v13013_v0  ;;  %v13025_v26 = vsel %vm5698_vm1, %v12750_v33, %v13015_v36 }
 0x7f6   :  { %v13027_v15 = vpop.permute.xlu1 %5799  ;;  %v13029_v28 = vpop.permute.xlu0 %5764 }
 0x7f7   :  { %v13034_v55 = vsel %vm14062_vm8, %v12767_v6, %v13027_v15  ;;  %v13039_v27 = vsel %vm5768_vm10, %v12761_v59, %v13029_v28 }
 0x7fa   :  { %v13041_v47 = vpop.permute.xlu1 %5869  ;;  %v13043_v60 = vpop.permute.xlu0 %5834 }
 0x7fb   :  { %v13048_v33 = vsel %vm14061_vm7, %v12796_v52, %v13041_v47  ;;  %v13053_v10 = vsel %vm14179_vm2, %v12794_v19, %v13043_v60  ;;  %vm14180_vm2 = vcmask 621568   ;;  %vm14181_vm7 = vcmask 1031168  }
 0x7fc   :  { %vm14182_vm8 = vmmov %vm14180_vm2 }
 0x7fe   :  { %v13055_v6 = vpop.permute.xlu1 %5939  ;;  %v13057_v50 = vpop.permute.xlu0 %5904 }
 0x7ff   :  { %v13062_v59 = vsel %vm5943_vm9, %v12827_v16, %v13055_v6  ;;  %v13067_v22 = vsel %vm5908_vm13, %v12819_v58, %v13057_v50 }
 0x802   :  { %v5352_v37 = vpop.permute.xlu1 %5351  ;;  %v5386_v14 = vpop.permute.xlu0 %5385 }
 0x803   :  { %v5356_v8 = vsel %vm177_vm0, %v5350_v11, %v5352_v37  ;;  %5366 = vst.msk [vmem:[#allocation5 + $0x48] sm:$0xff] %vm14180_vm2, %v5352_v37  ;;  %v5390_v21 = vsel %vm14181_vm7, %v5384_v23, %v5386_v14  ;;  %vm5978_vm7 = vcmask 719872  }
 0x804   :  { %5400 = vst.msk [vmem:[#allocation5 + $0x70] sm:$0xff] %vm14182_vm8, %v5386_v14  ;;  %6440 = vmatprep.subr.bf16.mxu0 %v5356_v8  ;;  %vm14183_vm8 = vmmov %vm14180_vm2 }
 0x805   :  { %6441 = vmatpush1.bf16.msra.mxu0 %v5355_v38 }
 0x806   :  { %v5934_v31 = vpop.permute.xlu1 %5933  ;;  %v13073_v42 = vpop.permute.xlu0 %5974  ;;  %6442 = vmatprep.subr.bf16.mxu0 %v5390_v21 }
 0x807   :  { %v5944_v12 = vsel %vm5943_vm9, %v5934_v31, %v12829_v18 }
 0x808   :  { %6392 = vmatpush1.bf16.msra.mxu1 %v5944_v12 }
 0x809   :  { %6443 = vmatpush1.bf16.msra.mxu0 %v5389_v20 }
 0x80a   :  { %v5420_v19 = vpop.permute.xlu1 %5419  ;;  %v5454_v52 = vpop.permute.xlu0 %5453 }
 0x80b   :  { %v5424_v17 = vsel %vm327_vm3, %v5418_v45, %v5420_v19  ;;  %5434 = vst.msk [vmem:[#allocation5 + $0x98] sm:$0xff] %vm14180_vm2, %v5420_v19  ;;  %v5458_v49 = vsel %vm402_vm4, %v5452_v35, %v5454_v52  ;;  %vm14184_vm3 = vmmov %vm14180_vm2 }
 0x80c   :  { %5468 = vst.msk [vmem:[#allocation5 + $0xc0] sm:$0xff] %vm14183_vm8, %v5454_v52  ;;  %6444 = vmatprep.subr.bf16.mxu0 %v5424_v17  ;;  %vm14185_vm4 = vmmov %vm14180_vm2  ;;  %vm14187_vm8 = vcmask 654336  }
 0x80d   :  { %6445 = vmatpush1.bf16.msra.mxu0 %v5423_v44 }
 0x80e   :  { %v5973_v13 = vpop.permute.xlu1 %5972  ;;  %v5971_v39 = vpop.permute.xlu0 %5970  ;;  %6446 = vmatprep.subr.bf16.mxu0 %v5458_v49 }
 0x80f   :  { %v13083_v5 = vsel %vm5978_vm7, %v5973_v13, %v13073_v42  ;;  %v5980_v30 = vsel %vm5978_vm7, %v5971_v39, %v5973_v13 }
 0x810   :  { %6393 = vmatprep.subr.bf16.mxu1 %v5980_v30 }
 0x811   :  { %6447 = vmatpush1.bf16.msra.mxu0 %v12946_v29 }
 0x812   :  { %v5488_v46 = vpop.permute.xlu1 %5487  ;;  %v5523_v63 = vpop.permute.xlu0 %5522 }
 0x813   :  { %v5493_v58 = vsel %vm5489_vm11, %v12963_v32, %v5488_v46  ;;  %5503 = vst.msk [vmem:[#allocation5 + $0xe8] sm:$0xff] %vm14184_vm3, %v5488_v46  ;;  %v5528_v40 = vsel %vm5524_vm14, %v12961_v4, %v5523_v63  ;;  %vm14186_vm14 = vmmov %vm14180_vm2 }
 0x814   :  { %5538 = vst.msk [vmem:[#allocation5 + $0x110] sm:$0xff] %vm14185_vm4, %v5523_v63  ;;  %6448 = vmatprep.subr.bf16.mxu0 %v5493_v58  ;;  %vm14188_vm3 = vmmov %vm14187_vm8 }
 0x815   :  { %6449 = vmatpush1.bf16.msra.mxu0 %v12973_v41  ;;  %vm14191_vm4 = vmmov %vm14180_vm2 }
 0x816   :  { %v13094_v16 = vpop.permute.xlu1 %6009  ;;  %v5969_v18 = vpop.permute.xlu0 %5968  ;;  %6450 = vmatprep.subr.bf16.mxu0 %v5528_v40 }
 0x817   :  { %v5979_v7 = vsel %vm5978_vm7, %v5969_v18, %v5971_v39 }
 0x818   :  { %6394 = vmatpush1.bf16.msra.mxu1 %v5979_v7 }
 0x819   :  { %6451 = vmatpush1.bf16.msra.mxu0 %v12968_v61 }
 0x81a   :  { %v5558_v1 = vpop.permute.xlu1 %5557  ;;  %v5593_v23 = vpop.permute.xlu0 %5592 }
 0x81b   :  { %v5563_v11 = vsel %vm5559_vm15, %v12981_v53, %v5558_v1  ;;  %5573 = vst.msk [vmem:[#allocation5 + $0x138] sm:$0xff] %vm14186_vm14, %v5558_v1  ;;  %v5598_v20 = vsel %vm5594_vm5, %v12979_v43, %v5593_v23  ;;  %vm14189_vm15 = vcmask 916480   ;;  %vm14190_vm5 = vmmov %vm14180_vm2 }
 0x81c   :  { %5608 = vst.msk [vmem:[#allocation5 + $0x160] sm:$0xff] %vm14180_vm2, %v5593_v23  ;;  %6452 = vmatprep.subr.bf16.mxu0 %v5563_v11  ;;  %vm14192_vm14 = vmmov %vm14188_vm3 }
 0x81d   :  { %6453 = vmatpush1.bf16.msra.mxu0 %v12991_v24 }
 0x81e   :  { %v6006_v38 = vpop.permute.xlu1 %6005  ;;  %v6008_v35 = vpop.permute.xlu0 %6007  ;;  %6454 = vmatprep.subr.bf16.mxu0 %v5598_v20 }
 0x81f   :  { %v6014_v45 = vsel %vm14187_vm8, %v6006_v38, %v6008_v35  ;;  %v13108_v29 = vsel %vm14188_vm3, %v6008_v35, %v13094_v16  ;;  %vm6047_vm8 = vcmask 646144  }
 0x820   :  { %6395 = vmatprep.subr.bf16.mxu1 %v6014_v45 }
 0x821   :  { %6455 = vmatpush1.bf16.msra.mxu0 %v12986_v25 }
 0x822   :  { %v5628_v44 = vpop.permute.xlu1 %5627  ;;  %v5662_v4 = vpop.permute.xlu0 %5661 }
 0x823   :  { %v5632_v32 = vsel %vm14189_vm15, %v12999_v3, %v5628_v44  ;;  %5642 = vst.msk [vmem:[#allocation5 + $0x188] sm:$0xff] %vm14190_vm5, %v5628_v44  ;;  %v5667_v61 = vsel %vm5663_vm6, %v12997_v56, %v5662_v4  ;;  %vm14193_vm6 = vmmov %vm14180_vm2  ;;  %vm14199_vm5 = vcmask 744448  }
 0x824   :  { %5677 = vst.msk [vmem:[#allocation5 + $0x1b0] sm:$0xff] %vm14191_vm4, %v5662_v4  ;;  %6456 = vmatprep.subr.bf16.mxu0 %v5632_v32  ;;  %v6172_v4 = vld [vmem:[%s13959_s4 + $0x28] sm:$0xff] }
 0x825   :  { %6457 = vmatpush1.bf16.msra.mxu0 %v13009_v34  ;;  %v13197_v32 = vld [vmem:[%s13959_s4 + $0x8] ss:$16 sps:$4 sm:$0xff]  }
 0x826   :  { %v6004_v41 = vpop.permute.xlu1 %6003  ;;  %v13118_v43 = vpop.permute.xlu0 %6043  ;;  %6458 = vmatprep.subr.bf16.mxu0 %v5667_v61 }
 0x827   :  { %v6013_v53 = vsel %vm14192_vm14, %v6004_v41, %v6006_v38  ;;  %vm6082_vm14 = vcmask 637952   ;;  %v13200_v41 = vcombine.high %v6172_v4, %v6172_v4 }
 0x828   :  { %6396 = vmatpush1.bf16.msra.mxu1 %v6013_v53  ;;  %v6217_v53 = vld [vmem:[#allocation5 + $0x160] sm:$0xff] }
 0x829   :  { %6459 = vmatpush1.bf16.msra.mxu0 %v13004_v57 }
 0x82a   :  { %v5697_v25 = vpop.permute.xlu1 %5696  ;;  %v5732_v24 = vpop.permute.xlu0 %5731 }
 0x82b   :  { %v5702_v3 = vsel %vm5698_vm1, %v13015_v36, %v5697_v25  ;;  %5712 = vst.msk [vmem:[#allocation5 + $0x1d8] sm:$0xff] %vm14193_vm6, %v5697_v25  ;;  %v5737_v56 = vsel %vm5733_vm12, %v13013_v0, %v5732_v24  ;;  %vm14194_vm1 = vmmov %vm14180_vm2  ;;  %vm14195_vm12 = vcmask 818176  }
 0x82c   :  { %5747 = vst.msk [vmem:[#allocation5 + $0x200] sm:$0xff] %vm14180_vm2, %v5732_v24  ;;  %6460 = vmatprep.subr.bf16.mxu0 %v5702_v3  ;;  %vm14196_vm3 = vmmov %vm14194_vm1  ;;  %v6177_v24 = vld [vmem:[#allocation5 + $0x20] sm:$0xff]  ;;  %v6222_v3 = vld [vmem:[#allocation5 + $0x188] sm:$0xff] }
 0x82d   :  { %6461 = vmatpush1.bf16.msra.mxu0 %v13025_v26  ;;  %vm14198_vm15 = vmmov %vm14194_vm1 }
 0x82e   :  { %v6042_v34 = vpop.permute.xlu1 %6041  ;;  %v6040_v37 = vpop.permute.xlu0 %6039  ;;  %6462 = vmatprep.subr.bf16.mxu0 %v5737_v56  ;;  %vm14200_vm4 = vmmov %vm14194_vm1 }
 0x82f   :  { %v13131_v57 = vsel %vm6047_vm8, %v6042_v34, %v13118_v43  ;;  %v6049_v36 = vsel %vm6047_vm8, %v6040_v37, %v6042_v34  ;;  %vm14201_vm6 = vmmov %vm14194_vm1  ;;  %v8622_v34 = vcombine.low %v6172_v4, %v6172_v4 }
 0x830   :  { %6397 = vmatprep.subr.bf16.mxu1 %v6049_v36  ;;  %vm14202_vm2 = vmmov %vm14194_vm1 }
 0x831   :  { %6463 = vmatpush1.bf16.msra.mxu0 %v13020_v48 }
 0x832   :  { %v5767_v14 = vpop.permute.xlu1 %5766  ;;  %v5802_v0 = vpop.permute.xlu0 %5801 }
 0x833   :  { %v5772_v8 = vsel %vm5768_vm10, %v13029_v28, %v5767_v14  ;;  %5782 = vst.msk [vmem:[#allocation5 + $0x228] sm:$0xff] %vm14194_vm1, %v5767_v14  ;;  %v5807_v26 = vsel %vm14195_vm12, %v13027_v15, %v5802_v0  ;;  %vm14197_vm10 = vcmask 752640   ;;  %vm14206_vm12 = vmmov %vm14202_vm2  ;;  %v6187_v14 = vld [vmem:[#allocation5 + $0x70] sm:$0xff] }
 0x834   :  { %5817 = vst.msk [vmem:[#allocation5 + $0x250] sm:$0xff] %vm14196_vm3, %v5802_v0  ;;  %6464 = vmatprep.subr.bf16.mxu0 %v5772_v8  ;;  %vm6117_vm3 = vcmask 629760   ;;  %v6232_v0 = vld [vmem:[#allocation5 + $0x1d8] sm:$0xff] }
 0x835   :  { %6465 = vmatpush1.bf16.msra.mxu0 %v13039_v27 }
 0x836   :  { %v6079_v21 = vpop.permute.xlu1 %6078  ;;  %v6038_v31 = vpop.permute.xlu0 %6037  ;;  %6466 = vmatprep.subr.bf16.mxu0 %v5807_v26  ;;  %v9732_v26 = vld [vmem:[%s13959_s4 + $0x4] ss:$16 sps:$4 sm:$0xff]  }
 0x837   :  { %v6048_v48 = vsel %vm6047_vm8, %v6038_v31, %v6040_v37  ;;  %v6182_v37 = vld [vmem:[#allocation5 + $0x48] sm:$0xff]  ;;  %v6237_v31 = vld [vmem:[#allocation5 + $0x200] sm:$0xff] }
 0x838   :  { %6398 = vmatpush1.bf16.msra.mxu1 %v6048_v48 }
 0x839   :  { %6467 = vmatpush1.bf16.msra.mxu0 %v13034_v55 }
 0x83a   :  { %v5837_v12 = vpop.permute.xlu1 %5836  ;;  %v5872_v28 = vpop.permute.xlu0 %5871 }
 0x83b   :  { %v5842_v19 = vsel %vm14197_vm10, %v13043_v60, %v5837_v12  ;;  %5852 = vst.msk [vmem:[#allocation5 + $0x278] sm:$0xff] %vm14198_vm15, %v5837_v12  ;;  %v5877_v15 = vsel %vm14199_vm5, %v13041_v47, %v5872_v28  ;;  %vm14208_vm10 = vmmov %vm14202_vm2  ;;  %v6242_v12 = vld [vmem:[#allocation5 + $0x228] sm:$0xff] }
 0x83c   :  { %5887 = vst.msk [vmem:[#allocation5 + $0x2a0] sm:$0xff] %vm14200_vm4, %v5872_v28  ;;  %6468 = vmatprep.subr.bf16.mxu0 %v5842_v19  ;;  %vm14210_vm15 = vmmov %vm14202_vm2  ;;  %v6202_v19 = vld [vmem:[#allocation5 + $0xe8] sm:$0xff] }
 0x83d   :  { %6469 = vmatpush1.bf16.msra.mxu0 %v13053_v10  ;;  %vm14211_vm5 = vmmov %vm14202_vm2 }
 0x83e   :  { %v6075_v27 = vpop.permute.xlu1 %6074  ;;  %v6077_v52 = vpop.permute.xlu0 %6076  ;;  %6489 = vmatprep.subr.bf16.mxu0 %v5877_v15  ;;  %vm14212_vm4 = vmmov %vm14202_vm2  ;;  %v6247_v15 = vld [vmem:[#allocation5 + $0x250] sm:$0xff] }
 0x83f   :  { %v6084_v55 = vsel %vm6082_vm14, %v6075_v27, %v6077_v52  ;;  %v6085_v17 = vsel %vm6082_vm14, %v6077_v52, %v6079_v21  ;;  %v6207_v52 = vld [vmem:[#allocation5 + $0x110] sm:$0xff] }
 0x840   :  { %6399 = vmatprep.subr.bf16.mxu1 %v6084_v55  ;;  %6471 = vmatmul.mubr.bf16.vlgmr.msra.gmra.mrb[36].mxu0 %v12841_v2 }
 0x841   :  { %6490 = vmatpush1.bf16.msra.mxu0 %v13048_v33  ;;  %6480 = vmatprep.mubr.bf16.mxu0 %v12927_v51 }
 0x842   :  { %v5907_v47 = vpop.permute.xlu1 %5906  ;;  %v5942_v60 = vpop.permute.xlu0 %5941  ;;  %v6252_v55 = vld [vmem:[#allocation5 + $0x278] sm:$0xff] }
 0x843   :  { %v5912_v49 = vsel %vm5908_vm13, %v13057_v50, %v5907_v47  ;;  %5922 = vst.msk [vmem:[#allocation5 + $0x2c8] sm:$0xff] %vm14201_vm6, %v5907_v47  ;;  %v5947_v10 = vsel %vm5943_vm9, %v13055_v6, %v5942_v60  ;;  %vm14203_vm13 = vcmask 130048   ;;  %vm14204_vm9 = vmmov %vm14194_vm1  ;;  %vm14205_vm1 = vcmask 654336   ;;  %v6257_v25 = vld [vmem:[#allocation5 + $0x2a0] sm:$0xff]  ;;  %v6212_v47 = vld [vmem:[#allocation5 + $0x138] sm:$0xff] }
 0x844   :  { %5957 = vst.msk [vmem:[#allocation5 + $0x2f0] sm:$0xff] %vm14202_vm2, %v5942_v60  ;;  %6491 = vmatprep.subr.bf16.mxu0 %v5912_v49  ;;  %vm14214_vm6 = vmmov %vm14202_vm2  ;;  %v6638_v49 = vlaneseq }
 0x845   :  { %6492 = vmatpush1.bf16.msra.mxu0 %v13067_v22 }
 0x846   :  { %v6073_v13 = vpop.permute.xlu1 %6072  ;;  %v6114_v39 = vpop.permute.xlu0 %6113  ;;  %6493 = vmatprep.subr.bf16.mxu0 %v5947_v10  ;;  %v6639_v10 = vshrl.u32 %v6638_v49, 7 }
 0x847   :  { %v6083_v33 = vsel %vm6082_vm14, %v6073_v13, %v6075_v27 }
 0x848   :  { %6400 = vmatpush1.bf16.msra.mxu1 %v6083_v33  ;;  %6481 = vmatmul.mubr.bf16.gmra.mrb[40].mxu0 %v12933_v54  ;;  %v6640_v13 = vsub.s32 0, %v6639_v10  ;;  %v6648_v33 = vsub.s32 2, %v6639_v10 }
 0x849   :  { %6494 = vmatpush1.bf16.msra.mxu0 %v13062_v59  ;;  %8626 = vmatprep.mubr.msk.bf16.mxu0 %vm14203_vm13, %v12953_v9 }
 0x84a   :  { %v5977_v50 = vpop.permute.xlu1 %5976  ;;  %v6012_v6 = vpop.permute.xlu0 %6011  ;;  %v6262_v56 = vld [vmem:[#allocation5 + $0x2c8] sm:$0xff] }
 0x84b   :  { %v5982_v30 = vsel %vm5978_vm7, %v13073_v42, %v5977_v50  ;;  %5992 = vst.msk [vmem:[#allocation5 + $0x318] sm:$0xff] %vm14204_vm9, %v5977_v50  ;;  %v6016_v22 = vsel %vm14205_vm1, %v13094_v16, %v6012_v6  ;;  %vm14207_vm7 = vmmov %vm14202_vm2  ;;  %v6267_v36 = vld [vmem:[#allocation5 + $0x2f0] sm:$0xff] }
 0x84c   :  { %6026 = vst.msk [vmem:[#allocation5 + $0x340] sm:$0xff] %vm14206_vm12, %v6012_v6  ;;  %6495 = vmatprep.subr.bf16.mxu0 %v5982_v30  ;;  %v6652_v6 = vsub.s32 3, %v6639_v10  ;;  %vm14219_vm12 = vmmov %vm14212_vm4 }
 0x84d   :  { %6496 = vmatpush1.bf16.msra.mxu0 %v13083_v5 }
 0x84e   :  { %v6112_v59 = vpop.permute.xlu1 %6111  ;;  %v6110_v46 = vpop.permute.xlu0 %6109  ;;  %6497 = vmatprep.subr.bf16.mxu0 %v6016_v22 }
 0x84f   :  { %v6120_v63 = vsel %vm6117_vm3, %v6112_v59, %v6114_v39  ;;  %v6119_v58 = vsel %vm6117_vm3, %v6110_v46, %v6112_v59 }
 0x850   :  { %6401 = vmatprep.subr.bf16.mxu1 %v6119_v58 }
 0x851   :  { %6498 = vmatpush1.bf16.msra.mxu0 %v13108_v29 }
 0x852   :  { %v6046_v42 = vpop.permute.xlu1 %6045  ;;  %v6081_v40 = vpop.permute.xlu0 %6080  ;;  %v6272_v8 = vld [vmem:[#allocation5 + $0x318] sm:$0xff] }
 0x853   :  { %v6051_v16 = vsel %vm6047_vm8, %v13118_v43, %v6046_v42  ;;  %6061 = vst.msk [vmem:[#allocation5 + $0x368] sm:$0xff] %vm14207_vm7, %v6046_v42  ;;  %v6086_v18 = vsel %vm6082_vm14, %v6079_v21, %v6081_v40  ;;  %vm14209_vm8 = vmmov %vm14202_vm2  ;;  %v6192_v21 = vld [vmem:[#allocation5 + $0x98] sm:$0xff]  ;;  %v6277_v48 = vld [vmem:[#allocation5 + $0x340] sm:$0xff] }
 0x854   :  { %6096 = vst.msk [vmem:[#allocation5 + $0x390] sm:$0xff] %vm14208_vm10, %v6081_v40  ;;  %6499 = vmatprep.subr.bf16.mxu0 %v6051_v16  ;;  %vm14213_vm14 = vmmov %vm14202_vm2 }
 0x855   :  { %6500 = vmatpush1.bf16.msra.mxu0 %v13131_v57  ;;  %vm14215_vm2 = vmmov %vm14203_vm13  ;;  %v6227_v57 = vld [vmem:[#allocation5 + $0x1b0] sm:$0xff] }
 0x856   :  { %v6149_v5 = vpop.permute.xlu1 %6148  ;;  %v6108_v7 = vpop.permute.xlu0 %6107  ;;  %6501 = vmatprep.subr.bf16.mxu0 %v6086_v18  ;;  %vm14216_vm13 = vmmov %vm14215_vm2 }
 0x857   :  { %v6118_v1 = vsel %vm6117_vm3, %v6108_v7, %v6110_v46  ;;  %vm14217_vm9 = vmmov %vm14215_vm2 }
 0x858   :  { %6402 = vmatpush1.bf16.msra.mxu1 %v6118_v1  ;;  %vm14218_vm1 = vmmov %vm14215_vm2 }
 0x859   :  { %6502 = vmatpush1.bf16.msra.mxu0 %v6085_v17 }
 0x85a   :  { %v6116_v23 = vpop.permute.xlu1 %6115  ;;  %v6151_v11 = vpop.permute.xlu0 %6150  ;;  %v6282_v28 = vld [vmem:[#allocation5 + $0x368] sm:$0xff] }
 0x85b   :  { %v6121_v20 = vsel %vm6117_vm3, %v6114_v39, %v6116_v23  ;;  %6131 = vst.msk [vmem:[#allocation5 + $0x3b8] sm:$0xff] %vm14209_vm8, %v6116_v23  ;;  %v6156_v38 = vsel %vm14210_vm15, %v6149_v5, %v6151_v11  ;;  %v6287_v27 = vld [vmem:[#allocation5 + $0x390] sm:$0xff]  ;;  %v6636_v39 = vld [vmem:[%s13960_s7] sm:$0x1f]  ;;  %vm14220_vm3 = vmmov %vm14212_vm4 }
 0x85c   :  { %6166 = vst.msk [vmem:[#allocation5 + $0x3e0] sm:$0xff] %vm14211_vm5, %v6151_v11  ;;  %6503 = vmatprep.subr.bf16.mxu0 %v6121_v20  ;;  %v13233_v50 = vrot.slane %v6636_v39, %v6640_v13  ;;  %v13241_v22 = vrot.slane %v6636_v39, %v6648_v33  ;;  %v13251_v42 = vrot.slane %v6636_v39, %v6652_v6  ;;  %vm14221_vm7 = vmmov %vm14220_vm3 }
 0x85d   :  { %6504 = vmatpush1.bf16.msra.mxu0 %v6120_v63  ;;  %vm14222_vm10 = vmmov %vm14220_vm3 }
 0x85e   :  { %v6145_v35 = vpop.permute.xlu1 %6144  ;;  %v6147_v45 = vpop.permute.xlu0 %6146  ;;  %6505 = vmatprep.subr.bf16.mxu0 %v6156_v38  ;;  %vm14223_vm8 = vmmov %vm14220_vm3 }
 0x85f   :  { %v6154_v29 = vsel %vm14212_vm4, %v6145_v35, %v6147_v45  ;;  %v6155_v44 = vsel %vm14213_vm14, %v6147_v45, %v6149_v5  ;;  %vm14224_vm15 = vmmov %vm14220_vm3 }
 0x860   :  { %6403 = vmatprep.subr.bf16.mxu1 %v6154_v29  ;;  %vm14225_vm5 = vmmov %vm14220_vm3 }
 0x861   :  { %6506 = vmatpush1.bf16.msra.mxu0 %v6155_v44  ;;  %vm14226_vm4 = vmmov %vm14220_vm3 }
 0x862   :  { %v6143_v61 = vpop.permute.xlu1 %6142  ;;  %6588 = vmatprep.subr.bf16.mxu0 %v12469_v62  ;;  %v6292_v17 = vld [vmem:[#allocation5 + $0x3b8] sm:$0xff]  ;;  %vm14227_vm14 = vmmov %vm14220_vm3 }
 0x863   :  { %v6153_v43 = vsel %vm14214_vm6, %v6143_v61, %v6145_v35  ;;  %v6297_v60 = vld [vmem:[#allocation5 + $0x3e0] sm:$0xff]  ;;  %vm7383_vm6 = vcmask 1047552  }
 0x864   :  { %6404 = vmatpush1.bf16.msra.mxu1 %v6153_v43  ;;  %6522 = vmatmul.mubr.bf16.vlgmr.msra.gmra.mrb[36].mxu0 %v13197_v32 }
 0x865   :  { %8686 = vmatprep.subr.bf16.mxu1 %v6217_v53  ;;  %6589 = vmatpush1.bf16.msra.mxu0 %v6257_v25 }
 0x866   :  { %6590 = vmatprep.subr.bf16.mxu0 %v12469_v62  ;;  %8627 = vmatprep.mubr.msk.bf16.mxu0 %vm14215_vm2, %v13200_v41  ;;  %vm7375_vm2 = vcmask 515072  }
 0x867   :  { %6420 = vmatmul.mubr.bf16.vlgmr.msra.gmra.mrb[32].mxu1 %v13197_v32 }
 0x868   :  { %8687 = vmatpush3.bf16.msra.mxu1 %v6177_v24  ;;  %8625 = vmatprep.mubr.msk.bf16.mxu1 %vm14216_vm13, %v13200_v41 }
 0x869   :  { %8688 = vmatprep.subr.bf16.mxu1 %v6222_v3  ;;  %6591 = vmatpush1.bf16.msra.mxu0 %v6262_v56 }
 0x86a   :  { %6592 = vmatprep.subr.bf16.mxu0 %v12469_v62 }
 0x86c   :  { %6532 = vmatmul.mubr.bf16.gmra.mrb[40].mxu0 %v8622_v34  ;;  %8689 = vmatpush3.bf16.msra.mxu1 %v6182_v37 }
 0x86d   :  { %8690 = vmatprep.subr.bf16.mxu1 %v6227_v57  ;;  %6593 = vmatpush1.bf16.msra.mxu0 %v6267_v36 }
 0x86e   :  { %6594 = vmatprep.subr.bf16.mxu0 %v12469_v62  ;;  %8628 = vmatprep.mubr.msk.bf16.mxu0 %vm14217_vm9, %v12953_v9  ;;  %v6197_v9 = vld [vmem:[#allocation5 + $0xc0] sm:$0xff] }
 0x86f   :  { %6430 = vmatmul.mubr.bf16.gmra.mrb[36].mxu1 %v8622_v34 }
 0x870   :  { %8691 = vmatpush3.bf16.msra.mxu1 %v6187_v14  ;;  %6572 = vmatprep.mubr.bf16.mxu1 %v9732_v26 }
 0x871   :  { %8692 = vmatprep.subr.bf16.mxu1 %v6232_v0  ;;  %6595 = vmatpush1.bf16.msra.mxu0 %v6272_v8  ;;  %v6656_v8 = vsub.s32 4, %v6639_v10 }
 0x872   :  { %6596 = vmatprep.subr.bf16.mxu0 %v12469_v62 }
 0x874   :  { %8693 = vmatpush3.bf16.msra.mxu1 %v6192_v21 }
 0x875   :  { %8694 = vmatprep.subr.bf16.mxu1 %v6237_v31  ;;  %6597 = vmatpush1.bf16.msra.mxu0 %v6277_v48 }
 0x876   :  { %6598 = vmatprep.subr.bf16.mxu0 %v12469_v62 }
 0x878   :  { %8695 = vmatpush3.bf16.msra.mxu1 %v6197_v9  ;;  %v13287_v9 = vrot.slane %v6636_v39, %v6656_v8 }
 0x879   :  { %8696 = vmatprep.subr.bf16.mxu1 %v6242_v12  ;;  %6599 = vmatpush1.bf16.msra.mxu0 %v6282_v28 }
 0x87a   :  { %6600 = vmatprep.subr.bf16.mxu0 %v12469_v62 }
 0x87c   :  { %8697 = vmatpush3.bf16.msra.mxu1 %v6202_v19 }
 0x87d   :  { %8698 = vmatprep.subr.bf16.mxu1 %v6247_v15  ;;  %6601 = vmatpush1.bf16.msra.mxu0 %v6287_v27 }
 0x87e   :  { %6602 = vmatprep.subr.bf16.mxu0 %v12469_v62 }
 0x880   :  { %8699 = vmatpush3.bf16.msra.mxu1 %v6207_v52 }
 0x881   :  { %8700 = vmatprep.subr.bf16.mxu1 %v6252_v55  ;;  %6603 = vmatpush1.bf16.msra.mxu0 %v6292_v17 }
 0x882   :  { %6604 = vmatprep.subr.bf16.mxu0 %v12469_v62  ;;  %v6644_v62 = vsub.s32 1, %v6639_v10 }
 0x884   :  { %8701 = vmatpush3.bf16.msra.mxu1 %v6212_v47  ;;  %v13237_v30 = vrot.slane %v6636_v39, %v6644_v62 }
 0x885   :  { %6605 = vmatpush1.bf16.msra.mxu0 %v6297_v60 }
 0x887   :  { %6573 = vmatmul.mubr.bf16.vlgmr.msra.gmra.mrb[40].mxu1 %v12841_v2 }
 0x888   :  { %6621 = vmatmul.mubr.bf16.vlgmr.msra.gmra.mrb[44].mxu0 %v13197_v32  ;;  %6580 = vmatprep.mubr.bf16.mxu1 %v12927_v51 }
 0x889   :  { %8629 = vmatprep.mubr.msk.bf16.mxu0 %vm14218_vm1, %v13200_v41 }
 0x88f   :  { %6581 = vmatmul.mubr.bf16.gmra.mrb[44].mxu1 %v12933_v54 }
 0x890   :  { %6629 = vmatmul.mubr.bf16.gmra.mrb[48].mxu0 %v8622_v34 }
 0x937   :  { %v13231_v2 = vpop.f32.mrb[36].mxu0 }
 0x938   :  { %v13235_v51 = vpop.f32.mrb[37].mxu0  ;;  %v6665_v7 = vmul.f32 %v13241_v22, %v13231_v2 }
 0x939   :  { %v13239_v54 = vpop.f32.mrb[38].mxu0  ;;  %v6666_v20 = vmul.f32 %v13251_v42, %v13235_v51 }
 0x93a   :  { %v13243_v59 = vpop.f32.mrb[32].mxu1  ;;  %v13245_v46 = vpop.f32.mrb[39].mxu0  ;;  %v6670_v38 = vmul.f32 %v13241_v22, %v13239_v54 }
 0x93b   :  { %v6663_v63 = vmul.f32 %v13233_v50, %v13243_v59  ;;  %v13249_v58 = vpop.f32.mrb[33].mxu1  ;;  %v6671_v4 = vmul.f32 %v13251_v42, %v13245_v46 }
 0x93c   :  { %v6664_v40 = vmul.f32 %v13237_v30, %v13249_v58  ;;  %v13255_v16 = vpop.f32.mrb[34].mxu1 }
 0x93d   :  { %v6668_v18 = vmul.f32 %v13233_v50, %v13255_v16  ;;  %v13259_v5 = vpop.f32.mrb[35].mxu1 }
 0x93e   :  { %v6678_v1 = vadd.f32 %v6664_v40, %v6663_v63  ;;  %v6669_v23 = vmul.f32 %v13237_v30, %v13259_v5 }
 0x93f   :  { %v13265_v11 = vpop.f32.mrb[40].mxu0 }
 0x940   :  { %v6679_v35 = vadd.f32 %v6678_v1, %v6665_v7  ;;  %v6685_v45 = vadd.f32 %v6669_v23, %v6668_v18  ;;  %v13271_v29 = vpop.f32.mrb[41].mxu0  ;;  %v6675_v37 = vmul.f32 %v13241_v22, %v13265_v11 }
 0x941   :  { %v6537_v44 = vpop.f32.mrb[42].mxu0  ;;  %v6676_v36 = vmul.f32 %v13251_v42, %v13271_v29 }
 0x942   :  { %v6686_v32 = vadd.f32 %v6685_v45, %v6670_v38  ;;  %v13275_v61 = vpop.f32.mrb[36].mxu1  ;;  %v6538_v41 = vpop.f32.mrb[43].mxu0  ;;  %v6680_v43 = vadd.f32 %v6679_v35, %v6666_v20  ;;  %v6792_v44 = vld [vmem:[%s13961_s5] sm:$0xff] }
 0x943   :  { %v6673_v53 = vmul.f32 %v13233_v50, %v13275_v61  ;;  %v13279_v25 = vpop.f32.mrb[37].mxu1  ;;  %v6793_v41 = vld [vmem:[%s13961_s5 + $0x8] sm:$0xff] }
 0x944   :  { %v6674_v24 = vmul.f32 %v13237_v30, %v13279_v25  ;;  %v6435_v3 = vpop.f32.mrb[38].mxu1  ;;  %v6687_v56 = vadd.f32 %v6686_v32, %v6671_v4  ;;  %v6825_v4 = vld [vmem:[%s13962_s6] sm:$0xff]  ;;  %v6826_v32 = vld [vmem:[%s13962_s6 + $0x8] sm:$0xff] }
 0x945   :  { %v6436_v34 = vpop.f32.mrb[39].mxu1 }
 0x946   :  { %v6692_v57 = vadd.f32 %v6674_v24, %v6673_v53 }
 0x948   :  { %v6693_v14 = vadd.f32 %v6692_v57, %v6675_v37 }
 0x94a   :  { %v6694_v0 = vadd.f32 %v6693_v14, %v6676_v36 }
 0x95a   :  { %v8702_v26 = vpop.f32.mrb[40].mxu1 }
 0x95b   :  { %v8703_v21 = vpop.f32.mrb[41].mxu1  ;;  %v6622_v31 = vpop.f32.mrb[44].mxu0 }
 0x95c   :  { %v8704_v48 = vadd.f32 %v8703_v21, %v8702_v26  ;;  %v8705_v12 = vpop.f32.mrb[42].mxu1  ;;  %v6624_v28 = vpop.f32.mrb[45].mxu0 }
 0x95d   :  { %v8706_v19 = vpop.f32.mrb[43].mxu1  ;;  %v6625_v15 = vpop.f32.mrb[46].mxu0 }
 0x95e   :  { %v6623_v27 = vadd.f32 %v8704_v48, %v6622_v31  ;;  %v8707_v52 = vadd.f32 %v8706_v19, %v8705_v12  ;;  %v6627_v55 = vpop.f32.mrb[47].mxu0 }
 0x960   :  { %v6667_v17 = vmul.f32 %v13287_v9, %v6623_v27  ;;  %v6626_v47 = vadd.f32 %v8707_v52, %v6625_v15 }
 0x962   :  { %v6681_v60 = vsel %vm14219_vm12, %v6667_v17, 0.0  ;;  %v6672_v49 = vmul.f32 %v13287_v9, %v6626_v47  ;;  %v8708_v10 = vpop.f32.mrb[44].mxu1 }
 0x963   :  { %v8709_v13 = vpop.f32.mrb[45].mxu1  ;;  %v6630_v62 = vpop.f32.mrb[48].mxu0  ;;  %v6682_v33 = vadd.f32 %v6681_v60, %v6680_v43 }
 0x964   :  { %v6688_v39 = vsel %vm14220_vm3, %v6672_v49, 0.0  ;;  %v8710_v6 = vadd.f32 %v8709_v13, %v8708_v10  ;;  %v8711_v63 = vpop.f32.mrb[46].mxu1  ;;  %v6632_v40 = vpop.f32.mrb[49].mxu0 }
 0x965   :  { %6683 = vadd.xlane.f32.xlu0 %v6682_v33  ;;  %v6689_v18 = vadd.f32 %v6688_v39, %v6687_v56  ;;  %v8712_v7 = vpop.f32.mrb[47].mxu1  ;;  %v6633_v1 = vpop.f32.mrb[50].mxu0 }
 0x966   :  { %v6631_v23 = vadd.f32 %v8710_v6, %v6630_v62  ;;  %v6634_v20 = vpop.f32.mrb[51].mxu0 }
 0x967   :  { %6690 = vadd.xlane.f32.xlu1 %v6689_v18 }
 0x968   :  { %v6677_v38 = vmul.f32 %v13287_v9, %v6631_v23 }
 0x96a   :  { %v6695_v35 = vsel %vm14221_vm7, %v6677_v38, 0.0 }
 0x96b   :  { %v6696_v45 = vadd.f32 %v6695_v35, %v6694_v0 }
 0x96d   :  { %6697 = vadd.xlane.f32.xlu0 %v6696_v45 }
 0x978   :  { %6797 = vperm.xlu1 %8993, %v6792_v44  }
 0x97c   :  { %6830 = vperm.xlu1 %8993, %v6825_v4  }
 0x980   :  { %6835 = vperm.xlu1 %8993, %v6826_v32  }
 0x983   :  { %6802 = vperm.xlu0 %8992, %v6793_v41  }
 0x9f2   :  { %v6684_v43 = vpop.xlane.xlu0 %6683 }
 0x9f3   :  { %v6699_v53 = vmul.f32 0.00390625, %v6684_v43 }
 0x9f4   :  { %v6691_v24 = vpop.xlane.xlu1 %6690 }
 0x9f5   :  { %v13308_v3 = vsub.f32 %v13243_v59, %v6699_v53  ;;  %v13311_v56 = vsub.f32 %v13249_v58, %v6699_v53  ;;  %v13314_v34 = vsub.f32 %v13231_v2, %v6699_v53  ;;  %v6700_v37 = vmul.f32 0.00390625, %v6691_v24 }
 0x9f6   :  { %v13317_v57 = vsub.f32 %v13235_v51, %v6699_v53  ;;  %v13319_v36 = vsub.f32 %v6623_v27, %v6699_v53 }
 0x9f7   :  { %v13322_v14 = vsub.f32 %v13255_v16, %v6700_v37  ;;  %v13325_v0 = vsub.f32 %v13259_v5, %v6700_v37  ;;  %v13328_v59 = vsub.f32 %v13239_v54, %v6700_v37  ;;  %v6717_v58 = vmul.f32 %v13308_v3, %v13308_v3 }
 0x9f8   :  { %v6718_v2 = vmul.f32 %v13311_v56, %v13311_v56  ;;  %v6719_v51 = vmul.f32 %v13314_v34, %v13314_v34  ;;  %v6721_v8 = vmul.f32 %v13319_v36, %v13319_v36  ;;  %v13340_v5 = vsub.f32 %v13245_v46, %v6700_v37 }
 0x9f9   :  { %v6732_v16 = vmul.f32 %v6717_v58, %v13233_v50  ;;  %v13342_v26 = vsub.f32 %v6626_v47, %v6700_v37  ;;  %v6722_v54 = vmul.f32 %v13322_v14, %v13322_v14  ;;  %v6720_v31 = vmul.f32 %v13317_v57, %v13317_v57 }
 0x9fa   :  { %v6698_v21 = vpop.xlane.xlu0 %6697  ;;  %v6733_v48 = vmul.f32 %v6718_v2, %v13237_v30  ;;  %v6736_v12 = vmul.f32 %v6721_v8, %v13287_v9  ;;  %v6734_v19 = vmul.f32 %v6719_v51, %v13241_v22  ;;  %v6723_v46 = vmul.f32 %v13325_v0, %v13325_v0 }
 0x9fb   :  { %v6701_v28 = vmul.f32 0.00390625, %v6698_v21  ;;  %v6724_v15 = vmul.f32 %v13328_v59, %v13328_v59  ;;  %v6725_v52 = vmul.f32 %v13340_v5, %v13340_v5  ;;  %v6726_v55 = vmul.f32 %v13342_v26, %v13342_v26 }
 0x9fc   :  { %v6747_v27 = vadd.f32 %v6733_v48, %v6732_v16  ;;  %v6737_v17 = vmul.f32 %v6722_v54, %v13233_v50  ;;  %v6738_v10 = vmul.f32 %v6723_v46, %v13237_v30  ;;  %v6735_v13 = vmul.f32 %v6720_v31, %v13251_v42 }
 0x9fd   :  { %v13361_v47 = vsub.f32 %v13275_v61, %v6701_v28  ;;  %v13364_v60 = vsub.f32 %v13279_v25, %v6701_v28  ;;  %v13367_v49 = vsub.f32 %v13265_v11, %v6701_v28  ;;  %v6750_v33 = vsel %vm14222_vm10, %v6736_v12, 0.0 }
 0x9fe   :  { %v6748_v62 = vadd.f32 %v6747_v27, %v6734_v19  ;;  %v6739_v39 = vmul.f32 %v6724_v15, %v13241_v22  ;;  %v6754_v6 = vadd.f32 %v6738_v10, %v6737_v17  ;;  %v13374_v63 = vsub.f32 %v13271_v29, %v6701_v28 }
 0x9ff   :  { %v13376_v61 = vsub.f32 %v6631_v23, %v6701_v28  ;;  %v6727_v25 = vmul.f32 %v13361_v47, %v13361_v47  ;;  %v6741_v40 = vmul.f32 %v6726_v55, %v13287_v9  ;;  %v6728_v18 = vmul.f32 %v13364_v60, %v13364_v60 }
 0xa00   :  { %v6749_v11 = vadd.f32 %v6748_v62, %v6735_v13  ;;  %v6729_v7 = vmul.f32 %v13367_v49, %v13367_v49  ;;  %v6740_v1 = vmul.f32 %v6725_v52, %v13251_v42  ;;  %v6755_v20 = vadd.f32 %v6754_v6, %v6739_v39 }
 0xa01   :  { %v6731_v29 = vmul.f32 %v13376_v61, %v13376_v61  ;;  %v6742_v23 = vmul.f32 %v6727_v25, %v13233_v50  ;;  %v6730_v35 = vmul.f32 %v13374_v63, %v13374_v63  ;;  %v6743_v45 = vmul.f32 %v6728_v18, %v13237_v30  ;;  %v6827_v30 = vld [vmem:[%s13962_s6 + $0x10] sm:$0xff] }
 0xa02   :  { %v6751_v38 = vadd.f32 %v6750_v33, %v6749_v11  ;;  %v6756_v44 = vadd.f32 %v6755_v20, %v6740_v1  ;;  %v6757_v4 = vsel %vm14223_vm8, %v6741_v40, 0.0  ;;  %v6744_v32 = vmul.f32 %v6729_v7, %v13241_v22  ;;  %v6794_v22 = vld [vmem:[%s13961_s5 + $0x10] sm:$0xff] }
 0xa03   :  { %v6761_v41 = vadd.f32 %v6743_v45, %v6742_v23  ;;  %v6746_v53 = vmul.f32 %v6731_v29, %v13287_v9  ;;  %v6745_v24 = vmul.f32 %v6730_v35, %v13251_v42  ;;  %v6798_v9 = vpop.permute.xlu1 %6797  ;;  %v6803_v42 = vpop.permute.xlu0 %6802 }
 0xa04   :  { %6752 = vadd.xlane.f32.xlu0 %v6751_v38  ;;  %v6758_v43 = vadd.f32 %v6757_v4, %v6756_v44 }
 0xa05   :  { %v6762_v37 = vadd.f32 %v6761_v41, %v6744_v32  ;;  %v6764_v58 = vsel %vm14224_vm15, %v6746_v53, 0.0  ;;  %vm14239_vm15 = vmmov 0  }
 0xa06   :  { %6759 = vadd.xlane.f32.xlu1 %v6758_v43 }
 0xa07   :  { %v6763_v50 = vadd.f32 %v6762_v37, %v6745_v24  ;;  %v13403_v51 = vpop.permute.xlu1 %6830 }
 0xa09   :  { %v6765_v2 = vadd.f32 %v6764_v58, %v6763_v50 }
 0xa0b   :  { %6766 = vadd.xlane.f32.xlu0 %v6765_v2  ;;  %v13405_v8 = vpop.permute.xlu1 %6835 }
 0xa17   :  { %6840 = vperm.xlu1 %8993, %v6827_v30  }
 0xa21   :  { %6807 = vperm.xlu0 %8992, %v6794_v22  }
 0xa91   :  { %v6753_v16 = vpop.xlane.xlu0 %6752 }
 0xa92   :  { %v6768_v54 = vmul.f32 0.00390625, %v6753_v16 }
 0xa93   :  { %v6760_v31 = vpop.xlane.xlu1 %6759 }
 0xa94   :  { %v6771_v21 = vadd.f32 1e-05, %v6768_v54  ;;  %v6769_v48 = vmul.f32 0.00390625, %v6760_v31 }
 0xa96   :  { %9696 = vrsqrt.f32 %v6771_v21  ;;  %v6772_v12 = vadd.f32 1e-05, %v6769_v48 }
 0xa98   :  { %9698 = vrsqrt.f32 %v6772_v12  ;;  %v6767_v28 = vpop.xlane.xlu0 %6766  ;;  %v9644_v12 = vld [vmem:[%s13963_s8 + $0x40] sm:$0xff]  }
 0xa99   :  { %v6770_v19 = vmul.f32 0.00390625, %v6767_v28  ;;  %v9645_v28 = vld [vmem:[%s13963_s8] sm:$0xff]   ;;  %8714 = vmatprep.subr.bf16.mxu1 %v9644_v12 }
 0xa9a   :  { %8715 = vmatpush3.bf16.msra.mxu1 %v9645_v28  ;;  %v9673_v28 = vld [vmem:[%s13963_s8 + $0xb0] sm:$0xff]  }
 0xa9b   :  { %v6773_v46 = vadd.f32 1e-05, %v6770_v19  ;;  %v9646_v19 = vld [vmem:[%s13963_s8 + $0x48] sm:$0xff]  }
 0xa9c   :  { %8716 = vmatprep.subr.bf16.mxu1 %v9646_v19 }
 0xa9d   :  { %9700 = vrsqrt.f32 %v6773_v46  ;;  %v9647_v46 = vld [vmem:[%s13963_s8 + $0x8] sm:$0xff]  }
 0xa9e   :  { %8717 = vmatpush3.bf16.msra.mxu1 %v9647_v46 }
 0xaa0   :  { %v9697_v15 = vpop.eup %9696  ;;  %v6808_v41 = vpop.permute.xlu0 %6807 }
 0xaa1   :  { %v6778_v27 = vmul.f32 %v9697_v15, %v13311_v56  ;;  %v6779_v52 = vmul.f32 %v9697_v15, %v13314_v34  ;;  %v6780_v55 = vmul.f32 %v9697_v15, %v13317_v57  ;;  %v6777_v17 = vmul.f32 %v9697_v15, %v13308_v3 }
 0xaa2   :  { %v6781_v10 = vmul.f32 %v9697_v15, %v13319_v36  ;;  %v9699_v13 = vpop.eup %9698  ;;  %v9648_v15 = vld [vmem:[%s13963_s8 + $0xc0] sm:$0xff]  }
 0xaa3   :  { %v6811_v62 = vmul.f32 %v6798_v9, %v6778_v27  ;;  %v6812_v33 = vmul.f32 %v6798_v9, %v6779_v52  ;;  %v6813_v39 = vmul.f32 %v6798_v9, %v6780_v55  ;;  %v6810_v6 = vmul.f32 %v6798_v9, %v6777_v17  ;;  %v9649_v27 = vld [vmem:[%s13963_s8 + $0x80] sm:$0xff]   ;;  %8742 = vmatprep.subr.bf16.mxu0 %v9648_v15  ;;  %v9650_v52 = vld [vmem:[%s13963_s8 + $0x50] sm:$0xff]   ;;  %v9652_v17 = vld [vmem:[%s13963_s8 + $0xc8] sm:$0xff]  }
 0xaa4   :  { %v6783_v25 = vmul.f32 %v9699_v13, %v13325_v0  ;;  %v6784_v11 = vmul.f32 %v9699_v13, %v13328_v59  ;;  %v6785_v40 = vmul.f32 %v9699_v13, %v13340_v5  ;;  %v6782_v56 = vmul.f32 %v9699_v13, %v13322_v14  ;;  %8743 = vmatpush3.bf16.msra.mxu0 %v9649_v27  ;;  %v9651_v55 = vld [vmem:[%s13963_s8 + $0x10] sm:$0xff]   ;;  %v13614_v15 = vld [vmem:[%s13963_s8 + $0x100] sm:$0xff]   ;;  %v9675_v27 = vld [vmem:[%s13963_s8 + $0xf8] sm:$0xff]  }
 0xaa5   :  { %v13417_v34 = vadd.f32 %v13403_v51, %v6811_v62  ;;  %v13420_v3 = vadd.f32 %v13403_v51, %v6812_v33  ;;  %v13423_v57 = vadd.f32 %v13403_v51, %v6813_v39  ;;  %v13426_v36 = vadd.f32 %v13403_v51, %v6810_v6  ;;  %8718 = vmatprep.subr.bf16.mxu1 %v9650_v52  ;;  %v9655_v62 = vld [vmem:[%s13963_s8 + $0x18] sm:$0xff]   ;;  %v9656_v33 = vld [vmem:[%s13963_s8 + $0xd0] sm:$0xff]   ;;  %v9658_v6 = vld [vmem:[%s13963_s8 + $0x60] sm:$0xff]  }
 0xaa6   :  { %v6816_v18 = vmul.f32 %v6803_v42, %v6783_v25  ;;  %v6817_v0 = vmul.f32 %v6803_v42, %v6784_v11  ;;  %v6818_v7 = vmul.f32 %v6803_v42, %v6785_v40  ;;  %v6815_v59 = vmul.f32 %v6803_v42, %v6782_v56  ;;  %8744 = vmatprep.subr.bf16.mxu0 %v9652_v17  ;;  %v9657_v39 = vld [vmem:[%s13963_s8 + $0x90] sm:$0xff]   ;;  %v9659_v25 = vld [vmem:[%s13963_s8 + $0x20] sm:$0xff]   ;;  %v9660_v11 = vld [vmem:[%s13963_s8 + $0xd8] sm:$0xff]  }
 0xaa7   :  { %v9244_v5 = vpack.i.bf16 %v13420_v3, %v13417_v34  ;;  %v6786_v14 = vmul.f32 %v9699_v13, %v13342_v26  ;;  %v6814_v1 = vmul.f32 %v6798_v9, %v6781_v10  ;;  %v9701_v20 = vpop.eup %9700  ;;  %v9653_v10 = vld [vmem:[%s13963_s8 + $0x88] sm:$0xff]   ;;  %v9654_v13 = vld [vmem:[%s13963_s8 + $0x58] sm:$0xff]   ;;  %8719 = vmatpush3.bf16.msra.mxu1 %v9651_v55 }
 0xaa8   :  { %v13432_v29 = vadd.f32 %v13405_v8, %v6816_v18  ;;  %v13435_v23 = vadd.f32 %v13405_v8, %v6817_v0  ;;  %v13438_v38 = vadd.f32 %v13405_v8, %v6818_v7  ;;  %v13441_v35 = vadd.f32 %v13405_v8, %v6815_v59  ;;  %8745 = vmatpush3.bf16.msra.mxu0 %v9653_v10  ;;  %v9661_v40 = vld [vmem:[%s13963_s8 + $0x98] sm:$0xff]   ;;  %v9662_v18 = vld [vmem:[%s13963_s8 + $0x68] sm:$0xff]  }
 0xaa9   :  { %v6787_v45 = vmul.f32 %v9701_v20, %v13361_v47  ;;  %v6788_v44 = vmul.f32 %v9701_v20, %v13364_v60  ;;  %v6789_v26 = vmul.f32 %v9701_v20, %v13367_v49  ;;  %v6790_v4 = vmul.f32 %v9701_v20, %v13374_v63  ;;  %9245 = vrot.lane.b32.xlu0 %v9244_v5, %s9733_s22  ;;  %v6841_v60 = vpop.permute.xlu1 %6840  ;;  %v9663_v59 = vld [vmem:[%s13963_s8 + $0x28] sm:$0xff]   ;;  %v9664_v5 = vld [vmem:[%s13963_s8 + $0xe0] sm:$0xff]  }
 0xaaa   :  { %v6791_v32 = vmul.f32 %v9701_v20, %v13376_v61  ;;  %v9249_v43 = vpack.i.bf16 %v13432_v29, %v13423_v57  ;;  %v9254_v53 = vpack.i.bf16 %v13438_v38, %v13435_v23  ;;  %v6819_v49 = vmul.f32 %v6803_v42, %v6786_v14  ;;  %8720 = vmatprep.subr.bf16.mxu1 %v9654_v13  ;;  %v9665_v14 = vld [vmem:[%s13963_s8 + $0xa0] sm:$0xff]   ;;  %v9676_v13 = vld [vmem:[%s13963_s8 + $0xb8] sm:$0xff]  }
 0xaab   :  { %v6820_v24 = vmul.f32 %v6808_v41, %v6787_v45  ;;  %v6821_v37 = vmul.f32 %v6808_v41, %v6788_v44  ;;  %v6822_v47 = vmul.f32 %v6808_v41, %v6789_v26  ;;  %v6823_v50 = vmul.f32 %v6808_v41, %v6790_v4  ;;  %8746 = vmatprep.subr.bf16.mxu0 %v9656_v33 }
 0xaac   :  { %v6824_v58 = vmul.f32 %v6808_v41, %v6791_v32  ;;  %9250 = vrot.lane.b32.xlu1 %v9249_v43, %s9733_s22  ;;  %v6847_v63 = vadd.f32 %v13403_v51, %v6814_v1  ;;  %v9259_v16 = vpack.i.bf16 %v13441_v35, %v13426_v36  ;;  %v6852_v54 = vadd.f32 %v13405_v8, %v6819_v49 }
 0xaad   :  { %v13455_v2 = vadd.f32 %v6841_v60, %v6820_v24  ;;  %v13457_v61 = vadd.f32 %v6841_v60, %v6821_v37  ;;  %v13459_v30 = vadd.f32 %v6841_v60, %v6822_v47  ;;  %v13461_v22 = vadd.f32 %v6841_v60, %v6823_v50  ;;  %9255 = vrot.lane.b32.xlu0 %v9254_v53, %s9733_s22  ;;  %v9666_v50 = vld [vmem:[%s13963_s8 + $0x70] sm:$0xff]  }
 0xaae   :  { %v6857_v9 = vadd.f32 %v6841_v60, %v6824_v58  ;;  %6862 = vst.msk [vmem:[#allocation6 + $0x20] sm:$0xff] %vm14225_vm5, %v6847_v63  ;;  %8721 = vmatpush3.bf16.msra.mxu1 %v9655_v62  ;;  %8747 = vmatpush3.bf16.msra.mxu0 %v9657_v39  ;;  %v9668_v63 = vld [vmem:[%s13963_s8 + $0xe8] sm:$0xff]   ;;  %vm7891_vm5 = vcmask 31744  }
 0xaaf   :  { %6867 = vst.msk [vmem:[#allocation6 + $0x48] sm:$0xff] %vm14227_vm14, %v6852_v54  ;;  %v9269_v51 = vpack.i.bf16 %v13459_v30, %v13457_v61  ;;  %v9274_v48 = vpack.i.bf16 %v13455_v2, %v13461_v22  ;;  %8722 = vmatprep.subr.bf16.mxu1 %v9658_v6  ;;  %8748 = vmatprep.subr.bf16.mxu0 %v9660_v11  ;;  %vm8116_vm14 = vcmask 1040384  }
 0xab0   :  { %6872 = vst.msk [vmem:[#allocation6 + $0x70] sm:$0xff] %vm14226_vm4, %v6857_v9  ;;  %9260 = vrot.lane.b32.xlu1 %v9259_v16, %s9733_s22  ;;  %vm7910_vm4 = vcmask 25600  }
 0xab2   :  { %8723 = vmatpush3.bf16.msra.mxu1 %v9659_v25  ;;  %8749 = vmatpush3.bf16.msra.mxu0 %v9661_v40 }
 0xab3   :  { %8724 = vmatprep.subr.bf16.mxu1 %v9662_v18  ;;  %8750 = vmatprep.subr.bf16.mxu0 %v9664_v5 }
 0xab4   :  { %9270 = vrot.lane.b32.xlu1 %v9269_v51, %s9733_s22 }
 0xab5   :  { %v13474_v42 = vld [vmem:[#allocation6 + $0x20] sm:$0xff] }
 0xab6   :  { %v13476_v21 = vld [vmem:[#allocation6 + $0x48] sm:$0xff]  ;;  %8725 = vmatpush3.bf16.msra.mxu1 %v9663_v59  ;;  %8751 = vmatpush3.bf16.msra.mxu0 %v9665_v14 }
 0xab7   :  { %v13478_v31 = vld [vmem:[#allocation6 + $0x70] sm:$0xff]  ;;  %v9264_v8 = vpack.i.bf16 %v13476_v21, %v13474_v42  ;;  %8726 = vmatprep.subr.bf16.mxu1 %v9666_v50  ;;  %8752 = vmatprep.subr.bf16.mxu0 %v9668_v63 }
 0xab8   :  { %6931 = vrot.lane.b32.xlu1 %v13478_v31, %s9733_s22 }
 0xab9   :  { %9265 = vrot.lane.b32.xlu0 %v9264_v8, %s9733_s22 }
 0xabd   :  { %9275 = vrot.lane.b32.xlu0 %v9274_v48, %s9733_s22  ;;  %v9670_v48 = vld [vmem:[%s13963_s8 + $0x78] sm:$0xff]  }
 0xb1b   :  { %v9246_v56 = vpop.permute.xlu0 %9245 }
 0xb1c   :  { %v9248_v0 = vunpack.i.h.bf16 %v9246_v56  ;;  %v9247_v7 = vunpack.i.l.bf16 %v9246_v56 }
 0xb1e   :  { %v9251_v1 = vpop.permute.xlu1 %9250  ;;  %v6934_v20 = vsel %vm177_vm0, %v9247_v7, %v9248_v0 }
 0xb1f   :  { %v9252_v45 = vunpack.i.l.bf16 %v9251_v1  ;;  %v9256_v44 = vpop.permute.xlu0 %9255  ;;  %v9253_v26 = vunpack.i.h.bf16 %v9251_v1  ;;  %v13557_v43 = vmax.f32 %v13417_v34, %v6934_v20 }
 0xb20   :  { %v9258_v4 = vunpack.i.h.bf16 %v9256_v44  ;;  %v9257_v32 = vunpack.i.l.bf16 %v9256_v44 }
 0xb21   :  { %v6935_v41 = vsel %vm177_vm0, %v9248_v0, %v9252_v45 }
 0xb22   :  { %v13560_v53 = vmax.f32 %v13420_v3, %v6935_v41  ;;  %v6938_v24 = vsel %vm177_vm0, %v9253_v26, %v9257_v32  ;;  %v6939_v37 = vsel %vm177_vm0, %v9257_v32, %v9258_v4  ;;  %v9261_v47 = vpop.permute.xlu1 %9260  ;;  %v9667_v3 = vld [vmem:[%s13963_s8 + $0x30] sm:$0xff]  }
 0xb23   :  { %v13568_v60 = vmax.f32 %v13432_v29, %v6938_v24  ;;  %v13571_v58 = vmax.f32 %v13435_v23, %v6939_v37  ;;  %v9263_v34 = vunpack.i.h.bf16 %v9261_v47  ;;  %v9262_v49 = vunpack.i.l.bf16 %v9261_v47  ;;  %v9669_v29 = vld [vmem:[%s13963_s8 + $0xa8] sm:$0xff]   ;;  %8727 = vmatpush3.bf16.msra.mxu1 %v9667_v3 }
 0xb24   :  { %v9279_v9 = vpack.i.bf16 %v13560_v53, %v13557_v43  ;;  %8753 = vmatpush3.bf16.msra.mxu0 %v9669_v29  ;;  %8728 = vmatprep.subr.bf16.mxu1 %v9670_v48 }
 0xb25   :  { %v6937_v23 = vsel %vm177_vm0, %v9263_v34, %v9253_v26  ;;  %v6933_v16 = vsel %vm177_vm0, %v9262_v49, %v9247_v7  ;;  %v9284_v54 = vpack.i.bf16 %v13571_v58, %v13568_v60 }
 0xb26   :  { %v13589_v51 = vmax.f32 %v13441_v35, %v6937_v23  ;;  %v13592_v8 = vmax.f32 %v13426_v36, %v6933_v16  ;;  %9280 = vrot.lane.b32.xlu0 %v9279_v9, %s9744_s20  ;;  %v9671_v35 = vld [vmem:[%s13963_s8 + $0x38] sm:$0xff]   ;;  %v9672_v36 = vld [vmem:[%s13963_s8 + $0xf0] sm:$0xff]   ;;  %v9271_v19 = vpop.permute.xlu1 %9270 }
 0xb27   :  { %9285 = vrot.lane.b32.xlu1 %v9284_v54, %s9744_s20  ;;  %8729 = vmatpush3.bf16.msra.mxu1 %v9671_v35  ;;  %v9273_v17 = vunpack.i.h.bf16 %v9271_v19  ;;  %v9272_v10 = vunpack.i.l.bf16 %v9271_v19 }
 0xb28   :  { %v9294_v12 = vpack.i.bf16 %v13589_v51, %v13592_v8  ;;  %8754 = vmatprep.subr.bf16.mxu0 %v9672_v36  ;;  %8843 = vmatprep.subr.bf16.mxu1 %v13614_v15 }
 0xb29   :  { %8755 = vmatpush3.bf16.msra.mxu0 %v9673_v28  ;;  %v6942_v56 = vsel %vm177_vm0, %v9272_v10, %v9273_v17 }
 0xb2a   :  { %9295 = vrot.lane.b32.xlu0 %v9294_v12, %s9744_s20  ;;  %8756 = vmatprep.subr.bf16.mxu0 %v9675_v27  ;;  %v6932_v7 = vpop.permute.xlu1 %6931  ;;  %v13646_v5 = vmax.f32 %v13457_v61, %v6942_v56  ;;  %v9764_v12 = vmov 65535   ;;  %v9679_v27 = vld [vmem:[%s13963_s8 + $0x118] sm:$0xff]  }
 0xb2b   :  { %v9266_v46 = vpop.permute.xlu0 %9265  ;;  %v13662_v44 = vmax.f32 %v13478_v31, %v6932_v7 }
 0xb2c   :  { %v9268_v52 = vunpack.i.h.bf16 %v9266_v46  ;;  %v9267_v55 = vunpack.i.l.bf16 %v9266_v46 }
 0xb2d   :  { %8757 = vmatpush3.bf16.msra.mxu0 %v9676_v13 }
 0xb2e   :  { %v13624_v62 = vmax.f32 %v13476_v21, %v9268_v52  ;;  %v6936_v33 = vsel %vm177_vm0, %v9252_v45, %v9267_v55  ;;  %v13628_v39 = vmax.f32 %v13474_v42, %v9267_v55  ;;  %v6940_v6 = vsel %vm177_vm0, %v9258_v4, %v9268_v52  ;;  %v9678_v52 = vld [vmem:[%s13963_s8 + $0x110] sm:$0xff]  }
 0xb2f   :  { %v13632_v25 = vmax.f32 %v13423_v57, %v6936_v33  ;;  %v13635_v11 = vmax.f32 %v13438_v38, %v6940_v6  ;;  %v9276_v40 = vpop.permute.xlu0 %9275 }
 0xb30   :  { %v9278_v18 = vunpack.i.h.bf16 %v9276_v40  ;;  %v9277_v21 = vunpack.i.l.bf16 %v9276_v40 }
 0xb31   :  { %v9289_v0 = vpack.i.bf16 %v13628_v39, %v13632_v25  ;;  %v9299_v42 = vpack.i.bf16 %v13624_v62, %v13635_v11 }
 0xb32   :  { %v6941_v59 = vsel %vm177_vm0, %v9278_v18, %v9272_v10  ;;  %v6943_v57 = vsel %vm177_vm0, %v9273_v17, %v9277_v21  ;;  %v6944_v38 = vsel %vm177_vm0, %v9277_v21, %v6932_v7  ;;  %vm7382_vm0 = vcmask 1046528  }
 0xb33   :  { %v13649_v14 = vmax.f32 %v13459_v30, %v6943_v57  ;;  %9290 = vrot.lane.b32.xlu1 %v9289_v0, %s9744_s20  ;;  %9300 = vrot.lane.b32.xlu0 %v9299_v42, %s9744_s20  ;;  %v13654_v1 = vmax.f32 %v13455_v2, %v6941_v59  ;;  %v13657_v20 = vmax.f32 %v13461_v22, %v6944_v38  ;;  %v7384_v35 = vsel %vm7382_vm0, 4294967295, %v9764_v12 }
 0xb34   :  { %v7385_v55 = vsel %vm7383_vm6, %v7384_v35, 0  ;;  %vm8112_vm0 = vcmask 408576  }
 0xb35   :  { %v9304_v45 = vpack.i.bf16 %v13649_v14, %v13646_v5  ;;  %v9309_v61 = vpack.i.bf16 %v13662_v44, %v13657_v20  ;;  %v7387_v21 = vand.u32 %v9679_v27, %v7385_v55 }
 0xb37   :  { %9305 = vrot.lane.b32.xlu1 %v9304_v45, %s9744_s20  ;;  %7010 = vrot.lane.b32.xlu0 %v13654_v1, %s9744_s20 }
 0xb3b   :  { %9310 = vrot.lane.b32.xlu1 %v9309_v61, %s9744_s20 }
 0xb98   :  { %v9281_v2 = vpop.permute.xlu0 %9280 }
 0xb99   :  { %v9283_v30 = vunpack.i.h.bf16 %v9281_v2  ;;  %v9282_v22 = vunpack.i.l.bf16 %v9281_v2  ;;  %v9286_v26 = vpop.permute.xlu1 %9285 }
 0xb9a   :  { %v9288_v4 = vunpack.i.h.bf16 %v9286_v26  ;;  %v9287_v32 = vunpack.i.l.bf16 %v9286_v26 }
 0xb9b   :  { %v7022_v41 = vsel %vm5489_vm11, %v9282_v22, %v9283_v30 }
 0xb9c   :  { %v7026_v31 = vsel %vm5489_vm11, %v9287_v32, %v9288_v4  ;;  %v9296_v24 = vpop.permute.xlu0 %9295  ;;  %v7049_v37 = vmax.f32 %v13557_v43, %v7022_v41 }
 0xb9d   :  { %v9298_v47 = vunpack.i.h.bf16 %v9296_v24  ;;  %v9297_v50 = vunpack.i.l.bf16 %v9296_v24  ;;  %v7054_v34 = vmax.f32 %v13568_v60, %v7026_v31  ;;  %v9677_v60 = vld [vmem:[%s13963_s8 + $0x108] sm:$0xff]   ;;  %s9765_s8 = smov 120  }
 0xb9e   :  { %v7064_v63 = vmax.f32 %v7049_v37, 0.0 }
 0xb9f   :  { %v7025_v49 = vsel %vm5489_vm11, %v9298_v47, %v9287_v32  ;;  %v7021_v3 = vsel %vm5489_vm11, %v9297_v50, %v9282_v22  ;;  %v7069_v9 = vmax.f32 %v7054_v34, 0.0 }
 0xba0   :  { %v7053_v29 = vmax.f32 %v13589_v51, %v7025_v49  ;;  %v7048_v23 = vmax.f32 %v13592_v8, %v7021_v3 }
 0xba1   :  { %v7079_v16 = vpack.c.bf16 %v7069_v9, %v7064_v63 }
 0xba2   :  { %v7068_v54 = vmax.f32 %v7053_v29, 0.0  ;;  %v7063_v48 = vmax.f32 %v7048_v23, 0.0 }
 0xba3   :  { %7421 = vmatprep.mubr.bf16.mxu1 %v7079_v16 }
 0xba4   :  { %v7078_v43 = vpack.c.bf16 %v7068_v54, %v7063_v48 }
 0xba5   :  { %v9291_v36 = vpop.permute.xlu1 %9290  ;;  %v9301_v28 = vpop.permute.xlu0 %9300 }
 0xba6   :  { %7422 = vmatmul.mubr.bf16.vlgmr.msra.gmra.mrb[48].mxu1 %v7078_v43  ;;  %v9293_v19 = vunpack.i.h.bf16 %v9291_v36  ;;  %v9292_v51 = vunpack.i.l.bf16 %v9291_v36  ;;  %v9303_v46 = vunpack.i.h.bf16 %v9301_v28  ;;  %v9302_v8 = vunpack.i.l.bf16 %v9301_v28 }
 0xba7   :  { %8844 = vmatpush3.bf16.msra.mxu1 %v13614_v15 }
 0xba8   :  { %8845 = vmatprep.subr.bf16.mxu1 %v9677_v60  ;;  %v7023_v17 = vsel %vm5489_vm11, %v9283_v30, %v9292_v51  ;;  %v7024_v10 = vsel %vm5489_vm11, %v9292_v51, %v9293_v19  ;;  %v7027_v33 = vsel %vm5489_vm11, %v9288_v4, %v9302_v8  ;;  %v7028_v15 = vsel %vm5489_vm11, %v9302_v8, %v9303_v46 }
 0xba9   :  { %v7050_v13 = vmax.f32 %v13560_v53, %v7023_v17  ;;  %v9306_v6 = vpop.permute.xlu1 %9305  ;;  %v7051_v40 = vmax.f32 %v13632_v25, %v7024_v10  ;;  %v7055_v56 = vmax.f32 %v13571_v58, %v7027_v33  ;;  %v7056_v7 = vmax.f32 %v13635_v11, %v7028_v15  ;;  %v7011_v38 = vpop.permute.xlu0 %7010 }
 0xbaa   :  { %v9308_v18 = vunpack.i.h.bf16 %v9306_v6  ;;  %v9307_v42 = vunpack.i.l.bf16 %v9306_v6  ;;  %v7052_v53 = vmax.f32 %v13628_v39, %v9293_v19  ;;  %v7057_v45 = vmax.f32 %v13624_v62, %v9303_v46 }
 0xbab   :  { %8846 = vmatpush3.bf16.msra.mxu1 %v9677_v60  ;;  %v7065_v0 = vmax.f32 %v7050_v13, 0.0  ;;  %v7066_v59 = vmax.f32 %v7051_v40, 0.0  ;;  %v7070_v57 = vmax.f32 %v7055_v56, 0.0  ;;  %v7071_v2 = vmax.f32 %v7056_v7, 0.0 }
 0xbac   :  { %8847 = vmatprep.subr.bf16.mxu1 %v9678_v52  ;;  %v7029_v61 = vsel %vm5489_vm11, %v7011_v38, %v9307_v42  ;;  %v7030_v58 = vsel %vm5489_vm11, %v9307_v42, %v9308_v18  ;;  %v7067_v39 = vmax.f32 %v7052_v53, 0.0  ;;  %v7072_v24 = vmax.f32 %v7057_v45, 0.0 }
 0xbad   :  { %v9311_v25 = vpop.permute.xlu1 %9310  ;;  %v7080_v30 = vpack.c.bf16 %v7070_v57, %v7065_v0  ;;  %v7058_v22 = vmax.f32 %v13654_v1, %v7029_v61  ;;  %v7081_v11 = vpack.c.bf16 %v7071_v2, %v7066_v59  ;;  %v7059_v32 = vmax.f32 %v13646_v5, %v7030_v58  ;;  %v9686_v2 = vld [vmem:[%s13964_s9 + $0x8] ss:$12 sps:$4 sm:$0xff]  }
 0xbae   :  { %v9313_v26 = vunpack.i.h.bf16 %v9311_v25  ;;  %v9312_v4 = vunpack.i.l.bf16 %v9311_v25  ;;  %v7082_v63 = vpack.c.bf16 %v7072_v24, %v7067_v39  ;;  %v9682_v25 = vld [vmem:[%s13964_s9 + $0x4] ss:$12 sps:$4 sm:$0xff]   ;;  %v7663_v58 = vld [vmem:[%s13965_s10 + $0x8] sm:$0xff] }
 0xbaf   :  { %8848 = vmatpush3.bf16.msra.mxu1 %v9678_v52  ;;  %v7073_v41 = vmax.f32 %v7058_v22, 0.0  ;;  %7469 = vmatprep.mubr.bf16.mxu0 %v7081_v11  ;;  %v7074_v37 = vmax.f32 %v7059_v32, 0.0  ;;  %v7665_v22 = vld [vmem:[%s13965_s10 + $0x18] sm:$0xff]  ;;  %v7666_v11 = vld [vmem:[%s13965_s10 + $0x20] sm:$0xff]  ;;  %v7985_v32 = vld [vmem:[%s13966_s11 + $0x8] sm:$0xff] }
 0xbb0   :  { %8849 = vmatprep.subr.bf16.mxu1 %v7387_v21  ;;  %v7032_v62 = vsel %vm5489_vm11, %v9312_v4, %v9313_v26  ;;  %v7031_v31 = vsel %vm5489_vm11, %v9308_v18, %v9312_v4  ;;  %7470 = vmatmul.mubr.bf16.vlgmr.msra.gmra.mrb[52].mxu0 %v7080_v30  ;;  %v7062_v3 = vmax.f32 %v13662_v44, %v9313_v26  ;;  %vm14229_vm11 = vcmask 1043456   ;;  %v7662_v30 = vld [vmem:[%s13965_s10] sm:$0xff]  ;;  %v7664_v26 = vld [vmem:[%s13965_s10 + $0x10] sm:$0xff]  ;;  %v7667_v4 = vld [vmem:[%s13965_s10 + $0x28] sm:$0xff] }
 0xbb1   :  { %v7061_v47 = vmax.f32 %v13657_v20, %v7032_v62  ;;  %v7060_v1 = vmax.f32 %v13649_v14, %v7031_v31  ;;  %v7083_v50 = vpack.c.bf16 %v7073_v41, %v7073_v41  ;;  %v7084_v34 = vpack.c.bf16 %v7074_v37, %v7074_v37  ;;  %v7668_v39 = vld [vmem:[%s13965_s10 + $0x30] sm:$0x3]  ;;  %v8033_v41 = vld [vmem:[%s13967_s12] sm:$0xff]  ;;  %vm14230_vm13 = vmmov %vm14229_vm11 }
 0xbb2   :  { %v7077_v23 = vmax.f32 %v7062_v3, 0.0  ;;  %v7984_v62 = vld [vmem:[%s13966_s11] sm:$0xff]  ;;  %vm14231_vm9 = vmmov %vm14229_vm11 }
 0xbb3   :  { %8850 = vmatpush3.bf16.msra.mxu1 %v7387_v21  ;;  %v7076_v49 = vmax.f32 %v7061_v47, 0.0  ;;  %v7075_v5 = vmax.f32 %v7060_v1, 0.0  ;;  %7429 = vmatprep.mubr.bf16.mxu1 %v7084_v34  ;;  %vm14232_vm1 = vmmov %vm14231_vm9 }
 0xbb4   :  { %7430 = vmatmul.mubr.bf16.gmra.mrb[52].mxu1 %v7083_v50  ;;  %v7087_v20 = vpack.c.bf16 %v7077_v23, %v7077_v23  ;;  %vm14233_vm12 = vmmov %vm14232_vm1 }
 0xbb5   :  { %v7086_v9 = vpack.c.bf16 %v7076_v49, %v7076_v49  ;;  %v7085_v29 = vpack.c.bf16 %v7075_v5, %v7075_v5  ;;  %8851 = vmatprep.mubr.msk.bf16.mxu1 %vm7375_vm2, %v7082_v63  ;;  %vm14234_vm3 = vmmov %vm14232_vm1 }
 0xbb6   :  { %vm14235_vm7 = vmmov %vm14232_vm1 }
 0xbb7   :  { %7477 = vmatprep.mubr.bf16.mxu0 %v7086_v9  ;;  %vm14236_vm10 = vmmov %vm14232_vm1 }
 0xbb8   :  { %7478 = vmatmul.mubr.bf16.gmra.mrb[56].mxu0 %v7085_v29  ;;  %vm14237_vm8 = vmmov %vm14232_vm1 }
 0xbb9   :  { %7795 = vmatprep.mubr.bf16.mxu0 %v9682_v25 }
 0xbbc   :  { %8852 = vmatmul.mubr.msk.bf16.vlgmr.msra.gmra.mrb[56].mxu1 %vm7375_vm2, %v7087_v20 }
 0xbbd   :  { %8871 = vmatprep.mubr.bf16.mxu1 %v9686_v2 }
 0xc79   :  { %v8730_v14 = vpop.f32.mrb[48].mxu1 }
 0xc7a   :  { %v8731_v16 = vpop.f32.mrb[49].mxu1 }
 0xc7b   :  { %v8732_v54 = vadd.f32 %v8731_v16, %v8730_v14  ;;  %v8733_v48 = vpop.f32.mrb[50].mxu1 }
 0xc7c   :  { %v8734_v43 = vpop.f32.mrb[51].mxu1 }
 0xc7d   :  { %v8735_v60 = vadd.f32 %v8734_v43, %v8733_v48 }
 0xc83   :  { %v8758_v12 = vpop.f32.mrb[52].mxu0 }
 0xc84   :  { %v8759_v44 = vpop.f32.mrb[53].mxu0 }
 0xc85   :  { %v8760_v35 = vadd.f32 %v8759_v44, %v8758_v12  ;;  %v8761_v36 = vpop.f32.mrb[54].mxu0 }
 0xc86   :  { %v8762_v28 = vpop.f32.mrb[55].mxu0 }
 0xc87   :  { %v8736_v19 = vpop.f32.mrb[52].mxu1  ;;  %v8763_v51 = vadd.f32 %v8762_v28, %v8761_v36  ;;  %v7472_v46 = vadd.f32 %v8760_v35, %v8732_v54 }
 0xc88   :  { %v8737_v8 = vpop.f32.mrb[53].mxu1 }
 0xc89   :  { %v8738_v27 = vadd.f32 %v8737_v8, %v8736_v19  ;;  %v8739_v52 = vpop.f32.mrb[54].mxu1  ;;  %v7475_v55 = vadd.f32 %v8763_v51, %v8735_v60 }
 0xc8a   :  { %v8740_v17 = vpop.f32.mrb[55].mxu1 }
 0xc8b   :  { %v8764_v10 = vpop.f32.mrb[56].mxu0  ;;  %v9680_v17 = vld [vmem:[%s13964_s9] ss:$12 sps:$4 sm:$0xff]  }
 0xc8c   :  { %v8765_v13 = vpop.f32.mrb[57].mxu0 }
 0xc8d   :  { %v8766_v33 = vadd.f32 %v8765_v13, %v8764_v10  ;;  %v8767_v15 = vpop.f32.mrb[58].mxu0  ;;  %v9683_v10 = vld [vmem:[%s13964_s9 + $0x1c] ss:$12 sps:$4 sm:$0xff]  }
 0xc8e   :  { %v8768_v6 = vpop.f32.mrb[59].mxu0 }
 0xc8f   :  { %v7480_v40 = vadd.f32 %v8766_v33, %v8738_v27  ;;  %v8853_v56 = vpop.f32.mrb[56].mxu1 }
 0xc90   :  { %v7519_v18 = vpop.f32.mrb[57].mxu1 }
 0xc91   :  { %v7528_v21 = vadd.f32 %v8853_v56, %v7480_v40  ;;  %v7520_v0 = vadd.f32 %v7519_v18, %v7472_v46  ;;  %v8854_v42 = vpop.f32.mrb[58].mxu1  ;;  %v9685_v40 = vld [vmem:[%s13964_s9 + $0x18] ss:$12 sps:$4 sm:$0xff]   ;;  %v9688_v56 = vld [vmem:[%s13964_s9 + $0x34] ss:$12 sps:$4 sm:$0xff]  }
 0xc92   :  { %v7522_v7 = vpop.f32.mrb[59].mxu1  ;;  %v7660_v42 = vld [vmem:[%s13964_s9 + $0x48] sm:$0x11] }
 0xc93   :  { %v13707_v59 = vpack.c.bf16 %v7528_v21, %v7528_v21  ;;  %v7523_v53 = vadd.f32 %v7522_v7, %v7475_v55  ;;  %v9687_v21 = vld [vmem:[%s13964_s9 + $0x20] ss:$12 sps:$4 sm:$0xff]   ;;  %v14238_v7 = vmov 0.0  }
 0xc95   :  { %v13709_v57 = vpack.c.bf16 %v7523_v53, %v7520_v0  ;;  %7588 = vrot.lane.b32.xlu0 %v13707_v59, %s9759_s3  ;;  %7568 = vrot.lane.b32.xlu1 %v13707_v59, %s9749_s29  ;;  %v7539_v45 = vrot.slane %v13707_v59, 4  ;;  %v9691_v0 = vld [vmem:[%s13964_s9 + $0x38] ss:$12 sps:$4 sm:$0xff]   ;;  %v8678_v53 = vcombine.high %v7660_v42, %v7660_v42 }
 0xc97   :  { %v7538_v38 = vrot.slane %v13709_v57, 4 }
 0xc99   :  { %7548 = vrot.lane.b32.xlu0 %v13707_v59, %s9765_s8  ;;  %7578 = vrot.lane.b32.xlu1 %v13707_v59, %s14228_s24  ;;  %v7540_v61 = vsel %vm14229_vm11, %v7538_v38, %v7539_v45 }
 0xc9d   :  { %7546 = vrot.lane.b32.xlu1 %v13709_v57, %s9765_s8  ;;  %7566 = vrot.lane.b32.xlu0 %v13709_v57, %s9749_s29 }
 0xca1   :  { %7576 = vrot.lane.b32.xlu0 %v13709_v57, %s14228_s24  ;;  %7541 = vrot.lane.b32.xlu1 %v7538_v38, %s9736_s27 }
 0xca5   :  { %7571 = vrot.lane.b32.xlu0 %v7538_v38, %s14173_s0  ;;  %7591 = vrot.lane.b32.xlu1 %v7538_v38, %s9766_s23 }
 0xca9   :  { %7551 = vrot.lane.b32.xlu1 %v7538_v38, %s9744_s20  ;;  %7563 = vrot.lane.b32.xlu0 %v7540_v61, %s9767_s30 }
 0xcad   :  { %7543 = vrot.lane.b32.xlu1 %v7540_v61, %s9736_s27  ;;  %7581 = vrot.lane.b32.xlu0 %v7538_v38, %s14174_s28 }
 0xcb1   :  { %7596 = vrot.lane.b32.xlu1 %v13709_v57, %s14175_s25  ;;  %7598 = vrot.lane.b32.xlu0 %v13707_v59, %s14175_s25  ;;  %s9768_s25 = smov 72  }
 0xcb5   :  { %7556 = vrot.lane.b32.xlu1 %v13709_v57, %s14176_s26  ;;  %7573 = vrot.lane.b32.xlu0 %v7540_v61, %s14173_s0 }
 0xcb9   :  { %7593 = vrot.lane.b32.xlu1 %v7540_v61, %s9766_s23  ;;  %7558 = vrot.lane.b32.xlu0 %v13707_v59, %s14176_s26  ;;  %s9769_s26 = smov 68  }
 0xcbd   :  { %7601 = vrot.lane.b32.xlu1 %v7538_v38, %s9763_s16  ;;  %7553 = vrot.lane.b32.xlu0 %v7540_v61, %s9744_s20 }
 0xcc1   :  { %7561 = vrot.lane.b32.xlu1 %v7538_v38, %s9767_s30  ;;  %7583 = vrot.lane.b32.xlu0 %v7540_v61, %s14174_s28 }
 0xcc5   :  { %7603 = vrot.lane.b32.xlu1 %v7540_v61, %s9763_s16  ;;  %7586 = vrot.lane.b32.xlu0 %v13709_v57, %s9759_s3 }
 0xcc9   :  { %7608 = vrot.lane.b32.xlu1 %v13707_v59, %s9768_s25  ;;  %7606 = vrot.lane.b32.xlu0 %v13709_v57, %s9768_s25 }
 0xccd   :  { %7613 = vrot.lane.b32.xlu1 %v7540_v61, %s9769_s26  ;;  %7611 = vrot.lane.b32.xlu0 %v7538_v38, %s9769_s26  ;;  %v8677_v38 = vcombine.low %v7660_v42, %v7660_v42 }
 0xcd1   :  { %7676 = vperm.xlu1 %8993, %v7663_v58   ;;  %7671 = vperm.xlu0 %8992, %v7662_v30  }
 0xcd5   :  { %7686 = vperm.xlu1 %8993, %v7665_v22   ;;  %7681 = vperm.xlu0 %8992, %v7664_v26  }
 0xcd9   :  { %7696 = vperm.xlu1 %8993, %v7667_v4   ;;  %7691 = vperm.xlu0 %8992, %v7666_v11  }
 0xcdd   :  { %7998 = vperm.xlu1 %8993, %v7985_v32   ;;  %7701 = vperm.xlu0 %8992, %v7668_v39  }
 0xce1   :  { %8042 = vperm.xlu1 %8993, %v8033_v41   ;;  %7993 = vperm.xlu0 %8992, %v7984_v62  }
 0xd07   :  { %v7589_v31 = vpop.permute.xlu0 %7588  ;;  %v7569_v24 = vpop.permute.xlu1 %7568 }
 0xd0b   :  { %v7549_v37 = vpop.permute.xlu0 %7548  ;;  %v7579_v47 = vpop.permute.xlu1 %7578 }
 0xd0f   :  { %v7547_v1 = vpop.permute.xlu1 %7546  ;;  %v7567_v50 = vpop.permute.xlu0 %7566 }
 0xd13   :  { %v7577_v34 = vpop.permute.xlu0 %7576  ;;  %v7542_v49 = vpop.permute.xlu1 %7541 }
 0xd14   :  { %v7618_v14 = vsel %vm14231_vm9, %v13707_v59, %v7542_v49  ;;  %v9690_v59 = vld [vmem:[%s13964_s9 + $0x30] ss:$12 sps:$4 sm:$0xff]  }
 0xd17   :  { %v7572_v5 = vpop.permute.xlu0 %7571  ;;  %v7592_v3 = vpop.permute.xlu1 %7591 }
 0xd18   :  { %v7638_v63 = vsel %vm14230_vm13, %v7589_v31, %v7592_v3  ;;  %v7630_v16 = vsel %vm14232_vm1, %v7569_v24, %v7572_v5 }
 0xd19   :  { %8855 = vmatprep.subr.bf16.mxu1 %v7638_v63 }
 0xd1a   :  { %8856 = vmatpush3.bf16.msra.mxu1 %v7638_v63 }
 0xd1b   :  { %v7552_v9 = vpop.permute.xlu1 %7551  ;;  %v7564_v29 = vpop.permute.xlu0 %7563 }
 0xd1c   :  { %8776 = vmatprep.subr.bf16.mxu0 %v7564_v29  ;;  %v7622_v35 = vsel %vm14233_vm12, %v7549_v37, %v7552_v9 }
 0xd1d   :  { %8777 = vmatpush3.bf16.msra.mxu0 %v13709_v57  ;;  %v9692_v57 = vld [vmem:[%s13964_s9 + $0x50] ss:$0 sps:$4 sm:$0x11]  }
 0xd1e   :  { %8778 = vmatprep.subr.bf16.mxu0 %v7567_v50 }
 0xd1f   :  { %v7544_v23 = vpop.permute.xlu1 %7543  ;;  %v7582_v20 = vpop.permute.xlu0 %7581 }
 0xd20   :  { %v7634_v36 = vsel %vm14234_vm3, %v7579_v47, %v7582_v20 }
 0xd21   :  { %8779 = vmatpush3.bf16.msra.mxu0 %v7618_v14 }
 0xd22   :  { %8780 = vmatprep.subr.bf16.mxu0 %v7630_v16 }
 0xd23   :  { %v7597_v54 = vpop.permute.xlu1 %7596  ;;  %v7599_v48 = vpop.permute.xlu0 %7598 }
 0xd25   :  { %8781 = vmatpush3.bf16.msra.mxu0 %v7544_v23 }
 0xd27   :  { %v7557_v43 = vpop.permute.xlu1 %7556  ;;  %v7574_v60 = vpop.permute.xlu0 %7573 }
 0xd28   :  { %8782 = vmatprep.subr.bf16.mxu0 %v7574_v60 }
 0xd29   :  { %8783 = vmatpush3.bf16.msra.mxu0 %v7547_v1 }
 0xd2a   :  { %8784 = vmatprep.subr.bf16.mxu0 %v7577_v34 }
 0xd2b   :  { %v7594_v12 = vpop.permute.xlu1 %7593  ;;  %v7559_v44 = vpop.permute.xlu0 %7558 }
 0xd2c   :  { %8857 = vmatprep.subr.bf16.mxu1 %v7594_v12 }
 0xd2d   :  { %8785 = vmatpush3.bf16.msra.mxu0 %v7622_v35  ;;  %8858 = vmatpush3.bf16.msra.mxu1 %v7594_v12 }
 0xd2e   :  { %8786 = vmatprep.subr.bf16.mxu0 %v7634_v36  ;;  %8859 = vmatprep.subr.bf16.mxu1 %v7597_v54 }
 0xd2f   :  { %v7602_v28 = vpop.permute.xlu1 %7601  ;;  %v7554_v19 = vpop.permute.xlu0 %7553 }
 0xd30   :  { %v7642_v51 = vsel %vm14235_vm7, %v7599_v48, %v7602_v28 }
 0xd31   :  { %8787 = vmatpush3.bf16.msra.mxu0 %v7554_v19  ;;  %8860 = vmatpush3.bf16.msra.mxu1 %v7597_v54 }
 0xd32   :  { %8861 = vmatprep.subr.bf16.mxu1 %v7642_v51 }
 0xd33   :  { %v7562_v46 = vpop.permute.xlu1 %7561  ;;  %v7584_v8 = vpop.permute.xlu0 %7583 }
 0xd34   :  { %8788 = vmatprep.subr.bf16.mxu0 %v7584_v8  ;;  %v7626_v55 = vsel %vm14236_vm10, %v7559_v44, %v7562_v46 }
 0xd35   :  { %8789 = vmatpush3.bf16.msra.mxu0 %v7557_v43  ;;  %8862 = vmatpush3.bf16.msra.mxu1 %v7642_v51 }
 0xd37   :  { %v7604_v27 = vpop.permute.xlu1 %7603  ;;  %v7587_v52 = vpop.permute.xlu0 %7586 }
 0xd38   :  { %8790 = vmatprep.subr.bf16.mxu0 %v7587_v52  ;;  %8863 = vmatprep.subr.bf16.mxu1 %v7604_v27 }
 0xd39   :  { %8791 = vmatpush3.bf16.msra.mxu0 %v7626_v55  ;;  %8864 = vmatpush3.bf16.msra.mxu1 %v7604_v27 }
 0xd3b   :  { %v7607_v13 = vpop.permute.xlu0 %7606  ;;  %v7609_v33 = vpop.permute.xlu1 %7608 }
 0xd3c   :  { %7796 = vmatmul.mubr.bf16.vlgmr.msra.gmra.mrb[60].mxu0 %v9680_v17  ;;  %8865 = vmatprep.subr.bf16.mxu1 %v7607_v13 }
 0xd3d   :  { %8866 = vmatpush3.bf16.msra.mxu1 %v7607_v13  ;;  %7803 = vmatprep.mubr.bf16.mxu0 %v9683_v10 }
 0xd3f   :  { %v7612_v15 = vpop.permute.xlu0 %7611  ;;  %v7614_v18 = vpop.permute.xlu1 %7613 }
 0xd40   :  { %v7646_v6 = vsel %vm14237_vm8, %v7609_v33, %v7612_v15 }
 0xd41   :  { %8867 = vmatprep.subr.bf16.mxu1 %v7646_v6 }
 0xd42   :  { %8868 = vmatpush3.bf16.msra.mxu1 %v7646_v6 }
 0xd43   :  { %8869 = vmatprep.subr.bf16.mxu1 %v7614_v18 }
 0xd44   :  { %7804 = vmatmul.mubr.bf16.gmra.mrb[64].mxu0 %v9685_v40 }
 0xd45   :  { %7811 = vmatprep.mubr.bf16.mxu0 %v9688_v56 }
 0xd46   :  { %8870 = vmatpush3.bf16.msra.mxu1 %v7614_v18 }
 0xd47   :  { %8879 = vmatprep.subr.bf16.mxu1 %v14238_v7 }
 0xd49   :  { %8872 = vmatmul.mubr.bf16.vlgmr.msra.gmra.mrb[60].mxu1 %v9687_v21 }
 0xd4a   :  { %8875 = vmatprep.mubr.bf16.mxu1 %v9691_v0 }
 0xd4c   :  { %7812 = vmatmul.mubr.bf16.gmra.mrb[68].mxu0 %v9690_v59  ;;  %v7986_v59 = vld [vmem:[%s13966_s11 + $0x10] sm:$0xff] }
 0xd4d   :  { %7819 = vmatprep.mubr.bf16.mxu0 %v8678_v53  ;;  %v8035_v53 = vld [vmem:[%s13967_s12 + $0x10] sm:$0xff] }
 0xd50   :  { %v7672_v22 = vpop.permute.xlu0 %7671  ;;  %v7677_v26 = vpop.permute.xlu1 %7676 }
 0xd51   :  { %8876 = vmatmul.mubr.bf16.gmra.mrb[64].mxu1 %v9692_v57  ;;  %v7988_v57 = vld [vmem:[%s13966_s11 + $0x20] sm:$0xff] }
 0xd52   :  { %8887 = vmatprep.mubr.msk.bf16.mxu1 %vm14239_vm15, %v14238_v7 }
 0xd54   :  { %7820 = vmatmul.mubr.bf16.gmra.mrb[72].mxu0 %v8677_v38  ;;  %v7682_v41 = vpop.permute.xlu0 %7681  ;;  %v7687_v37 = vpop.permute.xlu1 %7686  ;;  %v8034_v38 = vld [vmem:[%s13967_s12 + $0x8] sm:$0xff] }
 0xd58   :  { %v7692_v43 = vpop.permute.xlu0 %7691  ;;  %v7697_v36 = vpop.permute.xlu1 %7696 }
 0xd5c   :  { %v7702_v6 = vpop.permute.xlu0 %7701 }
 0xe0f   :  { %v8792_v45 = vpop.f32.mrb[60].mxu0 }
 0xe10   :  { %v8793_v61 = vpop.f32.mrb[61].mxu0 }
 0xe11   :  { %v8794_v25 = vadd.f32 %v8793_v61, %v8792_v45  ;;  %v8795_v2 = vpop.f32.mrb[62].mxu0  ;;  %v8037_v45 = vld [vmem:[%s13967_s12 + $0x20] sm:$0xff]  ;;  %v7987_v61 = vld [vmem:[%s13966_s11 + $0x18] sm:$0xff] }
 0xe12   :  { %v8796_v58 = vpop.f32.mrb[63].mxu0 }
 0xe13   :  { %v8797_v30 = vadd.f32 %v8796_v58, %v8795_v2  ;;  %v7798_v1 = vadd.f32 %v8794_v25, %v7672_v22  ;;  %v8036_v25 = vld [vmem:[%s13967_s12 + $0x18] sm:$0xff]  ;;  %v7989_v2 = vld [vmem:[%s13966_s11 + $0x28] sm:$0xff] }
 0xe14   :  { %v8038_v58 = vld [vmem:[%s13967_s12 + $0x28] sm:$0xff] }
 0xe15   :  { %v7801_v63 = vadd.f32 %v8797_v30, %v7677_v26  ;;  %v13873_v30 = vpop.permute.xlu1 %7998  ;;  %v13877_v26 = vpop.permute.xlu0 %7993 }
 0xe17   :  { %v8798_v4 = vpop.f32.mrb[64].mxu0 }
 0xe18   :  { %v8799_v11 = vpop.f32.mrb[65].mxu0 }
 0xe19   :  { %v8800_v32 = vadd.f32 %v8799_v11, %v8798_v4  ;;  %v8801_v39 = vpop.f32.mrb[66].mxu0  ;;  %v13875_v22 = vpop.permute.xlu1 %8042 }
 0xe1a   :  { %v8802_v62 = vpop.f32.mrb[67].mxu0 }
 0xe1b   :  { %v8803_v31 = vadd.f32 %v8802_v62, %v8801_v39  ;;  %v7806_v24 = vadd.f32 %v8800_v32, %v7682_v41 }
 0xe1c   :  { %v8873_v47 = vpop.f32.mrb[60].mxu1 }
 0xe1d   :  { %v13824_v50 = vadd.f32 %v8873_v47, %v7806_v24  ;;  %v7861_v34 = vpop.f32.mrb[61].mxu1  ;;  %v7809_v49 = vadd.f32 %v8803_v31, %v7687_v37 }
 0xe1e   :  { %v13826_v5 = vadd.f32 %v7861_v34, %v7798_v1  ;;  %v8874_v3 = vpop.f32.mrb[62].mxu1 }
 0xe1f   :  { %v13828_v9 = vadd.f32 %v8874_v3, %v7809_v49  ;;  %v8804_v29 = vpop.f32.mrb[68].mxu0  ;;  %v7864_v23 = vpop.f32.mrb[63].mxu1  ;;  %v7898_v52 = vsel %vm7891_vm5, %v13824_v50, 0.0 }
 0xe20   :  { %v13830_v20 = vadd.f32 %v7864_v23, %v7801_v63  ;;  %v8805_v14 = vpop.f32.mrb[69].mxu0  ;;  %v7892_v16 = vsel %vm7891_vm5, %v13826_v5, 0.0 }
 0xe21   :  { %v8806_v54 = vadd.f32 %v8805_v14, %v8804_v29  ;;  %v8807_v48 = vpop.f32.mrb[70].mxu0  ;;  %7893 = vadd.xlane.f32.xlu1 %v7892_v16  ;;  %v7901_v19 = vsel %vm7891_vm5, %v13828_v9, 0.0 }
 0xe22   :  { %v8808_v60 = vpop.f32.mrb[71].mxu0  ;;  %v7895_v12 = vsel %vm7891_vm5, %v13830_v20, 0.0 }
 0xe23   :  { %v8809_v44 = vadd.f32 %v8808_v60, %v8807_v48  ;;  %7896 = vadd.xlane.f32.xlu0 %v7895_v12  ;;  %v7814_v35 = vadd.f32 %v8806_v54, %v7692_v43 }
 0xe24   :  { %v8877_v28 = vpop.f32.mrb[64].mxu1 }
 0xe25   :  { %v7877_v51 = vpop.f32.mrb[65].mxu1  ;;  %7902 = vadd.xlane.f32.xlu1 %v7901_v19  ;;  %v7817_v46 = vadd.f32 %v8809_v44, %v7697_v36 }
 0xe26   :  { %v13838_v8 = vadd.f32 %v7877_v51, %v7814_v35  ;;  %v8878_v27 = vpop.f32.mrb[66].mxu1 }
 0xe27   :  { %v8810_v55 = vpop.f32.mrb[72].mxu0  ;;  %v7880_v17 = vpop.f32.mrb[67].mxu1  ;;  %7899 = vadd.xlane.f32.xlu0 %v7898_v52  ;;  %v7990_v27 = vld [vmem:[%s13966_s11 + $0x30] sm:$0x3]  ;;  %v8096_v52 = vld [vmem:[%s13968_s14 + $0x8] sm:$0x3] }
 0xe28   :  { %v7881_v10 = vadd.f32 %v7880_v17, %v7817_v46  ;;  %v8811_v13 = vpop.f32.mrb[73].mxu0  ;;  %v7904_v18 = vsel %vm7891_vm5, %v13838_v8, 0.0 }
 0xe29   :  { %v8812_v33 = vadd.f32 %v8811_v13, %v8810_v55  ;;  %v8813_v15 = vpop.f32.mrb[74].mxu0  ;;  %v8095_v55 = vld [vmem:[%s13968_s14] sm:$0xff] }
 0xe2a   :  { %v8814_v40 = vpop.f32.mrb[75].mxu0  ;;  %v7907_v56 = vsel %vm7891_vm5, %v7881_v10, 0.0 }
 0xe2b   :  { %v7822_v21 = vadd.f32 %v8812_v33, %v7702_v6  ;;  %7908 = vadd.xlane.f32.xlu1 %v7907_v56  ;;  %7905 = vadd.xlane.f32.xlu0 %v7904_v18 }
 0xe2d   :  { %v7886_v0 = vadd.f32 %v8877_v28, %v7822_v21 }
 0xe2f   :  { %v7911_v42 = vsel %vm7910_vm4, %v7886_v0, 0.0 }
 0xe30   :  { %7912 = vadd.xlane.f32.xlu0 %v7911_v42 }
 0xe3c   :  { %8003 = vperm.xlu1 %8993, %v7986_v59  }
 0xe40   :  { %8052 = vperm.xlu1 %8993, %v8035_v53  }
 0xe44   :  { %8013 = vperm.xlu1 %8993, %v7988_v57  }
 0xe46   :  { %8047 = vperm.xlu0 %8992, %v8034_v38  }
 0xe48   :  { %8062 = vperm.xlu1 %8993, %v8037_v45  }
 0xe4a   :  { %8008 = vperm.xlu0 %8992, %v7987_v61  }
 0xe4e   :  { %8057 = vperm.xlu0 %8992, %v8036_v25  }
 0xe52   :  { %8018 = vperm.xlu0 %8992, %v7989_v2  }
 0xe56   :  { %8067 = vperm.xlu0 %8992, %v8038_v58  }
 0xeae   :  { %v7894_v4 = vpop.xlane.xlu1 %7893 }
 0xeaf   :  { %v7914_v11 = vmul.f32 0.25, %v7894_v4 }
 0xeb0   :  { %v7897_v32 = vpop.xlane.xlu0 %7896 }
 0xeb1   :  { %v13880_v39 = vsub.f32 %v13826_v5, %v7914_v11  ;;  %v7915_v41 = vmul.f32 0.25, %v7897_v32 }
 0xeb2   :  { %v7903_v62 = vpop.xlane.xlu1 %7902 }
 0xeb3   :  { %v13883_v31 = vsub.f32 %v13830_v20, %v7915_v41  ;;  %v7917_v24 = vmul.f32 0.25, %v7903_v62  ;;  %v7928_v37 = vmul.f32 %v13880_v39, %v13880_v39 }
 0xeb4   :  { %v7900_v47 = vpop.xlane.xlu0 %7899 }
 0xeb5   :  { %v13888_v1 = vsub.f32 %v13828_v9, %v7917_v24  ;;  %v7916_v34 = vmul.f32 0.25, %v7900_v47  ;;  %v7935_v49 = vsel %vm7891_vm5, %v7928_v37, 0.0  ;;  %v7929_v5 = vmul.f32 %v13883_v31, %v13883_v31 }
 0xeb6   :  { %7936 = vadd.xlane.f32.xlu1 %v7935_v49 }
 0xeb7   :  { %v13894_v3 = vsub.f32 %v13824_v50, %v7916_v34  ;;  %v7938_v63 = vsel %vm7891_vm5, %v7929_v5, 0.0  ;;  %v7931_v29 = vmul.f32 %v13888_v1, %v13888_v1 }
 0xeb8   :  { %v7909_v23 = vpop.xlane.xlu1 %7908  ;;  %7939 = vadd.xlane.f32.xlu0 %v7938_v63  ;;  %v7906_v20 = vpop.xlane.xlu0 %7905 }
 0xeb9   :  { %v7919_v9 = vmul.f32 0.25, %v7909_v23  ;;  %v7918_v14 = vmul.f32 0.25, %v7906_v20  ;;  %v7930_v16 = vmul.f32 %v13894_v3, %v13894_v3  ;;  %v7944_v50 = vsel %vm7891_vm5, %v7931_v29, 0.0 }
 0xebb   :  { %v13901_v54 = vsub.f32 %v7881_v10, %v7919_v9  ;;  %v13904_v48 = vsub.f32 %v13838_v8, %v7918_v14  ;;  %v7941_v43 = vsel %vm7891_vm5, %v7930_v16, 0.0  ;;  %v8039_v8 = vld [vmem:[%s13967_s12 + $0x30] sm:$0x3] }
 0xebc   :  { %7945 = vadd.xlane.f32.xlu0 %v7944_v50  ;;  %7942 = vadd.xlane.f32.xlu1 %v7941_v43  ;;  %v8004_v10 = vpop.permute.xlu1 %8003 }
 0xebd   :  { %v7913_v60 = vpop.xlane.xlu0 %7912  ;;  %v7933_v12 = vmul.f32 %v13901_v54, %v13901_v54  ;;  %v7932_v44 = vmul.f32 %v13904_v48, %v13904_v48 }
 0xebe   :  { %v7920_v35 = vmul.f32 0.25, %v7913_v60 }
 0xebf   :  { %v7950_v36 = vsel %vm7891_vm5, %v7933_v12, 0.0  ;;  %v7947_v28 = vsel %vm7891_vm5, %v7932_v44, 0.0 }
 0xec0   :  { %v13914_v19 = vsub.f32 %v7886_v0, %v7920_v35  ;;  %7951 = vadd.xlane.f32.xlu0 %v7950_v36  ;;  %7948 = vadd.xlane.f32.xlu1 %v7947_v28  ;;  %v8053_v33 = vpop.permute.xlu1 %8052 }
 0xec2   :  { %v7934_v51 = vmul.f32 %v13914_v19, %v13914_v19 }
 0xec4   :  { %v7953_v46 = vsel %vm7910_vm4, %v7934_v51, 0.0  ;;  %v8014_v6 = vpop.permute.xlu1 %8013 }
 0xec5   :  { %7954 = vadd.xlane.f32.xlu1 %v7953_v46  ;;  %v8048_v17 = vpop.permute.xlu0 %8047 }
 0xec8   :  { %v8063_v56 = vpop.permute.xlu1 %8062 }
 0xec9   :  { %v8009_v13 = vpop.permute.xlu0 %8008 }
 0xecd   :  { %v8058_v15 = vpop.permute.xlu0 %8057 }
 0xed1   :  { %v8019_v40 = vpop.permute.xlu0 %8018 }
 0xed5   :  { %v8068_v18 = vpop.permute.xlu0 %8067 }
 0xed6   :  { %8072 = vperm.xlu0 %8992, %v8039_v8   ;;  %8023 = vperm.xlu1 %8993, %v7990_v27  }
 0xeda   :  { %8104 = vperm.xlu0 %8992, %v8096_v52   ;;  %8099 = vperm.xlu1 %8993, %v8095_v55  }
 0xf43   :  { %v7937_v21 = vpop.xlane.xlu1 %7936 }
 0xf44   :  { %v7956_v0 = vmul.f32 0.25, %v7937_v21 }
 0xf45   :  { %v7940_v42 = vpop.xlane.xlu0 %7939 }
 0xf46   :  { %v7963_v59 = vadd.f32 1e-05, %v7956_v0  ;;  %v7957_v53 = vmul.f32 0.25, %v7940_v42 }
 0xf48   :  { %9702 = vrsqrt.f32 %v7963_v59  ;;  %v7964_v57 = vadd.f32 1e-05, %v7957_v53 }
 0xf49   :  { %v7943_v38 = vpop.xlane.xlu1 %7942  ;;  %v7946_v45 = vpop.xlane.xlu0 %7945 }
 0xf4a   :  { %9704 = vrsqrt.f32 %v7964_v57  ;;  %v7958_v61 = vmul.f32 0.25, %v7943_v38  ;;  %v7959_v25 = vmul.f32 0.25, %v7946_v45 }
 0xf4c   :  { %v7965_v2 = vadd.f32 1e-05, %v7958_v61  ;;  %v7966_v58 = vadd.f32 1e-05, %v7959_v25 }
 0xf4d   :  { %v7949_v4 = vpop.xlane.xlu1 %7948  ;;  %v7952_v11 = vpop.xlane.xlu0 %7951 }
 0xf4e   :  { %9706 = vrsqrt.f32 %v7965_v2  ;;  %v7960_v32 = vmul.f32 0.25, %v7949_v4  ;;  %v7961_v41 = vmul.f32 0.25, %v7952_v11 }
 0xf4f   :  { %9708 = vrsqrt.f32 %v7966_v58 }
 0xf50   :  { %v7967_v62 = vadd.f32 1e-05, %v7960_v32  ;;  %v7968_v24 = vadd.f32 1e-05, %v7961_v41 }
 0xf52   :  { %v9703_v37 = vpop.eup %9702  ;;  %9710 = vrsqrt.f32 %v7967_v62  ;;  %v7955_v47 = vpop.xlane.xlu1 %7954 }
 0xf53   :  { %v7977_v34 = vmul.f32 %v9703_v37, %v13880_v39  ;;  %9712 = vrsqrt.f32 %v7968_v24  ;;  %v7962_v49 = vmul.f32 0.25, %v7955_v47 }
 0xf54   :  { %v9705_v5 = vpop.eup %9704 }
 0xf55   :  { %v7978_v63 = vmul.f32 %v9705_v5, %v13883_v31  ;;  %v7969_v29 = vadd.f32 1e-05, %v7962_v49  ;;  %v8026_v23 = vmul.f32 %v13877_v26, %v7977_v34 }
 0xf57   :  { %9714 = vrsqrt.f32 %v7969_v29  ;;  %v8027_v20 = vmul.f32 %v13873_v30, %v7978_v63  ;;  %v8075_v9 = vadd.f32 %v13875_v22, %v8026_v23 }
 0xf58   :  { %v9707_v14 = vpop.eup %9706 }
 0xf59   :  { %v9709_v16 = vpop.eup %9708  ;;  %v7979_v50 = vmul.f32 %v9707_v14, %v13894_v3  ;;  %v8076_v43 = vadd.f32 %v8048_v17, %v8027_v20  ;;  %v8082_v60 = vmax.f32 %v8075_v9, 0.0 }
 0xf5a   :  { %v7980_v39 = vmul.f32 %v9709_v16, %v13888_v1 }
 0xf5b   :  { %v8083_v12 = vmax.f32 %v8076_v43, 0.0  ;;  %v8028_v44 = vmul.f32 %v8004_v10, %v7979_v50 }
 0xf5c   :  { %v9711_v35 = vpop.eup %9710  ;;  %v8029_v31 = vmul.f32 %v8009_v13, %v7980_v39  ;;  %v8024_v13 = vpop.permute.xlu1 %8023 }
 0xf5d   :  { %v9713_v36 = vpop.eup %9712  ;;  %v7981_v26 = vmul.f32 %v9711_v35, %v13904_v48  ;;  %v8091_v28 = vpack.c.bf16 %v8083_v12, %v8082_v60  ;;  %v8077_v51 = vadd.f32 %v8053_v33, %v8028_v44 }
 0xf5e   :  { %v7982_v30 = vmul.f32 %v9713_v36, %v13901_v54  ;;  %v8078_v22 = vadd.f32 %v8058_v15, %v8029_v31  ;;  %v8073_v54 = vpop.permute.xlu0 %8072 }
 0xf5f   :  { %8880 = vmatpush3.bf16.msra.mxu1 %v8091_v28  ;;  %v8084_v46 = vmax.f32 %v8077_v51, 0.0  ;;  %v8030_v8 = vmul.f32 %v8014_v6, %v7981_v26 }
 0xf60   :  { %8881 = vmatprep.subr.bf16.mxu1 %v14238_v7  ;;  %v8085_v3 = vmax.f32 %v8078_v22, 0.0  ;;  %v8031_v1 = vmul.f32 %v8019_v40, %v7982_v30 }
 0xf61   :  { %v9715_v27 = vpop.eup %9714  ;;  %v8079_v52 = vadd.f32 %v8063_v56, %v8030_v8 }
 0xf62   :  { %v7983_v55 = vmul.f32 %v9715_v27, %v13914_v19  ;;  %v8092_v17 = vpack.c.bf16 %v8085_v3, %v8084_v46  ;;  %v8080_v10 = vadd.f32 %v8068_v18, %v8031_v1  ;;  %v9695_v19 = vld [vmem:[%s13969_s13] sm:$0x1f]   ;;  %v8100_v18 = vpop.permute.xlu1 %8099  ;;  %v8105_v57 = vpop.permute.xlu0 %8104 }
 0xf63   :  { %v8086_v48 = vmax.f32 %v8079_v52, 0.0 }
 0xf64   :  { %v8032_v21 = vmul.f32 %v8024_v13, %v7983_v55  ;;  %8882 = vmatpush3.bf16.msra.mxu1 %v8092_v17  ;;  %v8087_v33 = vmax.f32 %v8080_v10, 0.0 }
 0xf65   :  { %8883 = vmatprep.subr.bf16.mxu1 %v14238_v7 }
 0xf66   :  { %v8081_v15 = vadd.f32 %v8073_v54, %v8032_v21  ;;  %v8093_v6 = vpack.c.bf16 %v8087_v33, %v8086_v48 }
 0xf68   :  { %v8088_v0 = vmax.f32 %v8081_v15, 0.0  ;;  %8884 = vmatpush3.bf16.msra.mxu1 %v8093_v6 }
 0xf69   :  { %8885 = vmatprep.subr.bf16.mxu1 %v14238_v7 }
 0xf6a   :  { %v8094_v40 = vpack.c.bf16 %v8088_v0, %v8088_v0 }
 0xf6c   :  { %v8118_v56 = vsel %vm8116_vm14, %v8094_v40, 0 }
 0xf6d   :  { %8886 = vmatpush3.bf16.msra.mxu1 %v8118_v56 }
 0xf70   :  { %8888 = vmatmul.mubr.msk.bf16.vlgmr.msra.gmra.mrb[68].mxu1 %vm8112_vm0, %v9695_v19 }
0x1043   :  { %v8154_v42 = vpop.f32.mrb[68].mxu1 }
0x1044   :  { %v8155_v59 = vadd.f32 %v8154_v42, %v8100_v18  ;;  %v8889_v53 = vpop.f32.mrb[69].mxu1 }
0x1045   :  { %v8157_v38 = vpop.f32.mrb[70].mxu1 }
0x1046   :  { %v8161_v45 = vmax.f32 %v8155_v59, 0.0  ;;  %v8158_v61 = vadd.f32 %v8157_v38, %v8105_v57  ;;  %v8890_v25 = vpop.f32.mrb[71].mxu1 }
0x1048   :  { %8163 = vst.msk [vmem:[%s13970_s15] sm:$0xff] %vm7891_vm5, %v8161_v45  ;;  %v8162_v7 = vmax.f32 %v8158_v61, 0.0 }
0x104a   :  { %8164 = vst.msk [vmem:[%s13970_s15 + $0x8] sm:$0x3] %vm7910_vm4, %v8162_v7 }

</bundles_post_ra>
